<compile_context>
chip_gen: v5e
topology: v5e:2x2
jax: 0.10.0
libtpu: 0.0.40
codegen_flags: <defaults>
</compile_context>

<pallas_src>
import functools

import jax
import jax.numpy as jnp
import numpy as np
from jax import lax
from jax.experimental import pallas as pl
from jax.experimental.pallas import tpu as pltpu


# ----------------------------------------------------------------------------
# helpers used inside the kernel
# ----------------------------------------------------------------------------
def _prelu(x, a):
    return jnp.where(x > 0, x, a * x)


def _pad_hw1(x2d, H, W, C):
    """(H*W, C) -> (H+2, W+2, C) with a 1-pixel zero border (in-VMEM, no HBM)."""
    x3 = x2d.reshape(H, W, C)
    zr = jnp.zeros((1, W, C), x2d.dtype)
    x3 = jnp.concatenate([zr, x3, zr], axis=0)
    zc = jnp.zeros((H + 2, 1, C), x2d.dtype)
    return jnp.concatenate([zc, x3, zc], axis=1)


# ----------------------------------------------------------------------------
# Fused CrossScaleAttentionA kernel (one batch element per grid step)
# ----------------------------------------------------------------------------
def _csa_kernel(alpha_ref, xl_ref, xs_ref,
                w_asm_ref, b_asm_ref, w_m1_ref, b_m1_ref, w_m2_ref, b_m2_ref,
                o_ref, *,
                HL, WL, Hi, Wi, C, Cr, K,
                softmax_scale, res_scale, escape, average):
    P = HL * WL          # query positions (inputL grid)
    L = Hi * Wi          # key positions   (inputs grid)

    xl_cp = xl_ref[0]    # (C, P) channel-major (straight NCHW view, no HBM transpose)
    xs_cl = xs_ref[0]    # (C, L)

    # One in-VMEM relayout to (spatial, channel); replaces wrapper HBM transposes.
    xl = jnp.transpose(xl_cp)        # (P, C)
    xs = jnp.transpose(xs_cl)        # (L, C)

    # --- 1x1 conv stems + PReLU (plain MXU matmuls, stay in VMEM) ------------
    a_asm = alpha_ref[0]
    a_m1 = alpha_ref[1]
    a_m2 = alpha_ref[2]
    embed = _prelu(jnp.dot(xs, w_asm_ref[...], preferred_element_type=jnp.float32)
                   + b_asm_ref[...], a_asm)                       # (L, C)   conv_assembly
    refk = _prelu(jnp.dot(xs, w_m2_ref[...], preferred_element_type=jnp.float32)
                  + b_m2_ref[...], a_m2)                          # (L, Cr)  conv_match_2
    match = _prelu(jnp.dot(xl, w_m1_ref[...], preferred_element_type=jnp.float32)
                   + b_m1_ref[...], a_m1)                         # (P, Cr)  conv_match_1

    embed_p = _pad_hw1(embed, Hi, Wi, C)      # (Hi+2, Wi+2, C)
    ref_p = _pad_hw1(refk, Hi, Wi, Cr)        # (Hi+2, Wi+2, Cr)
    match_p = _pad_hw1(match, HL, WL, Cr)     # (HL+2, WL+2, Cr)

    # --- patch similarity: single im2col matmul -------------------------------
    # xk[l, :]  = 3x3 patch of `ref`   around key position l   (K*K*Cr columns)
    # xq[p, :]  = 3x3 patch of `match` around query position p
    xk = jnp.concatenate(
        [ref_p[dy:dy + Hi, dx:dx + Wi, :].reshape(L, Cr)
         for dy in range(K) for dx in range(K)], axis=-1)         # (L, K*K*Cr)
    xq = jnp.concatenate(
        [match_p[dy:dy + HL, dx:dx + WL, :].reshape(P, Cr)
         for dy in range(K) for dx in range(K)], axis=-1)         # (P, K*K*Cr)

    # wi_normed = wi / max(||wi||, escape_NaN); softmax_scale folded in here so
    # the (P, L) score map never needs a separate elementwise rescale.
    nrm = jnp.sqrt(jnp.sum(xk * xk, axis=1, keepdims=True))       # (L, 1)
    xk = xk * (softmax_scale / jnp.maximum(nrm, escape))

    s = lax.dot_general(xq, xk, (((1,), (1,)), ((), ())),
                        preferred_element_type=jnp.float32)       # (P, L)

    # softmax over key positions (last / lane axis)
    s = s - jnp.max(s, axis=-1, keepdims=True)
    p_exp = jnp.exp(s)
    att = p_exp / jnp.sum(p_exp, axis=-1, keepdims=True)          # (P, L)
    if not average:
        att = (att == jnp.max(att, axis=-1, keepdims=True)).astype(jnp.float32)

    # --- F.conv_transpose2d(att, raw_patches, stride=1, padding=1) ------------
    # raw patch l is a shifted window of embed_w, so:
    #   out[i,j,c] = sum_{dy,dx,l} att_pad[i+dy, j+dx, l]
    #                              * embed_pad[ly + K-1-dy, lx + K-1-dx, c]
    # expressed as ONE deep matmul (P, K*K*L) x (K*K*L, C).
    att_p = _pad_hw1(att, HL, WL, L)                              # (HL+2, WL+2, L)
    a_big = jnp.concatenate(
        [att_p[dy:dy + HL, dx:dx + WL, :].reshape(P, L)
         for dy in range(K) for dx in range(K)], axis=-1)         # (P, K*K*L)
    e_big = jnp.concatenate(
        [embed_p[K - 1 - dy:K - 1 - dy + Hi,
                 K - 1 - dx:K - 1 - dx + Wi, :].reshape(L, C)
         for dy in range(K) for dx in range(K)], axis=0)          # (K*K*L, C)
    out = jnp.dot(a_big, e_big, preferred_element_type=jnp.float32)   # (P, C)

    # residual:  y = attention_out + res * res_scale, written channel-major so
    # the output's lane dim is P (lane-dense stores, NCHW for free in wrapper).
    o_ref[0] = jnp.transpose(out) + res_scale * xl_cp             # (C, P)


def cross_scale_attention_a(inputL_nchw, inputs_nchw, params, *,
                            ksize=3, padding=1, stride=1,
                            softmax_scale=10.0, res_scale=1.0, average=True):
    assert ksize == 3 and padding == 1 and stride == 1, \
        "only the module defaults (ksize=3, padding=1, stride=1) are implemented"
    B, C, HL, WL = inputL_nchw.shape
    Bs, C2, Hi, Wi = inputs_nchw.shape
    assert Bs == B and C2 == C
    Cr = params["w_m1"].shape[-1]
    P = HL * WL
    L = Hi * Wi

    # Contiguous (free) reshapes of the NCHW tensors — no HBM transposes.
    xl = inputL_nchw.reshape(B, C, P).astype(jnp.float32)
    xs = inputs_nchw.reshape(B, C, L).astype(jnp.float32)

    alphas = jnp.stack([params["a_asm"], params["a_m1"],
                        params["a_m2"]]).astype(jnp.float32)            # (3,) -> SMEM

    kern = functools.partial(
        _csa_kernel, HL=HL, WL=WL, Hi=Hi, Wi=Wi, C=C, Cr=Cr, K=ksize,
        softmax_scale=float(softmax_scale), res_scale=float(res_scale),
        escape=1e-4, average=bool(average))

    out_cp = pl.pallas_call(
        kern,
        out_shape=jax.ShapeDtypeStruct((B, C, P), jnp.float32),
        grid=(B,),
        in_specs=[
            pl.BlockSpec(memory_space=pltpu.MemorySpace.SMEM),          # PReLU alphas
            pl.BlockSpec((1, C, P), lambda n: (n, 0, 0)),               # inputL (NCHW view)
            pl.BlockSpec((1, C, L), lambda n: (n, 0, 0)),               # inputs (NCHW view)
            pl.BlockSpec((C, C), lambda n: (0, 0)),                     # conv_assembly w
            pl.BlockSpec((1, C), lambda n: (0, 0)),                     # conv_assembly b
            pl.BlockSpec((C, Cr), lambda n: (0, 0)),                    # conv_match_1 w
            pl.BlockSpec((1, Cr), lambda n: (0, 0)),                    # conv_match_1 b
            pl.BlockSpec((C, Cr), lambda n: (0, 0)),                    # conv_match_2 w
            pl.BlockSpec((1, Cr), lambda n: (0, 0)),                    # conv_match_2 b
        ],
        out_specs=pl.BlockSpec((1, C, P), lambda n: (n, 0, 0)),
        compiler_params=pltpu.CompilerParams(
            dimension_semantics=("parallel",)),
    )(alphas, xl, xs,
      params["w_asm"], params["b_asm"].reshape(1, C),
      params["w_m1"], params["b_m1"].reshape(1, Cr),
      params["w_m2"], params["b_m2"].reshape(1, Cr))

    return out_cp.reshape(B, C, HL, WL)                                 # free reshape


# ----------------------------------------------------------------------------
# Pure-JAX reference (mirrors the PyTorch forward with lax convolutions)
# ----------------------------------------------------------------------------
def cross_scale_attention_a_ref(inputL_nchw, inputs_nchw, params, *,
                                softmax_scale=10.0, res_scale=1.0, average=True):
    B = inputL_nchw.shape[0]
    hp = lax.Precision.HIGHEST

    def conv1x1_prelu(x, w, b, a):
        y = jnp.einsum("bchw,cd->bdhw", x, w, precision=hp) + b[None, :, None, None]
        return jnp.where(y > 0, y, a * y)

    embed = conv1x1_prelu(inputs_nchw, params["w_asm"], params["b_asm"], params["a_asm"])
    refk = conv1x1_prelu(inputs_nchw, params["w_m2"], params["b_m2"], params["a_m2"])
    match = conv1x1_prelu(inputL_nchw, params["w_m1"], params["b_m1"], params["a_m1"])

    def patches(x, k=3):     # extract_image_patches(..., 'same') -> (B, L, Cc, k, k)
        b_, cc, h, w = x.shape
        xp = jnp.pad(x, ((0, 0), (0, 0), (1, 1), (1, 1)))
        cols = [xp[:, :, dy:dy + h, dx:dx + w] for dy in range(k) for dx in range(k)]
        st = jnp.stack(cols, axis=0).reshape(k, k, b_, cc, h, w)
        return jnp.transpose(st, (2, 4, 5, 3, 0, 1)).reshape(b_, h * w, cc, k, k)

    w_p = patches(refk)      # (B, L, Cr, 3, 3)
    raw_p = patches(embed)   # (B, L, C, 3, 3)

    outs = []
    for b in range(B):
        wi = w_p[b]
        max_wi = jnp.maximum(
            jnp.sqrt(jnp.sum(wi * wi, axis=(1, 2, 3), keepdims=True)), 1e-4)
        wi_n = wi / max_wi
        xi = jnp.pad(match[b:b + 1], ((0, 0), (0, 0), (1, 1), (1, 1)))
        yi = lax.conv_general_dilated(xi, wi_n, (1, 1), "VALID",
                                      dimension_numbers=("NCHW", "OIHW", "NCHW"),
                                      precision=hp)                 # (1, L, HL, WL)
        yi = jax.nn.softmax(yi * softmax_scale, axis=1)
        if not average:
            yi = (yi == jnp.max(yi, axis=1, keepdims=True)).astype(yi.dtype)
        wc = raw_p[b]                                               # (L, C, 3, 3)
        # conv_transpose2d(yi, wc, stride=1, padding=1) == conv2d with flipped kernel
        wflip = jnp.transpose(wc[:, :, ::-1, ::-1], (1, 0, 2, 3))   # (C, L, 3, 3)
        yo = lax.conv_general_dilated(yi, wflip, (1, 1), [(1, 1), (1, 1)],
                                      dimension_numbers=("NCHW", "OIHW", "NCHW"),
                                      precision=hp)                 # (1, C, HL, WL)
        outs.append(yo)
    y = jnp.concatenate(outs, axis=0)
    return y + res_scale * inputL_nchw


# ----------------------------------------------------------------------------
# Deterministic parameter init (shapes from CrossScaleAttentionA.__init__)
# ----------------------------------------------------------------------------
def init_params(key, channel, reduction=2):
    C = channel
    Cr = C // reduction
    ks = jax.random.split(key, 6)

    def w(k, shape, scale=0.1):
        return scale * jax.random.normal(k, shape, jnp.float32)

    return {
        "w_asm": w(ks[0], (C, C)),   "b_asm": w(ks[1], (C,), 0.02),   # conv_assembly
        "w_m1":  w(ks[2], (C, Cr)),  "b_m1":  w(ks[3], (Cr,), 0.02),  # conv_match_1
        "w_m2":  w(ks[4], (C, Cr)),  "b_m2":  w(ks[5], (Cr,), 0.02),  # conv_match_2
        # each BasicBlock has its own single-parameter nn.PReLU()
        "a_asm": jnp.float32(0.25),
        "a_m1":  jnp.float32(0.20),
        "a_m2":  jnp.float32(0.30),
    }


if __name__ == "__main__":
    B, channel = 2, 32                  # small test config (default module: channel=256)
    reduction, ksize, padding, stride = 2, 3, 1, 1
    softmax_scale, res_scale = 10.0, 1.0
    HL = WL = 16                        # inputL resolution (residual / query grid)
    Hi = Wi = 8                         # inputs resolution (key/value grid, scale=2)

    key = jax.random.PRNGKey(0)
    k1, k2, kp = jax.random.split(key, 3)
    inputL = jax.random.normal(k1, (B, channel, HL, WL), jnp.float32)   # NCHW
    inputs = jax.random.normal(k2, (B, channel, Hi, Wi), jnp.float32)   # NCHW
    params = init_params(kp, channel, reduction)

    out = cross_scale_attention_a(inputL, inputs, params,
                                  ksize=ksize, padding=padding, stride=stride,
                                  softmax_scale=softmax_scale,
                                  res_scale=res_scale, average=True)
    out = jax.block_until_ready(out)
    assert out.shape == (B, channel, HL, WL)

    ref = jax.block_until_ready(
        cross_scale_attention_a_ref(inputL, inputs, params,
                                    softmax_scale=softmax_scale,
                                    res_scale=res_scale, average=True))
    np.testing.assert_allclose(np.asarray(out), np.asarray(ref), rtol=1e-2, atol=1e-2)

    print("KERNEL_OK")
</pallas_src>

<mosaic_0001>
module attributes {stable_mosaic.version = 11 : i64} {
  func.func @_csa_kernel(%arg0: i32, %arg1: memref<3xf32, #tpu.memory_space<smem>>, %arg2: memref<1x32x256xf32, #tpu.memory_space<vmem>>, %arg3: memref<1x32x64xf32, #tpu.memory_space<vmem>>, %arg4: memref<32x32xf32, #tpu.memory_space<vmem>>, %arg5: memref<1x32xf32, #tpu.memory_space<vmem>>, %arg6: memref<32x16xf32, #tpu.memory_space<vmem>>, %arg7: memref<1x16xf32, #tpu.memory_space<vmem>>, %arg8: memref<32x16xf32, #tpu.memory_space<vmem>>, %arg9: memref<1x16xf32, #tpu.memory_space<vmem>>, %arg10: memref<1x32x256xf32, #tpu.memory_space<vmem>>) attributes {dimension_semantics = [#tpu.dimension_semantics<parallel>], iteration_bounds = array<i64: 2>, scalar_prefetch = 0 : i64, scratch_operands = 0 : i64, tpu.core_type = #tpu.core_type<tc>, window_params = [{transform_indices = @transform_0, window_bounds = array<i64: 3>}, {transform_indices = @transform_1, window_bounds = array<i64: 1, 32, 256>}, {transform_indices = @transform_2, window_bounds = array<i64: 1, 32, 64>}, {pipeline_mode = #tpu.pipeline_mode<synchronous>, transform_indices = @transform_3, window_bounds = array<i64: 32, 32>}, {pipeline_mode = #tpu.pipeline_mode<synchronous>, transform_indices = @transform_4, window_bounds = array<i64: 1, 32>}, {pipeline_mode = #tpu.pipeline_mode<synchronous>, transform_indices = @transform_5, window_bounds = array<i64: 32, 16>}, {pipeline_mode = #tpu.pipeline_mode<synchronous>, transform_indices = @transform_6, window_bounds = array<i64: 1, 16>}, {pipeline_mode = #tpu.pipeline_mode<synchronous>, transform_indices = @transform_7, window_bounds = array<i64: 32, 16>}, {pipeline_mode = #tpu.pipeline_mode<synchronous>, transform_indices = @transform_8, window_bounds = array<i64: 1, 16>}, {transform_indices = @transform_9, window_bounds = array<i64: 1, 32, 256>}]} {
    %c0 = arith.constant 0 : index
    %c0_0 = arith.constant 0 : index
    %c0_1 = arith.constant 0 : index
    %0 = vector.load %arg2[%c0, %c0_0, %c0_1] : memref<1x32x256xf32, #tpu.memory_space<vmem>>, vector<1x32x256xf32>
    %1 = vector.shape_cast %0 : vector<1x32x256xf32> to vector<32x256xf32>
    %c0_2 = arith.constant 0 : index
    %c0_3 = arith.constant 0 : index
    %c0_4 = arith.constant 0 : index
    %2 = vector.load %arg3[%c0_2, %c0_3, %c0_4] : memref<1x32x64xf32, #tpu.memory_space<vmem>>, vector<1x32x64xf32>
    %3 = vector.shape_cast %2 : vector<1x32x64xf32> to vector<32x64xf32>
    %4 = tpu.transpose %1, [1, 0] : vector<32x256xf32> -> vector<256x32xf32>
    %5 = tpu.transpose %3, [1, 0] : vector<32x64xf32> -> vector<64x32xf32>
    %c0_5 = arith.constant 0 : index
    %6 = memref.load %arg1[%c0_5] : memref<3xf32, #tpu.memory_space<smem>>
    %c1 = arith.constant 1 : index
    %7 = memref.load %arg1[%c1] : memref<3xf32, #tpu.memory_space<smem>>
    %c2 = arith.constant 2 : index
    %8 = memref.load %arg1[%c2] : memref<3xf32, #tpu.memory_space<smem>>
    %c0_6 = arith.constant 0 : index
    %c0_7 = arith.constant 0 : index
    %9 = vector.load %arg4[%c0_6, %c0_7] : memref<32x32xf32, #tpu.memory_space<vmem>>, vector<32x32xf32>
    %cst = arith.constant dense<0.000000e+00> : vector<64x32xf32>
    %10 = tpu.matmul %5, %9, %cst {dimension_numbers = #tpu.dot_dimension_numbers<[1], [0], [0], [1], [0, 0, 1, 1], [], []>} : vector<64x32xf32>, vector<32x32xf32>, vector<64x32xf32> -> vector<64x32xf32>
    %c0_8 = arith.constant 0 : index
    %c0_9 = arith.constant 0 : index
    %11 = vector.load %arg5[%c0_8, %c0_9] : memref<1x32xf32, #tpu.memory_space<vmem>>, vector<1x32xf32>
    %12 = vector.broadcast %11 : vector<1x32xf32> to vector<64x32xf32>
    %13 = arith.addf %10, %12 : vector<64x32xf32>
    %cst_10 = arith.constant 0.000000e+00 : f32
    %14 = vector.broadcast %cst_10 : f32 to vector<64x32xf32>
    %15 = arith.cmpf ogt, %13, %14 : vector<64x32xf32>
    %16 = vector.broadcast %6 : f32 to vector<64x32xf32>
    %17 = arith.mulf %16, %13 : vector<64x32xf32>
    %18 = arith.select %15, %13, %17 : vector<64x32xi1>, vector<64x32xf32>
    %c0_11 = arith.constant 0 : index
    %c0_12 = arith.constant 0 : index
    %19 = vector.load %arg8[%c0_11, %c0_12] : memref<32x16xf32, #tpu.memory_space<vmem>>, vector<32x16xf32>
    %cst_13 = arith.constant dense<0.000000e+00> : vector<64x16xf32>
    %20 = tpu.matmul %5, %19, %cst_13 {dimension_numbers = #tpu.dot_dimension_numbers<[1], [0], [0], [1], [0, 0, 1, 1], [], []>} : vector<64x32xf32>, vector<32x16xf32>, vector<64x16xf32> -> vector<64x16xf32>
    %c0_14 = arith.constant 0 : index
    %c0_15 = arith.constant 0 : index
    %21 = vector.load %arg9[%c0_14, %c0_15] : memref<1x16xf32, #tpu.memory_space<vmem>>, vector<1x16xf32>
    %22 = vector.broadcast %21 : vector<1x16xf32> to vector<64x16xf32>
    %23 = arith.addf %20, %22 : vector<64x16xf32>
    %cst_16 = arith.constant 0.000000e+00 : f32
    %24 = vector.broadcast %cst_16 : f32 to vector<64x16xf32>
    %25 = arith.cmpf ogt, %23, %24 : vector<64x16xf32>
    %26 = vector.broadcast %8 : f32 to vector<64x16xf32>
    %27 = arith.mulf %26, %23 : vector<64x16xf32>
    %28 = arith.select %25, %23, %27 : vector<64x16xi1>, vector<64x16xf32>
    %c0_17 = arith.constant 0 : index
    %c0_18 = arith.constant 0 : index
    %29 = vector.load %arg6[%c0_17, %c0_18] : memref<32x16xf32, #tpu.memory_space<vmem>>, vector<32x16xf32>
    %cst_19 = arith.constant dense<0.000000e+00> : vector<256x16xf32>
    %30 = tpu.matmul %4, %29, %cst_19 {dimension_numbers = #tpu.dot_dimension_numbers<[1], [0], [0], [1], [0, 0, 1, 1], [], []>} : vector<256x32xf32>, vector<32x16xf32>, vector<256x16xf32> -> vector<256x16xf32>
    %c0_20 = arith.constant 0 : index
    %c0_21 = arith.constant 0 : index
    %31 = vector.load %arg7[%c0_20, %c0_21] : memref<1x16xf32, #tpu.memory_space<vmem>>, vector<1x16xf32>
    %32 = vector.broadcast %31 : vector<1x16xf32> to vector<256x16xf32>
    %33 = arith.addf %30, %32 : vector<256x16xf32>
    %cst_22 = arith.constant 0.000000e+00 : f32
    %34 = vector.broadcast %cst_22 : f32 to vector<256x16xf32>
    %35 = arith.cmpf ogt, %33, %34 : vector<256x16xf32>
    %36 = vector.broadcast %7 : f32 to vector<256x16xf32>
    %37 = arith.mulf %36, %33 : vector<256x16xf32>
    %38 = arith.select %35, %33, %37 : vector<256x16xi1>, vector<256x16xf32>
    %39 = vector.shape_cast %18 : vector<64x32xf32> to vector<8x8x32xf32>
    %cst_23 = arith.constant 0.000000e+00 : f32
    %40 = vector.broadcast %cst_23 : f32 to vector<1x8x32xf32>
    %41 = tpu.concatenate %40, %39, %40 in 0 : vector<1x8x32xf32>, vector<8x8x32xf32>, vector<1x8x32xf32> -> vector<10x8x32xf32>
    %cst_24 = arith.constant 0.000000e+00 : f32
    %42 = vector.broadcast %cst_24 : f32 to vector<10x1x32xf32>
    %43 = tpu.concatenate %42, %41, %42 in 1 : vector<10x1x32xf32>, vector<10x8x32xf32>, vector<10x1x32xf32> -> vector<10x10x32xf32>
    %44 = vector.shape_cast %28 : vector<64x16xf32> to vector<8x8x16xf32>
    %cst_25 = arith.constant 0.000000e+00 : f32
    %45 = vector.broadcast %cst_25 : f32 to vector<1x8x16xf32>
    %46 = tpu.concatenate %45, %44, %45 in 0 : vector<1x8x16xf32>, vector<8x8x16xf32>, vector<1x8x16xf32> -> vector<10x8x16xf32>
    %cst_26 = arith.constant 0.000000e+00 : f32
    %47 = vector.broadcast %cst_26 : f32 to vector<10x1x16xf32>
    %48 = tpu.concatenate %47, %46, %47 in 1 : vector<10x1x16xf32>, vector<10x8x16xf32>, vector<10x1x16xf32> -> vector<10x10x16xf32>
    %49 = vector.shape_cast %38 : vector<256x16xf32> to vector<16x16x16xf32>
    %cst_27 = arith.constant 0.000000e+00 : f32
    %50 = vector.broadcast %cst_27 : f32 to vector<1x16x16xf32>
    %51 = tpu.concatenate %50, %49, %50 in 0 : vector<1x16x16xf32>, vector<16x16x16xf32>, vector<1x16x16xf32> -> vector<18x16x16xf32>
    %cst_28 = arith.constant 0.000000e+00 : f32
    %52 = vector.broadcast %cst_28 : f32 to vector<18x1x16xf32>
    %53 = tpu.concatenate %52, %51, %52 in 1 : vector<18x1x16xf32>, vector<18x16x16xf32>, vector<18x1x16xf32> -> vector<18x18x16xf32>
    %54 = vector.extract_strided_slice %48 {offsets = [0, 0, 0], sizes = [8, 8, 16], strides = [1, 1, 1]} : vector<10x10x16xf32> to vector<8x8x16xf32>
    %55 = vector.shape_cast %54 : vector<8x8x16xf32> to vector<64x16xf32>
    %56 = vector.extract_strided_slice %48 {offsets = [0, 1, 0], sizes = [8, 8, 16], strides = [1, 1, 1]} : vector<10x10x16xf32> to vector<8x8x16xf32>
    %57 = vector.shape_cast %56 : vector<8x8x16xf32> to vector<64x16xf32>
    %58 = vector.extract_strided_slice %48 {offsets = [0, 2, 0], sizes = [8, 8, 16], strides = [1, 1, 1]} : vector<10x10x16xf32> to vector<8x8x16xf32>
    %59 = vector.shape_cast %58 : vector<8x8x16xf32> to vector<64x16xf32>
    %60 = vector.extract_strided_slice %48 {offsets = [1, 0, 0], sizes = [8, 8, 16], strides = [1, 1, 1]} : vector<10x10x16xf32> to vector<8x8x16xf32>
    %61 = vector.shape_cast %60 : vector<8x8x16xf32> to vector<64x16xf32>
    %62 = vector.extract_strided_slice %48 {offsets = [1, 1, 0], sizes = [8, 8, 16], strides = [1, 1, 1]} : vector<10x10x16xf32> to vector<8x8x16xf32>
    %63 = vector.shape_cast %62 : vector<8x8x16xf32> to vector<64x16xf32>
    %64 = vector.extract_strided_slice %48 {offsets = [1, 2, 0], sizes = [8, 8, 16], strides = [1, 1, 1]} : vector<10x10x16xf32> to vector<8x8x16xf32>
    %65 = vector.shape_cast %64 : vector<8x8x16xf32> to vector<64x16xf32>
    %66 = vector.extract_strided_slice %48 {offsets = [2, 0, 0], sizes = [8, 8, 16], strides = [1, 1, 1]} : vector<10x10x16xf32> to vector<8x8x16xf32>
    %67 = vector.shape_cast %66 : vector<8x8x16xf32> to vector<64x16xf32>
    %68 = vector.extract_strided_slice %48 {offsets = [2, 1, 0], sizes = [8, 8, 16], strides = [1, 1, 1]} : vector<10x10x16xf32> to vector<8x8x16xf32>
    %69 = vector.shape_cast %68 : vector<8x8x16xf32> to vector<64x16xf32>
    %70 = vector.extract_strided_slice %48 {offsets = [2, 2, 0], sizes = [8, 8, 16], strides = [1, 1, 1]} : vector<10x10x16xf32> to vector<8x8x16xf32>
    %71 = vector.shape_cast %70 : vector<8x8x16xf32> to vector<64x16xf32>
    %72 = tpu.concatenate %55, %57, %59, %61, %63, %65, %67, %69, %71 in 1 : vector<64x16xf32>, vector<64x16xf32>, vector<64x16xf32>, vector<64x16xf32>, vector<64x16xf32>, vector<64x16xf32>, vector<64x16xf32>, vector<64x16xf32>, vector<64x16xf32> -> vector<64x144xf32>
    %73 = vector.extract_strided_slice %53 {offsets = [0, 0, 0], sizes = [16, 16, 16], strides = [1, 1, 1]} : vector<18x18x16xf32> to vector<16x16x16xf32>
    %74 = vector.shape_cast %73 : vector<16x16x16xf32> to vector<256x16xf32>
    %75 = vector.extract_strided_slice %53 {offsets = [0, 1, 0], sizes = [16, 16, 16], strides = [1, 1, 1]} : vector<18x18x16xf32> to vector<16x16x16xf32>
    %76 = vector.shape_cast %75 : vector<16x16x16xf32> to vector<256x16xf32>
    %77 = vector.extract_strided_slice %53 {offsets = [0, 2, 0], sizes = [16, 16, 16], strides = [1, 1, 1]} : vector<18x18x16xf32> to vector<16x16x16xf32>
    %78 = vector.shape_cast %77 : vector<16x16x16xf32> to vector<256x16xf32>
    %79 = vector.extract_strided_slice %53 {offsets = [1, 0, 0], sizes = [16, 16, 16], strides = [1, 1, 1]} : vector<18x18x16xf32> to vector<16x16x16xf32>
    %80 = vector.shape_cast %79 : vector<16x16x16xf32> to vector<256x16xf32>
    %81 = vector.extract_strided_slice %53 {offsets = [1, 1, 0], sizes = [16, 16, 16], strides = [1, 1, 1]} : vector<18x18x16xf32> to vector<16x16x16xf32>
    %82 = vector.shape_cast %81 : vector<16x16x16xf32> to vector<256x16xf32>
    %83 = vector.extract_strided_slice %53 {offsets = [1, 2, 0], sizes = [16, 16, 16], strides = [1, 1, 1]} : vector<18x18x16xf32> to vector<16x16x16xf32>
    %84 = vector.shape_cast %83 : vector<16x16x16xf32> to vector<256x16xf32>
    %85 = vector.extract_strided_slice %53 {offsets = [2, 0, 0], sizes = [16, 16, 16], strides = [1, 1, 1]} : vector<18x18x16xf32> to vector<16x16x16xf32>
    %86 = vector.shape_cast %85 : vector<16x16x16xf32> to vector<256x16xf32>
    %87 = vector.extract_strided_slice %53 {offsets = [2, 1, 0], sizes = [16, 16, 16], strides = [1, 1, 1]} : vector<18x18x16xf32> to vector<16x16x16xf32>
    %88 = vector.shape_cast %87 : vector<16x16x16xf32> to vector<256x16xf32>
    %89 = vector.extract_strided_slice %53 {offsets = [2, 2, 0], sizes = [16, 16, 16], strides = [1, 1, 1]} : vector<18x18x16xf32> to vector<16x16x16xf32>
    %90 = vector.shape_cast %89 : vector<16x16x16xf32> to vector<256x16xf32>
    %91 = tpu.concatenate %74, %76, %78, %80, %82, %84, %86, %88, %90 in 1 : vector<256x16xf32>, vector<256x16xf32>, vector<256x16xf32>, vector<256x16xf32>, vector<256x16xf32>, vector<256x16xf32>, vector<256x16xf32>, vector<256x16xf32>, vector<256x16xf32> -> vector<256x144xf32>
    %92 = arith.mulf %72, %72 : vector<64x144xf32>
    %cst_29 = arith.constant dense<0.000000e+00> : vector<64xf32>
    %93 = vector.multi_reduction <add>, %92, %cst_29 [1] : vector<64x144xf32> to vector<64xf32>
    %94 = vector.shape_cast %93 : vector<64xf32> to vector<64x1xf32>
    %95 = math.sqrt %94 : vector<64x1xf32>
    %cst_30 = arith.constant 9.99999974E-5 : f32
    %96 = vector.broadcast %cst_30 : f32 to vector<64x1xf32>
    %97 = arith.maximumf %95, %96 : vector<64x1xf32>
    %cst_31 = arith.constant 1.000000e+01 : f32
    %98 = vector.broadcast %cst_31 : f32 to vector<64x1xf32>
    %99 = arith.divf %98, %97 : vector<64x1xf32>
    %100 = vector.broadcast %99 : vector<64x1xf32> to vector<64x144xf32>
    %101 = arith.mulf %72, %100 : vector<64x144xf32>
    %cst_32 = arith.constant dense<0.000000e+00> : vector<256x64xf32>
    %102 = tpu.matmul %91, %101, %cst_32 {dimension_numbers = #tpu.dot_dimension_numbers<[1], [1], [0], [0], [0, 0, 1, 0], [], []>} : vector<256x144xf32>, vector<64x144xf32>, vector<256x64xf32> -> vector<256x64xf32>
    %cst_33 = arith.constant dense<0xFF800000> : vector<256xf32>
    %103 = vector.multi_reduction <maximumf>, %102, %cst_33 [1] : vector<256x64xf32> to vector<256xf32>
    %104 = vector.shape_cast %103 : vector<256xf32> to vector<256x1xf32>
    %105 = vector.broadcast %104 : vector<256x1xf32> to vector<256x64xf32>
    %106 = arith.subf %102, %105 : vector<256x64xf32>
    %107 = math.exp %106 : vector<256x64xf32>
    %cst_34 = arith.constant dense<0.000000e+00> : vector<256xf32>
    %108 = vector.multi_reduction <add>, %107, %cst_34 [1] : vector<256x64xf32> to vector<256xf32>
    %109 = vector.shape_cast %108 : vector<256xf32> to vector<256x1xf32>
    %110 = vector.broadcast %109 : vector<256x1xf32> to vector<256x64xf32>
    %111 = arith.divf %107, %110 : vector<256x64xf32>
    %112 = vector.shape_cast %111 : vector<256x64xf32> to vector<16x16x64xf32>
    %cst_35 = arith.constant 0.000000e+00 : f32
    %113 = vector.broadcast %cst_35 : f32 to vector<1x16x64xf32>
    %114 = tpu.concatenate %113, %112, %113 in 0 : vector<1x16x64xf32>, vector<16x16x64xf32>, vector<1x16x64xf32> -> vector<18x16x64xf32>
    %cst_36 = arith.constant 0.000000e+00 : f32
    %115 = vector.broadcast %cst_36 : f32 to vector<18x1x64xf32>
    %116 = tpu.concatenate %115, %114, %115 in 1 : vector<18x1x64xf32>, vector<18x16x64xf32>, vector<18x1x64xf32> -> vector<18x18x64xf32>
    %117 = vector.extract_strided_slice %116 {offsets = [0, 0, 0], sizes = [16, 16, 64], strides = [1, 1, 1]} : vector<18x18x64xf32> to vector<16x16x64xf32>
    %118 = vector.shape_cast %117 : vector<16x16x64xf32> to vector<256x64xf32>
    %119 = vector.extract_strided_slice %116 {offsets = [0, 1, 0], sizes = [16, 16, 64], strides = [1, 1, 1]} : vector<18x18x64xf32> to vector<16x16x64xf32>
    %120 = vector.shape_cast %119 : vector<16x16x64xf32> to vector<256x64xf32>
    %121 = vector.extract_strided_slice %116 {offsets = [0, 2, 0], sizes = [16, 16, 64], strides = [1, 1, 1]} : vector<18x18x64xf32> to vector<16x16x64xf32>
    %122 = vector.shape_cast %121 : vector<16x16x64xf32> to vector<256x64xf32>
    %123 = vector.extract_strided_slice %116 {offsets = [1, 0, 0], sizes = [16, 16, 64], strides = [1, 1, 1]} : vector<18x18x64xf32> to vector<16x16x64xf32>
    %124 = vector.shape_cast %123 : vector<16x16x64xf32> to vector<256x64xf32>
    %125 = vector.extract_strided_slice %116 {offsets = [1, 1, 0], sizes = [16, 16, 64], strides = [1, 1, 1]} : vector<18x18x64xf32> to vector<16x16x64xf32>
    %126 = vector.shape_cast %125 : vector<16x16x64xf32> to vector<256x64xf32>
    %127 = vector.extract_strided_slice %116 {offsets = [1, 2, 0], sizes = [16, 16, 64], strides = [1, 1, 1]} : vector<18x18x64xf32> to vector<16x16x64xf32>
    %128 = vector.shape_cast %127 : vector<16x16x64xf32> to vector<256x64xf32>
    %129 = vector.extract_strided_slice %116 {offsets = [2, 0, 0], sizes = [16, 16, 64], strides = [1, 1, 1]} : vector<18x18x64xf32> to vector<16x16x64xf32>
    %130 = vector.shape_cast %129 : vector<16x16x64xf32> to vector<256x64xf32>
    %131 = vector.extract_strided_slice %116 {offsets = [2, 1, 0], sizes = [16, 16, 64], strides = [1, 1, 1]} : vector<18x18x64xf32> to vector<16x16x64xf32>
    %132 = vector.shape_cast %131 : vector<16x16x64xf32> to vector<256x64xf32>
    %133 = vector.extract_strided_slice %116 {offsets = [2, 2, 0], sizes = [16, 16, 64], strides = [1, 1, 1]} : vector<18x18x64xf32> to vector<16x16x64xf32>
    %134 = vector.shape_cast %133 : vector<16x16x64xf32> to vector<256x64xf32>
    %135 = tpu.concatenate %118, %120, %122, %124, %126, %128, %130, %132, %134 in 1 : vector<256x64xf32>, vector<256x64xf32>, vector<256x64xf32>, vector<256x64xf32>, vector<256x64xf32>, vector<256x64xf32>, vector<256x64xf32>, vector<256x64xf32>, vector<256x64xf32> -> vector<256x576xf32>
    %136 = vector.extract_strided_slice %43 {offsets = [2, 2, 0], sizes = [8, 8, 32], strides = [1, 1, 1]} : vector<10x10x32xf32> to vector<8x8x32xf32>
    %137 = vector.shape_cast %136 : vector<8x8x32xf32> to vector<64x32xf32>
    %138 = vector.extract_strided_slice %43 {offsets = [2, 1, 0], sizes = [8, 8, 32], strides = [1, 1, 1]} : vector<10x10x32xf32> to vector<8x8x32xf32>
    %139 = vector.shape_cast %138 : vector<8x8x32xf32> to vector<64x32xf32>
    %140 = vector.extract_strided_slice %43 {offsets = [2, 0, 0], sizes = [8, 8, 32], strides = [1, 1, 1]} : vector<10x10x32xf32> to vector<8x8x32xf32>
    %141 = vector.shape_cast %140 : vector<8x8x32xf32> to vector<64x32xf32>
    %142 = vector.extract_strided_slice %43 {offsets = [1, 2, 0], sizes = [8, 8, 32], strides = [1, 1, 1]} : vector<10x10x32xf32> to vector<8x8x32xf32>
    %143 = vector.shape_cast %142 : vector<8x8x32xf32> to vector<64x32xf32>
    %144 = vector.extract_strided_slice %43 {offsets = [1, 1, 0], sizes = [8, 8, 32], strides = [1, 1, 1]} : vector<10x10x32xf32> to vector<8x8x32xf32>
    %145 = vector.shape_cast %144 : vector<8x8x32xf32> to vector<64x32xf32>
    %146 = vector.extract_strided_slice %43 {offsets = [1, 0, 0], sizes = [8, 8, 32], strides = [1, 1, 1]} : vector<10x10x32xf32> to vector<8x8x32xf32>
    %147 = vector.shape_cast %146 : vector<8x8x32xf32> to vector<64x32xf32>
    %148 = vector.extract_strided_slice %43 {offsets = [0, 2, 0], sizes = [8, 8, 32], strides = [1, 1, 1]} : vector<10x10x32xf32> to vector<8x8x32xf32>
    %149 = vector.shape_cast %148 : vector<8x8x32xf32> to vector<64x32xf32>
    %150 = vector.extract_strided_slice %43 {offsets = [0, 1, 0], sizes = [8, 8, 32], strides = [1, 1, 1]} : vector<10x10x32xf32> to vector<8x8x32xf32>
    %151 = vector.shape_cast %150 : vector<8x8x32xf32> to vector<64x32xf32>
    %152 = vector.extract_strided_slice %43 {offsets = [0, 0, 0], sizes = [8, 8, 32], strides = [1, 1, 1]} : vector<10x10x32xf32> to vector<8x8x32xf32>
    %153 = vector.shape_cast %152 : vector<8x8x32xf32> to vector<64x32xf32>
    %154 = tpu.concatenate %137, %139, %141, %143, %145, %147, %149, %151, %153 in 0 : vector<64x32xf32>, vector<64x32xf32>, vector<64x32xf32>, vector<64x32xf32>, vector<64x32xf32>, vector<64x32xf32>, vector<64x32xf32>, vector<64x32xf32>, vector<64x32xf32> -> vector<576x32xf32>
    %cst_37 = arith.constant dense<0.000000e+00> : vector<256x32xf32>
    %155 = tpu.matmul %135, %154, %cst_37 {dimension_numbers = #tpu.dot_dimension_numbers<[1], [0], [0], [1], [0, 0, 1, 1], [], []>} : vector<256x576xf32>, vector<576x32xf32>, vector<256x32xf32> -> vector<256x32xf32>
    %156 = tpu.transpose %155, [1, 0] : vector<256x32xf32> -> vector<32x256xf32>
    %cst_38 = arith.constant 1.000000e+00 : f32
    %157 = vector.broadcast %cst_38 : f32 to vector<32x256xf32>
    %158 = arith.mulf %157, %1 : vector<32x256xf32>
    %159 = arith.addf %156, %158 : vector<32x256xf32>
    %c0_39 = arith.constant 0 : index
    %c0_40 = arith.constant 0 : index
    %c0_41 = arith.constant 0 : index
    %160 = vector.load %arg10[%c0_39, %c0_40, %c0_41] : memref<1x32x256xf32, #tpu.memory_space<vmem>>, vector<1x32x256xf32>
    %161 = vector.shape_cast %160 : vector<1x32x256xf32> to vector<32x256xf32>
    %162 = vector.shape_cast %159 : vector<32x256xf32> to vector<1x32x256xf32>
    tpu.vector_store %arg10[%c0_39, %c0_40, %c0_41], %162 {strides = array<i32>} : memref<1x32x256xf32, #tpu.memory_space<vmem>>, vector<1x32x256xf32>,
    return
  }
  func.func @transform_0(%arg0: i32) -> i32 {
    %c0_i32 = arith.constant 0 : i32
    %c0_i32_0 = arith.constant 0 : i32
    return %c0_i32 : i32
  }
  func.func @transform_1(%arg0: i32) -> (i32, i32, i32) {
    %c0_i32 = arith.constant 0 : i32
    %c0_i32_0 = arith.constant 0 : i32
    %c0_i32_1 = arith.constant 0 : i32
    return %arg0, %c0_i32, %c0_i32_0 : i32, i32, i32
  }
  func.func @transform_2(%arg0: i32) -> (i32, i32, i32) {
    %c0_i32 = arith.constant 0 : i32
    %c0_i32_0 = arith.constant 0 : i32
    %c0_i32_1 = arith.constant 0 : i32
    return %arg0, %c0_i32, %c0_i32_0 : i32, i32, i32
  }
  func.func @transform_3(%arg0: i32) -> (i32, i32) {
    %c0_i32 = arith.constant 0 : i32
    %c0_i32_0 = arith.constant 0 : i32
    %c0_i32_1 = arith.constant 0 : i32
    return %c0_i32, %c0_i32_0 : i32, i32
  }
  func.func @transform_4(%arg0: i32) -> (i32, i32) {
    %c0_i32 = arith.constant 0 : i32
    %c0_i32_0 = arith.constant 0 : i32
    %c0_i32_1 = arith.constant 0 : i32
    return %c0_i32, %c0_i32_0 : i32, i32
  }
  func.func @transform_5(%arg0: i32) -> (i32, i32) {
    %c0_i32 = arith.constant 0 : i32
    %c0_i32_0 = arith.constant 0 : i32
    %c0_i32_1 = arith.constant 0 : i32
    return %c0_i32, %c0_i32_0 : i32, i32
  }
  func.func @transform_6(%arg0: i32) -> (i32, i32) {
    %c0_i32 = arith.constant 0 : i32
    %c0_i32_0 = arith.constant 0 : i32
    %c0_i32_1 = arith.constant 0 : i32
    return %c0_i32, %c0_i32_0 : i32, i32
  }
  func.func @transform_7(%arg0: i32) -> (i32, i32) {
    %c0_i32 = arith.constant 0 : i32
    %c0_i32_0 = arith.constant 0 : i32
    %c0_i32_1 = arith.constant 0 : i32
    return %c0_i32, %c0_i32_0 : i32, i32
  }
  func.func @transform_8(%arg0: i32) -> (i32, i32) {
    %c0_i32 = arith.constant 0 : i32
    %c0_i32_0 = arith.constant 0 : i32
    %c0_i32_1 = arith.constant 0 : i32
    return %c0_i32, %c0_i32_0 : i32, i32
  }
  func.func @transform_9(%arg0: i32) -> (i32, i32, i32) {
    %c0_i32 = arith.constant 0 : i32
    %c0_i32_0 = arith.constant 0 : i32
    %c0_i32_1 = arith.constant 0 : i32
    return %arg0, %c0_i32, %c0_i32_0 : i32, i32, i32
  }
}

</mosaic_0001>

<bundles_post_ra>
// kernel: tpu_custom_call.1
= control target key start
LH: loop header
LB: loop body
LE: loop exit
PB: predicated region body
PF: predicated region fallthrough
CT: control target
= control target key end

     0   :  { %s11809_s0 = inlined_call_operand.vmem [shape: f32[3], index: 0, kind: input, shape index: {}]   ;;  %s11810_s1 = inlined_call_operand.hbm [shape: f32[2,32,256], index: 1, kind: input, shape index: {}]   ;;  %s11811_s2 = inlined_call_operand.vmem [shape: f32[2,32,64], index: 2, kind: input, shape index: {}]   ;;  %s11812_s3 = inlined_call_operand.hbm [shape: f32[32,32], index: 3, kind: input, shape index: {}]   ;;  %s11813_s4 = inlined_call_operand.vmem [shape: f32[1,32], index: 4, kind: input, shape index: {}]   ;;  %s11814_s5 = inlined_call_operand.vmem [shape: f32[32,16], index: 5, kind: input, shape index: {}]   ;;  %s11815_s6 = inlined_call_operand.vmem [shape: f32[1,16], index: 6, kind: input, shape index: {}]   ;;  %s11816_s7 = inlined_call_operand.vmem [shape: f32[32,16], index: 7, kind: input, shape index: {}]   ;;  %s11817_s8 = inlined_call_operand.vmem [shape: f32[1,16], index: 8, kind: input, shape index: {}]   ;;  %s11818_s9 = inlined_call_operand.hbm [shape: f32[2,32,256], index: 9, kind: output, shape index: {}]  }
   0x1   :  { %12142 = sst [smem:[#allocation167_spill]] %s11809_s0 }
   0x2   :  { %12143 = sst [smem:[#allocation168_spill]] %s11812_s3 }
   0x3   :  { %12144 = sst [smem:[#allocation169_spill]] %s11818_s9 }
   0x4   :  { %14 = vsyncpa [#allocation5], 0 }
   0x5   :  { %15 = vsyncpa [#allocation3], 0 }
   0x6   :  { %17 = vsyncpa [#allocation3 + $0x1], 0 }
   0x7   :  { %18 = vsyncpa [#allocation8], 0 }
   0x8   :  { %19 = vsyncpa [#allocation4], 0 }
   0x9   :  { %21 = vsyncpa [#allocation4 + $0x1], 0  ;;  %s7193_s30 = smov 0   ;;  %s7195_s10 = smov 0  }
   0xa   :  { %s7197_s11 = smov 0   ;;  %s7199_s12 = smov 0  }
   0xb LB: > { %12145 = sst [smem:[#allocation14_spill]] %s7114_s30  ;;  %s7214_s13 = sadd.s32 4294967295, %s7126_s12   ;;  %s7126_s12 = sphi %s7199_s12, %s12924_s12   ;;  %s7122_s11 = sphi %s7197_s11, %s12928_s11   ;;  %s7118_s10 = sphi %s7195_s10, %s12927_s10   ;;  %s7114_s30 = sphi %s7193_s30, %s12926_s30  }
   0xc   : > { %s5743_s14 = sadd.s32 4294967294, %s7126_s12   ;;  %s7218_s15 = sadd.s32 1, %s7126_s12  }
   0xd   : > { %12146 = sst [smem:[#allocation15_spill]] %s7218_s15  ;;  %s55_s16 = sadd.s32 1, %s7122_s11 }
   0xe   : > { %s52_s17 = ssub.s32 %s7126_s12, %s7218_s15  ;;  %p62_p0 = scmp.ne.s32.totalorder %s7122_s11, %s7118_s10 }
   0xf   : > { %p53_p1 = scmp.eq.s32.totalorder %s52_s17, 0  ;;  %p63_p2 = scmp.eq.s32.totalorder %s7126_s12, 0 }
  0x10   : > { %p68_p3 = scmp.ne.s32.totalorder %s7118_s10, %s7114_s30  ;;  %p69_p4 = scmp.eq.s32.totalorder %s7214_s13, 0 }
  0x11   : > { %s7230_s18 = scalar_select %p53_p1, %s7122_s11, %s55_s16  }
  0x12   : > { %p7232_p5 = por %p63_p2, %p62_p0  ;;  %p7238_p6 = por %p69_p4, %p68_p3 }
  0x13   : > { %12147 = sst [smem:[#allocation16_spill]] %s7230_s18  ;;  %p244_p7 = scmp.eq.s32.totalorder %s7214_s13, 1 }
  0x14   : > { %p250_p8 = scmp.eq.s32.totalorder %s5743_s14, 1  ;;  %p5744_p9 = scmp.ge.s32.totalorder %s7126_s12, 1 }
  0x15   : > { %p257_p10 = scmp.lt.s32.totalorder %s7126_s12, 3  ;;  %p7245_p11 = por %p244_p7, %p62_p0 }
  0x16   : > { %p7249_p12 = por %p250_p8, %p68_p3  ;;  %s12154_s0 = sld [smem:[#allocation167_spill]] }
  0x17   : > { %p7253_p13 = pnand %p5744_p9, %p257_p10  ;;  %p5973_p2 = scmp.lt.s32.totalorder %s7126_s12, 2 }
  0x18   : > { %s12151_s22 = scalar_select %p7249_p12, 1, 0 }
  0x19   : > { %p5956_p1 = pneg %p7253_p13  ;;  %s12155_s3 = sld [smem:[#allocation168_spill]] }
  0x1a   : > { %12152 = sst [smem:[#allocation17_spill]] %s12151_s22  ;;  %p7271_p7 = pnand %p5973_p2, %p7232_p5 }
  0x1b   : > { %p5957_p3 = pnand %p5956_p1, %p69_p4  ;;  %s7128_s16 = smov [#allocation2]  }
  0x1c   : > { %s269_s26 = sshll.u32 %s12154_s0, 4  ;;  %s7129_s17 = smov [#allocation7]   ;;  %s270_s26 = int_to_ptr.vmem [resolvable:$true] %s269_s26 }
  0x1d   : > { %5959 = dma.vmem_to_smem (!%p5957_p3), %s270_s26, 16, %s7128_s16, [#allocation5]  }
  0x1e   : > { %s280_s24 = sshll.u32 %s7129_s17, 4  ;;  %s309_s25 = sand.u32 1, %s7122_s11   ;;  %s281_s24 = int_to_ptr.vmem [resolvable:$true] %s280_s24 }
  0x1f   : > { %s278_s29 = sshll.u32 %s12155_s3, 4  ;;  %s7130_s0 = smov 128   ;;  %s279_s29 = int_to_ptr.hbm [resolvable:$true] %s278_s29 }
  0x20   : > { %s7131_s18 = smov 8   ;;  %s5748_s15 = sshll.u32 %s309_s25, 6 }
  0x21   : > { %5962 = dma.hbm_to_vmem [thread:$0]  (!%p5957_p3), %s279_s29, 512, %s281_s24, [#allocation8], %s7130_s0, %s7130_s0, %s7131_s18  }
  0x22   : > { %s5933_s22 = sshll.u32 %s7126_s12, 6  ;;  %s313_s3 = scalar_lea.vmem [#allocation6], %s5748_s15 }
  0x23   : > { %s318_s19 = scalar_lea.hbm %s11810_s1, %s5933_s22  ;;  %s321_s30 = sshll.u32 %s313_s3, 4  ;;  %s322_s30 = int_to_ptr.vmem [resolvable:$true] %s321_s30 }
  0x24   : > { %s319_s9 = sshll.u32 %s318_s19, 4  ;;  %s310_s26 = scalar_lea.sflag [#allocation3], %s309_s25  ;;  %s320_s9 = int_to_ptr.hbm [resolvable:$true] %s319_s9 }
  0x25   : > { %s7022_s16 = sshra.s32 %s320_s9, 4  ;;  %p7026_p8 = pneg %p7271_p7  ;;  %s7023_s16 = int_to_ptr.hbm [resolvable:$true] %s7022_s16 }
  0x26   : > { %s7024_s17 = scalar_lea.hbm %s7023_s16, 64  ;;  %s7029_s29 = scalar_lea.hbm %s11810_s1, 128 }
  0x27   : > { %p7025_p5 = scmp.ne.s32.totalorder %s7023_s16, %s7024_s17  ;;  %p7030_p1 = scmp.lt.s32.totalorder %s7023_s16, %s11810_s1 }
  0x28   : > { %p7031_p2 = scmp.lt.s32.totalorder %s7029_s29, %s7024_s17 }
  0x29   : > { %p7027_p9 = pnand %p7026_p8, %p7025_p5 }
  0x2a   : > { %p7032_p3 = por %p7031_p2, %p7030_p1 }
  0x2b   : > { %p7028_p10 = pneg %p7027_p9 }
  0x2d   : > { %p7033_p0 = pnand %p7032_p3, %p7028_p10 }
  0x2f   : > { %7036 = shalt.err (!%p7033_p0)
}
  0x30   : > { %s7132_s3 = smov 256   ;;  %s7133_s15 = smov 16  }
  0x31   : > { %5966 = dma.hbm_to_vmem [thread:$0]  (!%p7271_p7), %s320_s9, 1024, %s322_s30, %s310_s26, %s7132_s3, %s7132_s3, %s7133_s15  }
  0x32   : > { %341 = sbr.rel (%p7253_p13) target bundleno = 2490 (0x9ba), region = 56 }
  0x37   : > { %7097 = dma.done.wait (%p69_p4), [#allocation5], 16  }
  0x38   : > { %7099 = vsyncadd (%p69_p4), [#allocation5], 4294967280  ;;  %s7297_s25 = sand.u32 1, %s7118_s10  }
  0x39   : > { %s5753_s27 = sshll.u32 %s7297_s25, 6  ;;  %s349_s28 = scalar_lea.sflag [#allocation3], %s7297_s25 }
  0x3a   : > { %s7303_s9 = scalar_lea.vmem [#allocation6], %s5753_s27 }
  0x3b   : > { %7101 = dma.done.wait (%p7238_p6), %s349_s28, 1024  }
  0x3c   : > { %7103 = vsyncadd (%p7238_p6), %s349_s28, 4294966272 }
  0x3d   : > { %7105 = dma.done.wait (%p69_p4), [#allocation8], 512  }
  0x3e   : > { %7107 = vsyncadd (%p69_p4), [#allocation8], 4294966784 }
  0x3f   : > { %363 = sfence }
  0x40   : > { %p399_p13 = scmp.lt.s32.totalorder %s7214_s13, 1  ;;  %v404_v0 = vld [vmem:[%s7303_s9] sm:$0xff]  ;;  %v405_v1 = vld [vmem:[%s7303_s9 + $0x8] sm:$0xff]  ;;  %v518_v2 = vld [vmem:[#allocation7 + $0x18] sm:$0xff]  ;;  %vm523_vm0 = vcmask 261120   ;;  %v7134_v36 = vmov 0.0  }
  0x41   : > { %416 = vxpose.xlu0.b32.start [1/4] (short) %v404_v0, 128  ;;  %448 = vxpose.xlu1.b32.start [1/4] (short) %v405_v1, 128  ;;  %v617_v3 = vld [vmem:[%s11816_s7 + $0x18] sm:$0xff]  ;;  %v517_v4 = vld [vmem:[#allocation7 + $0x10] sm:$0xff]  ;;  %v516_v6 = vld [vmem:[#allocation7 + $0x8] sm:$0xff]  ;;  %v7373_v37 = vrot.slane %v7134_v36, 7  ;;  %vm12082_vm1 = vcmask 1040384   ;;  %vm12080_vm2 = vcmask 1046528  }
  0x42   : > { %s400_s30 = scalar_select %p399_p13, %s7214_s13, 1  ;;  %560 = vmatpush.msra.mxu0 %v518_v2  ;;  %v616_v5 = vld [vmem:[%s11816_s7 + $0x10] sm:$0xff]  ;;  %5936 = vmatpush.msra.mxu2 %v518_v2  ;;  %v615_v7 = vld [vmem:[%s11816_s7 + $0x8] sm:$0xff]  ;;  %v515_v10 = vld [vmem:[#allocation7] sm:$0xff]  ;;  %vm12079_vm3 = vcmask 1045504  }
  0x43   : > { %634 = vmatpush.msra.mxu1 %v617_v3  ;;  %5940 = vmatpush.msra.mxu3 %v617_v3  ;;  %v406_v9 = vld [vmem:[%s7303_s9 + $0x10] sm:$0xff]  ;;  %v407_v11 = vld [vmem:[%s7303_s9 + $0x18] sm:$0xff]  ;;  %v614_v12 = vld [vmem:[%s11816_s7] sm:$0xff]  ;;  %12157 = vst [vmem:[#allocation18_spill] sm:$0xff] %v7373_v37  ;;  %v7377_v38 = vsel %vm12082_vm1, 0.0, %v7373_v37  ;;  %v7381_v39 = vsel %vm12082_vm1, %v7373_v37, 0.0 }
  0x44   : > { %s5934_s26 = sshll.u32 %s400_s30, 5  ;;  %561 = vmatpush.msra.mxu0 %v517_v4  ;;  %5937 = vmatpush.msra.mxu2 %v517_v4  ;;  %v408_v14 = vld [vmem:[%s7303_s9 + $0x20] sm:$0xff]  ;;  %v409_v15 = vld [vmem:[%s7303_s9 + $0x28] sm:$0xff]  ;;  %v410_v17 = vld [vmem:[%s7303_s9 + $0x30] sm:$0xff]  ;;  %12158 = vst [vmem:[#allocation19_spill] sm:$0xff] %v7377_v38  ;;  %v1266_v40 = vrot.slane %v7377_v38, 1 }
  0x45   : > { %s7326_s0 = scalar_lea.vmem %s11811_s2, %s5934_s26  ;;  %635 = vmatpush.msra.mxu1 %v616_v5  ;;  %5941 = vmatpush.msra.mxu3 %v616_v5  ;;  %v411_v18 = vld [vmem:[%s7303_s9 + $0x38] sm:$0xff]  ;;  %v690_v23 = vld [vmem:[%s11814_s5 + $0x10] sm:$0xff]  ;;  %v689_v25 = vld [vmem:[%s11814_s5 + $0x8] sm:$0xff]  ;;  %12159 = vst [vmem:[#allocation20_spill] sm:$0xff] %v7381_v39  ;;  %v11827_v41 = vrot.slane %v7381_v39, 1  ;;  %v11826_v42 = vrot.slane %v7373_v37, 1 }
  0x46   : > { %v412_v8 = vld [vmem:[%s7326_s0] sm:$0xff]  ;;  %562 = vmatpush.msra.mxu0 %v516_v6  ;;  %5938 = vmatpush.msra.mxu2 %v516_v6  ;;  %v413_v13 = vld [vmem:[%s7326_s0 + $0x8] sm:$0xff]  ;;  %v414_v16 = vld [vmem:[%s7326_s0 + $0x10] sm:$0xff]  ;;  %s7135_s26 = smov 16   ;;  %v11825_v48 = vrot.slane %v7381_v39, 2  ;;  %v1291_v49 = vrot.slane %v7377_v38, 2 }
  0x47   : > { %480 = vxpose.xlu2.b32.start [1/4] (short) (narrow) %v412_v8, 64  ;;  %636 = vmatpush.msra.mxu1 %v615_v7  ;;  %v415_v19 = vld [vmem:[%s7326_s0 + $0x18] sm:$0xff]  ;;  %v688_v27 = vld [vmem:[%s11814_s5] sm:$0xff]  ;;  %v7389_v44 = vsel %vm12080_vm2, %v1266_v40, %v11827_v41  ;;  %v7394_v45 = vsel %vm12080_vm2, %v1266_v40, %v11826_v42  ;;  %v11824_v50 = vrot.slane %v7373_v37, 2  ;;  %s7136_s16 = smov 32   ;;  %s512_s17 = sld [smem:[#allocation2]] }
  0x48   : > { %563 = vmatpush.msra.mxu0 %v515_v10  ;;  %5942 = vmatpush.msra.mxu3 %v615_v7  ;;  %v691_v21 = vld [vmem:[%s11814_s5 + $0x18] sm:$0xff]  ;;  %12160 = vst [vmem:[#allocation21_spill] sm:$0xff] %v7389_v44  ;;  %v6024_v46 = vpack.i.bf16 %v7394_v45, %v7389_v44  ;;  %v7409_v52 = vsel %vm12079_vm3, %v1291_v49, %v11825_v48  ;;  %s5759_s0 = sld [smem:[#allocation2 + $0x2]]  ;;  %v7430_v60 = vld [vmem:[%s11813_s4] ss:$0 sm:$0xff]  ;;  %s7137_s3 = smov 48  }
  0x49   : > { %417 = vxpose.xlu0.b32.cont [2/4] (short) %v406_v9, 128  ;;  %449 = vxpose.xlu1.b32.cont [2/4] (short) %v407_v11, 128  ;;  %12161 = vst [vmem:[#allocation22_spill] sm:$0xff] %v7394_v45  ;;  %v7414_v53 = vsel %vm12079_vm3, %v1291_v49, %v11824_v50  ;;  %v7435_v61 = vld [vmem:[%s11817_s8] ss:$0 sm:$0xff]  ;;  %s7138_s15 = smov 64   ;;  %s7611_s28 = sld [smem:[#allocation2 + $0x1]] }
  0x4a   : > { %637 = vmatpush.msra.mxu1 %v614_v12  ;;  %5939 = vmatpush.msra.mxu2 %v515_v10  ;;  %12162 = vst [vmem:[#allocation23_spill] sm:$0xff] %v7414_v53  ;;  %v6029_v54 = vpack.i.bf16 %v7414_v53, %v7409_v52  ;;  %s7139_s23 = smov 80   ;;  %s7140_s14 = smov 96  }
  0x4b   : > { %5943 = vmatpush.msra.mxu3 %v614_v12  ;;  %s7141_s19 = smov 112   ;;  %s11754_s29 = scalar_lea.vmem [#allocation9], %s5753_s27 }
  0x4c   : > { %804 = vmatpush.msrb.mxu2 %v691_v21  ;;  %4975 = vmatpush.msrb.mxu1 %v7389_v44  ;;  %s5935_s27 = sshll.u32 %s7214_s13, 6  ;;  %s5621_s20 = scalar_lea.sflag [#allocation4], %s7297_s25 }
  0x4d   : > { %v7437_v63 = vstv %s512_s17 }
  0x4e   : > { %805 = vmatpush.msrb.mxu2 %v690_v23  ;;  %v7439_v1 = vstv %s5759_s0 }
  0x4f   : > { %481 = vxpose.xlu2.b32.cont [2/4] (short) (narrow) %v413_v13, 64 }
  0x50   : > { %806 = vmatpush.msrb.mxu2 %v689_v25 }
  0x51   : > { %418 = vxpose.xlu0.b32.cont [3/4] (short) %v408_v14, 128  ;;  %450 = vxpose.xlu1.b32.cont [3/4] (short) %v409_v15, 128 }
  0x52   : > { %807 = vmatpush.msrb.mxu2 %v688_v27 }
  0x57   : > { %482 = vxpose.xlu2.b32.cont [3/4] (short) (narrow) %v414_v16, 64 }
  0x59   : > { %419 = vxpose.xlu0.b32.end [4/4] (short) %v410_v17, 128  ;;  %451 = vxpose.xlu1.b32.end [4/4] (short) %v411_v18, 128 }
  0x5f   : > { %483 = vxpose.xlu2.b32.end [4/4] (short) (narrow) %v415_v19, 64 }
  0xe0   : > { %v496_v20 = vpop.trf.xlu2 }
  0xe1   : > { %5760 = vmatmul.msk.f32.vlgmr.msra.gmra.mxu0 %vm523_vm0, %v496_v20  ;;  %5768 = vmatmul.msk.f32.vlgmr.msra.gmra.mxu1 %vm523_vm0, %v496_v20 }
  0xe5   : > { %v432_v28 = vpop.trf.xlu0  ;;  %v7421_v56 = vpop.trf.xlu1 }
  0xe8   : > { %v497_v22 = vpop.trf.xlu2  ;;  %6030 = vrot.lane.b32.xlu2 %v6029_v54, %s7136_s16 }
  0xe9   : > { %5761 = vmatmul.msk.f32.gmra.mxu0 %vm523_vm0, %v497_v22  ;;  %5769 = vmatmul.msk.f32.gmra.mxu1 %vm523_vm0, %v497_v22 }
  0xed   : > { %v433_v31 = vpop.trf.xlu0  ;;  %v7424_v58 = vpop.trf.xlu1 }
  0xf0   : > { %v498_v24 = vpop.trf.xlu2 }
  0xf1   : > { %5762 = vmatmul.msk.f32.gmra.mxu0 %vm523_vm0, %v498_v24  ;;  %5770 = vmatmul.msk.f32.gmra.mxu1 %vm523_vm0, %v498_v24 }
  0xf5   : > { %v434_v33 = vpop.trf.xlu0  ;;  %v7443_v4 = vpop.trf.xlu1 }
  0xf8   : > { %v499_v26 = vpop.trf.xlu2 }
  0xf9   : > { %5763 = vmatmul.msk.f32.gmra.mxu0 %vm523_vm0, %v499_v26  ;;  %5771 = vmatmul.msk.f32.gmra.mxu1 %vm523_vm0, %v499_v26 }
  0xfd   : > { %v435_v35 = vpop.trf.xlu0  ;;  %v7468_v21 = vpop.trf.xlu1 }
 0x100   : > { %v500_v29 = vpop.trf.xlu2 }
 0x101   : > { %5764 = vmatmul.msk.f32.vlgmr.msra.gmra.mxu2 %vm523_vm0, %v500_v29  ;;  %5772 = vmatmul.msk.f32.vlgmr.msra.gmra.mxu3 %vm523_vm0, %v500_v29 }
 0x105   : > { %v436_v43 = vpop.trf.xlu0 }
 0x108   : > { %v501_v30 = vpop.trf.xlu2 }
 0x109   : > { %5765 = vmatmul.msk.f32.gmra.mxu2 %vm523_vm0, %v501_v30  ;;  %5773 = vmatmul.msk.f32.gmra.mxu3 %vm523_vm0, %v501_v30 }
 0x10d   : > { %v437_v47 = vpop.trf.xlu0 }
 0x110   : > { %v502_v32 = vpop.trf.xlu2 }
 0x111   : > { %5766 = vmatmul.msk.f32.gmra.mxu2 %vm523_vm0, %v502_v32  ;;  %5774 = vmatmul.msk.f32.gmra.mxu3 %vm523_vm0, %v502_v32 }
 0x115   : > { %v438_v51 = vpop.trf.xlu0 }
 0x118   : > { %v503_v34 = vpop.trf.xlu2 }
 0x119   : > { %5767 = vmatmul.msk.f32.gmra.mxu2 %vm523_vm0, %v503_v34  ;;  %5775 = vmatmul.msk.f32.gmra.mxu3 %vm523_vm0, %v503_v34 }
 0x11d   : > { %v439_v55 = vpop.trf.xlu0 }
 0x121   : > { %5776 = vmatmul.msk.f32.vlgmr.msrb.gmra.mxu2 %vm523_vm0, %v432_v28 }
 0x125   : > { %v440_v57 = vpop.trf.xlu0 }
 0x127   : > { %6025 = vrot.lane.b32.xlu0 %v6024_v46, %s7135_s26 }
 0x129   : > { %5777 = vmatmul.msk.f32.gmra.mxu2 %vm523_vm0, %v433_v31 }
 0x12d   : > { %v441_v59 = vpop.trf.xlu0 }
 0x131   : > { %5778 = vmatmul.msk.f32.gmra.mxu2 %vm523_vm0, %v434_v33 }
 0x135   : > { %v442_v9 = vpop.trf.xlu0 }
 0x139   : > { %5779 = vmatmul.msk.f32.gmra.mxu2 %vm523_vm0, %v435_v35 }
 0x13d   : > { %v443_v29 = vpop.trf.xlu0 }
 0x141   : > { %5780 = vmatmul.msk.f32.gmra.mxu2 %vm523_vm0, %v436_v43 }
 0x149   : > { %5781 = vmatmul.msk.f32.gmra.mxu2 %vm523_vm0, %v437_v47 }
 0x151   : > { %5782 = vmatmul.msk.f32.gmra.mxu2 %vm523_vm0, %v438_v51 }
 0x159   : > { %5783 = vmatmul.msk.f32.gmra.mxu2 %vm523_vm0, %v439_v55  ;;  %v7497_v55 = vpop.trf.xlu1 }
 0x15e   : > { %v565_v62 = vpop.f32.mrf.mxu0  ;;  %v639_v0 = vpop.f32.mrf.mxu1 }
 0x15f   : > { %v566_v2 = vadd.f32 %v7430_v60, %v565_v62  ;;  %v640_v3 = vadd.f32 %v7435_v61, %v639_v0 }
 0x161   : > { %vm589_vm4 = vcmp.gt.f32.partialorder %v566_v2, 0.0  ;;  %v598_v5 = vmul.f32 %v7437_v63, %v566_v2  ;;  %vm663_vm5 = vcmp.gt.f32.partialorder %v640_v3, 0.0  ;;  %v672_v6 = vmul.f32 %v7439_v1, %v640_v3  ;;  %5784 = vmatmul.msk.f32.gmra.mxu2 %vm523_vm0, %v440_v57 }
 0x163   : > { %v606_v7 = vsel %vm589_vm4, %v566_v2, %v598_v5  ;;  %v680_v8 = vsel %vm663_vm5, %v640_v3, %v672_v6  ;;  %v444_v3 = vpop.trf.xlu0 }
 0x164   : > { %v7448_v10 = vrot.slane %v606_v7, 7  ;;  %v1056_v11 = vrot.slane %v680_v8, 7 }
 0x166   : > { %12163 = vst [vmem:[#allocation24_spill] sm:$0xff] %v7448_v10  ;;  %v642_v12 = vpop.f32.mrf.mxu1  ;;  %v7451_v13 = vsel %vm12082_vm1, 0.0, %v1056_v11  ;;  %v1080_v14 = vsel %vm12082_vm1, %v1056_v11, 0.0  ;;  %v7460_v18 = vsel %vm12082_vm1, 0.0, %v7448_v10  ;;  %v7464_v19 = vsel %vm12082_vm1, %v7448_v10, 0.0  ;;  %v568_v51 = vpop.f32.mrf.mxu0 }
 0x167   : > { %12164 = vst [vmem:[#allocation25_spill] sm:$0xff] %v7451_v13  ;;  %v643_v15 = vadd.f32 %v7435_v61, %v642_v12  ;;  %1379 = vrot.lane.b32.xlu2 %v7451_v13, %s7137_s3  ;;  %v1269_v16 = vrot.slane %v7451_v13, 1  ;;  %v1270_v17 = vrot.slane %v1080_v14, 1  ;;  %v1294_v23 = vrot.slane %v7451_v13, 2 }
 0x168   : > { %v1295_v24 = vrot.slane %v1080_v14, 2  ;;  %v4907_v25 = vrot.slane %v7460_v18, 1  ;;  %v4908_v27 = vrot.slane %v7464_v19, 1 }
 0x169   : > { %vm664_vm6 = vcmp.gt.f32.partialorder %v643_v15, 0.0  ;;  %v673_v20 = vmul.f32 %v7439_v1, %v643_v15  ;;  %5785 = vmatmul.msk.f32.gmra.mxu2 %vm523_vm0, %v441_v59  ;;  %v1271_v22 = vsel %vm12080_vm2, %v1269_v16, %v1270_v17 }
 0x16a   : > { %1333 = vrot.lane.b32.xlu1 %v1271_v22, %s7135_s26  ;;  %v7476_v30 = vsel %vm12080_vm2, %v4907_v25, %v4908_v27  ;;  %v7483_v34 = vsel %vm12079_vm3, %v1294_v23, %v1295_v24 }
 0x16b   : > { %v681_v26 = vsel %vm664_vm6, %v643_v15, %v673_v20  ;;  %12165 = vst [vmem:[#allocation26_spill] sm:$0xff] %v7476_v30  ;;  %v445_v20 = vpop.trf.xlu0 }
 0x16c   : > { %v1057_v28 = vrot.slane %v681_v26, 7  ;;  %v569_v26 = vadd.f32 %v7430_v60, %v568_v51 }
 0x16e   : > { %v7479_v31 = vsel %vm12082_vm1, 0.0, %v1057_v28  ;;  %v1081_v32 = vsel %vm12082_vm1, %v1057_v28, 0.0  ;;  %v645_v33 = vpop.f32.mrf.mxu1  ;;  %v571_v8 = vpop.f32.mrf.mxu0  ;;  %vm590_vm10 = vcmp.gt.f32.partialorder %v569_v26, 0.0 }
 0x16f   : > { %12166 = vst [vmem:[#allocation27_spill] sm:$0xff] %v7479_v31  ;;  %v646_v35 = vadd.f32 %v7435_v61, %v645_v33  ;;  %1357 = vrot.lane.b32.xlu2 %v7483_v34, %s7136_s16  ;;  %v1297_v36 = vrot.slane %v7479_v31, 2  ;;  %v1298_v40 = vrot.slane %v1081_v32, 2  ;;  %v1272_v47 = vrot.slane %v7479_v31, 1 }
 0x170   : > { %v1273_v49 = vrot.slane %v1081_v32, 1 }
 0x171   : > { %vm665_vm7 = vcmp.gt.f32.partialorder %v646_v35, 0.0  ;;  %v674_v43 = vmul.f32 %v7439_v1, %v646_v35  ;;  %5786 = vmatmul.msk.f32.gmra.mxu2 %vm523_vm0, %v442_v9  ;;  %v7492_v46 = vsel %vm12079_vm3, %v1297_v36, %v1298_v40  ;;  %v7514_v9 = vpop.trf.xlu1  ;;  %v572_v36 = vadd.f32 %v7430_v60, %v571_v8 }
 0x172   : > { %12167 = vst [vmem:[#allocation28_spill] sm:$0xff] %v7492_v46  ;;  %1359 = vrot.lane.b32.xlu1 %v7492_v46, %s7136_s16  ;;  %v7500_v62 = vsel %vm12080_vm2, %v1272_v47, %v1273_v49 }
 0x173   : > { %v682_v54 = vsel %vm665_vm7, %v646_v35, %v674_v43  ;;  %12168 = vst [vmem:[#allocation29_spill] sm:$0xff] %v7500_v62  ;;  %v599_v35 = vmul.f32 %v7437_v63, %v569_v26  ;;  %vm591_vm11 = vcmp.gt.f32.partialorder %v572_v36, 0.0 }
 0x174   : > { %v1058_v57 = vrot.slane %v682_v54, 7  ;;  %v446_v54 = vpop.trf.xlu0 }
 0x176   : > { %v648_v59 = vpop.f32.mrf.mxu1  ;;  %v7503_v0 = vsel %vm12082_vm1, 0.0, %v1058_v57  ;;  %v1082_v16 = vsel %vm12082_vm1, %v1058_v57, 0.0 }
 0x177   : > { %v649_v2 = vadd.f32 %v7435_v61, %v648_v59  ;;  %1335 = vrot.lane.b32.xlu2 %v7500_v62, %s7135_s26  ;;  %1383 = vrot.lane.b32.xlu0 %v7503_v0, %s7137_s3  ;;  %v1275_v23 = vrot.slane %v7503_v0, 1  ;;  %v1276_v24 = vrot.slane %v1082_v16, 1  ;;  %v1300_v49 = vrot.slane %v7503_v0, 2 }
 0x178   : > { %v1301_v51 = vrot.slane %v1082_v16, 2 }
 0x179   : > { %vm666_vm8 = vcmp.gt.f32.partialorder %v649_v2, 0.0  ;;  %v675_v5 = vmul.f32 %v7439_v1, %v649_v2  ;;  %5787 = vmatmul.msk.f32.gmra.mxu2 %vm523_vm0, %v443_v29  ;;  %v7538_v28 = vsel %vm12080_vm2, %v1275_v23, %v1276_v24  ;;  %v574_v29 = vpop.f32.mrf.mxu0  ;;  %v7543_v33 = vpop.trf.xlu1 }
 0x17a   : > { %1381 = vrot.lane.b32.xlu1 %v7479_v31, %s7137_s3  ;;  %12170 = vst [vmem:[#allocation31_spill] sm:$0xff] %v7538_v28  ;;  %v575_v43 = vadd.f32 %v7430_v60, %v574_v29 }
 0x17b   : > { %v683_v6 = vsel %vm666_vm8, %v649_v2, %v675_v5  ;;  %v600_v5 = vmul.f32 %v7437_v63, %v572_v36 }
 0x17c   : > { %v1059_v7 = vrot.slane %v683_v6, 7  ;;  %vm592_vm12 = vcmp.gt.f32.partialorder %v575_v43, 0.0 }
 0x17e   : > { %v7517_v11 = vsel %vm12082_vm1, 0.0, %v1059_v7  ;;  %v7520_v12 = vsel %vm12082_vm1, %v1059_v7, 0.0  ;;  %v601_v7 = vmul.f32 %v7437_v63, %v575_v43 }
 0x17f   : > { %1405 = vrot.lane.b32.xlu2 %v7500_v62, %s7138_s15  ;;  %1403 = vrot.lane.b32.xlu0 %v1271_v22, %s7138_s15  ;;  %v1303_v14 = vrot.slane %v7517_v11, 2  ;;  %v1304_v15 = vrot.slane %v7520_v12, 2 }
 0x181   : > { %5788 = vmatmul.msk.f32.gmra.mxu2 %vm523_vm0, %v444_v3  ;;  %v7530_v17 = vsel %vm12079_vm3, %v1303_v14, %v1304_v15  ;;  %v607_v3 = vsel %vm590_vm10, %v569_v26, %v599_v35  ;;  %v7565_v14 = vsel %vm12079_vm3, %v1300_v49, %v1301_v51  ;;  %v7573_v24 = vpop.trf.xlu1  ;;  %vm7856_vm10 = vmneg %vm12082_vm1 }
 0x182   : > { %12169 = vst [vmem:[#allocation30_spill] sm:$0xff] %v7530_v17  ;;  %1363 = vrot.lane.b32.xlu1 %v7530_v17, %s7136_s16  ;;  %v7570_v16 = vrot.slane %v607_v3, 7 }
 0x183   : > { %12171 = vst [vmem:[#allocation32_spill] sm:$0xff] %v7565_v14 }
 0x184   : > { %v577_v25 = vpop.f32.mrf.mxu2  ;;  %v651_v22 = vpop.f32.mrf.mxu3  ;;  %12172 = vst [vmem:[#allocation33_spill] sm:$0xff] %v7570_v16 }
 0x185   : > { %v652_v27 = vadd.f32 %v7435_v61, %v651_v22  ;;  %v578_v8 = vadd.f32 %v7430_v60, %v577_v25  ;;  %12173 = vst [vmem:[#allocation34_spill] sm:$0xff] %v7573_v24  ;;  %v609_v22 = vsel %vm592_vm12, %v575_v43, %v601_v7  ;;  %v7588_v43 = vsel %vm12082_vm1, %v7570_v16, 0.0 }
 0x186   : > { %v7590_v51 = vrot.slane %v609_v22, 7  ;;  %v1278_v7 = vrot.slane %v7517_v11, 1 }
 0x187   : > { %vm667_vm9 = vcmp.gt.f32.partialorder %v652_v27, 0.0  ;;  %v676_v32 = vmul.f32 %v7439_v1, %v652_v27  ;;  %1337 = vrot.lane.b32.xlu2 %v7538_v28, %s7135_s26  ;;  %v602_v25 = vmul.f32 %v7437_v63, %v578_v8  ;;  %vm593_vm14 = vcmp.gt.f32.partialorder %v578_v8, 0.0 }
 0x188   : > { %12175 = vst [vmem:[#allocation36_spill] sm:$0xff] %v7590_v51 }
 0x189   : > { %v7547_v40 = vsel %vm667_vm9, %v652_v27, %v676_v32  ;;  %5789 = vmatmul.msk.f32.gmra.mxu2 %vm523_vm0, %v445_v20  ;;  %v608_v20 = vsel %vm591_vm11, %v572_v36, %v600_v5  ;;  %v7584_v36 = vsel %vm12082_vm1, 0.0, %v7570_v16  ;;  %v610_v3 = vsel %vm593_vm14, %v578_v8, %v602_v25 }
 0x18a   : > { %v1060_v47 = vrot.slane %v7547_v40, 7  ;;  %v7577_v29 = vrot.slane %v608_v20, 7 }
 0x18c   : > { %v580_v57 = vpop.f32.mrf.mxu2  ;;  %v654_v59 = vpop.f32.mrf.mxu3  ;;  %v7556_v2 = vsel %vm12082_vm1, 0.0, %v1060_v47  ;;  %12174 = vst [vmem:[#allocation35_spill] sm:$0xff] %v7577_v29  ;;  %v7619_v48 = vsel %vm12082_vm1, 0.0, %v7577_v29  ;;  %v7623_v42 = vsel %vm12082_vm1, %v7577_v29, 0.0 }
 0x18d   : > { %v655_v6 = vadd.f32 %v7435_v61, %v654_v59  ;;  %1387 = vrot.lane.b32.xlu1 %v7556_v2, %s7137_s3  ;;  %v581_v26 = vadd.f32 %v7430_v60, %v580_v57 }
 0x18f   : > { %vm668_vm13 = vcmp.gt.f32.partialorder %v655_v6, 0.0  ;;  %v677_v15 = vmul.f32 %v7439_v1, %v655_v6  ;;  %1361 = vrot.lane.b32.xlu2 %v7565_v14, %s7136_s16  ;;  %v603_v5 = vmul.f32 %v7437_v63, %v581_v26  ;;  %vm594_vm5 = vcmp.gt.f32.partialorder %v581_v26, 0.0 }
 0x191   : > { %v685_v23 = vsel %vm668_vm13, %v655_v6, %v677_v15  ;;  %5790 = vmatmul.msk.f32.gmra.mxu2 %vm523_vm0, %v446_v54  ;;  %v447_v6 = vpop.trf.xlu0  ;;  %v1279_v15 = vrot.slane %v7520_v12, 1 }
 0x192   : > { %v1061_v27 = vrot.slane %v685_v23, 7 }
 0x194   : > { %v583_v32 = vpop.f32.mrf.mxu2  ;;  %v657_v35 = vpop.f32.mrf.mxu3  ;;  %v7580_v49 = vsel %vm12082_vm1, 0.0, %v1061_v27  ;;  %v7593_v54 = vsel %vm12082_vm1, %v1061_v27, 0.0 }
 0x195   : > { %v584_v57 = vadd.f32 %v7430_v60, %v583_v32  ;;  %v658_v59 = vadd.f32 %v7435_v61, %v657_v35  ;;  %1407 = vrot.lane.b32.xlu1 %v7538_v28, %s7138_s15  ;;  %1389 = vrot.lane.b32.xlu0 %v7580_v49, %s7137_s3  ;;  %v1309_v22 = vrot.slane %v7580_v49, 2  ;;  %v1310_v8 = vrot.slane %v7593_v54, 2 }
 0x196   : > { %v7615_v35 = vrot.slane %v610_v3, 7  ;;  %v7633_v3 = vsel %vm12082_vm1, %v1060_v47, 0.0 }
 0x197   : > { %vm595_vm15 = vcmp.gt.f32.partialorder %v584_v57, 0.0  ;;  %v604_v20 = vmul.f32 %v7437_v63, %v584_v57  ;;  %vm669_vm4 = vcmp.gt.f32.partialorder %v658_v59, 0.0  ;;  %v678_v23 = vmul.f32 %v7439_v1, %v658_v59  ;;  %1385 = vrot.lane.b32.xlu2 %v7517_v11, %s7137_s3 }
 0x198   : > { %12176 = vst [vmem:[#allocation37_spill] sm:$0xff] %v7615_v35  ;;  %v1282_v32 = vrot.slane %v7633_v3, 1 }
 0x199   : > { %v612_v25 = vsel %vm595_vm15, %v584_v57, %v604_v20  ;;  %v686_v27 = vsel %vm669_vm4, %v658_v59, %v678_v23  ;;  %5791 = vmatmul.msk.f32.gmra.mxu2 %vm523_vm0, %v447_v6  ;;  %v611_v57 = vsel %vm594_vm5, %v581_v26, %v603_v5  ;;  %v7625_v59 = vpop.trf.xlu1  ;;  %v7628_v6 = vsel %vm12080_vm2, %v1278_v7, %v1279_v15 }
 0x19a   : > { %v1062_v50 = vrot.slane %v686_v27, 7  ;;  %12177 = vst [vmem:[#allocation38_spill] sm:$0xff] %v7625_v59  ;;  %v7637_v20 = vsel %vm12082_vm1, 0.0, %v7590_v51  ;;  %v7639_v23 = vrot.slane %v612_v25, 7  ;;  %v7648_v15 = vsel %vm12079_vm3, %v1309_v22, %v1310_v8 }
 0x19b   : > { %12179 = vst [vmem:[#allocation40_spill] sm:$0xff] %v7648_v15  ;;  %v7656_v12 = vrot.slane %v611_v57, 7  ;;  %v7662_v22 = vsel %vm12082_vm1, 0.0, %v7615_v35  ;;  %v7673_v57 = vsel %vm12082_vm1, %v7590_v51, 0.0 }
 0x19c   : > { %12178 = vst [vmem:[#allocation39_spill] sm:$0xff] %v7639_v23  ;;  %v7642_v27 = vsel %vm12082_vm1, 0.0, %v1062_v50  ;;  %v7645_v26 = vsel %vm12082_vm1, %v1062_v50, 0.0  ;;  %v586_v5 = vpop.f32.mrf.mxu2  ;;  %v660_v7 = vpop.f32.mrf.mxu3  ;;  %v1281_v50 = vrot.slane %v7556_v2, 1 }
 0x19d   : > { %v587_v40 = vadd.f32 %v7430_v60, %v586_v5  ;;  %v661_v47 = vadd.f32 %v7435_v61, %v660_v7  ;;  %1367 = vrot.lane.b32.xlu1 %v7648_v15, %s7136_s16  ;;  %v1312_v25 = vrot.slane %v7642_v27, 2  ;;  %v1313_v41 = vrot.slane %v7645_v26, 2  ;;  %12180 = vst [vmem:[#allocation41_spill] sm:$0xff] %v7656_v12 }
 0x19e   : > { %v7702_v5 = vsel %vm12080_vm2, %v1281_v50, %v1282_v32 }
 0x19f   : > { %vm596_vm6 = vcmp.gt.f32.partialorder %v587_v40, 0.0  ;;  %v605_v60 = vmul.f32 %v7437_v63, %v587_v40  ;;  %vm670_vm7 = vcmp.gt.f32.partialorder %v661_v47, 0.0  ;;  %v679_v61 = vmul.f32 %v7439_v1, %v661_v47  ;;  %1339 = vrot.lane.b32.xlu2 %v7628_v6, %s7135_s26 }
 0x1a0   : > { %v7669_v8 = vsel %vm12079_vm3, %v1312_v25, %v1313_v41  ;;  %v7684_v41 = vld [vmem:[%s11815_s6] ss:$0 sm:$0xff]  ;;  %v7687_v63 = vstv %s7611_s28  ;;  %v1037_v25 = vsel %vm12082_vm1, 0.0, %v7639_v23  ;;  %s5633_s28 = sshll.u32 %s11754_s29, 4  ;;  %s5634_s28 = int_to_ptr.vmem [resolvable:$true] %s5633_s28 }
 0x1a1   : > { %v613_v45 = vsel %vm596_vm6, %v587_v40, %v605_v60  ;;  %1369 = vrot.lane.b32.xlu0 %v7669_v8, %s7136_s16  ;;  %5792 = vmatmul.msk.f32.gmra.mxu2 %vm523_vm0, %v7421_v56  ;;  %12181 = vst [vmem:[#allocation42_spill] sm:$0xff] %v7687_v63  ;;  %v7689_v1 = vsel %vm670_vm7, %v661_v47, %v679_v61  ;;  %v7698_v60 = vsel %vm12082_vm1, %v7615_v35, 0.0  ;;  %v4881_v56 = vrot.slane %v7662_v22, 1  ;;  %v7719_v44 = vpop.trf.xlu1 }
 0x1a2   : > { %v7693_v7 = vrot.slane %v613_v45, 7  ;;  %v11843_v40 = vrot.slane %v7689_v1, 7  ;;  %v1046_v47 = vsel %vm12082_vm1, %v7639_v23, 0.0  ;;  %v1036_v61 = vsel %vm12082_vm1, 0.0, %v7656_v12  ;;  %12183 = vst [vmem:[#allocation44_spill] sm:$0xff] %v7719_v44 }
 0x1a3   : > { %v1045_v45 = vsel %vm12082_vm1, %v7656_v12, 0.0  ;;  %v4887_v50 = vrot.slane %v1037_v25, 1  ;;  %v4859_v62 = vrot.slane %v1037_v25, 2  ;;  %v4860_v14 = vrot.slane %v1046_v47, 2 }
 0x1a4   : > { %12182 = vst [vmem:[#allocation43_spill] sm:$0xff] %v7693_v7  ;;  %v809_v53 = vpop.f32.mrf.mxu2  ;;  %v7713_v30 = vsel %vm12082_vm1, 0.0, %v11843_v40  ;;  %v1038_v13 = vsel %vm12082_vm1, 0.0, %v7693_v7  ;;  %v1047_v32 = vsel %vm12082_vm1, %v7693_v7, 0.0  ;;  %v4888_v40 = vrot.slane %v1046_v47, 1 }
 0x1a5   : > { %v810_v28 = vadd.f32 %v7684_v41, %v809_v53  ;;  %1393 = vrot.lane.b32.xlu1 %v7713_v30, %s7137_s3  ;;  %v4862_v39 = vrot.slane %v1038_v13, 2  ;;  %v4863_v31 = vrot.slane %v1047_v32, 2  ;;  %v4890_v15 = vrot.slane %v1038_v13, 1 }
 0x1a6   : > { %v4891_v59 = vrot.slane %v1047_v32, 1  ;;  %v4884_v53 = vrot.slane %v1036_v61, 1  ;;  %v4885_v13 = vrot.slane %v1045_v45, 1  ;;  %v4856_v32 = vrot.slane %v1036_v61, 2 }
 0x1a7   : > { %vm905_vm8 = vcmp.gt.f32.partialorder %v810_v28, 0.0  ;;  %v938_v38 = vmul.f32 %v7687_v63, %v810_v28  ;;  %1341 = vrot.lane.b32.xlu2 %v7702_v5, %s7135_s26  ;;  %v7728_v44 = vsel %vm12079_vm3, %v4862_v39, %v4863_v31  ;;  %v4857_v10 = vrot.slane %v1045_v45, 2 }
 0x1a8   : > { %v7731_v24 = vsel %vm12080_vm2, %v4890_v15, %v4891_v59  ;;  %5088 = vmatpush.msra.mxu2 %v7728_v44  ;;  %v1284_v25 = vrot.slane %v7580_v49, 1  ;;  %v1285_v47 = vrot.slane %v7593_v54, 1  ;;  %v4882_v39 = vrot.slane %v7698_v60, 1 }
 0x1a9   : > { %12184 = vst [vmem:[#allocation45_spill] sm:$0xff] %v7731_v24  ;;  %1409 = vrot.lane.b32.xlu0 %v7628_v6, %s7138_s15  ;;  %4976 = vmatpush.msrb.mxu1 %v7731_v24  ;;  %v4853_v31 = vrot.slane %v7662_v22, 2  ;;  %v970_v59 = vsel %vm905_vm8, %v810_v28, %v938_v38  ;;  %v7745_v15 = vsel %vm12080_vm2, %v4887_v50, %v4888_v40  ;;  %v4854_v45 = vrot.slane %v7698_v60, 2 }
 0x1aa   : > { %5793 = vmatmul.msk.f32.gmra.mxu2 %vm523_vm0, %v7424_v58  ;;  %12185 = vst [vmem:[#allocation46_spill] sm:$0xff] %v7745_v15  ;;  %v7748_v61 = vsel %vm12079_vm3, %v4859_v62, %v4860_v14  ;;  %v1306_v54 = vrot.slane %v7556_v2, 2  ;;  %v1307_v22 = vrot.slane %v7633_v3, 2  ;;  %v4879_v38 = vrot.slane %v7673_v57, 1 }
 0x1ab   : > { %12186 = vst [vmem:[#allocation47_spill] sm:$0xff] %v7748_v61  ;;  %4977 = vmatpush.msrb.mxu1 %v7745_v15  ;;  %5089 = vmatpush.msra.mxu2 %v7748_v61  ;;  %v4850_v58 = vrot.slane %v7637_v20, 2  ;;  %v7758_v40 = vsel %vm12080_vm2, %v4884_v53, %v4885_v13  ;;  %v7761_v62 = vsel %vm12079_vm3, %v4856_v32, %v4857_v10  ;;  %v1287_v14 = vrot.slane %v7642_v27, 1 }
 0x1ac   : > { %v812_v28 = vpop.f32.mrf.mxu2  ;;  %12187 = vst [vmem:[#allocation48_spill] sm:$0xff] %v7758_v40  ;;  %v1288_v60 = vrot.slane %v7645_v26, 1  ;;  %v1121_v50 = vrot.slane %v970_v59, 7  ;;  %v7769_v3 = vsel %vm12080_vm2, %v1284_v25, %v1285_v47  ;;  %v4851_v53 = vrot.slane %v7673_v57, 2  ;;  %v7782_v59 = vpop.trf.xlu1 }
 0x1ad   : > { %12188 = vst [vmem:[#allocation49_spill] sm:$0xff] %v7761_v62  ;;  %v813_v24 = vadd.f32 %v7684_v41, %v812_v28  ;;  %4978 = vmatpush.msrb.mxu1 %v7758_v40  ;;  %5090 = vmatpush.msra.mxu2 %v7761_v62  ;;  %v7775_v10 = vsel %vm12080_vm2, %v4881_v56, %v4882_v39  ;;  %v4876_v13 = vrot.slane %v7623_v42, 1  ;;  %v4847_v32 = vrot.slane %v7619_v48, 2 }
 0x1ae   : > { %1413 = vrot.lane.b32.xlu1 %v7769_v3, %s7138_s15  ;;  %12189 = vst [vmem:[#allocation50_spill] sm:$0xff] %v7775_v10  ;;  %v7778_v26 = vsel %vm12079_vm3, %v4853_v31, %v4854_v45  ;;  %v7788_v57 = vsel %vm12079_vm3, %v1306_v54, %v1307_v22  ;;  %v4848_v56 = vrot.slane %v7623_v42, 2  ;;  %v7794_v47 = vsel %vm12080_vm2, %v1287_v14, %v1288_v60 }
 0x1af   : > { %12190 = vst [vmem:[#allocation51_spill] sm:$0xff] %v7778_v26  ;;  %vm906_vm9 = vcmp.gt.f32.partialorder %v813_v24, 0.0  ;;  %v939_v25 = vmul.f32 %v7687_v63, %v813_v24  ;;  %4979 = vmatpush.msrb.mxu1 %v7775_v10  ;;  %5091 = vmatpush.msra.mxu2 %v7778_v26  ;;  %v12191_v39 = vrot.slane %v7637_v20, 1  ;;  %v4844_v45 = vrot.slane %v7584_v36, 2  ;;  %v12227_v10 = vld [vmem:[#allocation32_spill] sm:$0xff] }
 0x1b0   : > { %1365 = vrot.lane.b32.xlu2 %v7788_v57, %s7136_s16  ;;  %v4845_v28 = vrot.slane %v7588_v43, 2  ;;  %v7804_v54 = vsel %vm12082_vm1, 0.0, %v1121_v50  ;;  %v7810_v42 = vsel %vm12079_vm3, %v4850_v58, %v4851_v53  ;;  %v12198_v60 = vrot.slane %v7588_v43, 1 }
 0x1b1   : > { %v7799_v31 = vsel %vm12080_vm2, %v12191_v39, %v4879_v38  ;;  %12193 = vst [vmem:[#allocation53_spill] sm:$0xff] %v7804_v54  ;;  %v971_v22 = vsel %vm906_vm9, %v813_v24, %v939_v25  ;;  %1415 = vrot.lane.b32.xlu0 %v7794_v47, %s7138_s15  ;;  %5092 = vmatpush.msra.mxu2 %v7810_v42  ;;  %v12195_v38 = vrot.slane %v7619_v48, 1  ;;  %v12199_v58 = vrot.slane %v7584_v36, 1 }
 0x1b2   : > { %12192 = vst [vmem:[#allocation52_spill] sm:$0xff] %v7799_v31  ;;  %4980 = vmatpush.msrb.mxu1 %v7799_v31  ;;  %v1122_v20 = vrot.slane %v971_v22, 7  ;;  %5794 = vmatmul.msk.f32.gmra.mxu2 %vm523_vm0, %v7443_v4  ;;  %v7822_v24 = vsel %vm12079_vm3, %v4847_v32, %v4848_v56  ;;  %v4903_v48 = vrot.slane %v7460_v18, 2  ;;  %v7839_v56 = vsel %vm12079_vm3, %v4844_v45, %v4845_v28 }
 0x1b3   : > { %12194 = vst [vmem:[#allocation54_spill] sm:$0xff] %v7810_v42  ;;  %v7816_v14 = vsel %vm12080_vm2, %v12195_v38, %v4876_v13  ;;  %v7829_v53 = vsel %vm12080_vm2, %v12199_v58, %v12198_v60  ;;  %v4904_v13 = vrot.slane %v7464_v19, 2  ;;  %5093 = vmatpush.msra.mxu2 %v7822_v24  ;;  %v1594_v36 = vrot.slane %v7804_v54, 1  ;;  %v7860_v38 = vpop.permute.xlu2 %6030 }
 0x1b4   : > { %12196 = vst [vmem:[#allocation55_spill] sm:$0xff] %v7816_v14  ;;  %4981 = vmatpush.msrb.mxu1 %v7816_v14  ;;  %v7834_v25 = vsel %vm12082_vm1, %v1121_v50, %v1122_v20  ;;  %v1233_v4 = vsel %vm12082_vm1, %v1122_v20, 0.0  ;;  %v815_v32 = vpop.f32.mrf.mxu2  ;;  %v1672_v39 = vrot.slane %v7804_v54, 2  ;;  %v12204_v20 = vmov 0 }
 0x1b5   : > { %12197 = vst [vmem:[#allocation56_spill] sm:$0xff] %v7822_v24  ;;  %v816_v43 = vadd.f32 %v7684_v41, %v815_v32  ;;  %v1595_v18 = vrot.slane %v7834_v25, 1  ;;  %v1597_v19 = vrot.slane %v1233_v4, 1  ;;  %v1673_v50 = vrot.slane %v7834_v25, 2  ;;  %5094 = vmatpush.msra.mxu2 %v7839_v56 }
 0x1b6   : > { %12200 = vst [vmem:[#allocation57_spill] sm:$0xff] %v7829_v53  ;;  %4982 = vmatpush.msrb.mxu1 %v7829_v53  ;;  %1427 = vrot.lane.b32.xlu1 %v7483_v34, %s7139_s23  ;;  %v1675_v45 = vrot.slane %v1233_v4, 2  ;;  %v7853_v22 = vsel %vm12079_vm3, %v4903_v48, %v4904_v13  ;;  %v12205_v20 = vsel %vm7856_vm10, 4294967295, %v12204_v20  ;;  %v7876_v13 = vpop.trf.xlu1 }
 0x1b7   : > { %12201 = vst [vmem:[#allocation58_spill] sm:$0xff] %v7834_v25  ;;  %v940_v28 = vmul.f32 %v7687_v63, %v816_v43  ;;  %v7863_v60 = vsel %vm12080_vm2, %v1594_v36, %v1595_v18  ;;  %v7866_v34 = vsel %vm12080_vm2, %v1595_v18, %v1597_v19  ;;  %vm907_vm11 = vcmp.gt.f32.partialorder %v816_v43, 0.0  ;;  %5095 = vmatpush.msra.mxu2 %v7853_v22 }
 0x1b8   : > { %12202 = vst [vmem:[#allocation59_spill] sm:$0xff] %v7839_v56  ;;  %4983 = vmatpush.msrb.mxu1 %v7409_v52  ;;  %1343 = vrot.lane.b32.xlu2 %v7769_v3, %s7135_s26  ;;  %v7874_v48 = vsel %vm12079_vm3, %v1672_v39, %v1673_v50  ;;  %v7882_v4 = vsel %vm12079_vm3, %v1673_v50, %v1675_v45  ;;  %v12211_v39 = vrot.slane %v7689_v1, 7 }
 0x1b9   : > { %12203 = vst [vmem:[#allocation60_spill] sm:$0xff] %v7853_v22  ;;  %1429 = vrot.lane.b32.xlu0 %v7492_v46, %s7139_s23  ;;  %5849 = vmatpush.msk.msra.mxu2 %vm7856_vm10, %v7373_v37  ;;  %v972_v36 = vsel %vm907_vm11, %v816_v43, %v940_v28 }
 0x1ba   : > { %12206 = vst [vmem:[#allocation61_spill] sm:$0xff] %v12205_v20  ;;  %4984 = vmatpush.msrb.mxu1 %v7728_v44  ;;  %5795 = vmatmul.msk.f32.gmra.mxu2 %vm523_vm0, %v7468_v21  ;;  %v1124_v19 = vrot.slane %v972_v36, 7  ;;  %v7917_v45 = vsel %vm12082_vm1, %v12211_v39, 0.0 }
 0x1bb   : > { %12207 = vst [vmem:[#allocation62_spill] sm:$0xff] %v7863_v60  ;;  %5851 = vmatpush.msk.msra.mxu2 %vm7856_vm10, %v7693_v7  ;;  %v1321_v39 = vrot.slane %v7917_v45, 2 }
 0x1bc   : > { %12208 = vst [vmem:[#allocation63_spill] sm:$0xff] %v7866_v34  ;;  %4985 = vmatpush.msrb.mxu1 %v7748_v61  ;;  %v818_v44 = vpop.f32.mrf.mxu2  ;;  %v7920_v28 = vsel %vm12082_vm1, 0.0, %v1124_v19 }
 0x1bd   : > { %12209 = vst [vmem:[#allocation64_spill] sm:$0xff] %v7874_v48  ;;  %v819_v18 = vadd.f32 %v7684_v41, %v818_v44  ;;  %5853 = vmatpush.msk.msra.mxu2 %vm7856_vm10, %v7639_v23 }
 0x1be   : > { %12210 = vst [vmem:[#allocation65_spill] sm:$0xff] %v7882_v4  ;;  %4986 = vmatpush.msrb.mxu1 %v7761_v62  ;;  %1433 = vrot.lane.b32.xlu1 %v7530_v17, %s7139_s23  ;;  %v7925_v44 = vpop.trf.xlu1 }
 0x1bf   : > { %vm908_vm12 = vcmp.gt.f32.partialorder %v819_v18, 0.0  ;;  %v941_v21 = vmul.f32 %v7687_v63, %v819_v18  ;;  %5855 = vmatpush.msk.msra.mxu2 %vm7856_vm10, %v7656_v12  ;;  %12212 = vst [vmem:[#allocation66_spill] sm:$0xff] %v7920_v28 }
 0x1c0   : > { %4987 = vmatpush.msrb.mxu1 %v7778_v26  ;;  %1391 = vrot.lane.b32.xlu2 %v7642_v27, %s7137_s3 }
 0x1c1   : > { %v973_v43 = vsel %vm908_vm12, %v819_v18, %v941_v21  ;;  %1435 = vrot.lane.b32.xlu0 %v7788_v57, %s7139_s23  ;;  %v7912_v50 = vpop.permute.xlu2 %1379  ;;  %5857 = vmatpush.msk.msra.mxu2 %vm7856_vm10, %v7615_v35 }
 0x1c2   : > { %4988 = vmatpush.msrb.mxu1 %v7810_v42  ;;  %v1125_v36 = vrot.slane %v973_v43, 7  ;;  %5796 = vmatmul.msk.f32.gmra.mxu2 %vm523_vm0, %v7497_v55  ;;  %v1320_v43 = vrot.slane %v7713_v30, 2 }
 0x1c3   : > { %5859 = vmatpush.msk.msra.mxu2 %vm7856_vm10, %v7590_v51 }
 0x1c4   : > { %4989 = vmatpush.msrb.mxu1 %v7822_v24  ;;  %v7931_v1 = vsel %vm12082_vm1, %v1124_v19, %v1125_v36  ;;  %v7934_v18 = vsel %vm12082_vm1, %v1125_v36, 0.0  ;;  %v821_v21 = vpop.f32.mrf.mxu2  ;;  %v1599_v19 = vrot.slane %v7920_v28, 1 }
 0x1c5   : > { %12213 = vst [vmem:[#allocation67_spill] sm:$0xff] %v7931_v1  ;;  %v1602_v32 = vrot.slane %v7934_v18, 1  ;;  %v822_v55 = vadd.f32 %v7684_v41, %v821_v21  ;;  %v1600_v36 = vrot.slane %v7931_v1, 1  ;;  %5861 = vmatpush.msk.msra.mxu2 %vm7856_vm10, %v7577_v29 }
 0x1c6   : > { %4990 = vmatpush.msrb.mxu1 %v7839_v56  ;;  %1439 = vrot.lane.b32.xlu1 %v7669_v8, %s7139_s23  ;;  %v7967_v56 = vsel %vm12079_vm3, %v1320_v43, %v1321_v39  ;;  %v7983_v39 = vpop.trf.xlu1 }
 0x1c7   : > { %v942_v58 = vmul.f32 %v7687_v63, %v822_v55  ;;  %v7956_v21 = vsel %vm12080_vm2, %v1599_v19, %v1600_v36  ;;  %v7959_v22 = vsel %vm12080_vm2, %v1600_v36, %v1602_v32  ;;  %vm909_vm13 = vcmp.gt.f32.partialorder %v822_v55, 0.0  ;;  %5863 = vmatpush.msk.msra.mxu2 %vm7856_vm10, %v7570_v16  ;;  %v12219_v19 = vld [vmem:[#allocation24_spill] sm:$0xff] }
 0x1c8   : > { %5881 = vmatpush.msk.msra.mxu1 %vm7856_vm10, %v7639_v23  ;;  %12214 = vst [vmem:[#allocation68_spill] sm:$0xff] %v7956_v21  ;;  %1345 = vrot.lane.b32.xlu2 %v7794_v47, %s7135_s26 }
 0x1c9   : > { %12215 = vst [vmem:[#allocation69_spill] sm:$0xff] %v7959_v22  ;;  %1441 = vrot.lane.b32.xlu0 %v7967_v56, %s7139_s23  ;;  %v7974_v32 = vpop.permute.xlu2 %1357  ;;  %v974_v36 = vsel %vm909_vm13, %v822_v55, %v942_v58 }
 0x1ca   : > { %5883 = vmatpush.msk.msra.mxu1 %vm7856_vm10, %v7656_v12  ;;  %12216 = vst [vmem:[#allocation70_spill] sm:$0xff] %v7974_v32  ;;  %5797 = vmatmul.msk.f32.gmra.mxu2 %vm523_vm0, %v7514_v9  ;;  %v1127_v42 = vrot.slane %v974_v36, 7 }
 0x1cc   : > { %5885 = vmatpush.msk.msra.mxu1 %vm7856_vm10, %v7615_v35  ;;  %v824_v43 = vpop.f32.mrf.mxu2  ;;  %v8005_v36 = vsel %vm12082_vm1, 0.0, %v1127_v42 }
 0x1cd   : > { %v825_v24 = vadd.f32 %v7684_v41, %v824_v43  ;;  %12218 = vst [vmem:[#allocation72_spill] sm:$0xff] %v8005_v36  ;;  %v1604_v53 = vrot.slane %v8005_v36, 1 }
 0x1ce   : > { %5887 = vmatpush.msk.msra.mxu1 %vm7856_vm10, %v7590_v51  ;;  %1453 = vrot.lane.b32.xlu1 %v7503_v0, %s7140_s14 }
 0x1cf   : > { %vm910_vm14 = vcmp.gt.f32.partialorder %v825_v24, 0.0  ;;  %v943_v9 = vmul.f32 %v7687_v63, %v825_v24 }
 0x1d0   : > { %5889 = vmatpush.msk.msra.mxu1 %vm7856_vm10, %v7577_v29  ;;  %1411 = vrot.lane.b32.xlu2 %v7702_v5, %s7138_s15 }
 0x1d1   : > { %v975_v58 = vsel %vm910_vm14, %v825_v24, %v943_v9  ;;  %1455 = vrot.lane.b32.xlu0 %v7517_v11, %s7140_s14  ;;  %v8002_v55 = vpop.permute.xlu2 %1335  ;;  %v1317_v24 = vrot.slane %v7713_v30, 1  ;;  %v1318_v9 = vrot.slane %v7917_v45, 1 }
 0x1d2   : > { %5891 = vmatpush.msk.msra.mxu1 %vm7856_vm10, %v7570_v16  ;;  %12217 = vst [vmem:[#allocation71_spill] sm:$0xff] %v8002_v55  ;;  %v1128_v43 = vrot.slane %v975_v58, 7  ;;  %5798 = vmatmul.msk.f32.gmra.mxu2 %vm523_vm0, %v7543_v33 }
 0x1d4   : > { %5893 = vmatpush.msk.msra.mxu1 %vm7856_vm10, %v12219_v19  ;;  %v8015_v26 = vsel %vm12082_vm1, %v1127_v42, %v1128_v43  ;;  %v8018_v62 = vsel %vm12082_vm1, %v1128_v43, 0.0  ;;  %v827_v61 = vpop.f32.mrf.mxu2  ;;  %v8029_v42 = vpop.trf.xlu1  ;;  %v1319_v43 = vsel %vm12080_vm2, %v1317_v24, %v1318_v9 }
 0x1d5   : > { %12220 = vst [vmem:[#allocation73_spill] sm:$0xff] %v8015_v26  ;;  %v1607_v58 = vrot.slane %v8018_v62, 1  ;;  %v828_v16 = vadd.f32 %v7684_v41, %v827_v61  ;;  %v1605_v33 = vrot.slane %v8015_v26, 1 }
 0x1d6   : > { %5895 = vmatpush.msk.msra.mxu1 %vm7856_vm10, %v7373_v37  ;;  %1459 = vrot.lane.b32.xlu1 %v7580_v49, %s7140_s14 }
 0x1d7   : > { %v944_v45 = vmul.f32 %v7687_v63, %v828_v16  ;;  %v8034_v19 = vsel %vm12080_vm2, %v1605_v33, %v1607_v58  ;;  %v8037_v61 = vsel %vm12080_vm2, %v1604_v53, %v1605_v33  ;;  %vm911_vm15 = vcmp.gt.f32.partialorder %v828_v16, 0.0  ;;  %v12225_v58 = vld [vmem:[#allocation34_spill] sm:$0xff]  ;;  %v12226_v33 = vld [vmem:[#allocation19_spill] sm:$0xff] }
 0x1d8   : > { %12221 = vst [vmem:[#allocation74_spill] sm:$0xff] %v8034_v19  ;;  %1417 = vrot.lane.b32.xlu2 %v1319_v43, %s7138_s15  ;;  %v8048_v24 = vpack.i.bf16 %v8037_v61, %v7959_v22  ;;  %v6034_v51 = vpack.i.bf16 %v7920_v28, %v12226_v33 }
 0x1d9   : > { %12222 = vst [vmem:[#allocation75_spill] sm:$0xff] %v8037_v61  ;;  %1461 = vrot.lane.b32.xlu0 %v7642_v27, %s7140_s14  ;;  %v8044_v14 = vpop.permute.xlu2 %1405  ;;  %v976_v9 = vsel %vm911_vm15, %v828_v16, %v944_v45  ;;  %v12228_v45 = vld [vmem:[#allocation29_spill] sm:$0xff] }
 0x1da   : > { %12223 = vst [vmem:[#allocation76_spill] sm:$0xff] %v8044_v14  ;;  %5799 = vmatmul.msk.f32.gmra.mxu2 %vm523_vm0, %v12225_v58  ;;  %v1130_v29 = vrot.slane %v976_v9, 7 }
 0x1db   : > { %12224 = vst [vmem:[#allocation77_spill] sm:$0xff] %v8048_v24 }
 0x1dc   : > { %v830_v53 = vpop.f32.mrf.mxu2  ;;  %v8059_v12 = vpop.trf.xlu1 }
 0x1dd   : > { %v831_v31 = vadd.f32 %v7684_v41, %v830_v53  ;;  %v8066_v53 = vsel %vm12082_vm1, 0.0, %v1130_v29 }
 0x1de   : > { %6035 = vrot.lane.b32.xlu1 %v6034_v51, %s7140_s14  ;;  %12229 = vst [vmem:[#allocation34_spill] sm:$0xff] %v8066_v53  ;;  %v12230_v51 = vld [vmem:[#allocation38_spill] sm:$0xff]  ;;  %v1609_v15 = vrot.slane %v8066_v53, 1 }
 0x1df   : > { %vm912_vm4 = vcmp.gt.f32.partialorder %v831_v31, 0.0  ;;  %v945_v35 = vmul.f32 %v7687_v63, %v831_v31 }
 0x1e0   : > { %1431 = vrot.lane.b32.xlu2 %v12227_v10, %s7139_s23  ;;  %v1682_v10 = vrot.slane %v8005_v36, 2 }
 0x1e1   : > { %v977_v16 = vsel %vm912_vm4, %v831_v31, %v945_v35  ;;  %1475 = vrot.lane.b32.xlu0 %v12228_v45, %s7141_s19  ;;  %v8063_v58 = vpop.permute.xlu2 %1337 }
 0x1e2   : > { %v1131_v9 = vrot.slane %v977_v16, 7  ;;  %5800 = vmatmul.msk.f32.gmra.mxu2 %vm523_vm0, %v12230_v51  ;;  %v12234_v51 = vld [vmem:[#allocation40_spill] sm:$0xff] }
 0x1e4   : > { %v8071_v40 = vsel %vm12082_vm1, %v1130_v29, %v1131_v9  ;;  %v8074_v23 = vsel %vm12082_vm1, %v1131_v9, 0.0  ;;  %v833_v35 = vpop.f32.mrf.mxu2 }
 0x1e5   : > { %12231 = vst [vmem:[#allocation19_spill] sm:$0xff] %v8071_v40  ;;  %v1612_v31 = vrot.slane %v8074_v23, 1  ;;  %v834_v45 = vadd.f32 %v7684_v41, %v833_v35  ;;  %v1610_v20 = vrot.slane %v8071_v40, 1  ;;  %v12238_v35 = vld [vmem:[#allocation27_spill] sm:$0xff] }
 0x1e6   : > { %1479 = vrot.lane.b32.xlu1 %v7628_v6, %s7141_s19 }
 0x1e7   : > { %v946_v16 = vmul.f32 %v7687_v63, %v834_v45  ;;  %v8084_v29 = vsel %vm12080_vm2, %v1609_v15, %v1610_v20  ;;  %v8087_v9 = vsel %vm12080_vm2, %v1610_v20, %v1612_v31  ;;  %vm913_vm5 = vcmp.gt.f32.partialorder %v834_v45, 0.0  ;;  %v8101_v15 = vpop.permute.xlu1 %1333  ;;  %v12237_v31 = vld [vmem:[#allocation44_spill] sm:$0xff] }
 0x1e8   : > { %12232 = vst [vmem:[#allocation29_spill] sm:$0xff] %v8084_v29  ;;  %1437 = vrot.lane.b32.xlu2 %v12234_v51, %s7139_s23  ;;  %v8099_v6 = vpack.i.bf16 %v8084_v29, %v8034_v19  ;;  %v12241_v19 = vrot.slane %v7373_v37, 1 }
 0x1e9   : > { %12233 = vst [vmem:[#allocation38_spill] sm:$0xff] %v8087_v9  ;;  %1481 = vrot.lane.b32.xlu0 %v7702_v5, %s7141_s19  ;;  %v8095_v7 = vpop.permute.xlu2 %1361  ;;  %v978_v20 = vsel %vm913_vm5, %v834_v45, %v946_v16  ;;  %v12239_v16 = vld [vmem:[#allocation20_spill] sm:$0xff] }
 0x1ea   : > { %12235 = vst [vmem:[#allocation40_spill] sm:$0xff] %v8099_v6  ;;  %5801 = vmatmul.msk.f32.gmra.mxu2 %vm523_vm0, %v12237_v31  ;;  %v1133_v17 = vrot.slane %v978_v20, 7  ;;  %v12240_v31 = vrot.slane %v12239_v16, 1 }
 0x1eb   : > { %12236 = vst [vmem:[#allocation78_spill] sm:$0xff] %v8101_v15 }
 0x1ec   : > { %v836_v22 = vpop.f32.mrf.mxu2 }
 0x1ed   : > { %v837_v61 = vadd.f32 %v7684_v41, %v836_v22  ;;  %v8119_v22 = vsel %vm12080_vm2, %v12241_v19, %v12240_v31 }
 0x1ee   : > { %1485 = vrot.lane.b32.xlu1 %v7794_v47, %s7141_s19  ;;  %12242 = vst [vmem:[#allocation44_spill] sm:$0xff] %v8119_v22  ;;  %v8122_v47 = vsel %vm12082_vm1, 0.0, %v1133_v17 }
 0x1ef   : > { %vm914_vm6 = vcmp.gt.f32.partialorder %v837_v61, 0.0  ;;  %v947_v5 = vmul.f32 %v7687_v63, %v837_v61  ;;  %12243 = vst [vmem:[#allocation20_spill] sm:$0xff] %v8122_v47  ;;  %v8134_v55 = vpop.permute.xlu1 %1359 }
 0x1f0   : > { %1451 = vrot.lane.b32.xlu2 %v12238_v35, %s7140_s14  ;;  %v6044_v35 = vpack.i.bf16 %v7863_v60, %v8119_v22  ;;  %12245 = vst [vmem:[#allocation80_spill] sm:$0xff] %v8134_v55  ;;  %v1683_v55 = vrot.slane %v8015_v26, 2 }
 0x1f1   : > { %v979_v29 = vsel %vm914_vm6, %v837_v61, %v947_v5  ;;  %1487 = vrot.lane.b32.xlu0 %v1319_v43, %s7141_s19  ;;  %v8112_v45 = vpop.permute.xlu2 %1385 }
 0x1f2   : > { %v1134_v20 = vrot.slane %v979_v29, 7  ;;  %5802 = vmatmul.msk.f32.gmra.mxu2 %vm523_vm0, %v7782_v59  ;;  %v1614_v29 = vrot.slane %v8122_v47, 1 }
 0x1f4   : > { %v8127_v61 = vsel %vm12082_vm1, %v1133_v17, %v1134_v20  ;;  %v8130_v43 = vsel %vm12082_vm1, %v1134_v20, 0.0  ;;  %v839_v5 = vpop.f32.mrf.mxu2  ;;  %v6049_v17 = vpack.i.bf16 %v7956_v21, %v7866_v34 }
 0x1f5   : > { %12244 = vst [vmem:[#allocation79_spill] sm:$0xff] %v8127_v61  ;;  %v1617_v19 = vrot.slane %v8130_v43, 1  ;;  %v840_v31 = vadd.f32 %v7684_v41, %v839_v5  ;;  %v1615_v59 = vrot.slane %v8127_v61, 1 }
 0x1f6   : > { %6045 = vrot.lane.b32.xlu1 %v6044_v35, %s7135_s26 }
 0x1f7   : > { %v8144_v20 = vsel %vm12080_vm2, %v1614_v29, %v1615_v59  ;;  %v8147_v22 = vsel %vm12080_vm2, %v1615_v59, %v1617_v19  ;;  %v948_v60 = vmul.f32 %v7687_v63, %v840_v31  ;;  %vm915_vm7 = vcmp.gt.f32.partialorder %v840_v31, 0.0  ;;  %v8170_v14 = vpop.permute.xlu1 %1381 }
 0x1f8   : > { %12246 = vst [vmem:[#allocation81_spill] sm:$0xff] %v8144_v20  ;;  %1457 = vrot.lane.b32.xlu2 %v7556_v2, %s7140_s14  ;;  %v8154_v5 = vpack.i.bf16 %v8144_v20, %v8087_v9  ;;  %v1680_v9 = vrot.slane %v7934_v18, 2 }
 0x1f9   : > { %12247 = vst [vmem:[#allocation82_spill] sm:$0xff] %v8147_v22  ;;  %6050 = vrot.lane.b32.xlu0 %v6049_v17, %s7135_s26  ;;  %v8157_v35 = vpop.permute.xlu2 %1339  ;;  %v980_v19 = vsel %vm915_vm7, %v840_v31, %v948_v60  ;;  %v8180_v31 = vsel %vm12079_vm3, %v1682_v10, %v1683_v55 }
 0x1fa   : > { %12248 = vst [vmem:[#allocation83_spill] sm:$0xff] %v8154_v5  ;;  %5803 = vmatmul.msk.f32.gmra.mxu2 %vm523_vm0, %v7876_v13  ;;  %v1136_v29 = vrot.slane %v980_v19, 7  ;;  %v12252_v19 = vrot.slane %v7931_v1, 2 }
 0x1fb   : > { %12249 = vst [vmem:[#allocation84_spill] sm:$0xff] %v8170_v14 }
 0x1fc   : > { %v842_v59 = vpop.f32.mrf.mxu2  ;;  %12250 = vst [vmem:[#allocation85_spill] sm:$0xff] %v8180_v31  ;;  %v8183_v17 = vsel %vm12082_vm1, 0.0, %v1136_v29 }
 0x1fd   : > { %v843_v34 = vadd.f32 %v7684_v41, %v842_v59  ;;  %12251 = vst [vmem:[#allocation86_spill] sm:$0xff] %v8183_v17 }
 0x1fe   : > { %6060 = vrot.lane.b32.xlu1 %v8099_v6, %s7135_s26 }
 0x1ff   : > { %vm916_vm8 = vcmp.gt.f32.partialorder %v843_v34, 0.0  ;;  %v949_v60 = vmul.f32 %v7687_v63, %v843_v34  ;;  %v8230_v14 = vpop.permute.xlu1 %1363 }
 0x200   : > { %1463 = vrot.lane.b32.xlu2 %v7713_v30, %s7140_s14  ;;  %v8190_v30 = vsel %vm12079_vm3, %v12252_v19, %v1680_v9 }
 0x201   : > { %v981_v13 = vsel %vm916_vm8, %v843_v34, %v949_v60  ;;  %6065 = vrot.lane.b32.xlu0 %v8154_v5, %s7135_s26  ;;  %v8177_v18 = vpop.permute.xlu2 %1341  ;;  %12253 = vst [vmem:[#allocation87_spill] sm:$0xff] %v8190_v30  ;;  %v12254_v34 = vrot.slane %v12239_v16, 2  ;;  %v12255_v60 = vrot.slane %v7373_v37, 2  ;;  %v1695_v37 = vrot.slane %v8130_v43, 2 }
 0x202   : > { %v1137_v59 = vrot.slane %v981_v13, 7  ;;  %5804 = vmatmul.msk.f32.gmra.mxu2 %vm523_vm0, %v7925_v44  ;;  %v6079_v44 = vpack.i.bf16 %v8180_v31, %v8190_v30 }
 0x203   : > { %v8197_v20 = vsel %vm12079_vm3, %v12255_v60, %v12254_v34  ;;  %v8215_v60 = vpop.permute.xlu0 %6025 }
 0x204   : > { %12256 = vst [vmem:[#allocation88_spill] sm:$0xff] %v8197_v20  ;;  %v8200_v10 = vsel %vm12082_vm1, %v1136_v29, %v1137_v59  ;;  %v8203_v13 = vsel %vm12082_vm1, %v1137_v59, 0.0  ;;  %v845_v6 = vpop.f32.mrf.mxu2  ;;  %v6069_v34 = vpack.i.bf16 %v7874_v48, %v8197_v20  ;;  %v1619_v59 = vrot.slane %v8183_v17, 1 }
 0x205   : > { %12257 = vst [vmem:[#allocation89_spill] sm:$0xff] %v8200_v10  ;;  %v1622_v9 = vrot.slane %v8203_v13, 1  ;;  %v846_v19 = vadd.f32 %v7684_v41, %v845_v6  ;;  %v1698_v16 = vrot.slane %v8200_v10, 2  ;;  %v1620_v29 = vrot.slane %v8200_v10, 1 }
 0x206   : > { %6080 = vrot.lane.b32.xlu1 %v6079_v44, %s7136_s16  ;;  %v1697_v6 = vrot.slane %v8183_v17, 2  ;;  %v12258_v44 = vld [vmem:[#allocation31_spill] sm:$0xff] }
 0x207   : > { %v950_v31 = vmul.f32 %v7687_v63, %v846_v19  ;;  %vm917_vm9 = vcmp.gt.f32.partialorder %v846_v19, 0.0  ;;  %v8225_v48 = vsel %vm12080_vm2, %v1620_v29, %v1622_v9  ;;  %v8228_v30 = vsel %vm12080_vm2, %v1619_v59, %v1620_v29 }
 0x208   : > { %1477 = vrot.lane.b32.xlu2 %v12258_v44, %s7141_s19  ;;  %12259 = vst [vmem:[#allocation31_spill] sm:$0xff] %v8225_v48  ;;  %v8234_v43 = vsel %vm12079_vm3, %v1697_v6, %v1698_v16  ;;  %v8240_v44 = vpack.i.bf16 %v8228_v30, %v8147_v22  ;;  %v1685_v9 = vrot.slane %v8018_v62, 2  ;;  %v1687_v29 = vrot.slane %v8066_v53, 2 }
 0x209   : > { %12260 = vst [vmem:[#allocation90_spill] sm:$0xff] %v8228_v30  ;;  %6070 = vrot.lane.b32.xlu0 %v6069_v34, %s7136_s16  ;;  %v982_v59 = vsel %vm917_vm9, %v846_v19, %v950_v31  ;;  %v12263_v34 = vrot.slane %v8127_v61, 2  ;;  %v12265_v30 = vrot.slane %v8071_v40, 2 }
 0x20a   : > { %12261 = vst [vmem:[#allocation91_spill] sm:$0xff] %v8234_v43  ;;  %v8243_v20 = vpop.permute.xlu2 %1365  ;;  %5805 = vmatmul.msk.f32.gmra.mxu2 %vm523_vm0, %v7983_v39  ;;  %v1139_v31 = vrot.slane %v982_v59, 7  ;;  %v8263_v39 = vsel %vm12079_vm3, %v1683_v55, %v1685_v9 }
 0x20b   : > { %12262 = vst [vmem:[#allocation92_spill] sm:$0xff] %v8240_v44  ;;  %v8251_v6 = vsel %vm12079_vm3, %v12263_v34, %v1695_v37  ;;  %v8258_v62 = vsel %vm12079_vm3, %v1687_v29, %v12265_v30  ;;  %v8265_v19 = vpop.permute.xlu0 %1383  ;;  %v8272_v30 = vpop.permute.xlu1 %1387  ;;  %v1700_v29 = vrot.slane %v8203_v13, 2 }
 0x20c   : > { %12264 = vst [vmem:[#allocation93_spill] sm:$0xff] %v8251_v6  ;;  %v848_v5 = vpop.f32.mrf.mxu2  ;;  %v6104_v22 = vpack.i.bf16 %v8234_v43, %v8251_v6  ;;  %v6084_v34 = vpack.i.bf16 %v8258_v62, %v8263_v39 }
 0x20d   : > { %12266 = vst [vmem:[#allocation94_spill] sm:$0xff] %v8258_v62  ;;  %v849_v32 = vadd.f32 %v7684_v41, %v848_v5  ;;  %v8302_v6 = vsel %vm12079_vm3, %v1698_v16, %v1700_v29 }
 0x20e   : > { %6105 = vrot.lane.b32.xlu1 %v6104_v22, %s7136_s16  ;;  %12267 = vst [vmem:[#allocation95_spill] sm:$0xff] %v8263_v39  ;;  %v8276_v22 = vsel %vm12082_vm1, 0.0, %v1139_v31 }
 0x20f   : > { %12268 = vst [vmem:[#allocation96_spill] sm:$0xff] %v8265_v19  ;;  %vm918_vm11 = vcmp.gt.f32.partialorder %v849_v32, 0.0  ;;  %v951_v37 = vmul.f32 %v7687_v63, %v849_v32  ;;  %v1702_v43 = vrot.slane %v8276_v22, 2 }
 0x210   : > { %1483 = vrot.lane.b32.xlu2 %v7769_v3, %s7141_s19  ;;  %12269 = vst [vmem:[#allocation97_spill] sm:$0xff] %v8276_v22 }
 0x211   : > { %v983_v5 = vsel %vm918_vm11, %v849_v32, %v951_v37  ;;  %6085 = vrot.lane.b32.xlu0 %v6084_v34, %s7136_s16  ;;  %v6109_v37 = vpack.i.bf16 %v7931_v1, %v7920_v28  ;;  %12272 = vst [vmem:[#allocation99_spill] sm:$0xff] %v8302_v6 }
 0x212   : > { %v1140_v55 = vrot.slane %v983_v5, 7  ;;  %v8278_v9 = vpop.permute.xlu2 %1343  ;;  %5806 = vmatmul.msk.f32.gmra.mxu2 %vm523_vm0, %v8029_v42  ;;  %v12271_v42 = vld [vmem:[#allocation21_spill] sm:$0xff] }
 0x213   : > { %v8318_v19 = vpop.permute.xlu0 %1403 }
 0x214   : > { %v8284_v59 = vsel %vm12082_vm1, %v1139_v31, %v1140_v55  ;;  %v8287_v3 = vsel %vm12082_vm1, %v1140_v55, 0.0  ;;  %v851_v32 = vpop.f32.mrf.mxu2  ;;  %v6039_v31 = vpack.i.bf16 %v7956_v21, %v12271_v42  ;;  %v1624_v55 = vrot.slane %v8276_v22, 1 }
 0x215   : > { %12270 = vst [vmem:[#allocation98_spill] sm:$0xff] %v8284_v59  ;;  %v1627_v34 = vrot.slane %v8287_v3, 1  ;;  %v852_v5 = vadd.f32 %v7684_v41, %v851_v32  ;;  %v11914_v13 = vrot.slane %v8284_v59, 2  ;;  %v1625_v62 = vrot.slane %v8284_v59, 1 }
 0x216   : > { %6110 = vrot.lane.b32.xlu1 %v6109_v37, %s7137_s3 }
 0x217   : > { %v952_v39 = vmul.f32 %v7687_v63, %v852_v5  ;;  %v8307_v32 = vsel %vm12079_vm3, %v1702_v43, %v11914_v13  ;;  %vm919_vm12 = vcmp.gt.f32.partialorder %v852_v5, 0.0  ;;  %v8313_v42 = vsel %vm12080_vm2, %v1624_v55, %v1625_v62 }
 0x218   : > { %12273 = vst [vmem:[#allocation100_spill] sm:$0xff] %v8307_v32  ;;  %6040 = vrot.lane.b32.xlu2 %v6039_v31, %s7141_s19  ;;  %v6119_v37 = vpack.i.bf16 %v8307_v32, %v8302_v6  ;;  %v8316_v21 = vsel %vm12080_vm2, %v1625_v62, %v1627_v34  ;;  %v8324_v43 = vpack.i.bf16 %v8313_v42, %v8225_v48  ;;  %v8329_v31 = vpop.permute.xlu1 %1407 }
 0x219   : > { %12274 = vst [vmem:[#allocation101_spill] sm:$0xff] %v8313_v42  ;;  %v984_v55 = vsel %vm919_vm12, %v852_v5, %v952_v39 }
 0x21a   : > { %12275 = vst [vmem:[#allocation102_spill] sm:$0xff] %v8316_v21  ;;  %v8326_v29 = vpop.permute.xlu2 %1391  ;;  %6120 = vrot.lane.b32.xlu0 %v6119_v37, %s7136_s16  ;;  %5807 = vmatmul.msk.f32.gmra.mxu2 %vm523_vm0, %v8059_v12  ;;  %v1142_v13 = vrot.slane %v984_v55, 7  ;;  %v6124_v37 = vpack.i.bf16 %v8015_v26, %v8005_v36  ;;  %v1677_v12 = vrot.slane %v7920_v28, 2  ;;  %v6134_v28 = vpack.i.bf16 %v8127_v61, %v8122_v47 }
 0x21b   : > { %12276 = vst [vmem:[#allocation103_spill] sm:$0xff] %v8324_v43  ;;  %v8341_v39 = vpop.permute.xlu0 %1389 }
 0x21c   : > { %12277 = vst [vmem:[#allocation104_spill] sm:$0xff] %v8329_v31  ;;  %v854_v62 = vpop.f32.mrf.mxu2 }
 0x21d   : > { %v855_v34 = vadd.f32 %v7684_v41, %v854_v62  ;;  %v8345_v62 = vsel %vm12082_vm1, 0.0, %v1142_v13 }
 0x21e   : > { %6115 = vrot.lane.b32.xlu1 %v8324_v43, %s7135_s26  ;;  %12278 = vst [vmem:[#allocation105_spill] sm:$0xff] %v8345_v62  ;;  %v12279_v43 = vrot.slane %v7931_v1, 2 }
 0x21f   : > { %vm920_vm13 = vcmp.gt.f32.partialorder %v855_v34, 0.0  ;;  %v953_v16 = vmul.f32 %v7687_v63, %v855_v34 }
 0x220   : > { %6055 = vrot.lane.b32.xlu2 %v8048_v24, %s7135_s26  ;;  %v8353_v42 = vsel %vm12079_vm3, %v1677_v12, %v12279_v43  ;;  %v8361_v48 = vpop.permute.xlu1 %1367 }
 0x221   : > { %v985_v5 = vsel %vm920_vm13, %v855_v34, %v953_v16  ;;  %12280 = vst [vmem:[#allocation106_spill] sm:$0xff] %v8353_v42  ;;  %vm1499_vm13 = vcmask 130048  }
 0x222   : > { %v1143_v55 = vrot.slane %v985_v5, 7  ;;  %v8347_v32 = vpop.permute.xlu2 %1345  ;;  %6125 = vrot.lane.b32.xlu0 %v6124_v37, %s7137_s3  ;;  %v1629_v37 = vrot.slane %v8345_v62, 1 }
 0x223   : > { %v8381_v36 = vpop.permute.xlu0 %1369 }
 0x224   : > { %v8356_v6 = vsel %vm12082_vm1, %v1142_v13, %v1143_v55  ;;  %v1240_v16 = vsel %vm12082_vm1, %v1143_v55, 0.0  ;;  %v857_v34 = vpop.f32.mrf.mxu2  ;;  %v6074_v13 = vpack.i.bf16 %v8353_v42, %v7882_v4 }
 0x225   : > { %12281 = vst [vmem:[#allocation107_spill] sm:$0xff] %v8356_v6  ;;  %v1632_v5 = vrot.slane %v1240_v16, 1  ;;  %v858_v26 = vadd.f32 %v7684_v41, %v857_v34  ;;  %v1630_v24 = vrot.slane %v8356_v6, 1  ;;  %v1710_v31 = vrot.slane %v1240_v16, 2 }
 0x226   : > { %6135 = vrot.lane.b32.xlu1 %v6134_v28, %s7137_s3 }
 0x227   : > { %v954_v43 = vmul.f32 %v7687_v63, %v858_v26  ;;  %v8371_v12 = vsel %vm12080_vm2, %v1629_v37, %v1630_v24  ;;  %v8374_v55 = vsel %vm12080_vm2, %v1630_v24, %v1632_v5  ;;  %vm921_vm14 = vcmp.gt.f32.partialorder %v858_v26, 0.0 }
 0x228   : > { %12282 = vst [vmem:[#allocation108_spill] sm:$0xff] %v8371_v12  ;;  %6075 = vrot.lane.b32.xlu2 %v6074_v13, %s7136_s16  ;;  %v8379_v34 = vpack.i.bf16 %v8371_v12, %v8316_v21  ;;  %v6159_v24 = vpack.i.bf16 %v8356_v6, %v8345_v62  ;;  %v1690_v21 = vrot.slane %v8074_v23, 2  ;;  %v8394_v1 = vpop.permute.xlu1 %1393  ;;  %v12286_v23 = vrot.slane %v8127_v61, 2 }
 0x229   : > { %12283 = vst [vmem:[#allocation109_spill] sm:$0xff] %v8374_v55  ;;  %v986_v4 = vsel %vm921_vm14, %v858_v26, %v954_v43  ;;  %v6144_v26 = vpack.i.bf16 %v8200_v10, %v8183_v17  ;;  %v1692_v43 = vrot.slane %v8122_v47, 2  ;;  %v12288_v10 = vrot.slane %v8071_v40, 2 }
 0x22a   : > { %12284 = vst [vmem:[#allocation110_spill] sm:$0xff] %v8379_v34  ;;  %v8383_v28 = vpop.permute.xlu2 %1411  ;;  %6140 = vrot.lane.b32.xlu0 %v8379_v34, %s7135_s26  ;;  %v1145_v13 = vrot.slane %v986_v4, 7  ;;  %vm1516_vm14 = vcmask 392192  }
 0x22b   : > { %v8411_v37 = vsel %vm12079_vm3, %v1692_v43, %v12286_v23  ;;  %v8413_v12 = vpop.permute.xlu0 %1409  ;;  %v8418_v47 = vsel %vm12079_vm3, %v12288_v10, %v1690_v21 }
 0x22c   : > { %v8403_v4 = vsel %vm12082_vm1, 0.0, %v1145_v13  ;;  %12287 = vst [vmem:[#allocation112_spill] sm:$0xff] %v8411_v37  ;;  %v6094_v43 = vpack.i.bf16 %v8411_v37, %v8418_v47 }
 0x22d   : > { %v860_v5 = vpop.f32.mrf.mxu2  ;;  %12285 = vst [vmem:[#allocation111_spill] sm:$0xff] %v8403_v4  ;;  %v1712_v23 = vrot.slane %v8403_v4, 2  ;;  %v1634_v21 = vrot.slane %v8403_v4, 1 }
 0x22e   : > { %v861_v42 = vadd.f32 %v7684_v41, %v860_v5  ;;  %6160 = vrot.lane.b32.xlu1 %v6159_v24, %s7137_s3  ;;  %12289 = vst [vmem:[#allocation113_spill] sm:$0xff] %v8418_v47 }
 0x230   : > { %vm922_vm15 = vcmp.gt.f32.partialorder %v861_v42, 0.0  ;;  %v955_v34 = vmul.f32 %v7687_v63, %v861_v42  ;;  %6090 = vrot.lane.b32.xlu2 %v8240_v44, %s7135_s26 }
 0x232   : > { %v987_v5 = vsel %vm922_vm15, %v861_v42, %v955_v34  ;;  %v8405_v24 = vpop.permute.xlu2 %1417  ;;  %6145 = vrot.lane.b32.xlu0 %v6144_v26, %s7137_s3  ;;  %v11953_v42 = vrot.slane %v8356_v6, 2  ;;  %vm1525_vm15 = vcmask 523264  }
 0x233   : > { %v1146_v44 = vrot.slane %v987_v5, 7 }
 0x235   : > { %v8422_v34 = vsel %vm12082_vm1, %v1145_v13, %v1146_v44  ;;  %v1241_v26 = vsel %vm12082_vm1, %v1146_v44, 0.0  ;;  %v863_v5 = vpop.f32.mrf.mxu2  ;;  %v8436_v44 = vsel %vm12079_vm3, %v11953_v42, %v1710_v31  ;;  %v6099_v42 = vpack.i.bf16 %v7834_v25, %v7804_v54 }
 0x236   : > { %12290 = vst [vmem:[#allocation114_spill] sm:$0xff] %v8422_v34  ;;  %v1637_v17 = vrot.slane %v1241_v26, 1  ;;  %v1713_v16 = vrot.slane %v8422_v34, 2  ;;  %v1635_v61 = vrot.slane %v8422_v34, 1  ;;  %v864_v10 = vadd.f32 %v7684_v41, %v863_v5  ;;  %v8447_v34 = vpop.permute.xlu1 %1413 }
 0x237   : > { %12291 = vst [vmem:[#allocation115_spill] sm:$0xff] %v8436_v44 }
 0x238   : > { %6095 = vrot.lane.b32.xlu2 %v6094_v43, %s7136_s16  ;;  %v8439_v13 = vsel %vm12079_vm3, %v1712_v23, %v1713_v16  ;;  %v8442_v47 = vsel %vm12080_vm2, %v1635_v61, %v1637_v17  ;;  %v8445_v37 = vsel %vm12080_vm2, %v1634_v21, %v1635_v61  ;;  %v956_v5 = vmul.f32 %v7687_v63, %v864_v10  ;;  %v8461_v61 = vpop.permute.xlu0 %1415 }
 0x239   : > { %12292 = vst [vmem:[#allocation116_spill] sm:$0xff] %v8439_v13  ;;  %v6169_v43 = vpack.i.bf16 %v8439_v13, %v8436_v44  ;;  %vm923_vm4 = vcmp.gt.f32.partialorder %v864_v10, 0.0  ;;  %v8458_v17 = vpack.i.bf16 %v8445_v37, %v8374_v55 }
 0x23a   : > { %12293 = vst [vmem:[#allocation117_spill] sm:$0xff] %v8442_v47  ;;  %v8452_v4 = vpop.permute.xlu2 %1431  ;;  %v988_v23 = vsel %vm923_vm4, %v864_v10, %v956_v5  ;;  %v1715_v5 = vrot.slane %v1241_v26, 2  ;;  %vm1534_vm4 = vcmask 654336  }
 0x23b   : > { %12294 = vst [vmem:[#allocation118_spill] sm:$0xff] %v8445_v37  ;;  %6170 = vrot.lane.b32.xlu1 %v6169_v43, %s7136_s16  ;;  %v1148_v44 = vrot.slane %v988_v23, 7 }
 0x23c   : > { %12295 = vst [vmem:[#allocation119_spill] sm:$0xff] %v8452_v4 }
 0x23d   : > { %12296 = vst [vmem:[#allocation120_spill] sm:$0xff] %v8458_v17  ;;  %v866_v21 = vpop.f32.mrf.mxu2  ;;  %v8473_v37 = vsel %vm12082_vm1, 0.0, %v1148_v44 }
 0x23e   : > { %v867_v13 = vadd.f32 %v7684_v41, %v866_v21  ;;  %v8470_v55 = vpop.permute.xlu1 %1427  ;;  %12298 = vst [vmem:[#allocation122_spill] sm:$0xff] %v8473_v37  ;;  %v6129_v21 = vpack.i.bf16 %v8071_v40, %v8066_v53  ;;  %v8495_v53 = vsel %vm12079_vm3, %v1713_v16, %v1715_v5  ;;  %v12307_v5 = vrot.slane %v8356_v6, 2 }
 0x23f   : > { %12297 = vst [vmem:[#allocation121_spill] sm:$0xff] %v8470_v55 }
 0x240   : > { %6100 = vrot.lane.b32.xlu2 %v6099_v42, %s7137_s3  ;;  %vm924_vm5 = vcmp.gt.f32.partialorder %v867_v13, 0.0  ;;  %v957_v31 = vmul.f32 %v7687_v63, %v867_v13  ;;  %v8483_v54 = vpop.permute.xlu0 %1429  ;;  %12301 = vst [vmem:[#allocation125_spill] sm:$0xff] %v8495_v53 }
 0x241   : > { %12300 = vst [vmem:[#allocation124_spill] sm:$0xff] %v8483_v54 }
 0x242   : > { %v8468_v4 = vpop.permute.xlu2 %1437  ;;  %v989_v43 = vsel %vm924_vm5, %v867_v13, %v957_v31  ;;  %v1717_v31 = vrot.slane %v8473_v37, 2  ;;  %vm1543_vm5 = vcmask 785408  }
 0x243   : > { %v1149_v10 = vrot.slane %v989_v43, 7  ;;  %v1639_v43 = vrot.slane %v8473_v37, 1 }
 0x245   : > { %v8476_v25 = vsel %vm12082_vm1, %v1148_v44, %v1149_v10  ;;  %v8479_v23 = vsel %vm12082_vm1, %v1149_v10, 0.0  ;;  %v869_v42 = vpop.f32.mrf.mxu2  ;;  %v1705_v44 = vrot.slane %v8287_v3, 2 }
 0x246   : > { %12299 = vst [vmem:[#allocation123_spill] sm:$0xff] %v8476_v25  ;;  %v1642_v15 = vrot.slane %v8479_v23, 1  ;;  %v870_v13 = vadd.f32 %v7684_v41, %v869_v42  ;;  %v11968_v26 = vrot.slane %v8476_v25, 2  ;;  %v1640_v10 = vrot.slane %v8476_v25, 1 }
 0x247   : > { %v1707_v42 = vrot.slane %v8345_v62, 2 }
 0x248   : > { %6130 = vrot.lane.b32.xlu2 %v6129_v21, %s7137_s3  ;;  %v958_v40 = vmul.f32 %v7687_v63, %v870_v13  ;;  %v8500_v41 = vsel %vm12079_vm3, %v1717_v31, %v11968_v26  ;;  %vm925_vm6 = vcmp.gt.f32.partialorder %v870_v13, 0.0  ;;  %v8508_v37 = vsel %vm12080_vm2, %v1639_v43, %v1640_v10 }
 0x249   : > { %12302 = vst [vmem:[#allocation126_spill] sm:$0xff] %v8500_v41  ;;  %v6179_v21 = vpack.i.bf16 %v8500_v41, %v8495_v53  ;;  %v8511_v54 = vsel %vm12080_vm2, %v1640_v10, %v1642_v15  ;;  %v8515_v16 = vpack.i.bf16 %v8508_v37, %v8442_v47  ;;  %v8520_v31 = vsel %vm12079_vm3, %v1707_v42, %v12307_v5  ;;  %v8525_v41 = vpop.permute.xlu1 %1433  ;;  %v8539_v5 = vld [vmem:[%s11815_s6] ss:$0 sm:$0xff] }
 0x24a   : > { %v8503_v3 = vpop.permute.xlu2 %1451  ;;  %12304 = vst [vmem:[#allocation128_spill] sm:$0xff] %v8508_v37  ;;  %v990_v43 = vsel %vm925_vm6, %v870_v13, %v958_v40  ;;  %v12309_v15 = vrot.slane %v8284_v59, 2  ;;  %v8543_v13 = vpop.permute.xlu0 %1435 }
 0x24b   : > { %12303 = vst [vmem:[#allocation127_spill] sm:$0xff] %v8503_v3  ;;  %6180 = vrot.lane.b32.xlu0 %v6179_v21, %s7136_s16  ;;  %6175 = vrot.lane.b32.xlu1 %v8515_v16, %s7135_s26  ;;  %v1151_v40 = vrot.slane %v990_v43, 7 }
 0x24c   : > { %12305 = vst [vmem:[#allocation129_spill] sm:$0xff] %v8511_v54  ;;  %v8532_v10 = vsel %vm12079_vm3, %v12309_v15, %v1705_v44 }
 0x24d   : > { %12306 = vst [vmem:[#allocation130_spill] sm:$0xff] %v8515_v16  ;;  %v872_v53 = vpop.f32.mrf.mxu2  ;;  %v6149_v42 = vpack.i.bf16 %v8520_v31, %v8532_v10  ;;  %v8549_v16 = vsel %vm12082_vm1, 0.0, %v1151_v40 }
 0x24e   : > { %12308 = vst [vmem:[#allocation131_spill] sm:$0xff] %v8520_v31  ;;  %v873_v21 = vadd.f32 %v8539_v5, %v872_v53 }
 0x24f   : > { %12310 = vst [vmem:[#allocation132_spill] sm:$0xff] %v8532_v10 }
 0x250   : > { %6150 = vrot.lane.b32.xlu2 %v6149_v42, %s7136_s16  ;;  %vm926_vm7 = vcmp.gt.f32.partialorder %v873_v21, 0.0  ;;  %v959_v44 = vmul.f32 %v7687_v63, %v873_v21  ;;  %12311 = vst [vmem:[#allocation133_spill] sm:$0xff] %v8549_v16  ;;  %v6154_v42 = vpack.i.bf16 %v8284_v59, %v8276_v22 }
 0x251   : > { %v8557_v62 = vpop.permute.xlu1 %1439 }
 0x252   : > { %v8546_v15 = vpop.permute.xlu2 %1457  ;;  %v991_v26 = vsel %vm926_vm7, %v873_v21, %v959_v44  ;;  %v1644_v21 = vrot.slane %v8549_v16, 1  ;;  %v8573_v22 = vpop.permute.xlu0 %1441  ;;  %vm12127_vm7 = vcmask 916480  }
 0x253   : > { %v1152_v37 = vrot.slane %v991_v26, 7 }
 0x255   : > { %v8552_v10 = vsel %vm12082_vm1, %v1151_v40, %v1152_v37  ;;  %v1243_v53 = vsel %vm12082_vm1, %v1152_v37, 0.0  ;;  %v875_v43 = vpop.f32.mrf.mxu2 }
 0x256   : > { %12312 = vst [vmem:[#allocation134_spill] sm:$0xff] %v8552_v10  ;;  %v1647_v47 = vrot.slane %v1243_v53, 1  ;;  %v876_v31 = vadd.f32 %v8539_v5, %v875_v43  ;;  %v1645_v44 = vrot.slane %v8552_v10, 1  ;;  %v1723_v3 = vrot.slane %v8552_v10, 2 }
 0x258   : > { %6155 = vrot.lane.b32.xlu2 %v6154_v42, %s7137_s3  ;;  %v8564_v26 = vsel %vm12080_vm2, %v1644_v21, %v1645_v44  ;;  %v960_v37 = vmul.f32 %v7687_v63, %v876_v31  ;;  %vm927_vm8 = vcmp.gt.f32.partialorder %v876_v31, 0.0  ;;  %v8576_v43 = vsel %vm12080_vm2, %v1645_v44, %v1647_v47 }
 0x259   : > { %12313 = vst [vmem:[#allocation135_spill] sm:$0xff] %v8564_v26  ;;  %v8571_v59 = vpack.i.bf16 %v8564_v26, %v8511_v54  ;;  %v1720_v54 = vrot.slane %v8479_v23, 2  ;;  %v8587_v55 = vpop.permute.xlu1 %1453 }
 0x25a   : > { %v8567_v40 = vpop.permute.xlu2 %1463  ;;  %12315 = vst [vmem:[#allocation137_spill] sm:$0xff] %v8576_v43  ;;  %v992_v21 = vsel %vm927_vm8, %v876_v31, %v960_v37  ;;  %v8596_v26 = vpop.permute.xlu0 %1455 }
 0x25b   : > { %12314 = vst [vmem:[#allocation136_spill] sm:$0xff] %v8571_v59  ;;  %6185 = vrot.lane.b32.xlu0 %v8571_v59, %s7135_s26  ;;  %v1154_v47 = vrot.slane %v992_v21, 7  ;;  %v1722_v59 = vrot.slane %v8549_v16, 2 }
 0x25c   : > { %12316 = vst [vmem:[#allocation138_spill] sm:$0xff] %v8587_v55 }
 0x25d   : > { %v878_v6 = vpop.f32.mrf.mxu2  ;;  %12319 = vst [vmem:[#allocation141_spill] sm:$0xff] %v8596_v26  ;;  %v8599_v23 = vsel %vm12082_vm1, 0.0, %v1154_v47 }
 0x25e   : > { %v879_v46 = vadd.f32 %v8539_v5, %v878_v6  ;;  %v8594_v6 = vsel %vm12079_vm3, %v1722_v59, %v1723_v3  ;;  %12320 = vst [vmem:[#allocation142_spill] sm:$0xff] %v8599_v23 }
 0x25f   : > { %12318 = vst [vmem:[#allocation140_spill] sm:$0xff] %v8594_v6 }
 0x260   : > { %6165 = vrot.lane.b32.xlu2 %v8458_v17, %s7135_s26  ;;  %vm928_vm9 = vcmp.gt.f32.partialorder %v879_v46, 0.0  ;;  %v961_v44 = vmul.f32 %v7687_v63, %v879_v46  ;;  %v12321_v17 = vrot.slane %v8476_v25, 2  ;;  %v1725_v25 = vrot.slane %v1243_v53, 2 }
 0x262   : > { %v8591_v42 = vpop.permute.xlu2 %1477  ;;  %v993_v31 = vsel %vm928_vm9, %v879_v46, %v961_v44  ;;  %v8604_v21 = vsel %vm12079_vm3, %v12321_v17, %v1720_v54  ;;  %v1727_v54 = vrot.slane %v8599_v23, 2  ;;  %v1649_v17 = vrot.slane %v8599_v23, 1 }
 0x263   : > { %12317 = vst [vmem:[#allocation139_spill] sm:$0xff] %v8591_v42  ;;  %v1155_v37 = vrot.slane %v993_v31, 7  ;;  %v6189_v59 = vpack.i.bf16 %v8594_v6, %v8604_v21  ;;  %v8638_v23 = vsel %vm12079_vm3, %v1723_v3, %v1725_v25 }
 0x264   : > { %12322 = vst [vmem:[#allocation143_spill] sm:$0xff] %v8604_v21 }
 0x265   : > { %v8607_v10 = vsel %vm12082_vm1, %v1154_v47, %v1155_v37  ;;  %v8610_v16 = vsel %vm12082_vm1, %v1155_v37, 0.0  ;;  %v881_v46 = vpop.f32.mrf.mxu2  ;;  %12326 = vst [vmem:[#allocation147_spill] sm:$0xff] %v8638_v23 }
 0x266   : > { %12323 = vst [vmem:[#allocation144_spill] sm:$0xff] %v8607_v10  ;;  %v1652_v44 = vrot.slane %v8610_v16, 1  ;;  %v882_v31 = vadd.f32 %v8539_v5, %v881_v46  ;;  %v12006_v26 = vrot.slane %v8607_v10, 2  ;;  %v1650_v47 = vrot.slane %v8607_v10, 1 }
 0x268   : > { %6190 = vrot.lane.b32.xlu2 %v6189_v59, %s7136_s16  ;;  %v962_v37 = vmul.f32 %v7687_v63, %v882_v31  ;;  %v8625_v21 = vsel %vm12079_vm3, %v1727_v54, %v12006_v26  ;;  %v8628_v46 = vsel %vm12080_vm2, %v1649_v17, %v1650_v47  ;;  %v8631_v53 = vsel %vm12080_vm2, %v1650_v47, %v1652_v44  ;;  %v8633_v59 = vpop.permute.xlu1 %1459  ;;  %v8648_v26 = vpop.permute.xlu0 %1461 }
 0x269   : > { %12324 = vst [vmem:[#allocation145_spill] sm:$0xff] %v8625_v21  ;;  %vm929_vm11 = vcmp.gt.f32.partialorder %v882_v31, 0.0  ;;  %v6199_v42 = vpack.i.bf16 %v8625_v21, %v8638_v23  ;;  %v8646_v17 = vpack.i.bf16 %v8628_v46, %v8576_v43  ;;  %v1507_v54 = vsel %vm1499_vm13, %v7642_v27, %v8347_v32 }
 0x26a   : > { %12325 = vst [vmem:[#allocation146_spill] sm:$0xff] %v8628_v46  ;;  %v8635_v6 = vpop.permute.xlu2 %1483  ;;  %v994_v44 = vsel %vm929_vm11, %v882_v31, %v962_v37 }
 0x26b   : > { %12327 = vst [vmem:[#allocation148_spill] sm:$0xff] %v8646_v17  ;;  %6200 = vrot.lane.b32.xlu1 %v6199_v42, %s7136_s16  ;;  %v1157_v25 = vrot.slane %v994_v44, 7 }
 0x26d   : > { %v884_v47 = vpop.f32.mrf.mxu2  ;;  %v8661_v42 = vsel %vm12082_vm1, 0.0, %v1157_v25 }
 0x26e   : > { %v885_v55 = vadd.f32 %v8539_v5, %v884_v47  ;;  %12329 = vst [vmem:[#allocation150_spill] sm:$0xff] %v8661_v42  ;;  %v1515_v47 = vsel %vm523_vm0, %v1507_v54, %v8381_v36 }
 0x26f   : > { %v1524_v36 = vsel %vm1516_vm14, %v1515_v47, %v8394_v1  ;;  %v1504_v1 = vsel %vm1499_vm13, %v7517_v11, %v8157_v35 }
 0x270   : > { %6195 = vrot.lane.b32.xlu2 %v8646_v17, %s7135_s26  ;;  %vm930_vm12 = vcmp.gt.f32.partialorder %v885_v55, 0.0  ;;  %v963_v3 = vmul.f32 %v7687_v63, %v885_v55  ;;  %v8658_v43 = vpop.permute.xlu1 %6035  ;;  %v8679_v54 = vpop.permute.xlu0 %1475  ;;  %v1512_v35 = vsel %vm523_vm0, %v1504_v1, %v8230_v14 }
 0x271   : > { %12328 = vst [vmem:[#allocation149_spill] sm:$0xff] %v8658_v43  ;;  %v12333_v47 = vunpack.i.l.bf16 %v8658_v43  ;;  %v12434_v43 = vld [vmem:[#allocation110_spill] sm:$0xff] }
 0x272   : > { %v995_v31 = vsel %vm930_vm12, %v885_v55, %v963_v3  ;;  %v8671_v17 = vpop.permute.xlu2 %6040  ;;  %v1654_v55 = vrot.slane %v8661_v42, 1 }
 0x273   : > { %v1158_v37 = vrot.slane %v995_v31, 7  ;;  %12331 = vst [vmem:[#allocation152_spill] sm:$0xff] %v8671_v17  ;;  %v6042_v31 = vunpack.i.l.bf16 %v8671_v17 }
 0x275   : > { %v8666_v44 = vsel %vm12082_vm1, %v1157_v25, %v1158_v37  ;;  %v8669_v21 = vsel %vm12082_vm1, %v1158_v37, 0.0  ;;  %v887_v46 = vpop.f32.mrf.mxu2 }
 0x276   : > { %12330 = vst [vmem:[#allocation151_spill] sm:$0xff] %v8666_v44  ;;  %v888_v27 = vadd.f32 %v8539_v5, %v887_v46  ;;  %v1655_v3 = vrot.slane %v8666_v44, 1  ;;  %v1657_v25 = vrot.slane %v8669_v21, 1  ;;  %v1533_v46 = vsel %vm1525_vm15, %v1524_v36, %v8405_v24 }
 0x277   : > { %v1542_v23 = vsel %vm1534_vm4, %v1533_v46, %v8573_v22 }
 0x278   : > { %v964_v37 = vmul.f32 %v7687_v63, %v888_v27  ;;  %v8687_v32 = vsel %vm12080_vm2, %v1654_v55, %v1655_v3  ;;  %vm931_vm6 = vcmp.gt.f32.partialorder %v888_v27, 0.0  ;;  %v1551_v17 = vsel %vm1543_vm5, %v1542_v23, %v12333_v47  ;;  %v8724_v1 = vpop.permute.xlu1 %1479 }
 0x279   : > { %12332 = vst [vmem:[#allocation153_spill] sm:$0xff] %v8687_v32  ;;  %v8698_v24 = vsel %vm12127_vm7, %v1551_v17, %v6042_v31  ;;  %v2667_v55 = vmul.f32 %v7409_v52, %v7409_v52  ;;  %v8703_v36 = vsel %vm12080_vm2, %v1655_v3, %v1657_v25  ;;  %v8707_v22 = vpack.i.bf16 %v8687_v32, %v8631_v53 }
 0x27a   : > { %12334 = vst [vmem:[#allocation154_spill] sm:$0xff] %v8703_v36  ;;  %v996_v46 = vsel %vm931_vm6, %v888_v27, %v964_v37  ;;  %v1521_v17 = vsel %vm1516_vm14, %v1512_v35, %v8272_v30  ;;  %v2666_v31 = vmul.f32 %v8698_v24, %v8698_v24  ;;  %v8726_v30 = vpop.permute.xlu0 %1481 }
 0x27b   : > { %v1160_v25 = vrot.slane %v996_v46, 7  ;;  %v2696_v27 = vsel %vm1499_vm13, %v2667_v55, 0.0  ;;  %v1530_v14 = vsel %vm1525_vm15, %v1521_v17, %v8383_v28 }
 0x27c   : > { %v1539_v37 = vsel %vm1534_vm4, %v1530_v14, %v8543_v13  ;;  %v2697_v3 = vadd.f32 %v2696_v27, %v2666_v31  ;;  %v2661_v31 = vmul.f32 %v12234_v51, %v12234_v51 }
 0x27d   : > { %v890_v11 = vpop.f32.mrf.mxu2  ;;  %v1548_v35 = vsel %vm1543_vm5, %v1539_v37, %v8633_v59  ;;  %v8735_v55 = vsel %vm12082_vm1, 0.0, %v1160_v25  ;;  %v1505_v59 = vsel %vm1499_vm13, %v7556_v2, %v8177_v18 }
 0x27e   : > { %v891_v23 = vadd.f32 %v8539_v5, %v890_v11  ;;  %v8732_v32 = vsel %vm12127_vm7, %v1548_v35, %v8635_v6  ;;  %12335 = vst [vmem:[#allocation155_spill] sm:$0xff] %v8735_v55  ;;  %v1659_v27 = vrot.slane %v8735_v55, 1  ;;  %v1513_v2 = vsel %vm523_vm0, %v1505_v59, %v8243_v20 }
 0x27f   : > { %v1522_v35 = vsel %vm1516_vm14, %v1513_v2, %v8341_v39 }
 0x280   : > { %vm932_vm8 = vcmp.gt.f32.partialorder %v891_v23, 0.0  ;;  %v965_v47 = vmul.f32 %v7687_v63, %v891_v23  ;;  %v1486_v59 = vpop.permute.xlu1 %1485 }
 0x282   : > { %v997_v11 = vsel %vm932_vm8, %v891_v23, %v965_v47  ;;  %v2660_v47 = vmul.f32 %v8732_v32, %v8732_v32 }
 0x283   : > { %v1161_v46 = vrot.slane %v997_v11, 7 }
 0x285   : > { %v8738_v28 = vsel %vm12082_vm1, %v1160_v25, %v1161_v46  ;;  %v8741_v13 = vsel %vm12082_vm1, %v1161_v46, 0.0  ;;  %v893_v17 = vpop.f32.mrf.mxu2  ;;  %2698 = vadd.xlane.f32.xlu0 %v2697_v3  ;;  %v1506_v25 = vsel %vm1499_vm13, %v7580_v49, %v8278_v9  ;;  %v2684_v9 = vsel %vm1499_vm13, %v2661_v31, 0.0 }
 0x286   : > { %12336 = vst [vmem:[#allocation156_spill] sm:$0xff] %v8738_v28  ;;  %v1662_v23 = vrot.slane %v8741_v13, 1  ;;  %v894_v6 = vadd.f32 %v8539_v5, %v893_v17  ;;  %v1660_v3 = vrot.slane %v8738_v28, 1  ;;  %v1514_v37 = vsel %vm523_vm0, %v1506_v25, %v8361_v48  ;;  %v1488_v48 = vpop.permute.xlu0 %1487 }
 0x287   : > { %v1523_v11 = vsel %vm1516_vm14, %v1514_v37, %v8326_v29  ;;  %v2685_v20 = vadd.f32 %v2684_v9, %v2660_v47  ;;  %v1531_v46 = vsel %vm1525_vm15, %v1522_v35, %v8447_v34 }
 0x288   : > { %v8760_v18 = vsel %vm12080_vm2, %v1660_v3, %v1662_v23  ;;  %v8763_v14 = vsel %vm12080_vm2, %v1659_v27, %v1660_v3  ;;  %v966_v49 = vmul.f32 %v7687_v63, %v894_v6  ;;  %vm933_vm9 = vcmp.gt.f32.partialorder %v894_v6, 0.0 }
 0x289   : > { %v1532_v17 = vsel %vm1525_vm15, %v1523_v11, %v8461_v61  ;;  %v1540_v29 = vsel %vm1534_vm4, %v1531_v46, %v8468_v4  ;;  %v6027_v4 = vunpack.i.l.bf16 %v8215_v60  ;;  %v6032_v46 = vunpack.i.l.bf16 %v7860_v38 }
 0x28a   : > { %v1541_v31 = vsel %vm1534_vm4, %v1532_v17, %v8557_v62  ;;  %v1549_v25 = vsel %vm1543_vm5, %v1540_v29, %v8648_v26  ;;  %v998_v61 = vsel %vm933_vm9, %v894_v6, %v966_v49  ;;  %v8796_v62 = vpack.i.bf16 %v8763_v14, %v8703_v36  ;;  %v12423_v36 = vld [vmem:[#allocation77_spill] sm:$0xff] }
 0x28b   : > { %v1550_v34 = vsel %vm1543_vm5, %v1541_v31, %v8567_v40  ;;  %v8789_v3 = vsel %vm12127_vm7, %v1549_v25, %v1486_v59  ;;  %v2663_v40 = vmul.f32 %v7669_v8, %v7669_v8  ;;  %v1503_v6 = vsel %vm1499_vm13, %v7503_v0, %v8063_v58 }
 0x28c   : > { %v8792_v27 = vsel %vm12127_vm7, %v1550_v34, %v1488_v48  ;;  %12337 = vst [vmem:[#allocation157_spill] sm:$0xff] %v8796_v62  ;;  %v1163_v2 = vrot.slane %v998_v61, 7  ;;  %v1511_v37 = vsel %vm523_vm0, %v1503_v6, %v8095_v7  ;;  %v2662_v49 = vmul.f32 %v8789_v3, %v8789_v3 }
 0x28d   : > { %v896_v39 = vpop.f32.mrf.mxu2  ;;  %2686 = vadd.xlane.f32.xlu0 %v2685_v20  ;;  %v2664_v9 = vmul.f32 %v8792_v27, %v8792_v27  ;;  %v1520_v35 = vsel %vm1516_vm14, %v1511_v37, %v8112_v45  ;;  %v1500_v0 = vsel %vm1499_vm13, %v12226_v33, %v6027_v4  ;;  %v2688_v58 = vsel %vm1499_vm13, %v2663_v40, 0.0  ;;  %v12343_v37 = vld [vmem:[#allocation121_spill] sm:$0xff] }
 0x28e   : > { %v897_v47 = vadd.f32 %v8539_v5, %v896_v39  ;;  %v2665_v5 = vmul.f32 %v7967_v56, %v7967_v56  ;;  %v1529_v7 = vsel %vm1525_vm15, %v1520_v35, %v8413_v12  ;;  %v8827_v59 = vsel %vm12082_vm1, 0.0, %v1163_v2  ;;  %v8860_v6 = vpop.permute.xlu0 %6050  ;;  %v12344_v35 = vld [vmem:[#allocation127_spill] sm:$0xff] }
 0x28f   : > { %v1538_v17 = vsel %vm1534_vm4, %v1529_v7, %v8525_v41  ;;  %12338 = vst [vmem:[#allocation158_spill] sm:$0xff] %v8827_v59  ;;  %v2689_v29 = vadd.f32 %v2688_v58, %v2662_v49  ;;  %v1508_v25 = vsel %vm523_vm0, %v1500_v0, %v6032_v46  ;;  %v1733_v34 = vrot.slane %v8666_v44, 2  ;;  %v8883_v58 = vpop.permute.xlu2 %6055 }
 0x290   : > { %vm934_vm11 = vcmp.gt.f32.partialorder %v897_v47, 0.0  ;;  %v967_v26 = vmul.f32 %v7687_v63, %v897_v47  ;;  %v2692_v48 = vsel %vm1499_vm13, %v2665_v5, 0.0  ;;  %v1547_v31 = vsel %vm1543_vm5, %v1538_v17, %v8546_v15  ;;  %12341 = vst [vmem:[#allocation161_spill] sm:$0xff] %v8860_v6  ;;  %v12427_v6 = vld [vmem:[#allocation90_spill] sm:$0xff] }
 0x291   : > { %v2693_v12 = vadd.f32 %v2692_v48, %v2664_v9  ;;  %v8840_v41 = vsel %vm12127_vm7, %v1547_v31, %v8726_v30  ;;  %v1664_v61 = vrot.slane %v8827_v59, 1  ;;  %v1730_v4 = vrot.slane %v8610_v16, 2  ;;  %12346 = vst [vmem:[#allocation121_spill] sm:$0xff] %v8883_v58  ;;  %v12347_v48 = vld [vmem:[#allocation28_spill] sm:$0xff]  ;;  %v12400_v58 = vld [vmem:[#allocation75_spill] sm:$0xff] }
 0x292   : > { %v8813_v11 = vsel %vm934_vm11, %v897_v47, %v967_v26  ;;  %v2659_v47 = vmul.f32 %v7788_v57, %v7788_v57  ;;  %v2658_v15 = vmul.f32 %v8840_v41, %v8840_v41  ;;  %v1732_v26 = vrot.slane %v8661_v42, 2 }
 0x293   : > { %v12018_v20 = vrot.slane %v8813_v11, 7  ;;  %v1517_v40 = vsel %vm1516_vm14, %v1508_v25, %v7912_v50  ;;  %v2653_v31 = vmul.f32 %v12347_v48, %v12347_v48 }
 0x294   : > { %v1526_v5 = vsel %vm1525_vm15, %v1517_v40, %v8318_v19  ;;  %v2680_v49 = vsel %vm1499_vm13, %v2659_v47, 0.0  ;;  %v12345_v19 = vrot.slane %v8607_v10, 2  ;;  %v12016_v40 = vrot.slane %v8738_v28, 2 }
 0x295   : > { %v8832_v45 = vsel %vm12082_vm1, %v1163_v2, %v12018_v20  ;;  %2690 = vadd.xlane.f32.xlu1 %v2689_v29  ;;  %v8863_v2 = vsel %vm12079_vm3, %v1732_v26, %v1733_v34  ;;  %v1535_v16 = vsel %vm1534_vm4, %v1526_v5, %v12343_v37  ;;  %v2681_v46 = vadd.f32 %v2680_v49, %v2658_v15  ;;  %v12352_v5 = vld [vmem:[#allocation78_spill] sm:$0xff]  ;;  %v12353_v37 = vld [vmem:[#allocation25_spill] sm:$0xff] }
 0x296   : > { %12339 = vst [vmem:[#allocation159_spill] sm:$0xff] %v8832_v45  ;;  %v12017_v39 = vrot.slane %v8832_v45, 1  ;;  %v1544_v50 = vsel %vm1543_vm5, %v1535_v16, %v12344_v35  ;;  %v8877_v0 = vsel %vm12079_vm3, %v12345_v19, %v1730_v4  ;;  %v2668_v25 = vsel %vm1499_vm13, %v2653_v31, 0.0  ;;  %v12356_v19 = vld [vmem:[#allocation70_spill] sm:$0xff] }
 0x297   : > { %12342 = vst [vmem:[#allocation162_spill] sm:$0xff] %v8863_v2  ;;  %v8881_v7 = vsel %vm12127_vm7, %v1544_v50, %v8679_v54  ;;  %v6209_v17 = vpack.i.bf16 %v8863_v2, %v8877_v0  ;;  %v8895_v54 = vpop.permute.xlu0 %6065  ;;  %v8897_v47 = vpop.permute.xlu2 %6075  ;;  %v1501_v16 = vsel %vm1499_vm13, %v12353_v37, %v12352_v5  ;;  %v1735_v49 = vrot.slane %v8669_v21, 2  ;;  %v12361_v37 = vld [vmem:[#allocation76_spill] sm:$0xff] }
 0x298   : > { %v8854_v30 = vsel %vm12080_vm2, %v1664_v61, %v12017_v39  ;;  %v2652_v29 = vmul.f32 %v8881_v7, %v8881_v7  ;;  %12348 = vst [vmem:[#allocation127_spill] sm:$0xff] %v8895_v54  ;;  %v1737_v50 = vrot.slane %v8735_v55, 2  ;;  %v12367_v39 = vld [vmem:[#allocation32_spill] sm:$0xff] }
 0x299   : > { %2694 = vadd.xlane.f32.xlu2 %v2693_v12  ;;  %12340 = vst [vmem:[#allocation160_spill] sm:$0xff] %v8854_v30  ;;  %v8870_v9 = vpack.i.bf16 %v8854_v30, %v8760_v18  ;;  %v8892_v12 = vpop.permute.xlu1 %6045  ;;  %v8929_v21 = vsel %vm12079_vm3, %v1733_v34, %v1735_v49  ;;  %v2655_v20 = vmul.f32 %v12367_v39, %v12367_v39 }
 0x29a   : > { %v2669_v61 = vadd.f32 %v2668_v25, %v2652_v29  ;;  %12349 = vst [vmem:[#allocation28_spill] sm:$0xff] %v8897_v47  ;;  %v8922_v31 = vsel %vm12079_vm3, %v1737_v50, %v12016_v40  ;;  %v12358_v29 = vld [vmem:[#allocation84_spill] sm:$0xff]  ;;  %v12363_v50 = vld [vmem:[#allocation138_spill] sm:$0xff] }
 0x29b   : > { %12357 = vst [vmem:[#allocation70_spill] sm:$0xff] %v8922_v31  ;;  %v6219_v5 = vpack.i.bf16 %v8922_v31, %v8929_v21 }
 0x29c   : > { %12360 = vst [vmem:[#allocation165_spill] sm:$0xff] %v8929_v21 }
 0x29f   : > { %v8901_v4 = vpop.permute.xlu0 %6070  ;;  %v8905_v26 = vpop.permute.xlu2 %6090 }
 0x2a0   : > { %12351 = vst [vmem:[#allocation164_spill] sm:$0xff] %v8905_v26  ;;  %v12374_v26 = vld [vmem:[#allocation133_spill] sm:$0xff] }
 0x2a1   : > { %2682 = vadd.xlane.f32.xlu2 %v2681_v46  ;;  %6210 = vrot.lane.b32.xlu0 %v6209_v17, %s7136_s16  ;;  %v8899_v15 = vpop.permute.xlu1 %6060  ;;  %v1509_v17 = vsel %vm523_vm0, %v1501_v16, %v12356_v19  ;;  %v12362_v16 = vld [vmem:[#allocation124_spill] sm:$0xff] }
 0x2a2   : > { %12350 = vst [vmem:[#allocation163_spill] sm:$0xff] %v8899_v15  ;;  %v1518_v25 = vsel %vm1516_vm14, %v1509_v17, %v12358_v29  ;;  %v12364_v17 = vld [vmem:[#allocation139_spill] sm:$0xff] }
 0x2a3   : > { %v1527_v23 = vsel %vm1525_vm15, %v1518_v25, %v12361_v37 }
 0x2a4   : > { %v1536_v19 = vsel %vm1534_vm4, %v1527_v23, %v12362_v16  ;;  %v12369_v16 = vld [vmem:[#allocation27_spill] sm:$0xff] }
 0x2a5   : > { %v1545_v40 = vsel %vm1543_vm5, %v1536_v19, %v12363_v50 }
 0x2a6   : > { %v8942_v29 = vsel %vm12127_vm7, %v1545_v40, %v12364_v17  ;;  %v12368_v40 = vld [vmem:[#allocation71_spill] sm:$0xff]  ;;  %v12371_v17 = vld [vmem:[#allocation80_spill] sm:$0xff] }
 0x2a7   : > { %v8915_v46 = vpop.permute.xlu0 %6085  ;;  %v2654_v25 = vmul.f32 %v8942_v29, %v8942_v29  ;;  %v1502_v19 = vsel %vm1499_vm13, %v12369_v16, %v12368_v40  ;;  %v12378_v40 = vld [vmem:[#allocation141_spill] sm:$0xff] }
 0x2a8   : > { %12355 = vst [vmem:[#allocation25_spill] sm:$0xff] %v8915_v46  ;;  %v1510_v30 = vsel %vm523_vm0, %v1502_v19, %v12371_v17 }
 0x2a9   : > { %2670 = vadd.xlane.f32.xlu2 %v2669_v61  ;;  %v8912_v35 = vpop.permute.xlu1 %6080  ;;  %v8926_v61 = vpop.permute.xlu2 %6095 }
 0x2aa   : > { %12354 = vst [vmem:[#allocation78_spill] sm:$0xff] %v8912_v35 }
 0x2ab   : > { %12359 = vst [vmem:[#allocation84_spill] sm:$0xff] %v8926_v61  ;;  %v12375_v61 = vld [vmem:[#allocation134_spill] sm:$0xff] }
 0x2ac   : > { %v6244_v54 = vpack.i.bf16 %v12375_v61, %v12374_v26 }
 0x2ae   : > { %6205 = vrot.lane.b32.xlu1 %v8707_v22, %s7135_s26 }
 0x2af   : > { %v8944_v34 = vpop.permute.xlu0 %6120 }
 0x2b0   : > { %12365 = vst [vmem:[#allocation76_spill] sm:$0xff] %v8944_v34  ;;  %v12373_v34 = vld [vmem:[#allocation96_spill] sm:$0xff] }
 0x2b1   : > { %v8946_v49 = vpop.permute.xlu1 %6105  ;;  %v8952_v23 = vpop.permute.xlu2 %6100 }
 0x2b2   : > { %12366 = vst [vmem:[#allocation124_spill] sm:$0xff] %v8946_v49  ;;  %v1519_v49 = vsel %vm1516_vm14, %v1510_v30, %v12373_v34  ;;  %v12380_v30 = vld [vmem:[#allocation30_spill] sm:$0xff] }
 0x2b3   : > { %v2657_v34 = vmul.f32 %v12380_v30, %v12380_v30 }
 0x2b7   : > { %v8960_v50 = vpop.permute.xlu0 %6125 }
 0x2b8   : > { %12370 = vst [vmem:[#allocation138_spill] sm:$0xff] %v8960_v50  ;;  %v12421_v50 = vld [vmem:[#allocation112_spill] sm:$0xff] }
 0x2b9   : > { %v8964_v63 = vpop.permute.xlu1 %6110  ;;  %v8977_v19 = vpop.permute.xlu2 %6130 }
 0x2ba   : > { %12372 = vst [vmem:[#allocation139_spill] sm:$0xff] %v8964_v63 }
 0x2bb   : > { %12379 = vst [vmem:[#allocation32_spill] sm:$0xff] %v8977_v19 }
 0x2c1   : > { %6220 = vrot.lane.b32.xlu2 %v6219_v5, %s7136_s16  ;;  %v2672_v5 = vsel %vm1499_vm13, %v2655_v20, 0.0  ;;  %v12376_v20 = vld [vmem:[#allocation104_spill] sm:$0xff] }
 0x2c2   : > { %v2673_v37 = vadd.f32 %v2672_v5, %v2654_v25  ;;  %v1528_v25 = vsel %vm1525_vm15, %v1519_v49, %v12376_v20  ;;  %v12377_v5 = vld [vmem:[#allocation119_spill] sm:$0xff]  ;;  %v8987_v20 = vpop.permute.xlu0 %6140 }
 0x2c3   : > { %12381 = vst [vmem:[#allocation71_spill] sm:$0xff] %v8987_v20  ;;  %v12386_v20 = vrot.slane %v8813_v11, 7 }
 0x2c5   : > { %v1247_v15 = vsel %vm12082_vm1, %v12386_v20, 0.0  ;;  %v12395_v20 = vld [vmem:[#allocation122_spill] sm:$0xff] }
 0x2c9   : > { %6225 = vrot.lane.b32.xlu2 %v8870_v9, %s7135_s26 }
 0x2ca   : > { %v9004_v19 = vpop.permute.xlu0 %6145 }
 0x2cb   : > { %2674 = vadd.xlane.f32.xlu0 %v2673_v37  ;;  %v1537_v37 = vsel %vm1534_vm4, %v1528_v25, %v12377_v5  ;;  %v8991_v25 = vpop.permute.xlu1 %6115  ;;  %v2676_v5 = vsel %vm1499_vm13, %v2657_v34, 0.0  ;;  %12387 = vst [vmem:[#allocation96_spill] sm:$0xff] %v9004_v19  ;;  %v12396_v19 = vld [vmem:[#allocation123_spill] sm:$0xff] }
 0x2cc   : > { %v1546_v16 = vsel %vm1543_vm5, %v1537_v37, %v12378_v40  ;;  %12382 = vst [vmem:[#allocation27_spill] sm:$0xff] %v8991_v25  ;;  %v12384_v40 = vld [vmem:[#allocation67_spill] sm:$0xff] }
 0x2cd   : > { %v8981_v17 = vsel %vm12127_vm7, %v1546_v16, %v8724_v1  ;;  %v8995_v1 = vpop.permute.xlu2 %6150  ;;  %v12385_v16 = vld [vmem:[#allocation72_spill] sm:$0xff]  ;;  %v12392_v25 = vld [vmem:[#allocation87_spill] sm:$0xff] }
 0x2ce   : > { %v2656_v49 = vmul.f32 %v8981_v17, %v8981_v17  ;;  %12383 = vst [vmem:[#allocation80_spill] sm:$0xff] %v8995_v1  ;;  %v6274_v46 = vpack.i.bf16 %v12385_v16, %v12384_v40  ;;  %v12391_v1 = vld [vmem:[#allocation106_spill] sm:$0xff] }
 0x2cf   : > { %v6289_v16 = vpack.i.bf16 %v12392_v25, %v12391_v1  ;;  %v12399_v40 = vld [vmem:[#allocation74_spill] sm:$0xff] }
 0x2d0   : > { %v2677_v37 = vadd.f32 %v2676_v5, %v2656_v49  ;;  %v1743_v49 = vrot.slane %v8832_v45, 2 }
 0x2d1   : > { %6245 = vrot.lane.b32.xlu2 %v6244_v54, %s7137_s3  ;;  %v6259_v54 = vpack.i.bf16 %v8738_v28, %v8735_v55 }
 0x2d2   : > { %v9019_v11 = vpop.permute.xlu0 %6180 }
 0x2d3   : > { %v9007_v34 = vpop.permute.xlu1 %6135  ;;  %12393 = vst [vmem:[#allocation119_spill] sm:$0xff] %v9019_v11 }
 0x2d4   : > { %12388 = vst [vmem:[#allocation133_spill] sm:$0xff] %v9007_v34  ;;  %v6239_v34 = vpack.i.bf16 %v12396_v19, %v12395_v20 }
 0x2d5   : > { %v9010_v5 = vpop.permute.xlu2 %6155 }
 0x2d6   : > { %12389 = vst [vmem:[#allocation134_spill] sm:$0xff] %v9010_v5 }
 0x2d8   : > { %2678 = vadd.xlane.f32.xlu1 %v2677_v37 }
 0x2d9   : > { %6260 = vrot.lane.b32.xlu2 %v6259_v54, %s7137_s3  ;;  %v1745_v54 = vrot.slane %v1247_v15, 2 }
 0x2da   : > { %v9029_v5 = vpop.permute.xlu0 %6185 }
 0x2db   : > { %v9013_v37 = vsel %vm12079_vm3, %v1743_v49, %v1745_v54  ;;  %v1667_v54 = vrot.slane %v1247_v15, 1  ;;  %12398 = vst [vmem:[#allocation122_spill] sm:$0xff] %v9029_v5  ;;  %v1742_v15 = vrot.slane %v8827_v59, 2  ;;  %v12405_v5 = vld [vmem:[#allocation142_spill] sm:$0xff] }
 0x2dc   : > { %12390 = vst [vmem:[#allocation104_spill] sm:$0xff] %v9013_v37 }
 0x2dd   : > { %v9026_v35 = vpop.permute.xlu2 %6165 }
 0x2de   : > { %12397 = vst [vmem:[#allocation30_spill] sm:$0xff] %v9026_v35  ;;  %v6249_v35 = vpack.i.bf16 %v8607_v10, %v12405_v5 }
 0x2df   : > { %6215 = vrot.lane.b32.xlu0 %v8796_v62, %s7135_s26 }
 0x2e1   : > { %6275 = vrot.lane.b32.xlu2 %v6274_v46, %s7140_s14  ;;  %v9022_v46 = vpop.permute.xlu1 %6160 }
 0x2e2   : > { %12394 = vst [vmem:[#allocation141_spill] sm:$0xff] %v9022_v46 }
 0x2e7   : > { %1917 = vrot.lane.b32.xlu0 %v9013_v37, %s7136_s16  ;;  %v12401_v37 = vpack.i.bf16 %v12399_v40, %v12400_v58  ;;  %v9049_v58 = vsel %vm12079_vm3, %v1742_v15, %v1743_v49  ;;  %v12413_v49 = vld [vmem:[#allocation86_spill] sm:$0xff] }
 0x2e8   : > { %12406 = vst [vmem:[#allocation75_spill] sm:$0xff] %v9049_v58 }
 0x2e9   : > { %6290 = vrot.lane.b32.xlu2 %v6289_v16, %s7139_s23  ;;  %v9035_v11 = vpop.permute.xlu1 %6170  ;;  %v12403_v16 = vrot.slane %v8832_v45, 1 }
 0x2ea   : > { %12402 = vst [vmem:[#allocation123_spill] sm:$0xff] %v9035_v11 }
 0x2eb   : > { %v9040_v46 = vsel %vm12080_vm2, %v12403_v16, %v1667_v54  ;;  %v9054_v54 = vpop.permute.xlu2 %6190  ;;  %v12409_v16 = vrot.slane %v8738_v28, 2 }
 0x2ec   : > { %12404 = vst [vmem:[#allocation74_spill] sm:$0xff] %v9040_v46 }
 0x2ed   : > { %12408 = vst [vmem:[#allocation142_spill] sm:$0xff] %v9054_v54  ;;  %v12415_v54 = vld [vmem:[#allocation62_spill] sm:$0xff] }
 0x2ef   : > { %6240 = vrot.lane.b32.xlu0 %v6239_v34, %s7137_s3  ;;  %v1740_v34 = vrot.slane %v8741_v13, 2 }
 0x2f1   : > { %6305 = vrot.lane.b32.xlu2 %v12401_v37, %s7138_s15  ;;  %1821 = vrot.lane.b32.xlu1 %v9040_v46, %s7135_s26  ;;  %v12407_v37 = vld [vmem:[#allocation83_spill] sm:$0xff]  ;;  %v9059_v13 = vsel %vm12079_vm3, %v12409_v16, %v1740_v34  ;;  %v9063_v45 = vpop.permute.xlu1 %6175 }
 0x2f2   : > { %12410 = vst [vmem:[#allocation83_spill] sm:$0xff] %v9059_v13  ;;  %v6229_v46 = vpack.i.bf16 %v9049_v58, %v9059_v13  ;;  %v12417_v16 = vld [vmem:[#allocation111_spill] sm:$0xff]  ;;  %v12418_v58 = vld [vmem:[#allocation114_spill] sm:$0xff] }
 0x2f3   : > { %12411 = vst [vmem:[#allocation166_spill] sm:$0xff] %v9063_v45  ;;  %v6234_v45 = vpack.i.bf16 %v12418_v58, %v12417_v16  ;;  %v9075_v2 = vpop.permute.xlu2 %6195 }
 0x2f7   : > { %6250 = vrot.lane.b32.xlu0 %v6249_v35, %s7137_s3  ;;  %v12412_v35 = vld [vmem:[#allocation79_spill] sm:$0xff] }
 0x2f8   : > { %v2699_v40 = vpop.xlane.xlu0 %2698  ;;  %v6334_v15 = vpack.i.bf16 %v12413_v49, %v12412_v35 }
 0x2f9   : > { %6320 = vrot.lane.b32.xlu2 %v12407_v37, %s7141_s19  ;;  %6807 = vrsqrt.f32 %v2699_v40  ;;  %6230 = vrot.lane.b32.xlu1 %v6229_v46, %s7136_s16  ;;  %v12414_v37 = vld [vmem:[#allocation63_spill] sm:$0xff]  ;;  %v9077_v46 = vpop.permute.xlu1 %6200  ;;  %vm2791_vm12 = vcmp.eq.f32.partialorder %v2699_v40, inf  ;;  %vm2793_vm6 = vcmp.eq.f32.partialorder %v2699_v40, 0.0 }
 0x2fa   : > { %v12416_v59 = vpack.i.bf16 %v12414_v37, %v12415_v54  ;;  %12419 = vst [vmem:[#allocation63_spill] sm:$0xff] %v9075_v2  ;;  %v12422_v54 = vld [vmem:[#allocation93_spill] sm:$0xff]  ;;  %v2794_v2 = vand.u32 2147483648, %v2699_v40 }
 0x2fb   : > { %12420 = vst [vmem:[#allocation62_spill] sm:$0xff] %v9077_v46  ;;  %v6254_v46 = vpack.i.bf16 %v8666_v44, %v8661_v42 }
 0x2ff   : > { %v6808_v11 = vpop.eup %6807  ;;  %6265 = vrot.lane.b32.xlu0 %v12416_v59, %s7138_s15  ;;  %v6349_v59 = vpack.i.bf16 %v12422_v54, %v12421_v50 }
 0x300   : > { %v2785_v28 = vmul.f32 %v6808_v11, %v2699_v40  ;;  %v2687_v21 = vpop.xlane.xlu0 %2686 }
 0x301   : > { %6335 = vrot.lane.b32.xlu2 %v6334_v15, %s7140_s14  ;;  %6809 = vrsqrt.f32 %v2687_v21  ;;  %6235 = vrot.lane.b32.xlu1 %v6234_v45, %s7137_s3  ;;  %vm2755_vm8 = vcmp.eq.f32.partialorder %v2687_v21, inf  ;;  %vm2757_vm9 = vcmp.eq.f32.partialorder %v2687_v21, 0.0 }
 0x302   : > { %v2786_v34 = vmul.f32 %v6808_v11, %v2785_v28 }
 0x304   : > { %v2787_v49 = vmul.f32 0.5, %v2786_v34 }
 0x306   : > { %v2788_v35 = vsub.f32 1.5, %v2787_v49 }
 0x307   : > { %v6810_v37 = vpop.eup %6809  ;;  %6280 = vrot.lane.b32.xlu0 %v12423_v36, %s7141_s19  ;;  %v12424_v36 = vld [vmem:[#allocation73_spill] sm:$0xff] }
 0x308   : > { %v2789_v15 = vmul.f32 %v6808_v11, %v2788_v35  ;;  %v2749_v28 = vmul.f32 %v6810_v37, %v2687_v21  ;;  %v9087_v34 = vpop.xlane.xlu1 %2690  ;;  %v12425_v11 = vld [vmem:[#allocation34_spill] sm:$0xff] }
 0x309   : > { %6350 = vrot.lane.b32.xlu2 %v6349_v59, %s7139_s23  ;;  %6811 = vrsqrt.f32 %v9087_v34  ;;  %6255 = vrot.lane.b32.xlu1 %v6254_v46, %s7137_s3  ;;  %v6294_v35 = vpack.i.bf16 %v12425_v11, %v12424_v36  ;;  %vm2767_vm11 = vcmp.eq.f32.partialorder %v9087_v34, inf }
 0x30a   : > { %v2790_v47 = vmul.f32 %v2789_v15, %v2699_v40  ;;  %v2750_v62 = vmul.f32 %v6810_v37, %v2749_v28 }
 0x30c   : > { %v9089_v45 = vpop.xlane.xlu2 %2694  ;;  %v2792_v49 = vsel %vm2791_vm12, %v2699_v40, %v2790_v47  ;;  %v2751_v54 = vmul.f32 0.5, %v2750_v62  ;;  %v12426_v47 = vld [vmem:[#allocation31_spill] sm:$0xff]  ;;  %vm2769_vm12 = vcmp.eq.f32.partialorder %v9087_v34, 0.0 }
 0x30d   : > { %6813 = vrsqrt.f32 %v9089_v45  ;;  %v2795_v15 = vsel %vm2793_vm6, %v2794_v2, %v2792_v49  ;;  %v12428_v62 = vpack.i.bf16 %v12426_v47, %v12427_v6  ;;  %v12429_v49 = vld [vmem:[#allocation65_spill] sm:$0xff]  ;;  %vm2779_vm6 = vcmp.eq.f32.partialorder %v9089_v45, inf }
 0x30e   : > { %v2752_v59 = vsub.f32 1.5, %v2751_v54  ;;  %v2803_v28 = vmax.f32 %v2795_v15, 0.0001  ;;  %v12432_v15 = vld [vmem:[#allocation85_spill] sm:$0xff] }
 0x30f   : > { %6295 = vrot.lane.b32.xlu0 %v6294_v35, %s7140_s14  ;;  %v6812_v25 = vpop.eup %6811 }
 0x310   : > { %v2753_v50 = vmul.f32 %v6810_v37, %v2752_v59  ;;  %6815 = vrcp.f32 %v2803_v28  ;;  %v2761_v63 = vmul.f32 %v6812_v25, %v9087_v34  ;;  %v12430_v37 = vld [vmem:[#allocation64_spill] sm:$0xff]  ;;  %v2758_v59 = vand.u32 2147483648, %v2687_v21 }
 0x311   : > { %6365 = vrot.lane.b32.xlu2 %v12428_v62, %s7138_s15  ;;  %v12431_v35 = vpack.i.bf16 %v12429_v49, %v12430_v37  ;;  %vm2914_vm3 = vweird.f32 %v2803_v28 }
 0x312   : > { %v2754_v46 = vmul.f32 %v2753_v50, %v2687_v21  ;;  %v2762_v6 = vmul.f32 %v6812_v25, %v2761_v63  ;;  %v12433_v50 = vld [vmem:[#allocation95_spill] sm:$0xff] }
 0x313   : > { %v6814_v40 = vpop.eup %6813  ;;  %6270 = vrot.lane.b32.xlu1 %v12431_v35, %s7139_s23  ;;  %v6309_v47 = vpack.i.bf16 %v12433_v50, %v12432_v15  ;;  %v12435_v63 = vld [vmem:[#allocation107_spill] sm:$0xff] }
 0x314   : > { %v9102_v55 = vpop.xlane.xlu2 %2682  ;;  %v2756_v54 = vsel %vm2755_vm8, %v2687_v21, %v2754_v46  ;;  %v2773_v2 = vmul.f32 %v6814_v40, %v9089_v45  ;;  %v2763_v36 = vmul.f32 0.5, %v2762_v6  ;;  %v6394_v13 = vpack.i.bf16 %v12417_v16, %v12435_v63 }
 0x315   : > { %6817 = vrsqrt.f32 %v9102_v55  ;;  %v2759_v46 = vsel %vm2757_vm9, %v2758_v59, %v2756_v54  ;;  %v2770_v54 = vand.u32 2147483648, %v9087_v34  ;;  %vm2781_vm9 = vcmp.eq.f32.partialorder %v9089_v45, 0.0 }
 0x316   : > { %v2774_v62 = vmul.f32 %v6814_v40, %v2773_v2  ;;  %v6816_v11 = vpop.eup %6815  ;;  %v2764_v37 = vsub.f32 1.5, %v2763_v36  ;;  %v9117_v1 = vmax.f32 %v2759_v46, 0.0001  ;;  %v12437_v36 = vld [vmem:[#allocation68_spill] sm:$0xff]  ;;  %v2918_v46 = vand.u32 2147483647, %v2803_v28 }
 0x317   : > { %6310 = vrot.lane.b32.xlu0 %v6309_v47, %s7139_s23  ;;  %v2910_v49 = vmul.f32 %v6816_v11, %v2803_v28  ;;  %v2920_v47 = vand.u32 2147483648, %v2803_v28  ;;  %vm2915_vm8 = vweird.f32 %v6816_v11 }
 0x318   : > { %v2775_v44 = vmul.f32 0.5, %v2774_v62  ;;  %v2765_v2 = vmul.f32 %v6812_v25, %v2764_v37  ;;  %6819 = vrcp.f32 %v9117_v1  ;;  %vm2916_vm2 = vmor %vm2914_vm3, %vm2915_vm8  ;;  %vm2745_vm3 = vcmp.eq.f32.partialorder %v9102_v55, 0.0 }
 0x319   : > { %6380 = vrot.lane.b32.xlu2 %v12434_v43, %s7141_s19  ;;  %v2911_v31 = vsub.f32 1.0, %v2910_v49  ;;  %vm2869_vm1 = vweird.f32 %v9117_v1 }
 0x31a   : > { %v2776_v35 = vsub.f32 1.5, %v2775_v44  ;;  %v12436_v44 = vld [vmem:[#allocation69_spill] sm:$0xff]  ;;  %v2766_v62 = vmul.f32 %v2765_v2, %v9087_v34 }
 0x31b   : > { %v6818_v21 = vpop.eup %6817  ;;  %v12438_v6 = vpack.i.bf16 %v12436_v44, %v12437_v36  ;;  %v2912_v25 = vmul.f32 %v6816_v11, %v2911_v31  ;;  %v12439_v44 = vld [vmem:[#allocation38_spill] sm:$0xff]  ;;  %v12440_v36 = vld [vmem:[#allocation29_spill] sm:$0xff] }
 0x31c   : > { %v2777_v59 = vmul.f32 %v6814_v40, %v2776_v35  ;;  %v2737_v43 = vmul.f32 %v6818_v21, %v9102_v55  ;;  %v2768_v37 = vsel %vm2767_vm11, %v9087_v34, %v2766_v62  ;;  %v2782_v35 = vand.u32 2147483648, %v9089_v45  ;;  %v12442_v34 = vld [vmem:[#allocation40_spill] sm:$0xff] }
 0x31d   : > { %6285 = vrot.lane.b32.xlu1 %v12438_v6, %s7138_s15  ;;  %v12441_v2 = vpack.i.bf16 %v12439_v44, %v12440_v36  ;;  %v2913_v31 = vadd.f32 %v6816_v11, %v2912_v25  ;;  %v2921_v6 = vor.u32 1.1754944e-38, %v2920_v47  ;;  %v2771_v62 = vsel %vm2769_vm12, %v2770_v54, %v2768_v37 }
 0x31e   : > { %v2778_v49 = vmul.f32 %v2777_v59, %v9089_v45  ;;  %v2738_v40 = vmul.f32 %v6818_v21, %v2737_v43  ;;  %vm2919_vm11 = vcmp.eq.f32.partialorder %v2918_v46, 8.507059e+37  ;;  %v9148_v36 = vmax.f32 %v2771_v62, 0.0001  ;;  %v12443_v46 = vld [vmem:[#allocation131_spill] sm:$0xff] }
 0x31f   : > { %6325 = vrot.lane.b32.xlu0 %v12441_v2, %s7138_s15  ;;  %v2917_v16 = vsel %vm2916_vm2, %v6816_v11, %v2913_v31  ;;  %vm2743_vm2 = vcmp.eq.f32.partialorder %v9102_v55, inf  ;;  %v2746_v31 = vand.u32 2147483648, %v9102_v55 }
 0x320   : > { %v2780_v59 = vsel %vm2779_vm6, %v9089_v45, %v2778_v49  ;;  %v2739_v43 = vmul.f32 0.5, %v2738_v40  ;;  %v2922_v25 = vsel %vm2919_vm11, %v2921_v6, %v2917_v16  ;;  %6821 = vrcp.f32 %v9148_v36  ;;  %v12444_v40 = vld [vmem:[#allocation115_spill] sm:$0xff] }
 0x321   : > { %6395 = vrot.lane.b32.xlu2 %v6394_v13, %s7140_s14  ;;  %v2783_v44 = vsel %vm2781_vm9, %v2782_v35, %v2780_v59  ;;  %v2923_v49 = vmul.f32 10.0, %v2922_v25  ;;  %v9153_v13 = vpop.eup %6819  ;;  %v6409_v16 = vpack.i.bf16 %v12444_v40, %v12443_v46  ;;  %v12446_v59 = vld [vmem:[#allocation19_spill] sm:$0xff]  ;;  %vm2884_vm6 = vweird.f32 %v9148_v36  ;;  %v12454_v40 = vld [vmem:[#allocation113_spill] sm:$0xff] }
 0x322   : > { %v2740_v28 = vsub.f32 1.5, %v2739_v43  ;;  %v9150_v2 = vmax.f32 %v2783_v44, 0.0001  ;;  %v12447_v43 = vld [vmem:[#allocation20_spill] sm:$0xff]  ;;  %vm2870_vm11 = vweird.f32 %v9153_v13  ;;  %v2873_v46 = vand.u32 2147483647, %v9117_v1 }
 0x323   : > { %v2938_v11 = vmul.f32 %v2923_v49, %v8698_v24  ;;  %v2939_v45 = vmul.f32 %v2923_v49, %v7409_v52  ;;  %v12445_v24 = vld [vmem:[#allocation92_spill] sm:$0xff]  ;;  %v6314_v6 = vpack.i.bf16 %v12447_v43, %v12446_v59 }
 0x324   : > { %v2741_v47 = vmul.f32 %v6818_v21, %v2740_v28  ;;  %6823 = vrcp.f32 %v9150_v2  ;;  %v2865_v21 = vmul.f32 %v9153_v13, %v9117_v1 }
 0x325   : > { %6300 = vrot.lane.b32.xlu1 %v12442_v34, %s7141_s19  ;;  %3036 = vmatpush.xpose.msrb.mxu3 %v2938_v11  ;;  %v12448_v11 = vld [vmem:[#allocation89_spill] sm:$0xff] }
 0x326   : > { %v2742_v54 = vmul.f32 %v2741_v47, %v9102_v55  ;;  %5808 = vmatpush.xpose.msk.msrb.mxu0 %vm1499_vm13, %v2939_v45  ;;  %v6822_v35 = vpop.eup %6821  ;;  %v2866_v44 = vsub.f32 1.0, %v2865_v21  ;;  %v12449_v45 = vld [vmem:[#allocation97_spill] sm:$0xff] }
 0x327   : > { %6340 = vrot.lane.b32.xlu0 %v12445_v24, %s7141_s19  ;;  %v2880_v62 = vmul.f32 %v6822_v35, %v9148_v36  ;;  %vm2885_vm12 = vweird.f32 %v6822_v35  ;;  %v12450_v21 = vld [vmem:[#allocation117_spill] sm:$0xff] }
 0x328   : > { %v2744_v37 = vsel %vm2743_vm2, %v9102_v55, %v2742_v54  ;;  %v6354_v54 = vpack.i.bf16 %v12449_v45, %v12448_v11  ;;  %v9182_v55 = vpop.xlane.xlu2 %2670  ;;  %v2867_v63 = vmul.f32 %v9153_v13, %v2866_v44  ;;  %v2903_v44 = vand.u32 2147483647, %v9150_v2  ;;  %vm9200_vm9 = vmor %vm2884_vm6, %vm2885_vm12 }
 0x329   : > { %6410 = vrot.lane.b32.xlu2 %v6409_v16, %s7139_s23  ;;  %v2747_v28 = vsel %vm2745_vm3, %v2746_v31, %v2744_v37  ;;  %v2881_v49 = vsub.f32 1.0, %v2880_v62  ;;  %v12451_v37 = vld [vmem:[#allocation118_spill] sm:$0xff]  ;;  %vm2899_vm2 = vweird.f32 %v9150_v2  ;;  %v2875_v11 = vand.u32 2147483648, %v9117_v1  ;;  %v12460_v1 = vld [vmem:[#allocation136_spill] sm:$0xff] }
 0x32a   : > { %v6824_v25 = vpop.eup %6823  ;;  %v9177_v47 = vmax.f32 %v2747_v28, 0.0001  ;;  %v12452_v31 = vpack.i.bf16 %v12450_v21, %v12451_v37  ;;  %v2890_v28 = vand.u32 2147483648, %v9148_v36  ;;  %vm2904_vm12 = vcmp.eq.f32.partialorder %v2903_v44, 8.507059e+37 }
 0x32b   : > { %v2895_v34 = vmul.f32 %v6824_v25, %v9150_v2  ;;  %v2882_v16 = vmul.f32 %v6822_v35, %v2881_v49  ;;  %vm2900_vm8 = vweird.f32 %v6824_v25  ;;  %v2876_v44 = vor.u32 1.1754944e-38, %v2875_v11 }
 0x32c   : > { %6825 = vrcp.f32 %v9177_v47  ;;  %vm2901_vm3 = vmor %vm2899_vm2, %vm2900_vm8 }
 0x32d   : > { %6315 = vrot.lane.b32.xlu1 %v6314_v6, %s7140_s14  ;;  %v2896_v24 = vsub.f32 1.0, %v2895_v34  ;;  %v2905_v6 = vand.u32 2147483648, %v9150_v2  ;;  %v2883_v62 = vadd.f32 %v6822_v35, %v2882_v16  ;;  %v2888_v34 = vand.u32 2147483647, %v9148_v36  ;;  %v9213_v2 = vpop.permute.xlu0 %6210  ;;  %vm2871_vm8 = vmor %vm2869_vm1, %vm2870_vm11 }
 0x32e   : > { %6827 = vrsqrt.f32 %v9182_v55  ;;  %v2868_v36 = vadd.f32 %v9153_v13, %v2867_v63  ;;  %12457 = vst [vmem:[#allocation114_spill] sm:$0xff] %v9213_v2  ;;  %vm2854_vm11 = vweird.f32 %v9177_v47 }
 0x32f   : > { %6355 = vrot.lane.b32.xlu0 %v6354_v54, %s7140_s14  ;;  %v2897_v49 = vmul.f32 %v6824_v25, %v2896_v24  ;;  %v12453_v54 = vld [vmem:[#allocation94_spill] sm:$0xff]  ;;  %v2887_v24 = vsel %vm9200_vm9, %v6822_v35, %v2883_v62  ;;  %v2906_v37 = vor.u32 1.1754944e-38, %v2905_v6  ;;  %vm2889_vm6 = vcmp.eq.f32.partialorder %v2888_v34, 8.507059e+37  ;;  %v12458_v35 = vld [vmem:[#allocation91_spill] sm:$0xff] }
 0x330   : > { %v6329_v45 = vpack.i.bf16 %v12454_v40, %v12453_v54  ;;  %v12459_v62 = vld [vmem:[#allocation99_spill] sm:$0xff]  ;;  %vm2874_vm9 = vcmp.eq.f32.partialorder %v2873_v46, 8.507059e+37 }
 0x331   : > { %6425 = vrot.lane.b32.xlu2 %v12452_v31, %s7138_s15  ;;  %v2898_v16 = vadd.f32 %v6824_v25, %v2897_v49  ;;  %v2891_v31 = vor.u32 1.1754944e-38, %v2890_v28  ;;  %v6369_v63 = vpack.i.bf16 %v12459_v62, %v12458_v35  ;;  %v2872_v28 = vsel %vm2871_vm8, %v9153_v13, %v2868_v36 }
 0x332   : > { %v6826_v43 = vpop.eup %6825  ;;  %v2860_v36 = vand.u32 2147483648, %v9177_v47  ;;  %vm2707_vm8 = vcmp.eq.f32.partialorder %v9182_v55, inf }
 0x333   : > { %v2902_v59 = vsel %vm2901_vm3, %v6824_v25, %v2898_v16  ;;  %v2850_v21 = vmul.f32 %v6826_v43, %v9177_v47  ;;  %vm2855_vm1 = vweird.f32 %v6826_v43 }
 0x334   : > { %v2907_v49 = vsel %vm2904_vm12, %v2906_v37, %v2902_v59  ;;  %v6828_v25 = vpop.eup %6827  ;;  %v2877_v37 = vsel %vm2874_vm9, %v2876_v44, %v2872_v28  ;;  %vm2856_vm2 = vmor %vm2854_vm11, %vm2855_vm1  ;;  %v12464_v44 = vld [vmem:[#allocation102_spill] sm:$0xff]  ;;  %vm2709_vm9 = vcmp.eq.f32.partialorder %v9182_v55, 0.0 }
 0x335   : > { %6330 = vrot.lane.b32.xlu1 %v6329_v45, %s7139_s23  ;;  %v2892_v45 = vsel %vm2889_vm6, %v2891_v31, %v2887_v24  ;;  %v2908_v6 = vmul.f32 10.0, %v2907_v49  ;;  %v2851_v24 = vsub.f32 1.0, %v2850_v21  ;;  %v2701_v31 = vmul.f32 %v6828_v25, %v9182_v55  ;;  %v12462_v49 = vld [vmem:[#allocation81_spill] sm:$0xff] }
 0x336   : > { %v2893_v16 = vmul.f32 10.0, %v2892_v45  ;;  %v2878_v45 = vmul.f32 10.0, %v2877_v37  ;;  %v6454_v21 = vpack.i.bf16 %v12405_v5, %v12375_v61 }
 0x337   : > { %6370 = vrot.lane.b32.xlu0 %v6369_v63, %s7139_s23  ;;  %v2936_v34 = vmul.f32 %v2908_v6, %v8792_v27  ;;  %v2937_v59 = vmul.f32 %v2908_v6, %v7967_v56  ;;  %v2852_v13 = vmul.f32 %v6826_v43, %v2851_v24  ;;  %v12461_v63 = vld [vmem:[#allocation82_spill] sm:$0xff]  ;;  %v2858_v27 = vand.u32 2147483647, %v9177_v47 }
 0x338   : > { %v12463_v46 = vpack.i.bf16 %v12461_v63, %v12462_v49  ;;  %v2934_v56 = vmul.f32 %v2893_v16, %v8789_v3  ;;  %v2935_v11 = vmul.f32 %v2893_v16, %v7669_v8  ;;  %v2932_v16 = vmul.f32 %v2878_v45, %v8732_v32  ;;  %v12469_v32 = vld [vmem:[#allocation140_spill] sm:$0xff] }
 0x339   : > { %6440 = vrot.lane.b32.xlu2 %v12460_v1, %s7141_s19  ;;  %3037 = vmatpush.xpose.msrb.mxu3 %v2936_v34  ;;  %v2853_v6 = vadd.f32 %v6826_v43, %v2852_v13  ;;  %v2861_v1 = vor.u32 1.1754944e-38, %v2860_v36  ;;  %v12465_v34 = vld [vmem:[#allocation101_spill] sm:$0xff]  ;;  %vm2859_vm3 = vcmp.eq.f32.partialorder %v2858_v27, 8.507059e+37  ;;  %v2933_v47 = vmul.f32 %v2878_v45, %v12234_v51  ;;  %v12467_v13 = vld [vmem:[#allocation103_spill] sm:$0xff] }
 0x33a   : > { %5809 = vmatpush.xpose.msk.msrb.mxu0 %vm1499_vm13, %v2937_v59  ;;  %v12466_v3 = vpack.i.bf16 %v12464_v44, %v12465_v34  ;;  %v2702_v59 = vmul.f32 %v6828_v25, %v2701_v31  ;;  %v12470_v27 = vld [vmem:[#allocation147_spill] sm:$0xff] }
 0x33b   : > { %v2857_v8 = vsel %vm2856_vm2, %v6826_v43, %v2853_v6  ;;  %v6469_v51 = vpack.i.bf16 %v12470_v27, %v12469_v32 }
 0x33c   : > { %v2862_v24 = vsel %vm2859_vm3, %v2861_v1, %v2857_v8  ;;  %v2703_v63 = vmul.f32 0.5, %v2702_v59  ;;  %v6414_v8 = vpack.i.bf16 %v12395_v20, %v12418_v58 }
 0x33d   : > { %6345 = vrot.lane.b32.xlu1 %v12463_v46, %s7138_s15  ;;  %3038 = vmatpush.xpose.msrb.mxu3 %v2934_v56  ;;  %v2863_v37 = vmul.f32 10.0, %v2862_v24  ;;  %v9252_v46 = vpop.permute.xlu1 %6205 }
 0x33e   : > { %v2675_v28 = vpop.xlane.xlu0 %2674  ;;  %5810 = vmatpush.xpose.msk.msrb.mxu0 %vm1499_vm13, %v2935_v11  ;;  %12468 = vst [vmem:[#allocation77_spill] sm:$0xff] %v9252_v46  ;;  %v12471_v11 = vld [vmem:[#allocation120_spill] sm:$0xff]  ;;  %v2704_v45 = vsub.f32 1.5, %v2703_v63 }
 0x33f   : > { %6829 = vrsqrt.f32 %v2675_v28  ;;  %6385 = vrot.lane.b32.xlu0 %v12466_v3, %s7138_s15  ;;  %v2930_v49 = vmul.f32 %v2863_v37, %v8840_v41  ;;  %v2931_v43 = vmul.f32 %v2863_v37, %v7788_v57  ;;  %v12472_v41 = vld [vmem:[#allocation98_spill] sm:$0xff]  ;;  %vm2719_vm12 = vcmp.eq.f32.partialorder %v2675_v28, inf }
 0x340   : > { %v2705_v44 = vmul.f32 %v6828_v25, %v2704_v45  ;;  %v12476_v25 = vld [vmem:[#allocation100_spill] sm:$0xff]  ;;  %vm2721_vm6 = vcmp.eq.f32.partialorder %v2675_v28, 0.0 }
 0x341   : > { %6455 = vrot.lane.b32.xlu2 %v6454_v21, %s7140_s14  ;;  %3039 = vmatpush.xpose.msrb.mxu3 %v2932_v16  ;;  %v12473_v21 = vld [vmem:[#allocation105_spill] sm:$0xff]  ;;  %v12474_v16 = vld [vmem:[#allocation146_spill] sm:$0xff] }
 0x342   : > { %5811 = vmatpush.xpose.msk.msrb.mxu0 %vm1499_vm13, %v2933_v47  ;;  %v6374_v57 = vpack.i.bf16 %v12473_v21, %v12472_v41  ;;  %v12475_v47 = vpack.i.bf16 %v8631_v53, %v12474_v16  ;;  %v2706_v24 = vmul.f32 %v2705_v44, %v9182_v55  ;;  %v2710_v53 = vand.u32 2147483648, %v9182_v55  ;;  %v12483_v16 = vld [vmem:[#allocation108_spill] sm:$0xff] }
 0x345   : > { %6360 = vrot.lane.b32.xlu1 %v12467_v13, %s7141_s19  ;;  %v6830_v36 = vpop.eup %6829  ;;  %3040 = vmatpush.xpose.msrb.mxu3 %v2930_v49  ;;  %v2722_v13 = vand.u32 2147483648, %v2675_v28 }
 0x346   : > { %v2713_v31 = vmul.f32 %v6830_v36, %v2675_v28  ;;  %5812 = vmatpush.xpose.msk.msrb.mxu0 %vm1499_vm13, %v2931_v43 }
 0x347   : > { %6400 = vrot.lane.b32.xlu0 %v12471_v11, %s7141_s19  ;;  %v12479_v11 = vld [vmem:[#allocation125_spill] sm:$0xff] }
 0x348   : > { %v2714_v56 = vmul.f32 %v6830_v36, %v2713_v31  ;;  %v2708_v31 = vsel %vm2707_vm8, %v9182_v55, %v2706_v24  ;;  %v12482_v55 = vld [vmem:[#allocation109_spill] sm:$0xff]  ;;  %v9296_v24 = vpop.permute.xlu2 %6220 }
 0x349   : > { %6470 = vrot.lane.b32.xlu2 %v6469_v51, %s7139_s23  ;;  %12485 = vst [vmem:[#allocation90_spill] sm:$0xff] %v9296_v24 }
 0x34a   : > { %v2715_v6 = vmul.f32 0.5, %v2714_v56  ;;  %v12478_v56 = vld [vmem:[#allocation116_spill] sm:$0xff] }
 0x34b   : > { %v2679_v3 = vpop.xlane.xlu1 %2678  ;;  %v6429_v45 = vpack.i.bf16 %v12479_v11, %v12478_v56 }
 0x34c   : > { %v2716_v1 = vsub.f32 1.5, %v2715_v6  ;;  %6831 = vrsqrt.f32 %v2679_v3  ;;  %vm2731_vm1 = vcmp.eq.f32.partialorder %v2679_v3, inf  ;;  %vm2733_vm11 = vcmp.eq.f32.partialorder %v2679_v3, 0.0 }
 0x34d   : > { %6375 = vrot.lane.b32.xlu1 %v6374_v57, %s7140_s14 }
 0x34e   : > { %v2717_v34 = vmul.f32 %v6830_v36, %v2716_v1  ;;  %v12477_v36 = vld [vmem:[#allocation132_spill] sm:$0xff]  ;;  %v2711_v1 = vsel %vm2709_vm9, %v2710_v53, %v2708_v31  ;;  %v2734_v31 = vand.u32 2147483648, %v2679_v3 }
 0x34f   : > { %6415 = vrot.lane.b32.xlu0 %v6414_v8, %s7140_s14  ;;  %v6389_v63 = vpack.i.bf16 %v12477_v36, %v12476_v25  ;;  %v9290_v8 = vmax.f32 %v2711_v1, 0.0001 }
 0x350   : > { %v2718_v59 = vmul.f32 %v2717_v34, %v2675_v28 }
 0x351   : > { %6485 = vrot.lane.b32.xlu2 %v12475_v47, %s7138_s15  ;;  %v9287_v44 = vpop.permute.xlu0 %6215  ;;  %v12484_v47 = vpack.i.bf16 %v12482_v55, %v12483_v16  ;;  %v12493_v55 = vld [vmem:[#allocation148_spill] sm:$0xff]  ;;  %v2815_v2 = vand.u32 2147483648, %v9290_v8 }
 0x352   : > { %v2720_v37 = vsel %vm2719_vm12, %v2675_v28, %v2718_v59  ;;  %v6832_v43 = vpop.eup %6831  ;;  %v12480_v28 = vpack.i.bf16 %v8760_v18, %v8763_v14  ;;  %12481 = vst [vmem:[#allocation31_spill] sm:$0xff] %v9287_v44  ;;  %v12486_v14 = vld [vmem:[#allocation129_spill] sm:$0xff] }
 0x353   : > { %v2723_v49 = vsel %vm2721_vm6, %v2722_v13, %v2720_v37  ;;  %v2725_v51 = vmul.f32 %v6832_v43, %v2679_v3  ;;  %v12487_v13 = vld [vmem:[#allocation128_spill] sm:$0xff] }
 0x354   : > { %v9280_v6 = vmax.f32 %v2723_v49, 0.0001 }
 0x355   : > { %6390 = vrot.lane.b32.xlu1 %v6389_v63, %s7139_s23  ;;  %v2726_v57 = vmul.f32 %v6832_v43, %v2725_v51  ;;  %v12488_v63 = vpack.i.bf16 %v12486_v14, %v12487_v13 }
 0x356   : > { %6833 = vrcp.f32 %v9280_v6  ;;  %vm2824_vm3 = vweird.f32 %v9280_v6 }
 0x357   : > { %6430 = vrot.lane.b32.xlu0 %v6429_v45, %s7139_s23  ;;  %v2727_v34 = vmul.f32 0.5, %v2726_v57  ;;  %6835 = vrcp.f32 %v9290_v8  ;;  %v12490_v57 = vld [vmem:[#allocation130_spill] sm:$0xff] }
 0x359   : > { %6525 = vrot.lane.b32.xlu2 %v12480_v28, %s7138_s15  ;;  %v2728_v59 = vsub.f32 1.5, %v2727_v34  ;;  %v9303_v51 = vpop.permute.xlu0 %1917 }
 0x35a   : > { %12489 = vst [vmem:[#allocation65_spill] sm:$0xff] %v9303_v51  ;;  %v2830_v51 = vand.u32 2147483648, %v9280_v6 }
 0x35b   : > { %v2729_v37 = vmul.f32 %v6832_v43, %v2728_v59  ;;  %v9312_v59 = vpop.permute.xlu2 %6225 }
 0x35c   : > { %v6834_v49 = vpop.eup %6833  ;;  %12492 = vst [vmem:[#allocation85_spill] sm:$0xff] %v9312_v59 }
 0x35d   : > { %6405 = vrot.lane.b32.xlu1 %v12484_v47, %s7138_s15  ;;  %v2730_v18 = vmul.f32 %v2729_v37, %v2679_v3  ;;  %v2820_v43 = vmul.f32 %v6834_v49, %v9280_v6  ;;  %v9308_v28 = vpop.eup %6835  ;;  %v6434_v47 = vpack.i.bf16 %v12374_v26, %v12396_v19  ;;  %vm2825_vm2 = vweird.f32 %v6834_v49 }
 0x35e   : > { %v2805_v16 = vmul.f32 %v9308_v28, %v9290_v8  ;;  %vm9338_vm6 = vmor %vm2824_vm3, %vm2825_vm2  ;;  %vm2810_vm8 = vweird.f32 %v9308_v28 }
 0x35f   : > { %6445 = vrot.lane.b32.xlu0 %v12488_v63, %s7138_s15  ;;  %v2732_v53 = vsel %vm2731_vm1, %v2679_v3, %v2730_v18  ;;  %v2821_v3 = vsub.f32 1.0, %v2820_v43 }
 0x360   : > { %v2735_v45 = vsel %vm2733_vm11, %v2734_v31, %v2732_v53  ;;  %v2806_v18 = vsub.f32 1.0, %v2805_v16  ;;  %v6474_v31 = vpack.i.bf16 %v8661_v42, %v8607_v10  ;;  %v2831_v42 = vor.u32 1.1754944e-38, %v2830_v51 }
 0x361   : > { %v2798_v1 = vmax.f32 %v2735_v45, 0.0001  ;;  %v2822_v37 = vmul.f32 %v6834_v49, %v2821_v3  ;;  %v9321_v13 = vpop.permute.xlu0 %6240  ;;  %vm2809_vm11 = vweird.f32 %v9290_v8 }
 0x362   : > { %v2807_v43 = vmul.f32 %v9308_v28, %v2806_v18  ;;  %v6033_v18 = vunpack.i.h.bf16 %v7860_v38 }
 0x363   : > { %v9310_v34 = vpop.permute.xlu1 %1821  ;;  %6837 = vrcp.f32 %v2798_v1  ;;  %v2845_v16 = vand.u32 2147483648, %v2798_v1  ;;  %v2843_v59 = vand.u32 2147483647, %v2798_v1  ;;  %vm2839_vm9 = vweird.f32 %v2798_v1 }
 0x364   : > { %12491 = vst [vmem:[#allocation64_spill] sm:$0xff] %v9310_v34  ;;  %v9333_v34 = vpop.permute.xlu2 %6245  ;;  %v2808_v44 = vadd.f32 %v9308_v28, %v2807_v43  ;;  %v2816_v43 = vor.u32 1.1754944e-38, %v2815_v2 }
 0x365   : > { %6420 = vrot.lane.b32.xlu1 %v12490_v57, %s7141_s19  ;;  %v2823_v57 = vadd.f32 %v6834_v49, %v2822_v37  ;;  %vm2844_vm2 = vcmp.eq.f32.partialorder %v2843_v59, 8.507059e+37 }
 0x367   : > { %6460 = vrot.lane.b32.xlu0 %v12493_v55, %s7141_s19  ;;  %v12495_v55 = vld [vmem:[#allocation126_spill] sm:$0xff] }
 0x369   : > { %v6838_v14 = vpop.eup %6837 }
 0x36a   : > { %v2835_v53 = vmul.f32 %v6838_v14, %v2798_v1  ;;  %vm2840_vm12 = vweird.f32 %v6838_v14  ;;  %v9352_v1 = vpop.permute.xlu0 %6250 }
 0x36b   : > { %v9323_v63 = vpop.permute.xlu1 %6230  ;;  %vm2841_vm1 = vmor %vm2839_vm9, %vm2840_vm12  ;;  %vm12592_vm9 = vcmask 1040384  }
 0x36c   : > { %12494 = vst [vmem:[#allocation95_spill] sm:$0xff] %v9323_v63  ;;  %v2836_v45 = vsub.f32 1.0, %v2835_v53  ;;  %v12497_v53 = vld [vmem:[#allocation145_spill] sm:$0xff]  ;;  %vm2811_vm12 = vmor %vm2809_vm11, %vm2810_vm8  ;;  %vm12597_vm11 = vcmask 1046528  }
 0x36d   : > { %6435 = vrot.lane.b32.xlu1 %v6434_v47, %s7140_s14  ;;  %v12496_v47 = vld [vmem:[#allocation143_spill] sm:$0xff]  ;;  %v6489_v37 = vpack.i.bf16 %v8877_v0, %v12497_v53 }
 0x36e   : > { %v6449_v3 = vpack.i.bf16 %v12496_v47, %v12495_v55  ;;  %v2837_v63 = vmul.f32 %v6838_v14, %v2836_v45  ;;  %v2827_v45 = vsel %vm9338_vm6, %v6834_v49, %v2823_v57  ;;  %v2812_v57 = vsel %vm2811_vm12, %v9308_v28, %v2808_v44 }
 0x36f   : > { %6475 = vrot.lane.b32.xlu0 %v6474_v31, %s7140_s14  ;;  %v2828_v31 = vand.u32 2147483647, %v9280_v6  ;;  %v2846_v6 = vor.u32 1.1754944e-38, %v2845_v16  ;;  %v6028_v44 = vunpack.i.h.bf16 %v8215_v60  ;;  %v6047_v60 = vunpack.i.l.bf16 %v8892_v12 }
 0x370   : > { %v2838_v24 = vadd.f32 %v6838_v14, %v2837_v63  ;;  %v2813_v63 = vand.u32 2147483647, %v9290_v8  ;;  %vm12612_vm12 = vcmask 1045504  }
 0x371   : > { %vm2829_vm3 = vcmp.eq.f32.partialorder %v2828_v31, 8.507059e+37 }
 0x372   : > { %v2842_v46 = vsel %vm2841_vm1, %v6838_v14, %v2838_v24  ;;  %v2832_v49 = vsel %vm2829_vm3, %v2831_v42, %v2827_v45  ;;  %vm2814_vm6 = vcmp.eq.f32.partialorder %v2813_v63, 8.507059e+37  ;;  %v9360_v14 = vpop.permute.xlu2 %6260  ;;  %v12500_v42 = vld [vmem:[#allocation137_spill] sm:$0xff]  ;;  %v6266_v28 = vpop.permute.xlu0 %6265  ;;  %vm12594_vm1 = vmmov %vm12592_vm9 }
 0x373   : > { %v9349_v10 = vpop.permute.xlu1 %6235  ;;  %v2833_v59 = vmul.f32 10.0, %v2832_v49  ;;  %v2817_v8 = vsel %vm2814_vm6, %v2816_v43, %v2812_v57  ;;  %v6267_v63 = vunpack.i.l.bf16 %v6266_v28  ;;  %v12505_v49 = vld [vmem:[#allocation46_spill] sm:$0xff]  ;;  %v6103_v57 = vunpack.i.h.bf16 %v8952_v23  ;;  %vm12609_vm3 = vmmov %vm12597_vm11 }
 0x374   : > { %vm12613_vm6 = vmmov %vm12612_vm12 }
 0x375   : > { %6450 = vrot.lane.b32.xlu1 %v6449_v3, %s7139_s23  ;;  %v2847_v3 = vsel %vm2844_vm2, %v2846_v6, %v2842_v46  ;;  %v12501_v46 = vld [vmem:[#allocation135_spill] sm:$0xff]  ;;  %v2926_v2 = vmul.f32 %v2833_v59, %v8942_v29  ;;  %v2428_v29 = vsel %vm1499_vm13, %v12226_v33, %v6028_v44  ;;  %vm12603_vm2 = vmmov %vm12594_vm1 }
 0x376   : > { %v2848_v51 = vmul.f32 10.0, %v2847_v3  ;;  %v12502_v31 = vpack.i.bf16 %v12500_v42, %v12501_v46  ;;  %v12510_v46 = vld [vmem:[#allocation149_spill] sm:$0xff] }
 0x377   : > { %6490 = vrot.lane.b32.xlu0 %v6489_v37, %s7139_s23 }
 0x378   : > { %v2928_v16 = vmul.f32 %v2848_v51, %v8981_v17  ;;  %v2929_v24 = vmul.f32 %v2848_v51, %v12380_v30  ;;  %v2927_v17 = vmul.f32 %v2833_v59, %v12367_v39  ;;  %v2818_v30 = vmul.f32 10.0, %v2817_v8  ;;  %v12508_v59 = vld [vmem:[#allocation70_spill] sm:$0xff]  ;;  %v12509_v8 = vld [vmem:[#allocation83_spill] sm:$0xff] }
 0x379   : > { %v6102_v39 = vunpack.i.l.bf16 %v8952_v23  ;;  %v6529_v42 = vpack.i.bf16 %v12509_v8, %v12508_v59  ;;  %v12512_v23 = vld [vmem:[#allocation18_spill] sm:$0xff] }
 0x37a   : > { %3041 = vmatpush.xpose.msrb.mxu3 %v2928_v16  ;;  %5813 = vmatpush.xpose.msk.msrb.mxu0 %vm1499_vm13, %v2929_v24  ;;  %v2924_v45 = vmul.f32 %v2818_v30, %v8881_v7  ;;  %v2925_v6 = vmul.f32 %v2818_v30, %v12347_v48  ;;  %v6072_v7 = vunpack.i.l.bf16 %v8901_v4  ;;  %v2460_v48 = vsel %vm523_vm0, %v2428_v29, %v6033_v18  ;;  %v9390_v3 = vpop.permute.xlu2 %6275  ;;  %v12506_v24 = vld [vmem:[#allocation106_spill] sm:$0xff]  ;;  %v12511_v30 = vld [vmem:[#allocation48_spill] sm:$0xff]  ;;  %v12514_v29 = vld [vmem:[#allocation41_spill] sm:$0xff] }
 0x37b   : > { %v9367_v37 = vpop.permute.xlu1 %6255  ;;  %v2492_v43 = vsel %vm1516_vm14, %v2460_v48, %v6102_v39  ;;  %v2429_v44 = vsel %vm1499_vm13, %v12512_v23, %v6047_v60  ;;  %v12513_v18 = vld [vmem:[#allocation152_spill] sm:$0xff]  ;;  %v6048_v48 = vunpack.i.h.bf16 %v8892_v12  ;;  %v12520_v12 = vld [vmem:[#allocation139_spill] sm:$0xff]  ;;  %v6278_v23 = vunpack.i.h.bf16 %v9390_v3 }
 0x37d   : > { %6465 = vrot.lane.b32.xlu1 %v12502_v31, %s7138_s15  ;;  %v6038_v31 = vunpack.i.h.bf16 %v12510_v46  ;;  %v12527_v46 = vld [vmem:[#allocation33_spill] sm:$0xff] }
 0x37e   : > { %3042 = vmatpush.xpose.msrb.mxu3 %v2926_v2  ;;  %5814 = vmatpush.xpose.msk.msrb.mxu0 %vm1499_vm13, %v2927_v17  ;;  %v6268_v2 = vunpack.i.h.bf16 %v6266_v28  ;;  %v2524_v17 = vsel %vm1525_vm15, %v2492_v43, %v6267_v63  ;;  %v2461_v28 = vsel %vm523_vm0, %v2429_v44, %v6072_v7  ;;  %v12516_v43 = vld [vmem:[#allocation37_spill] sm:$0xff]  ;;  %v6281_v7 = vpop.permute.xlu0 %6280  ;;  %v6112_v44 = vunpack.i.l.bf16 %v12520_v12 }
 0x37f   : > { %6520 = vrot.lane.b32.xlu0 %v8870_v9, %s7141_s19  ;;  %v12503_v9 = vld [vmem:[#allocation43_spill] sm:$0xff]  ;;  %v2493_v60 = vsel %vm1516_vm14, %v2461_v28, %v6103_v57  ;;  %v12521_v57 = vld [vmem:[#allocation36_spill] sm:$0xff] }
 0x382   : > { %3043 = vmatpush.xpose.msrb.mxu3 %v2924_v45  ;;  %5815 = vmatpush.xpose.msk.msrb.mxu0 %vm1499_vm13, %v2925_v6  ;;  %v6043_v45 = vunpack.i.h.bf16 %v12513_v18 }
 0x385   : > { %6480 = vrot.lane.b32.xlu1 %v8707_v22, %s7141_s19  ;;  %v6271_v51 = vpop.permute.xlu1 %6270  ;;  %5816 = vmatmul.msk.f32.vlgmr.msrb.gmra.mxu0 %vm1499_vm13, %v12506_v24  ;;  %v12507_v22 = vld [vmem:[#allocation39_spill] sm:$0xff] }
 0x386   : > { %5865 = vmatpush.msk.msra.mxu3 %vm7856_vm10, %v12503_v9  ;;  %5314 = vmatpush.msra.mxu0 %v12505_v49  ;;  %v6272_v16 = vunpack.i.l.bf16 %v6271_v51  ;;  %v6273_v6 = vunpack.i.h.bf16 %v6271_v51  ;;  %v12515_v9 = vld [vmem:[#allocation50_spill] sm:$0xff]  ;;  %v12517_v51 = vld [vmem:[#allocation151_spill] sm:$0xff]  ;;  %v6296_v38 = vpop.permute.xlu0 %6295 }
 0x387   : > { %6530 = vrot.lane.b32.xlu0 %v6529_v42, %s7139_s23  ;;  %v12518_v24 = vld [vmem:[#allocation155_spill] sm:$0xff] }
 0x388   : > { %5867 = vmatpush.msk.msra.mxu3 %vm7856_vm10, %v12507_v22  ;;  %5315 = vmatpush.msra.mxu0 %v12511_v30  ;;  %v2556_v39 = vsel %vm1534_vm4, %v2524_v17, %v6272_v16  ;;  %v6494_v22 = vpack.i.bf16 %v12518_v24, %v12517_v51  ;;  %v6073_v16 = vunpack.i.h.bf16 %v8901_v4  ;;  %v12519_v17 = vld [vmem:[#allocation52_spill] sm:$0xff] }
 0x389   : > { %v2588_v63 = vsel %vm1543_vm5, %v2556_v39, %v6038_v31  ;;  %v2525_v31 = vsel %vm1525_vm15, %v2493_v60, %v6268_v2  ;;  %v12523_v39 = vld [vmem:[#allocation53_spill] sm:$0xff]  ;;  %v12524_v2 = vld [vmem:[#allocation87_spill] sm:$0xff] }
 0x38a   : > { %5869 = vmatpush.msk.msra.mxu3 %vm7856_vm10, %v12514_v29  ;;  %5316 = vmatpush.msra.mxu0 %v12515_v9  ;;  %v2620_v42 = vsel %vm12127_vm7, %v2588_v63, %v6043_v45  ;;  %v2557_v18 = vsel %vm1534_vm4, %v2525_v31, %v6273_v6  ;;  %v6277_v45 = vunpack.i.l.bf16 %v9390_v3  ;;  %v12522_v29 = vld [vmem:[#allocation55_spill] sm:$0xff]  ;;  %v2430_v28 = vsel %vm1499_vm13, %v12523_v39, %v6048_v48  ;;  %v12526_v6 = vld [vmem:[#allocation57_spill] sm:$0xff]  ;;  %v12528_v48 = vld [vmem:[#allocation26_spill] sm:$0xff] }
 0x38b   : > { %3044 = vmatmul.f32.vlgmr.msrb.gmra.mxu3 %v2620_v42  ;;  %v12525_v60 = vld [vmem:[#allocation35_spill] sm:$0xff] }
 0x38c   : > { %5871 = vmatpush.msk.msra.mxu3 %vm7856_vm10, %v12516_v43  ;;  %5317 = vmatpush.msra.mxu0 %v12519_v17  ;;  %v2462_v43 = vsel %vm523_vm0, %v2430_v28, %v6073_v16  ;;  %v2589_v42 = vsel %vm1543_vm5, %v2557_v18, %v6277_v45  ;;  %v12530_v28 = vld [vmem:[#allocation21_spill] sm:$0xff] }
 0x38d   : > { %6495 = vrot.lane.b32.xlu1 %v6494_v22, %s7140_s14  ;;  %5817 = vmatmul.msk.f32.gmra.mxu0 %vm1499_vm13, %v12524_v2  ;;  %v6291_v22 = vpop.permute.xlu2 %6290  ;;  %v2494_v31 = vsel %vm1516_vm14, %v2462_v43, %v6112_v44  ;;  %v12531_v44 = vld [vmem:[#allocation161_spill] sm:$0xff] }
 0x38e   : > { %5873 = vmatpush.msk.msra.mxu3 %vm7856_vm10, %v12521_v57  ;;  %5318 = vmatpush.msra.mxu0 %v12522_v29  ;;  %v6282_v57 = vunpack.i.l.bf16 %v6281_v7  ;;  %v6292_v2 = vunpack.i.l.bf16 %v6291_v22  ;;  %v6052_v18 = vunpack.i.l.bf16 %v12531_v44  ;;  %v12532_v45 = vld [vmem:[#allocation157_spill] sm:$0xff] }
 0x38f   : > { %v6286_v4 = vpop.permute.xlu1 %6285 }
 0x390   : > { %v6287_v63 = vunpack.i.l.bf16 %v6286_v4  ;;  %5875 = vmatpush.msk.msra.mxu3 %vm7856_vm10, %v12525_v60  ;;  %5319 = vmatpush.msra.mxu0 %v12526_v6  ;;  %v12529_v60 = vld [vmem:[#allocation24_spill] sm:$0xff]  ;;  %v2621_v16 = vsel %vm12127_vm7, %v2589_v42, %v6282_v57  ;;  %v6113_v42 = vunpack.i.h.bf16 %v12520_v12  ;;  %v6288_v57 = vunpack.i.h.bf16 %v6286_v4  ;;  %v12538_v12 = vld [vmem:[#allocation51_spill] sm:$0xff]  ;;  %v12539_v4 = vld [vmem:[#allocation54_spill] sm:$0xff] }
 0x392   : > { %5877 = vmatpush.msk.msra.mxu3 %vm7856_vm10, %v12527_v46  ;;  %5320 = vmatpush.msra.mxu0 %v12528_v48  ;;  %v2526_v39 = vsel %vm1525_vm15, %v2494_v31, %v6287_v63  ;;  %v12533_v46 = vld [vmem:[#allocation45_spill] sm:$0xff]  ;;  %v12534_v63 = vld [vmem:[#allocation28_spill] sm:$0xff] }
 0x393   : > { %3047 = vmatmul.f32.gmra.mxu3 %v2621_v16  ;;  %v2558_v43 = vsel %vm1534_vm4, %v2526_v39, %v6292_v2  ;;  %v6077_v31 = vunpack.i.l.bf16 %v12534_v63  ;;  %v12536_v16 = vld [vmem:[#allocation49_spill] sm:$0xff]  ;;  %v12537_v39 = vld [vmem:[#allocation58_spill] sm:$0xff] }
 0x394   : > { %5879 = vmatpush.msk.msra.mxu3 %vm7856_vm10, %v12529_v60  ;;  %5321 = vmatpush.msra.mxu0 %v12530_v28  ;;  %v12535_v60 = vld [vmem:[#allocation47_spill] sm:$0xff]  ;;  %v2590_v28 = vsel %vm1543_vm5, %v2558_v43, %v6278_v23  ;;  %v2431_v2 = vsel %vm1499_vm13, %v12537_v39, %v6052_v18  ;;  %v6293_v18 = vunpack.i.h.bf16 %v6291_v22 }
 0x395   : > { %6500 = vrot.lane.b32.xlu1 %v12532_v45, %s7141_s19  ;;  %5818 = vmatmul.msk.f32.gmra.mxu0 %vm1499_vm13, %v12432_v15  ;;  %v6283_v45 = vunpack.i.h.bf16 %v6281_v7  ;;  %v2463_v3 = vsel %vm523_vm0, %v2431_v2, %v6077_v31  ;;  %v12540_v7 = vld [vmem:[#allocation154_spill] sm:$0xff]  ;;  %v12543_v31 = vld [vmem:[#allocation56_spill] sm:$0xff]  ;;  %v12544_v39 = vld [vmem:[#allocation59_spill] sm:$0xff] }
 0x396   : > { %5209 = vmatpush.msra.mxu3 %v12533_v46  ;;  %5322 = vmatpush.msra.mxu0 %v12535_v60  ;;  %v2495_v15 = vsel %vm1516_vm14, %v2463_v3, %v6113_v42  ;;  %v6053_v60 = vunpack.i.h.bf16 %v12531_v44 }
 0x397   : > { %v6301_v46 = vpop.permute.xlu1 %6300  ;;  %v2527_v23 = vsel %vm1525_vm15, %v2495_v15, %v6288_v57  ;;  %v6078_v57 = vunpack.i.h.bf16 %v12534_v63  ;;  %v12548_v63 = vld [vmem:[#allocation162_spill] sm:$0xff]  ;;  %v12549_v15 = vld [vmem:[#allocation165_spill] sm:$0xff] }
 0x398   : > { %5210 = vmatpush.msra.mxu3 %v12505_v49  ;;  %5323 = vmatpush.msra.mxu0 %v12536_v16  ;;  %v2622_v49 = vsel %vm12127_vm7, %v2590_v28, %v6283_v45  ;;  %v6302_v42 = vunpack.i.l.bf16 %v6301_v46  ;;  %v2559_v22 = vsel %vm1534_vm4, %v2527_v23, %v6293_v18  ;;  %v6297_v16 = vunpack.i.l.bf16 %v6296_v38  ;;  %v6311_v28 = vpop.permute.xlu0 %6310  ;;  %v12546_v45 = vld [vmem:[#allocation60_spill] sm:$0xff] }
 0x39a   : > { %5211 = vmatpush.msra.mxu3 %v12511_v30  ;;  %5324 = vmatpush.msra.mxu0 %v12538_v12  ;;  %v12541_v30 = vld [vmem:[#allocation153_spill] sm:$0xff]  ;;  %v2591_v3 = vsel %vm1543_vm5, %v2559_v22, %v6297_v16  ;;  %v6312_v12 = vunpack.i.l.bf16 %v6311_v28 }
 0x39b   : > { %3050 = vmatmul.f32.gmra.mxu3 %v2622_v49  ;;  %v12542_v43 = vpack.i.bf16 %v12540_v7, %v12541_v30  ;;  %v6509_v49 = vpack.i.bf16 %v12549_v15, %v12548_v63 }
 0x39c   : > { %5212 = vmatpush.msra.mxu3 %v12515_v9  ;;  %5325 = vmatpush.msra.mxu0 %v12539_v4  ;;  %v6306_v9 = vpop.permute.xlu2 %6305  ;;  %v2623_v4 = vsel %vm12127_vm7, %v2591_v3, %v6302_v42  ;;  %v12551_v42 = vld [vmem:[#allocation67_spill] sm:$0xff]  ;;  %v12554_v3 = vld [vmem:[#allocation158_spill] sm:$0xff] }
 0x39d   : > { %6505 = vrot.lane.b32.xlu1 %v12542_v43, %s7138_s15  ;;  %5819 = vmatmul.msk.f32.gmra.mxu0 %vm1499_vm13, %v12433_v50  ;;  %v6307_v44 = vunpack.i.l.bf16 %v6306_v9  ;;  %v12547_v50 = vld [vmem:[#allocation66_spill] sm:$0xff] }
 0x39e   : > { %5213 = vmatpush.msra.mxu3 %v12519_v17  ;;  %5326 = vmatpush.msra.mxu0 %v12543_v31  ;;  %v12545_v17 = vld [vmem:[#allocation138_spill] sm:$0xff] }
 0x39f   : > { %v6127_v2 = vunpack.i.l.bf16 %v12545_v17  ;;  %v6316_v18 = vpop.permute.xlu1 %6315 }
 0x3a0   : > { %5214 = vmatpush.msra.mxu3 %v12522_v29  ;;  %5327 = vmatpush.msra.mxu0 %v12544_v39  ;;  %v2432_v29 = vsel %vm1499_vm13, %v12547_v50, %v6053_v60  ;;  %v6298_v60 = vunpack.i.h.bf16 %v6296_v38  ;;  %v6308_v39 = vunpack.i.h.bf16 %v6306_v9 }
 0x3a1   : > { %v2464_v23 = vsel %vm523_vm0, %v2432_v29, %v6078_v57  ;;  %v12552_v57 = vld [vmem:[#allocation78_spill] sm:$0xff] }
 0x3a2   : > { %5215 = vmatpush.msra.mxu3 %v12526_v6  ;;  %5328 = vmatpush.msra.mxu0 %v12546_v45  ;;  %v12550_v6 = vld [vmem:[#allocation121_spill] sm:$0xff]  ;;  %v2496_v30 = vsel %vm1516_vm14, %v2464_v23, %v6127_v2  ;;  %v6082_v16 = vunpack.i.l.bf16 %v12552_v57  ;;  %v12555_v23 = vld [vmem:[#allocation72_spill] sm:$0xff] }
 0x3a3   : > { %3053 = vmatmul.f32.gmra.mxu3 %v2623_v4  ;;  %v6057_v7 = vunpack.i.l.bf16 %v12550_v6  ;;  %v2528_v43 = vsel %vm1525_vm15, %v2496_v30, %v6307_v44  ;;  %v6058_v45 = vunpack.i.h.bf16 %v12550_v6  ;;  %v6313_v44 = vunpack.i.h.bf16 %v6311_v28  ;;  %v12556_v6 = vld [vmem:[#allocation32_spill] sm:$0xff] }
 0x3a4   : > { %5216 = vmatpush.msra.mxu3 %v12528_v48  ;;  %5329 = vmatpush.msra.mxu0 %v7409_v52  ;;  %v6303_v48 = vunpack.i.h.bf16 %v6301_v46  ;;  %v2560_v31 = vsel %vm1534_vm4, %v2528_v43, %v6312_v12  ;;  %v6128_v52 = vunpack.i.h.bf16 %v12545_v17  ;;  %v12553_v46 = vld [vmem:[#allocation156_spill] sm:$0xff]  ;;  %v6321_v29 = vpop.permute.xlu2 %6320  ;;  %v6317_v12 = vunpack.i.l.bf16 %v6316_v18 }
 0x3a5   : > { %6510 = vrot.lane.b32.xlu1 %v6509_v49, %s7139_s23  ;;  %5820 = vmatmul.msk.f32.gmra.mxu0 %vm1499_vm13, %v12453_v54  ;;  %v2433_v22 = vsel %vm1499_vm13, %v12551_v42, %v6057_v7  ;;  %v2592_v2 = vsel %vm1543_vm5, %v2560_v31, %v6298_v60  ;;  %v6514_v50 = vpack.i.bf16 %v12554_v3, %v12553_v46  ;;  %v6326_v49 = vpop.permute.xlu0 %6325  ;;  %v6132_v7 = vunpack.i.l.bf16 %v12556_v6 }
 0x3a6   : > { %v2624_v54 = vsel %vm12127_vm7, %v2592_v2, %v6303_v48  ;;  %v2465_v38 = vsel %vm523_vm0, %v2433_v22, %v6082_v16  ;;  %v2434_v28 = vsel %vm1499_vm13, %v12555_v23, %v6058_v45  ;;  %v6083_v43 = vunpack.i.h.bf16 %v12552_v57  ;;  %v12557_v2 = vld [vmem:[#allocation163_spill] sm:$0xff]  ;;  %v12560_v23 = vld [vmem:[#allocation73_spill] sm:$0xff] }
 0x3a7   : > { %v2497_v17 = vsel %vm1516_vm14, %v2465_v38, %v6128_v52  ;;  %v6331_v9 = vpop.permute.xlu1 %6330  ;;  %v6327_v48 = vunpack.i.l.bf16 %v6326_v49  ;;  %v6322_v60 = vunpack.i.l.bf16 %v6321_v29  ;;  %v6133_v38 = vunpack.i.h.bf16 %v12556_v6 }
 0x3a8   : > { %v2529_v4 = vsel %vm1525_vm15, %v2497_v17, %v6308_v39  ;;  %v6332_v42 = vunpack.i.l.bf16 %v6331_v9  ;;  %v2466_v22 = vsel %vm523_vm0, %v2434_v28, %v6083_v43  ;;  %v6328_v17 = vunpack.i.h.bf16 %v6326_v49 }
 0x3a9   : > { %v2561_v30 = vsel %vm1534_vm4, %v2529_v4, %v6313_v44  ;;  %v2498_v52 = vsel %vm1516_vm14, %v2466_v22, %v6132_v7  ;;  %v12558_v44 = vld [vmem:[#allocation25_spill] sm:$0xff]  ;;  %v6323_v7 = vunpack.i.h.bf16 %v6321_v29 }
 0x3aa   : > { %v2593_v31 = vsel %vm1543_vm5, %v2561_v30, %v6317_v12  ;;  %v2530_v39 = vsel %vm1525_vm15, %v2498_v52, %v6327_v48  ;;  %v6087_v57 = vunpack.i.l.bf16 %v12558_v44  ;;  %v12559_v12 = vld [vmem:[#allocation112_spill] sm:$0xff]  ;;  %v6333_v30 = vunpack.i.h.bf16 %v6331_v9  ;;  %v12561_v22 = vld [vmem:[#allocation133_spill] sm:$0xff] }
 0x3ab   : > { %3056 = vmatmul.f32.gmra.mxu3 %v2624_v54  ;;  %v2625_v16 = vsel %vm12127_vm7, %v2593_v31, %v6322_v60  ;;  %v2562_v45 = vsel %vm1534_vm4, %v2530_v39, %v6332_v42  ;;  %v6318_v54 = vunpack.i.h.bf16 %v6316_v18  ;;  %v6063_v48 = vunpack.i.h.bf16 %v12557_v2  ;;  %v12562_v39 = vld [vmem:[#allocation34_spill] sm:$0xff] }
 0x3ac   : > { %v6088_v60 = vunpack.i.h.bf16 %v12558_v44  ;;  %v6137_v52 = vunpack.i.l.bf16 %v12561_v22 }
 0x3ad   : > { %6515 = vrot.lane.b32.xlu1 %v6514_v50, %s7140_s14  ;;  %5821 = vmatmul.msk.f32.gmra.mxu0 %vm1499_vm13, %v12454_v40  ;;  %v6062_v40 = vunpack.i.l.bf16 %v12557_v2  ;;  %v6336_v50 = vpop.permute.xlu2 %6335  ;;  %v2594_v4 = vsel %vm1543_vm5, %v2562_v45, %v6318_v54  ;;  %v6341_v42 = vpop.permute.xlu0 %6340  ;;  %v2436_v2 = vsel %vm1499_vm13, %v12562_v39, %v6063_v48 }
 0x3ae   : > { %v2626_v6 = vsel %vm12127_vm7, %v2594_v4, %v6323_v7  ;;  %v6337_v9 = vunpack.i.l.bf16 %v6336_v50  ;;  %v2468_v45 = vsel %vm523_vm0, %v2436_v2, %v6088_v60  ;;  %v6338_v48 = vunpack.i.h.bf16 %v6336_v50 }
 0x3af   : > { %v2435_v28 = vsel %vm1499_vm13, %v12560_v23, %v6062_v40  ;;  %v6346_v18 = vpop.permute.xlu1 %6345  ;;  %v12563_v40 = vld [vmem:[#allocation93_spill] sm:$0xff]  ;;  %v2500_v54 = vsel %vm1516_vm14, %v2468_v45, %v6137_v52  ;;  %v12564_v23 = vld [vmem:[#allocation127_spill] sm:$0xff]  ;;  %v6138_v60 = vunpack.i.h.bf16 %v12561_v22 }
 0x3b0   : > { %v2467_v43 = vsel %vm523_vm0, %v2435_v28, %v6087_v57  ;;  %v6067_v28 = vunpack.i.l.bf16 %v12564_v23  ;;  %v6068_v45 = vunpack.i.h.bf16 %v12564_v23 }
 0x3b1   : > { %v2499_v31 = vsel %vm1516_vm14, %v2467_v43, %v6133_v38  ;;  %v6342_v38 = vunpack.i.l.bf16 %v6341_v42 }
 0x3b2   : > { %v2531_v49 = vsel %vm1525_vm15, %v2499_v31, %v6328_v17 }
 0x3b3   : > { %3059 = vmatmul.f32.gmra.mxu3 %v2625_v16  ;;  %v2563_v29 = vsel %vm1534_vm4, %v2531_v49, %v6333_v30  ;;  %v6347_v16 = vunpack.i.l.bf16 %v6346_v18  ;;  %v12565_v30 = vld [vmem:[#allocation84_spill] sm:$0xff]  ;;  %v6348_v49 = vunpack.i.h.bf16 %v6346_v18 }
 0x3b4   : > { %v2595_v44 = vsel %vm1543_vm5, %v2563_v29, %v6337_v9  ;;  %v6097_v43 = vunpack.i.l.bf16 %v12565_v30  ;;  %v12566_v29 = vld [vmem:[#allocation19_spill] sm:$0xff] }
 0x3b5   : > { %5822 = vmatmul.msk.f32.gmra.mxu0 %vm1499_vm13, %v12559_v12  ;;  %v6351_v57 = vpop.permute.xlu2 %6350  ;;  %v2532_v12 = vsel %vm1525_vm15, %v2500_v54, %v6347_v16  ;;  %v2627_v4 = vsel %vm12127_vm7, %v2595_v44, %v6342_v38  ;;  %v6356_v31 = vpop.permute.xlu0 %6355  ;;  %v2437_v9 = vsel %vm1499_vm13, %v12566_v29, %v6067_v28  ;;  %v6343_v16 = vunpack.i.h.bf16 %v6341_v42 }
 0x3b6   : > { %v6352_v17 = vunpack.i.l.bf16 %v6351_v57  ;;  %v2469_v39 = vsel %vm523_vm0, %v2437_v9, %v6097_v43  ;;  %v6353_v22 = vunpack.i.h.bf16 %v6351_v57  ;;  %v6098_v42 = vunpack.i.h.bf16 %v12565_v30  ;;  %v12568_v57 = vld [vmem:[#allocation20_spill] sm:$0xff] }
 0x3b7   : > { %v2501_v2 = vsel %vm1516_vm14, %v2469_v39, %v6138_v60  ;;  %v6357_v54 = vunpack.i.l.bf16 %v6356_v31  ;;  %v2438_v23 = vsel %vm1499_vm13, %v12568_v57, %v6068_v45  ;;  %v12569_v60 = vld [vmem:[#allocation164_spill] sm:$0xff]  ;;  %v12570_v39 = vld [vmem:[#allocation79_spill] sm:$0xff]  ;;  %v12572_v57 = vld [vmem:[#allocation86_spill] sm:$0xff] }
 0x3b8   : > { %v2564_v7 = vsel %vm1534_vm4, %v2532_v12, %v6352_v17  ;;  %v12567_v17 = vld [vmem:[#allocation96_spill] sm:$0xff] }
 0x3b9   : > { %v2596_v52 = vsel %vm1543_vm5, %v2564_v7, %v6338_v48 }
 0x3ba   : > { %v2628_v50 = vsel %vm12127_vm7, %v2596_v52, %v6343_v16  ;;  %v6358_v16 = vunpack.i.h.bf16 %v6356_v31 }
 0x3bb   : > { %3062 = vmatmul.f32.gmra.mxu3 %v2626_v6  ;;  %v6361_v6 = vpop.permute.xlu1 %6360 }
 0x3bc   : > { %v6362_v18 = vunpack.i.l.bf16 %v6361_v6  ;;  %v6363_v29 = vunpack.i.h.bf16 %v6361_v6 }
 0x3bd   : > { %5823 = vmatmul.msk.f32.gmra.mxu0 %vm1499_vm13, %v12563_v40  ;;  %v2533_v40 = vsel %vm1525_vm15, %v2501_v2, %v6348_v49  ;;  %v6371_v38 = vpop.permute.xlu0 %6370  ;;  %v6092_v49 = vunpack.i.l.bf16 %v12569_v60 }
 0x3be   : > { %v2565_v44 = vsel %vm1534_vm4, %v2533_v40, %v6353_v22  ;;  %v6372_v43 = vunpack.i.l.bf16 %v6371_v38  ;;  %v12571_v40 = vld [vmem:[#allocation124_spill] sm:$0xff]  ;;  %v6373_v6 = vunpack.i.h.bf16 %v6371_v38 }
 0x3bf   : > { %v2597_v7 = vsel %vm1543_vm5, %v2565_v44, %v6357_v54  ;;  %v2439_v2 = vsel %vm1499_vm13, %v12570_v39, %v6092_v49  ;;  %v6107_v22 = vunpack.i.l.bf16 %v12571_v40 }
 0x3c0   : > { %v2629_v48 = vsel %vm12127_vm7, %v2597_v7, %v6362_v18 }
 0x3c3   : > { %3065 = vmatmul.f32.gmra.mxu3 %v2627_v4  ;;  %v6376_v12 = vpop.permute.xlu1 %6375  ;;  %v6147_v4 = vunpack.i.l.bf16 %v12567_v17 }
 0x3c4   : > { %v6377_v31 = vunpack.i.l.bf16 %v6376_v12 }
 0x3c5   : > { %5824 = vmatmul.msk.f32.gmra.mxu0 %vm1499_vm13, %v12458_v35  ;;  %v6366_v35 = vpop.permute.xlu2 %6365  ;;  %v6386_v7 = vpop.permute.xlu0 %6385 }
 0x3c6   : > { %v6367_v28 = vunpack.i.l.bf16 %v6366_v35  ;;  %v6368_v45 = vunpack.i.h.bf16 %v6366_v35 }
 0x3cb   : > { %3068 = vmatmul.f32.gmra.mxu3 %v2628_v50  ;;  %v6148_v50 = vunpack.i.h.bf16 %v12567_v17  ;;  %v6391_v18 = vpop.permute.xlu1 %6390 }
 0x3cd   : > { %5825 = vmatmul.msk.f32.gmra.mxu0 %vm1499_vm13, %v12459_v62  ;;  %v2470_v62 = vsel %vm523_vm0, %v2438_v23, %v6098_v42  ;;  %v6093_v42 = vunpack.i.h.bf16 %v12569_v60  ;;  %v12573_v23 = vld [vmem:[#allocation134_spill] sm:$0xff] }
 0x3ce   : > { %v2502_v30 = vsel %vm1516_vm14, %v2470_v62, %v6147_v4  ;;  %v6381_v4 = vpop.permute.xlu2 %6380  ;;  %v6387_v62 = vunpack.i.l.bf16 %v6386_v7 }
 0x3cf   : > { %v2534_v52 = vsel %vm1525_vm15, %v2502_v30, %v6367_v28  ;;  %v2440_v35 = vsel %vm1499_vm13, %v12572_v57, %v6093_v42  ;;  %v6382_v49 = vunpack.i.l.bf16 %v6381_v4  ;;  %v6392_v30 = vunpack.i.l.bf16 %v6391_v18 }
 0x3d0   : > { %v2566_v9 = vsel %vm1534_vm4, %v2534_v52, %v6372_v43  ;;  %v6157_v43 = vunpack.i.l.bf16 %v12573_v23  ;;  %v6158_v42 = vunpack.i.h.bf16 %v12573_v23  ;;  %v6383_v57 = vunpack.i.h.bf16 %v6381_v4 }
 0x3d1   : > { %v2598_v44 = vsel %vm1543_vm5, %v2566_v9, %v6358_v16 }
 0x3d2   : > { %v2630_v54 = vsel %vm12127_vm7, %v2598_v44, %v6363_v29  ;;  %v12574_v29 = vld [vmem:[#allocation27_spill] sm:$0xff] }
 0x3d3   : > { %3071 = vmatmul.f32.gmra.mxu3 %v2629_v48  ;;  %v6108_v48 = vunpack.i.h.bf16 %v12571_v40  ;;  %v6117_v9 = vunpack.i.l.bf16 %v12574_v29 }
 0x3d5   : > { %5826 = vmatmul.msk.f32.gmra.mxu0 %vm1499_vm13, %v12476_v25  ;;  %v2471_v25 = vsel %vm523_vm0, %v2439_v2, %v6107_v22  ;;  %v2472_v52 = vsel %vm523_vm0, %v2440_v35, %v6108_v48  ;;  %v6406_v2 = vpop.permute.xlu1 %6405  ;;  %v6378_v22 = vunpack.i.h.bf16 %v6376_v12  ;;  %v6393_v35 = vunpack.i.h.bf16 %v6391_v18  ;;  %v6401_v48 = vpop.permute.xlu0 %6400 }
 0x3d6   : > { %v2503_v28 = vsel %vm1516_vm14, %v2471_v25, %v6148_v50  ;;  %v2504_v16 = vsel %vm1516_vm14, %v2472_v52, %v6157_v43  ;;  %v6396_v40 = vpop.permute.xlu2 %6395  ;;  %v6407_v52 = vunpack.i.l.bf16 %v6406_v2 }
 0x3d7   : > { %v2535_v17 = vsel %vm1525_vm15, %v2503_v28, %v6368_v45  ;;  %v12575_v45 = vld [vmem:[#allocation89_spill] sm:$0xff]  ;;  %v6397_v18 = vunpack.i.l.bf16 %v6396_v40 }
 0x3d8   : > { %v2567_v38 = vsel %vm1534_vm4, %v2535_v17, %v6373_v6  ;;  %v2441_v44 = vsel %vm1499_vm13, %v12575_v45, %v6117_v9  ;;  %v12576_v6 = vld [vmem:[#allocation131_spill] sm:$0xff]  ;;  %v6118_v17 = vunpack.i.h.bf16 %v12574_v29 }
 0x3d9   : > { %v2599_v60 = vsel %vm1543_vm5, %v2567_v38, %v6377_v31  ;;  %v6388_v31 = vunpack.i.h.bf16 %v6386_v7  ;;  %v12579_v7 = vld [vmem:[#allocation141_spill] sm:$0xff]  ;;  %v12580_v9 = vld [vmem:[#allocation115_spill] sm:$0xff] }
 0x3da   : > { %v2631_v39 = vsel %vm12127_vm7, %v2599_v60, %v6382_v49  ;;  %v6162_v49 = vunpack.i.l.bf16 %v12579_v7 }
 0x3db   : > { %3074 = vmatmul.f32.gmra.mxu3 %v2630_v54  ;;  %v12577_v54 = vld [vmem:[#allocation76_spill] sm:$0xff] }
 0x3dc   : > { %v6122_v25 = vunpack.i.l.bf16 %v12577_v54  ;;  %v6123_v4 = vunpack.i.h.bf16 %v12577_v54 }
 0x3dd   : > { %5827 = vmatmul.msk.f32.gmra.mxu0 %vm1499_vm13, %v12477_v36  ;;  %v2536_v36 = vsel %vm1525_vm15, %v2504_v16, %v6387_v62  ;;  %v12578_v62 = vld [vmem:[#allocation97_spill] sm:$0xff]  ;;  %v9634_v29 = vpop.permute.xlu1 %6420 }
 0x3de   : > { %v2568_v50 = vsel %vm1534_vm4, %v2536_v36, %v6392_v30  ;;  %v2473_v43 = vsel %vm523_vm0, %v2441_v44, %v6122_v25  ;;  %v2442_v60 = vsel %vm1499_vm13, %v12578_v62, %v6118_v17  ;;  %v12581_v44 = vld [vmem:[#allocation71_spill] sm:$0xff]  ;;  %v12582_v25 = vld [vmem:[#allocation80_spill] sm:$0xff]  ;;  %v6398_v17 = vunpack.i.h.bf16 %v6396_v40 }
 0x3df   : > { %v2600_v28 = vsel %vm1543_vm5, %v2568_v50, %v6378_v22  ;;  %v2505_v12 = vsel %vm1516_vm14, %v2473_v43, %v6158_v42  ;;  %v2474_v16 = vsel %vm523_vm0, %v2442_v60, %v6123_v4  ;;  %v6402_v22 = vunpack.i.l.bf16 %v6401_v48 }
 0x3e0   : > { %v2632_v38 = vsel %vm12127_vm7, %v2600_v28, %v6383_v57  ;;  %v2537_v23 = vsel %vm1525_vm15, %v2505_v12, %v6388_v31  ;;  %v2506_v50 = vsel %vm1516_vm14, %v2474_v16, %v6162_v49  ;;  %v6142_v42 = vunpack.i.l.bf16 %v12581_v44  ;;  %v6416_v57 = vpop.permute.xlu0 %6415 }
 0x3e1   : > { %v2569_v30 = vsel %vm1534_vm4, %v2537_v23, %v6393_v35  ;;  %v2538_v45 = vsel %vm1525_vm15, %v2506_v50, %v6407_v52  ;;  %v6152_v31 = vunpack.i.l.bf16 %v12582_v25  ;;  %v6408_v12 = vunpack.i.h.bf16 %v6406_v2 }
 0x3e2   : > { %v2601_v36 = vsel %vm1543_vm5, %v2569_v30, %v6397_v18  ;;  %v2443_v35 = vsel %vm1499_vm13, %v12472_v41, %v6142_v42  ;;  %v6163_v62 = vunpack.i.h.bf16 %v12579_v7  ;;  %v6403_v60 = vunpack.i.h.bf16 %v6401_v48  ;;  %v12583_v42 = vld [vmem:[#allocation30_spill] sm:$0xff] }
 0x3e3   : > { %3077 = vmatmul.f32.gmra.mxu3 %v2631_v39  ;;  %v6411_v39 = vpop.permute.xlu2 %6410  ;;  %v2633_v54 = vsel %vm12127_vm7, %v2601_v36, %v6402_v22  ;;  %v2475_v43 = vsel %vm523_vm0, %v2443_v35, %v6152_v31  ;;  %v6422_v2 = vunpack.i.l.bf16 %v9634_v29  ;;  %v6153_v48 = vunpack.i.h.bf16 %v12582_v25 }
 0x3e4   : > { %v2507_v49 = vsel %vm1516_vm14, %v2475_v43, %v6163_v62  ;;  %v6413_v41 = vunpack.i.h.bf16 %v6411_v39  ;;  %v6417_v7 = vunpack.i.l.bf16 %v6416_v57  ;;  %v6423_v31 = vunpack.i.h.bf16 %v9634_v29 }
 0x3e5   : > { %5828 = vmatmul.msk.f32.gmra.mxu0 %vm1499_vm13, %v12576_v6  ;;  %v6412_v6 = vunpack.i.l.bf16 %v6411_v39  ;;  %v2539_v30 = vsel %vm1525_vm15, %v2507_v49, %v6408_v12  ;;  %v6238_v43 = vunpack.i.h.bf16 %v9349_v10  ;;  %v12585_v12 = vld [vmem:[#allocation123_spill] sm:$0xff]  ;;  %v6168_v49 = vunpack.i.h.bf16 %v12583_v42 }
 0x3e6   : > { %v2571_v18 = vsel %vm1534_vm4, %v2539_v30, %v6413_v41 }
 0x3e7   : > { %v2570_v28 = vsel %vm1534_vm4, %v2538_v45, %v6412_v6  ;;  %v2603_v39 = vsel %vm1543_vm5, %v2571_v18, %v6417_v7  ;;  %v6167_v6 = vunpack.i.l.bf16 %v12583_v42 }
 0x3e8   : > { %v2602_v23 = vsel %vm1543_vm5, %v2570_v28, %v6398_v17  ;;  %v6431_v52 = vpop.permute.xlu0 %6430  ;;  %v2635_v45 = vsel %vm12127_vm7, %v2603_v39, %v6422_v2  ;;  %v6418_v28 = vunpack.i.h.bf16 %v6416_v57  ;;  %v12584_v17 = vld [vmem:[#allocation107_spill] sm:$0xff]  ;;  %v6173_v39 = vunpack.i.h.bf16 %v12585_v12 }
 0x3e9   : > { %v2634_v40 = vsel %vm12127_vm7, %v2602_v23, %v6403_v60  ;;  %v6432_v22 = vunpack.i.l.bf16 %v6431_v52  ;;  %v2445_v35 = vsel %vm1499_vm13, %v12584_v17, %v6167_v6  ;;  %v6172_v23 = vunpack.i.l.bf16 %v12585_v12 }
 0x3ea   : > { %v6433_v29 = vunpack.i.h.bf16 %v6431_v52  ;;  %v6242_v52 = vunpack.i.l.bf16 %v9321_v13 }
 0x3eb   : > { %3080 = vmatmul.f32.gmra.mxu3 %v2632_v38  ;;  %v9651_v38 = vpop.permute.xlu1 %6435  ;;  %v6426_v4 = vpop.permute.xlu2 %6425 }
 0x3ec   : > { %v6427_v16 = vunpack.i.l.bf16 %v6426_v4  ;;  %v6428_v62 = vunpack.i.h.bf16 %v6426_v4  ;;  %v6437_v57 = vunpack.i.l.bf16 %v9651_v38  ;;  %v899_v4 = vpop.f32.mrf.mxu2 }
 0x3ed   : > { %5829 = vmatmul.msk.f32.gmra.mxu0 %vm1499_vm13, %v12580_v9  ;;  %v6237_v9 = vunpack.i.l.bf16 %v9349_v10 }
 0x3f0   : > { %v6446_v2 = vpop.permute.xlu0 %6445 }
 0x3f3   : > { %3083 = vmatmul.f32.gmra.mxu3 %v2633_v54  ;;  %v9665_v36 = vpop.permute.xlu1 %6450 }
 0x3f4   : > { %v6452_v42 = vunpack.i.l.bf16 %v9665_v36 }
 0x3f5   : > { %5830 = vmatmul.msk.f32.gmra.mxu0 %vm1499_vm13, %v12478_v56  ;;  %v6143_v56 = vunpack.i.h.bf16 %v12581_v44 }
 0x3f7   : > { %v2444_v50 = vsel %vm1499_vm13, %v12473_v21, %v6143_v56 }
 0x3fb   : > { %3086 = vmatmul.f32.gmra.mxu3 %v2634_v40  ;;  %v6441_v40 = vpop.permute.xlu2 %6440  ;;  %v9688_v41 = vpop.permute.xlu1 %6465 }
 0x3fd   : > { %5831 = vmatmul.msk.f32.gmra.mxu0 %vm1499_vm13, %v12479_v11  ;;  %v2476_v11 = vsel %vm523_vm0, %v2444_v50, %v6153_v48  ;;  %v12586_v48 = vld [vmem:[#allocation111_spill] sm:$0xff]  ;;  %v6447_v50 = vunpack.i.l.bf16 %v6446_v2 }
 0x3fe   : > { %v2508_v54 = vsel %vm1516_vm14, %v2476_v11, %v6237_v9  ;;  %v2446_v7 = vsel %vm1499_vm13, %v12586_v48, %v6168_v49  ;;  %v6442_v11 = vunpack.i.l.bf16 %v6441_v40  ;;  %v6243_v49 = vunpack.i.h.bf16 %v9321_v13 }
 0x3ff   : > { %v2540_v25 = vsel %vm1525_vm15, %v2508_v54, %v6427_v16  ;;  %v2478_v6 = vsel %vm523_vm0, %v2446_v7, %v6173_v39  ;;  %v6453_v48 = vunpack.i.h.bf16 %v9665_v36  ;;  %v6247_v39 = vunpack.i.l.bf16 %v9333_v34 }
 0x400   : > { %v2572_v21 = vsel %vm1534_vm4, %v2540_v25, %v6432_v22  ;;  %v12587_v25 = vld [vmem:[#allocation166_spill] sm:$0xff] }
 0x401   : > { %v2604_v60 = vsel %vm1543_vm5, %v2572_v21, %v6418_v28 }
 0x402   : > { %v3158_v44 = vpop.f32.mrf.mxu0  ;;  %v2636_v30 = vsel %vm12127_vm7, %v2604_v60, %v6423_v31  ;;  %v2510_v31 = vsel %vm1516_vm14, %v2478_v6, %v6242_v52  ;;  %v6467_v6 = vunpack.i.l.bf16 %v9688_v41 }
 0x403   : > { %3089 = vmatmul.f32.gmra.mxu3 %v2635_v45  ;;  %v9712_v12 = vpop.permute.xlu2 %6455 }
 0x405   : > { %5832 = vmatmul.msk.f32.gmra.mxu0 %vm1499_vm13, %v12495_v55  ;;  %v2477_v55 = vsel %vm523_vm0, %v2445_v35, %v6172_v23  ;;  %v12588_v35 = vld [vmem:[#allocation119_spill] sm:$0xff]  ;;  %v6438_v23 = vunpack.i.h.bf16 %v9651_v38  ;;  %v6443_v38 = vunpack.i.h.bf16 %v6441_v40 }
 0x406   : > { %v2509_v10 = vsel %vm1516_vm14, %v2477_v55, %v6238_v43  ;;  %v6182_v43 = vunpack.i.l.bf16 %v12588_v35  ;;  %v6448_v55 = vunpack.i.h.bf16 %v6446_v2  ;;  %v6183_v40 = vunpack.i.h.bf16 %v12588_v35 }
 0x407   : > { %v2541_v18 = vsel %vm1525_vm15, %v2509_v10, %v6428_v62  ;;  %v9715_v62 = vpop.permute.xlu1 %6480 }
 0x408   : > { %v2573_v16 = vsel %vm1534_vm4, %v2541_v18, %v6433_v29  ;;  %v6178_v18 = vunpack.i.h.bf16 %v12587_v25 }
 0x409   : > { %v2605_v45 = vsel %vm1543_vm5, %v2573_v16, %v6437_v57 }
 0x40a   : > { %v3161_v56 = vpop.f32.mrf.mxu0  ;;  %v2637_v21 = vsel %vm12127_vm7, %v2605_v45, %v6442_v11  ;;  %v12589_v45 = vld [vmem:[#allocation42_spill] sm:$0xff] }
 0x40b   : > { %3092 = vmatmul.f32.gmra.mxu3 %v2636_v30  ;;  %v902_v30 = vpop.f32.mrf.mxu2 }
 0x40d   : > { %5833 = vmatmul.msk.f32.gmra.mxu0 %vm1499_vm13, %v12496_v47  ;;  %v6177_v47 = vunpack.i.l.bf16 %v12587_v25 }
 0x40e   : > { %v3045_v9 = vpop.f32.mrf.mxu3 }
 0x40f   : > { %v9699_v22 = vadd.f32 %v3158_v44, %v3045_v9  ;;  %v2542_v44 = vsel %vm1525_vm15, %v2510_v31, %v6447_v50  ;;  %v2447_v60 = vsel %vm1499_vm13, %v12418_v58, %v6177_v47  ;;  %v6968_v58 = vld [vmem:[%s11815_s6] ss:$0 sm:$0xff]  ;;  %v6461_v9 = vpop.permute.xlu0 %6460  ;;  %v6471_v47 = vpop.permute.xlu2 %6470 }
 0x410   : > { %v2574_v17 = vsel %vm1534_vm4, %v2542_v44, %v6452_v42  ;;  %v900_v13 = vadd.f32 %v6968_v58, %v899_v4  ;;  %v2479_v7 = vsel %vm523_vm0, %v2447_v60, %v6182_v43  ;;  %v903_v2 = vadd.f32 %v6968_v58, %v902_v30  ;;  %v9748_v31 = vpop.permute.xlu1 %6495 }
 0x411   : > { %v3254_v54 = vsel %vm1525_vm15, %v9699_v22, -inf  ;;  %v2606_v10 = vsel %vm1543_vm5, %v2574_v17, %v6438_v23  ;;  %v2448_v4 = vsel %vm1499_vm13, %v12395_v20, %v6178_v18  ;;  %v6457_v42 = vunpack.i.l.bf16 %v9712_v12 }
 0x412   : > { %3255 = vmax.xlane.f32.xlu2 %v3254_v54  ;;  %v3164_v28 = vpop.f32.mrf.mxu0  ;;  %v2638_v52 = vsel %vm12127_vm7, %v2606_v10, %v6443_v38  ;;  %v968_v11 = vmul.f32 %v12589_v45, %v900_v13  ;;  %vm935_vm10 = vcmp.gt.f32.partialorder %v900_v13, 0.0  ;;  %v969_v54 = vmul.f32 %v12589_v45, %v903_v2 }
 0x413   : > { %3095 = vmatmul.f32.gmra.mxu3 %v2637_v21  ;;  %vm936_vm8 = vcmp.gt.f32.partialorder %v903_v2, 0.0  ;;  %v2480_v20 = vsel %vm523_vm0, %v2448_v4, %v6183_v40  ;;  %v6462_v35 = vunpack.i.l.bf16 %v6461_v9  ;;  %v6472_v30 = vunpack.i.l.bf16 %v6471_v47 }
 0x414   : > { %v2512_v17 = vsel %vm1516_vm14, %v2480_v20, %v6247_v39  ;;  %v1000_v43 = vsel %vm935_vm10, %v900_v13, %v968_v11  ;;  %v9757_v60 = vsel %vm936_vm8, %v903_v2, %v969_v54  ;;  %v12591_v2 = vld [vmem:[#allocation142_spill] sm:$0xff] }
 0x415   : > { %5834 = vmatmul.msk.f32.gmra.mxu0 %vm1499_vm13, %v12469_v32  ;;  %v2544_v23 = vsel %vm1525_vm15, %v2512_v17, %v6467_v6  ;;  %v1166_v18 = vrot.slane %v1000_v43, 7  ;;  %v1167_v38 = vrot.slane %v9757_v60, 7  ;;  %v12596_v6 = vld [vmem:[#allocation159_spill] sm:$0xff] }
 0x416   : > { %v3048_v29 = vpop.f32.mrf.mxu3  ;;  %v2576_v10 = vsel %vm1534_vm4, %v2544_v23, %v6472_v30 }
 0x417   : > { %v9722_v57 = vadd.f32 %v3161_v56, %v3048_v29  ;;  %v2511_v56 = vsel %vm1516_vm14, %v2479_v7, %v6243_v49  ;;  %v12590_v49 = vld [vmem:[#allocation122_spill] sm:$0xff]  ;;  %v9764_v58 = vpop.permute.xlu0 %6475  ;;  %v6248_v7 = vunpack.i.h.bf16 %v9333_v34  ;;  %v9777_v4 = vsel %vm12592_vm9, 0.0, %v1166_v18  ;;  %v6486_v20 = vpop.permute.xlu2 %6485 }
 0x418   : > { %v2543_v16 = vsel %vm1525_vm15, %v2511_v56, %v6448_v55  ;;  %v6187_v29 = vunpack.i.l.bf16 %v12590_v49  ;;  %v6192_v56 = vunpack.i.l.bf16 %v12591_v2  ;;  %12593 = vst [vmem:[#allocation110_spill] sm:$0xff] %v9777_v4  ;;  %v6188_v45 = vunpack.i.h.bf16 %v12590_v49 }
 0x419   : > { %v3257_v32 = vsel %vm1525_vm15, %v9722_v57, -inf  ;;  %v2575_v50 = vsel %vm1534_vm4, %v2543_v16, %v6453_v48  ;;  %v6458_v48 = vunpack.i.h.bf16 %v9712_v12  ;;  %v6463_v12 = vunpack.i.h.bf16 %v6461_v9 }
 0x41a   : > { %3258 = vmax.xlane.f32.xlu0 %v3257_v32  ;;  %v3167_v36 = vpop.f32.mrf.mxu0  ;;  %v2607_v44 = vsel %vm1543_vm5, %v2575_v50, %v6457_v42  ;;  %v2449_v13 = vsel %vm1499_vm13, %v12396_v19, %v6187_v29  ;;  %v9782_v19 = vsel %vm12594_vm1, %v1166_v18, %v1167_v38  ;;  %v6473_v42 = vunpack.i.h.bf16 %v6471_v47 }
 0x41b   : > { %3098 = vmatmul.f32.gmra.mxu3 %v2638_v52  ;;  %v6468_v52 = vunpack.i.h.bf16 %v9688_v41  ;;  %v2608_v16 = vsel %vm1543_vm5, %v2576_v10, %v6458_v48  ;;  %12595 = vst [vmem:[#allocation69_spill] sm:$0xff] %v9782_v19  ;;  %v2481_v34 = vsel %vm523_vm0, %v2449_v13, %v6192_v56  ;;  %v1750_v11 = vrot.slane %v9782_v19, 1 }
 0x41c   : > { %v2640_v9 = vsel %vm12127_vm7, %v2608_v16, %v6463_v12  ;;  %v6534_v54 = vpack.i.bf16 %v9777_v4, %v12596_v6  ;;  %v6477_v43 = vunpack.i.l.bf16 %v9764_v58  ;;  %v6193_v29 = vunpack.i.h.bf16 %v12591_v2 }
 0x41d   : > { %5835 = vmatmul.msk.f32.gmra.mxu0 %vm1499_vm13, %v12470_v27  ;;  %v6487_v30 = vunpack.i.l.bf16 %v6486_v20 }
 0x41e   : > { %v3051_v25 = vpop.f32.mrf.mxu3 }
 0x41f   : > { %v9750_v21 = vadd.f32 %v3164_v28, %v3051_v25  ;;  %v2639_v28 = vsel %vm12127_vm7, %v2607_v44, %v6462_v35  ;;  %v1749_v25 = vrot.slane %v9777_v4, 1  ;;  %v6482_v44 = vunpack.i.l.bf16 %v9715_v62  ;;  %v6491_v23 = vpop.permute.xlu0 %6490 }
 0x421   : > { %v3260_v27 = vsel %vm1525_vm15, %v9750_v21, -inf  ;;  %v9810_v49 = vsel %vm12597_vm11, %v1749_v25, %v1750_v11  ;;  %v6488_v25 = vunpack.i.h.bf16 %v6486_v20 }
 0x422   : > { %3261 = vmax.xlane.f32.xlu1 %v3260_v27  ;;  %v3170_v55 = vpop.f32.mrf.mxu0  ;;  %v2450_v27 = vsel %vm1499_vm13, %v12374_v26, %v6188_v45  ;;  %12598 = vst [vmem:[#allocation68_spill] sm:$0xff] %v9810_v49 }
 0x423   : > { %3101 = vmatmul.f32.gmra.mxu3 %v2639_v28  ;;  %v2482_v26 = vsel %vm523_vm0, %v2450_v27, %v6193_v29 }
 0x425   : > { %5836 = vmatmul.msk.f32.gmra.mxu0 %vm1499_vm13, %v12497_v53  ;;  %v9785_v53 = vpop.permute.xlu1 %6500 }
 0x426   : > { %v3054_v32 = vpop.f32.mrf.mxu3 }
 0x427   : > { %v9773_v40 = vadd.f32 %v3167_v36, %v3054_v32  ;;  %v2513_v36 = vsel %vm1516_vm14, %v2481_v34, %v6248_v7  ;;  %v12599_v7 = vld [vmem:[#allocation74_spill] sm:$0xff]  ;;  %v6478_v34 = vunpack.i.h.bf16 %v9764_v58  ;;  %v6521_v60 = vpop.permute.xlu0 %6520 }
 0x428   : > { %v2545_v39 = vsel %vm1525_vm15, %v2513_v36, %v6468_v52  ;;  %v6539_v32 = vpack.i.bf16 %v9810_v49, %v12599_v7  ;;  %v6483_v52 = vunpack.i.h.bf16 %v9715_v62  ;;  %v12600_v36 = vld [vmem:[#allocation63_spill] sm:$0xff] }
 0x429   : > { %v3263_v41 = vsel %vm1525_vm15, %v9773_v40, -inf  ;;  %v2577_v35 = vsel %vm1534_vm4, %v2545_v39, %v6473_v42  ;;  %v12601_v39 = vld [vmem:[#allocation62_spill] sm:$0xff]  ;;  %v6198_v58 = vunpack.i.h.bf16 %v12600_v36 }
 0x42a   : > { %3264 = vmax.xlane.f32.xlu2 %v3263_v41  ;;  %v3173_v50 = vpop.f32.mrf.mxu0  ;;  %v2609_v10 = vsel %vm1543_vm5, %v2577_v35, %v6477_v43  ;;  %v6202_v45 = vunpack.i.l.bf16 %v12601_v39  ;;  %v6493_v43 = vunpack.i.h.bf16 %v6491_v23  ;;  %v6203_v27 = vunpack.i.h.bf16 %v12601_v39 }
 0x42b   : > { %3104 = vmatmul.f32.gmra.mxu3 %v2640_v9  ;;  %v2641_v18 = vsel %vm12127_vm7, %v2609_v10, %v6482_v44  ;;  %v6197_v9 = vunpack.i.l.bf16 %v12600_v36  ;;  %v12606_v36 = vld [vmem:[#allocation77_spill] sm:$0xff] }
 0x42d   : > { %5837 = vmatmul.msk.f32.gmra.mxu0 %vm1499_vm13, %v8877_v0  ;;  %v6252_v0 = vunpack.i.l.bf16 %v9352_v1  ;;  %v9819_v48 = vpop.permute.xlu1 %6505 }
 0x42e   : > { %6535 = vrot.lane.b32.xlu0 %v6534_v54, %s7140_s14  ;;  %v3057_v17 = vpop.f32.mrf.mxu3  ;;  %v6507_v10 = vunpack.i.l.bf16 %v9819_v48 }
 0x42f   : > { %v9803_v47 = vadd.f32 %v3170_v55, %v3057_v17  ;;  %v6492_v55 = vunpack.i.l.bf16 %v6491_v23  ;;  %v2514_v2 = vsel %vm1516_vm14, %v2482_v26, %v6252_v0  ;;  %v12602_v17 = vld [vmem:[#allocation160_spill] sm:$0xff]  ;;  %v6497_v0 = vunpack.i.l.bf16 %v9748_v31 }
 0x430   : > { %v2546_v56 = vsel %vm1525_vm15, %v2514_v2, %v6487_v30  ;;  %v6549_v35 = vpack.i.bf16 %v12599_v7, %v12602_v17  ;;  %v6257_v30 = vunpack.i.l.bf16 %v9367_v37  ;;  %v12608_v17 = vld [vmem:[#allocation114_spill] sm:$0xff] }
 0x431   : > { %v3266_v28 = vsel %vm1525_vm15, %v9803_v47, -inf  ;;  %v2578_v12 = vsel %vm1534_vm4, %v2546_v56, %v6492_v55  ;;  %v2452_v55 = vsel %vm1499_vm13, %v12405_v5, %v6198_v58  ;;  %v12604_v5 = vld [vmem:[#allocation75_spill] sm:$0xff]  ;;  %v6503_v58 = vunpack.i.h.bf16 %v9785_v53 }
 0x432   : > { %3267 = vmax.xlane.f32.xlu2 %v3266_v28  ;;  %v9821_v13 = vpop.f32.mrf.mxu0  ;;  %v2610_v62 = vsel %vm1543_vm5, %v2578_v12, %v6478_v34  ;;  %v6502_v28 = vunpack.i.l.bf16 %v9785_v53  ;;  %v2484_v7 = vsel %vm523_vm0, %v2452_v55, %v6203_v27  ;;  %v12605_v12 = vld [vmem:[#allocation104_spill] sm:$0xff]  ;;  %v6208_v53 = vunpack.i.h.bf16 %v12606_v36 }
 0x433   : > { %3107 = vmatmul.f32.gmra.mxu3 %v2641_v18  ;;  %v2642_v54 = vsel %vm12127_vm7, %v2610_v62, %v6483_v52  ;;  %v2516_v2 = vsel %vm1516_vm14, %v2484_v7, %v6257_v30  ;;  %v6554_v34 = vpack.i.bf16 %v12605_v12, %v12604_v5  ;;  %v9905_v30 = vpop.permute.xlu2 %6525  ;;  %v6213_v7 = vunpack.i.h.bf16 %v12608_v17 }
 0x434   : > { %v2548_v52 = vsel %vm1525_vm15, %v2516_v2, %v6507_v10  ;;  %v12611_v10 = vld [vmem:[#allocation150_spill] sm:$0xff] }
 0x435   : > { %5838 = vmatmul.msk.f32.gmra.mxu0 %vm1499_vm13, %v12548_v63  ;;  %v6253_v63 = vunpack.i.h.bf16 %v9352_v1  ;;  %v6511_v29 = vpop.permute.xlu1 %6510  ;;  %v2454_v55 = vsel %vm1499_vm13, %v12611_v10, %v6208_v53  ;;  %v12614_v53 = vld [vmem:[#allocation23_spill] sm:$0xff] }
 0x436   : > { %6540 = vrot.lane.b32.xlu0 %v6539_v32, %s7141_s19  ;;  %v3060_v16 = vpop.f32.mrf.mxu3  ;;  %v6512_v18 = vunpack.i.l.bf16 %v6511_v29 }
 0x437   : > { %v9833_v41 = vadd.f32 %v3173_v50, %v3060_v16  ;;  %v2451_v50 = vsel %vm1499_vm13, %v12375_v61, %v6197_v9  ;;  %v6207_v9 = vunpack.i.l.bf16 %v12606_v36 }
 0x438   : > { %v2483_v1 = vsel %vm523_vm0, %v2451_v50, %v6202_v45  ;;  %v2580_v39 = vsel %vm1534_vm4, %v2548_v52, %v6512_v18  ;;  %v6262_v18 = vunpack.i.l.bf16 %v9360_v14  ;;  %v2486_v52 = vsel %vm523_vm0, %v2454_v55, %v6213_v7 }
 0x439   : > { %v3269_v42 = vsel %vm1525_vm15, %v9833_v41, -inf  ;;  %v2515_v20 = vsel %vm1516_vm14, %v2483_v1, %v6253_v63  ;;  %v12607_v63 = vld [vmem:[#allocation144_spill] sm:$0xff] }
 0x43a   : > { %3270 = vmax.xlane.f32.xlu1 %v3269_v42  ;;  %v9842_v44 = vpop.f32.mrf.mxu0  ;;  %v2547_v23 = vsel %vm1525_vm15, %v2515_v20, %v6488_v25  ;;  %v6258_v25 = vunpack.i.h.bf16 %v9367_v37  ;;  %v2518_v36 = vsel %vm1516_vm14, %v2486_v52, %v6262_v18 }
 0x43b   : > { %3110 = vmatmul.f32.gmra.mxu3 %v2642_v54  ;;  %v2579_v26 = vsel %vm1534_vm4, %v2547_v23, %v6493_v43  ;;  %v2453_v54 = vsel %vm1499_vm13, %v12607_v63, %v6207_v9  ;;  %v6513_v43 = vunpack.i.h.bf16 %v6511_v29  ;;  %v6523_v63 = vunpack.i.h.bf16 %v6521_v60 }
 0x43c   : > { %v2611_v32 = vsel %vm1543_vm5, %v2579_v26, %v6497_v0  ;;  %v6522_v26 = vunpack.i.l.bf16 %v6521_v60 }
 0x43d   : > { %5839 = vmatmul.msk.f32.gmra.mxu0 %vm1499_vm13, %v12549_v15  ;;  %v9870_v15 = vsel %vm12603_vm2, %v1167_v38, 0.0  ;;  %v2643_v56 = vsel %vm12127_vm7, %v2611_v32, %v6502_v28  ;;  %v6498_v38 = vunpack.i.h.bf16 %v9748_v31  ;;  %v6516_v50 = vpop.permute.xlu1 %6515  ;;  %v6212_v31 = vunpack.i.l.bf16 %v12608_v17  ;;  %v9912_v28 = vpop.permute.xlu0 %6530 }
 0x43e   : > { %6550 = vrot.lane.b32.xlu0 %v6549_v35, %s7138_s15  ;;  %v9858_v61 = vpop.f32.mrf.mxu3  ;;  %v1752_v45 = vrot.slane %v9870_v15, 1  ;;  %v6508_v35 = vunpack.i.h.bf16 %v9819_v48  ;;  %v6517_v1 = vunpack.i.l.bf16 %v6516_v50  ;;  %v6544_v32 = vpack.i.bf16 %v12596_v6, %v12554_v3 }
 0x43f   : > { %v2612_v62 = vsel %vm1543_vm5, %v2580_v39, %v6498_v38  ;;  %v2485_v37 = vsel %vm523_vm0, %v2453_v54, %v6212_v31  ;;  %v6532_v2 = vunpack.i.l.bf16 %v9912_v28  ;;  %v1754_v17 = vrot.slane %v9777_v4, 2 }
 0x440   : > { %v2644_v27 = vsel %vm12127_vm7, %v2612_v62, %v6503_v58  ;;  %v2517_v0 = vsel %vm1516_vm14, %v2485_v37, %v6258_v25  ;;  %v1757_v60 = vrot.slane %v9870_v15, 2  ;;  %v9957_v15 = vadd.f32 %v9821_v13, %v9858_v61 }
 0x441   : > { %v2549_v20 = vsel %vm1525_vm15, %v2517_v0, %v6508_v35 }
 0x442   : > { %v9875_v16 = vpop.f32.mrf.mxu0  ;;  %v2581_v29 = vsel %vm1534_vm4, %v2549_v20, %v6513_v43 }
 0x443   : > { %3113 = vmatmul.f32.gmra.mxu3 %v2643_v56  ;;  %v2613_v23 = vsel %vm1543_vm5, %v2581_v29, %v6517_v1 }
 0x444   : > { %v2645_v56 = vsel %vm12127_vm7, %v2613_v23, %v6522_v26  ;;  %v12615_v23 = vld [vmem:[#allocation88_spill] sm:$0xff] }
 0x445   : > { %5840 = vmatmul.msk.f32.gmra.mxu0 %vm1499_vm13, %v12508_v59  ;;  %v9896_v59 = vsel %vm12609_vm3, %v1750_v11, %v1752_v45 }
 0x446   : > { %6555 = vrot.lane.b32.xlu0 %v6554_v34, %s7139_s23  ;;  %v3066_v42 = vpop.f32.mrf.mxu3  ;;  %12610 = vst [vmem:[#allocation38_spill] sm:$0xff] %v9896_v59  ;;  %v6518_v34 = vunpack.i.h.bf16 %v6516_v50  ;;  %v1755_v50 = vrot.slane %v9782_v19, 2 }
 0x448   : > { %v9944_v43 = vsel %vm12613_vm6, %v1755_v50, %v1757_v60  ;;  %v12617_v60 = vld [vmem:[#allocation22_spill] sm:$0xff] }
 0x44a   : > { %2390 = vrot.lane.b32.xlu2 %v9896_v59, %s7141_s19  ;;  %v3185_v48 = vpop.f32.mrf.mxu0 }
 0x44b   : > { %3116 = vmatmul.f32.gmra.mxu3 %v2644_v27  ;;  %v9949_v27 = vadd.f32 %v9842_v44, %v3066_v42  ;;  %v3272_v44 = vsel %vm1525_vm15, %v9957_v15, -inf }
 0x44d   : > { %5841 = vmatmul.msk.f32.gmra.mxu0 %vm1499_vm13, %v12509_v8  ;;  %v6527_v8 = vunpack.i.l.bf16 %v9905_v30  ;;  %v3275_v0 = vsel %vm1525_vm15, %v9949_v27, -inf }
 0x44e   : > { %2297 = vrot.lane.b32.xlu0 %v9782_v19, %s7140_s14  ;;  %v3069_v11 = vpop.f32.mrf.mxu3 }
 0x44f   : > { %v2550_v9 = vsel %vm1525_vm15, %v2518_v36, %v6527_v8  ;;  %v9960_v20 = vadd.f32 %v9875_v16, %v3069_v11 }
 0x450   : > { %v2582_v45 = vsel %vm1534_vm4, %v2550_v9, %v6532_v2 }
 0x451   : > { %v2614_v62 = vsel %vm1543_vm5, %v2582_v45, %v6518_v34  ;;  %v3278_v55 = vsel %vm1525_vm15, %v9960_v20, -inf }
 0x452   : > { %v3188_v39 = vpop.f32.mrf.mxu0  ;;  %v2646_v54 = vsel %vm12127_vm7, %v2614_v62, %v6523_v63 }
 0x453   : > { %6545 = vrot.lane.b32.xlu1 %v6544_v32, %s7137_s3  ;;  %3119 = vmatmul.f32.gmra.mxu3 %v2645_v56 }
 0x455   : > { %5842 = vmatmul.msk.f32.gmra.mxu0 %vm1499_vm13, %v12604_v5  ;;  %v9938_v5 = vsel %vm12612_vm12, %v1754_v17, %v1755_v50 }
 0x456   : > { %v3072_v38 = vpop.f32.mrf.mxu3 }
 0x457   : > { %v9970_v13 = vadd.f32 %v3185_v48, %v3072_v38 }
 0x459   : > { %v3281_v11 = vsel %vm1525_vm15, %v9970_v13, -inf }
 0x45a   : > { %v3191_v58 = vpop.f32.mrf.mxu0 }
 0x45b   : > { %3122 = vmatmul.f32.gmra.mxu3 %v2646_v54 }
 0x45d   : > { %5843 = vmatmul.msk.f32.gmra.mxu0 %vm1499_vm13, %v12605_v12 }
 0x45e   : > { %v3075_v25 = vpop.f32.mrf.mxu3 }
 0x45f   : > { %v9974_v16 = vadd.f32 %v3188_v39, %v3075_v25  ;;  %v12616_v25 = vld [vmem:[#allocation31_spill] sm:$0xff] }
 0x461   : > { %v3284_v7 = vsel %vm1525_vm15, %v9974_v16, -inf }
 0x462   : > { %v3194_v35 = vpop.f32.mrf.mxu0 }
 0x465   : > { %5844 = vmatmul.msk.f32.gmra.mxu0 %vm1499_vm13, %v9938_v5 }
 0x466   : > { %v3078_v31 = vpop.f32.mrf.mxu3 }
 0x467   : > { %v9981_v8 = vadd.f32 %v3191_v58, %v3078_v31  ;;  %v6217_v58 = vunpack.i.l.bf16 %v12616_v25 }
 0x469   : > { %v3287_v2 = vsel %vm1525_vm15, %v9981_v8, -inf }
 0x46a   : > { %v3197_v37 = vpop.f32.mrf.mxu0 }
 0x46d   : > { %5845 = vmatmul.msk.f32.gmra.mxu0 %vm1499_vm13, %v9944_v43 }
 0x46e   : > { %v3081_v12 = vpop.f32.mrf.mxu3 }
 0x472   : > { %v3200_v42 = vpop.f32.mrf.mxu0 }
 0x475   : > { %5846 = vmatmul.msk.f32.gmra.mxu0 %vm1499_vm13, %v12614_v53 }
 0x476   : > { %v3084_v1 = vpop.f32.mrf.mxu3 }
 0x477   : > { %v9983_v32 = vadd.f32 %v3197_v37, %v3084_v1  ;;  %v2455_v1 = vsel %vm1499_vm13, %v12517_v51, %v6217_v58  ;;  %v6533_v51 = vunpack.i.h.bf16 %v9912_v28 }
 0x478   : > { %3276 = vmax.xlane.f32.xlu0 %v3275_v0 }
 0x479   : > { %v3293_v56 = vsel %vm1525_vm15, %v9983_v32, -inf }
 0x47a   : > { %v3203_v45 = vpop.f32.mrf.mxu0 }
 0x47d   : > { %3273 = vmax.xlane.f32.xlu1 %v3272_v44  ;;  %5847 = vmatmul.msk.f32.gmra.mxu0 %vm1499_vm13, %v12615_v23  ;;  %v12619_v44 = vld [vmem:[#allocation90_spill] sm:$0xff] }
 0x47e   : > { %v3087_v29 = vpop.f32.mrf.mxu3 }
 0x47f   : > { %v9966_v10 = vadd.f32 %v3200_v42, %v3087_v29  ;;  %v6222_v42 = vunpack.i.l.bf16 %v12619_v44 }
 0x480   : > { %3279 = vmax.xlane.f32.xlu0 %v3278_v55  ;;  %v6528_v55 = vunpack.i.h.bf16 %v9905_v30 }
 0x481   : > { %v3296_v61 = vsel %vm1525_vm15, %v9966_v10, -inf }
 0x482   : > { %3297 = vmax.xlane.f32.xlu2 %v3296_v61  ;;  %v10015_v29 = vpop.f32.mrf.mxu0 }
 0x485   : > { %v3256_v18 = vpop.xlane.xlu2 %3255  ;;  %3282 = vmax.xlane.f32.xlu1 %v3281_v11  ;;  %v6263_v11 = vunpack.i.h.bf16 %v9360_v14 }
 0x486   : > { %v3350_v26 = vsub.f32 %v9699_v22, %v3256_v18  ;;  %v9991_v22 = vadd.f32 %v3194_v35, %v3081_v12  ;;  %v3090_v38 = vpop.f32.mrf.mxu3  ;;  %v12618_v35 = vld [vmem:[#allocation44_spill] sm:$0xff] }
 0x487   : > { %v9998_v63 = vadd.f32 %v3203_v45, %v3090_v38  ;;  %v6559_v12 = vpack.i.bf16 %v12618_v35, %v12617_v60 }
 0x488   : > { %v3382_v48 = vmul.f32 1.442695, %v3350_v26  ;;  %3285 = vmax.xlane.f32.xlu0 %v3284_v7  ;;  %v3290_v39 = vsel %vm1525_vm15, %v9991_v22, -inf }
 0x489   : > { %v3299_v54 = vsel %vm1525_vm15, %v9998_v63, -inf }
 0x48a   : > { %6839 = vpow2.f32 %v3382_v48 }
 0x48d   : > { %3288 = vmax.xlane.f32.xlu1 %v3287_v2  ;;  %v3259_v34 = vpop.xlane.xlu0 %3258 }
 0x48e   : > { %v3351_v9 = vsub.f32 %v9722_v57, %v3259_v34  ;;  %v10012_v0 = vpop.f32.mrf.mxu3 }
 0x490   : > { %v9989_v52 = vpop.eup %6839  ;;  %3294 = vmax.xlane.f32.xlu0 %v3293_v56  ;;  %v3384_v62 = vmul.f32 1.442695, %v3351_v9 }
 0x491   : > { %v3446_v36 = vsel %vm1525_vm15, %v9989_v52, 0.0 }
 0x492   : > { %3447 = vadd.xlane.f32.xlu2 %v3446_v36  ;;  %6841 = vpow2.f32 %v3384_v62 }
 0x495   : > { %3291 = vmax.xlane.f32.xlu1 %v3290_v39  ;;  %v3262_v18 = vpop.xlane.xlu1 %3261  ;;  %v3209_v39 = vpop.f32.mrf.mxu0 }
 0x496   : > { %v3096_v36 = vpop.f32.mrf.mxu3 }
 0x497   : > { %v10038_v62 = vadd.f32 %v3209_v39, %v3096_v36 }
 0x498   : > { %v10008_v37 = vpop.eup %6841 }
 0x499   : > { %v3449_v61 = vsel %vm1525_vm15, %v10008_v37, 0.0  ;;  %v3305_v58 = vsel %vm1525_vm15, %v10038_v62, -inf }
 0x49d   : > { %v3265_v50 = vpop.xlane.xlu2 %3264  ;;  %3300 = vmax.xlane.f32.xlu1 %v3299_v54 }
 0x49e   : > { %v3353_v17 = vsub.f32 %v9773_v40, %v3265_v50  ;;  %v2487_v40 = vsel %vm523_vm0, %v2455_v1, %v6222_v42  ;;  %v3099_v50 = vpop.f32.mrf.mxu3 }
 0x49f   : > { %v2519_v7 = vsel %vm1516_vm14, %v2487_v40, %v6263_v11 }
 0x4a0   : > { %v3388_v57 = vmul.f32 1.442695, %v3353_v17  ;;  %v10004_v31 = vpop.permute.xlu0 %6535  ;;  %v2551_v48 = vsel %vm1525_vm15, %v2519_v7, %v6528_v55  ;;  %v3212_v17 = vpop.f32.mrf.mxu0  ;;  %v6218_v55 = vunpack.i.h.bf16 %v12616_v25  ;;  %v12621_v7 = vld [vmem:[#allocation95_spill] sm:$0xff] }
 0x4a1   : > { %v6537_v26 = vunpack.i.l.bf16 %v10004_v31  ;;  %v2583_v34 = vsel %vm1534_vm4, %v2551_v48, %v6533_v51  ;;  %v12620_v51 = vld [vmem:[#allocation85_spill] sm:$0xff]  ;;  %v6232_v48 = vunpack.i.l.bf16 %v12621_v7 }
 0x4a2   : > { %6843 = vpow2.f32 %v3388_v57 }
 0x4a3   : > { %v2615_v14 = vsel %vm1543_vm5, %v2583_v34, %v6537_v26  ;;  %v6227_v26 = vunpack.i.l.bf16 %v12620_v51 }
 0x4a4   : > { %6560 = vrot.lane.b32.xlu0 %v6559_v12, %s7138_s15  ;;  %v10044_v12 = vadd.f32 %v3212_v17, %v3099_v50  ;;  %v6538_v50 = vunpack.i.h.bf16 %v10004_v31 }
 0x4a5   : > { %3450 = vadd.xlane.f32.xlu1 %v3449_v61  ;;  %v3268_v11 = vpop.xlane.xlu2 %3267  ;;  %v2457_v36 = vsel %vm1499_vm13, %v12553_v46, %v6227_v26 }
 0x4a6   : > { %v3308_v40 = vsel %vm1525_vm15, %v10044_v12, -inf  ;;  %v3354_v34 = vsub.f32 %v9803_v47, %v3268_v11  ;;  %v10060_v25 = vpop.f32.mrf.mxu3  ;;  %v2489_v39 = vsel %vm523_vm0, %v2457_v36, %v6232_v48 }
 0x4a8   : > { %v10027_v2 = vpop.permute.xlu0 %6540  ;;  %v10029_v30 = vpop.eup %6843 }
 0x4a9   : > { %v6542_v56 = vunpack.i.l.bf16 %v10027_v2  ;;  %v3455_v9 = vsel %vm1525_vm15, %v10029_v30, 0.0 }
 0x4ab   : > { %v2647_v28 = vsel %vm12127_vm7, %v2615_v14, %v6542_v56  ;;  %v2456_v56 = vsel %vm1499_vm13, %v12518_v24, %v6218_v55  ;;  %v10064_v24 = vpop.f32.mrf.mxu0 }
 0x4ac   : > { %3125 = vmatmul.f32.gmra.mxu3 %v2647_v28 }
 0x4ad   : > { %v3271_v38 = vpop.xlane.xlu1 %3270  ;;  %3456 = vadd.xlane.f32.xlu1 %v3455_v9 }
 0x4ae   : > { %v3355_v45 = vsub.f32 %v9833_v41, %v3271_v38  ;;  %v3352_v41 = vsub.f32 %v9750_v21, %v3262_v18  ;;  %v6223_v21 = vunpack.i.h.bf16 %v12619_v44  ;;  %v3105_v48 = vpop.f32.mrf.mxu3 }
 0x4b0   : > { %v3392_v54 = vmul.f32 1.442695, %v3355_v45  ;;  %v6551_v42 = vpop.permute.xlu0 %6550  ;;  %v3386_v61 = vmul.f32 1.442695, %v3352_v41  ;;  %v2488_v45 = vsel %vm523_vm0, %v2456_v56, %v6223_v21  ;;  %v6543_v41 = vunpack.i.h.bf16 %v10027_v2 }
 0x4b1   : > { %v6552_v38 = vunpack.i.l.bf16 %v6551_v42  ;;  %v6553_v46 = vunpack.i.h.bf16 %v6551_v42 }
 0x4b2   : > { %6845 = vpow2.f32 %v3392_v54  ;;  %v3390_v54 = vmul.f32 1.442695, %v3354_v34 }
 0x4b3   : > { %6847 = vpow2.f32 %v3386_v61  ;;  %v3218_v21 = vpop.f32.mrf.mxu0 }
 0x4b4   : > { %6849 = vpow2.f32 %v3390_v54 }
 0x4b5   : > { %3306 = vmax.xlane.f32.xlu1 %v3305_v58 }
 0x4b8   : > { %v10042_v57 = vpop.eup %6845  ;;  %v6556_v18 = vpop.permute.xlu0 %6555 }
 0x4b9   : > { %v3461_v1 = vsel %vm1525_vm15, %v10042_v57, 0.0  ;;  %v6557_v47 = vunpack.i.l.bf16 %v6556_v18  ;;  %v6558_v11 = vunpack.i.h.bf16 %v6556_v18 }
 0x4ba   : > { %3462 = vadd.xlane.f32.xlu2 %v3461_v1  ;;  %v10070_v1 = vpop.eup %6847 }
 0x4bb   : > { %v3452_v31 = vsel %vm1525_vm15, %v10070_v1, 0.0  ;;  %v10081_v34 = vpop.eup %6849 }
 0x4bc   : > { %v3458_v18 = vsel %vm1525_vm15, %v10081_v34, 0.0 }
 0x4bd   : > { %3309 = vmax.xlane.f32.xlu1 %v3308_v40 }
 0x4c0   : > { %v2298_v56 = vpop.permute.xlu0 %2297 }
 0x4c5   : > { %v6546_v14 = vpop.permute.xlu1 %6545 }
 0x4c6   : > { %v6548_v28 = vunpack.i.h.bf16 %v6546_v14  ;;  %v6547_v9 = vunpack.i.l.bf16 %v6546_v14  ;;  %v2391_v14 = vpop.permute.xlu2 %2390 }
 0x4c8   : > { %v2520_v44 = vsel %vm1516_vm14, %v2488_v45, %v6547_v9  ;;  %v2521_v58 = vsel %vm1516_vm14, %v2489_v39, %v6548_v28  ;;  %v10088_v28 = vadd.f32 %v10015_v29, %v10012_v0  ;;  %v3108_v9 = vpop.f32.mrf.mxu3  ;;  %v3221_v39 = vpop.f32.mrf.mxu0  ;;  %v10092_v45 = vadd.f32 %v3218_v21, %v3105_v48 }
 0x4c9   : > { %v2552_v17 = vsel %vm1525_vm15, %v2520_v44, %v6552_v38  ;;  %v2553_v61 = vsel %vm1525_vm15, %v2521_v58, %v6553_v46  ;;  %v10096_v58 = vadd.f32 %v3221_v39, %v3108_v9 }
 0x4ca   : > { %v2584_v40 = vsel %vm1534_vm4, %v2552_v17, %v6557_v47  ;;  %v2585_v42 = vsel %vm1534_vm4, %v2553_v61, %v6558_v11  ;;  %v3302_v38 = vsel %vm1525_vm15, %v10088_v28, -inf  ;;  %v3314_v47 = vsel %vm1525_vm15, %v10092_v45, -inf }
 0x4cb   : > { %v2616_v55 = vsel %vm1543_vm5, %v2584_v40, %v6538_v50  ;;  %v2617_v2 = vsel %vm1543_vm5, %v2585_v42, %v2298_v56  ;;  %v3317_v29 = vsel %vm1525_vm15, %v10096_v58, -inf }
 0x4cc   : > { %v2648_v26 = vsel %vm12127_vm7, %v2616_v55, %v6543_v41  ;;  %v2649_v36 = vsel %vm12127_vm7, %v2617_v2, %v2391_v14 }
 0x4cd   : > { %3128 = vmatmul.f32.gmra.mxu3 %v2648_v26 }
 0x4ce   : > { %3453 = vadd.xlane.f32.xlu0 %v3452_v31 }
 0x4d0   : > { %v3111_v54 = vpop.f32.mrf.mxu3  ;;  %v3224_v44 = vpop.f32.mrf.mxu0 }
 0x4d1   : > { %v10101_v55 = vadd.f32 %v3224_v44, %v3111_v54  ;;  %v10126_v44 = vadd.f32 %v10064_v24, %v10060_v25 }
 0x4d3   : > { %v3320_v31 = vsel %vm1525_vm15, %v10101_v55, -inf }
 0x4d5   : > { %3131 = vmatmul.f32.gmra.mxu3 %v2649_v36 }
 0x4d6   : > { %3459 = vadd.xlane.f32.xlu0 %v3458_v18 }
 0x4d8   : > { %v3114_v46 = vpop.f32.mrf.mxu3  ;;  %v3227_v41 = vpop.f32.mrf.mxu0 }
 0x4d9   : > { %v10110_v2 = vadd.f32 %v3227_v41, %v3114_v46 }
 0x4db   : > { %v3323_v54 = vsel %vm1525_vm15, %v10110_v2, -inf }
 0x4de   : > { %3303 = vmax.xlane.f32.xlu0 %v3302_v38 }
 0x4e0   : > { %v3117_v48 = vpop.f32.mrf.mxu3 }
 0x4e6   : > { %3315 = vmax.xlane.f32.xlu0 %v3314_v47 }
 0x4e8   : > { %v3120_v24 = vpop.f32.mrf.mxu3 }
 0x4eb   : > { %v3277_v50 = vpop.xlane.xlu0 %3276 }
 0x4ec   : > { %v3357_v0 = vsub.f32 %v9949_v27, %v3277_v50 }
 0x4ee   : > { %v3396_v17 = vmul.f32 1.442695, %v3357_v0  ;;  %3318 = vmax.xlane.f32.xlu0 %v3317_v29 }
 0x4f0   : > { %6851 = vpow2.f32 %v3396_v17  ;;  %v3274_v40 = vpop.xlane.xlu1 %3273  ;;  %v3311_v17 = vsel %vm1525_vm15, %v10126_v44, -inf }
 0x4f1   : > { %v3356_v61 = vsub.f32 %v9957_v15, %v3274_v40  ;;  %v3230_v15 = vpop.f32.mrf.mxu0 }
 0x4f2   : > { %v10115_v36 = vadd.f32 %v3230_v15, %v3117_v48 }
 0x4f3   : > { %v3394_v11 = vmul.f32 1.442695, %v3356_v61  ;;  %v3280_v26 = vpop.xlane.xlu0 %3279 }
 0x4f4   : > { %v3358_v18 = vsub.f32 %v9960_v20, %v3280_v26 }
 0x4f5   : > { %6853 = vpow2.f32 %v3394_v11  ;;  %v3298_v50 = vpop.xlane.xlu2 %3297 }
 0x4f6   : > { %v10106_v27 = vpop.eup %6851  ;;  %3321 = vmax.xlane.f32.xlu0 %v3320_v31  ;;  %v3398_v47 = vmul.f32 1.442695, %v3358_v18  ;;  %v3364_v41 = vsub.f32 %v9966_v10, %v3298_v50 }
 0x4f7   : > { %v3467_v42 = vsel %vm1525_vm15, %v10106_v27, 0.0 }
 0x4f8   : > { %v3283_v56 = vpop.xlane.xlu1 %3282  ;;  %3468 = vadd.xlane.f32.xlu1 %v3467_v42  ;;  %v3410_v31 = vmul.f32 1.442695, %v3364_v41 }
 0x4f9   : > { %v3359_v21 = vsub.f32 %v9970_v13, %v3283_v56  ;;  %v3326_v13 = vsel %vm1525_vm15, %v10115_v36, -inf }
 0x4fb   : > { %v10113_v14 = vpop.eup %6853  ;;  %v3400_v9 = vmul.f32 1.442695, %v3359_v21  ;;  %v3286_v39 = vpop.xlane.xlu0 %3285 }
 0x4fc   : > { %v3464_v38 = vsel %vm1525_vm15, %v10113_v14, 0.0  ;;  %v3360_v40 = vsub.f32 %v9974_v16, %v3286_v39 }
 0x4fd   : > { %3465 = vadd.xlane.f32.xlu2 %v3464_v38  ;;  %6855 = vpow2.f32 %v3400_v9 }
 0x4fe   : > { %3324 = vmax.xlane.f32.xlu0 %v3323_v54  ;;  %6857 = vpow2.f32 %v3398_v47  ;;  %v3402_v42 = vmul.f32 1.442695, %v3360_v40 }
 0x500   : > { %v3289_v20 = vpop.xlane.xlu1 %3288  ;;  %3327 = vmax.xlane.f32.xlu1 %v3326_v13 }
 0x501   : > { %v3361_v56 = vsub.f32 %v9981_v8, %v3289_v20 }
 0x503   : > { %v3295_v0 = vpop.xlane.xlu0 %3294  ;;  %v10128_v29 = vpop.eup %6855  ;;  %v3404_v9 = vmul.f32 1.442695, %v3361_v56 }
 0x504   : > { %v3363_v46 = vsub.f32 %v9983_v32, %v3295_v0  ;;  %v3473_v25 = vsel %vm1525_vm15, %v10128_v29, 0.0  ;;  %v10137_v26 = vpop.eup %6857  ;;  %v3233_v32 = vpop.f32.mrf.mxu0 }
 0x505   : > { %3312 = vmax.xlane.f32.xlu2 %v3311_v17  ;;  %v10139_v48 = vadd.f32 %v3233_v32, %v3120_v24  ;;  %v3470_v10 = vsel %vm1525_vm15, %v10137_v26, 0.0 }
 0x506   : > { %v3408_v61 = vmul.f32 1.442695, %v3363_v46 }
 0x507   : > { %v3329_v15 = vsel %vm1525_vm15, %v10139_v48, -inf }
 0x508   : > { %6859 = vpow2.f32 %v3408_v61  ;;  %v3292_v11 = vpop.xlane.xlu1 %3291  ;;  %3474 = vadd.xlane.f32.xlu1 %v3473_v25  ;;  %v10172_v61 = vpop.xlane.xlu2 %3447 }
 0x509   : > { %6861 = vpow2.f32 %v3410_v31  ;;  %v3362_v54 = vsub.f32 %v9991_v22, %v3292_v11  ;;  %vm3547_vm11 = vweird.f32 %v10172_v61 }
 0x50a   : > { %6863 = vpow2.f32 %v3402_v42 }
 0x50b   : > { %6865 = vpow2.f32 %v3404_v9  ;;  %v3406_v20 = vmul.f32 1.442695, %v3362_v54  ;;  %v3123_v54 = vpop.f32.mrf.mxu3 }
 0x50c   : > { %v3236_v9 = vpop.f32.mrf.mxu0 }
 0x50d   : > { %3471 = vadd.xlane.f32.xlu2 %v3470_v10  ;;  %6867 = vpow2.f32 %v3406_v20 }
 0x50e   : > { %v10143_v16 = vpop.eup %6859 }
 0x50f   : > { %v3485_v21 = vsel %vm1525_vm15, %v10143_v16, 0.0  ;;  %v10150_v39 = vpop.eup %6861 }
 0x510   : > { %v3301_v18 = vpop.xlane.xlu1 %3300  ;;  %3486 = vadd.xlane.f32.xlu0 %v3485_v21  ;;  %3330 = vmax.xlane.f32.xlu1 %v3329_v15  ;;  %v10152_v38 = vpop.eup %6863  ;;  %v3488_v8 = vsel %vm1525_vm15, %v10150_v39, 0.0 }
 0x511   : > { %v3476_v47 = vsel %vm1525_vm15, %v10152_v38, 0.0  ;;  %v10161_v50 = vpop.eup %6865  ;;  %v3365_v0 = vsub.f32 %v9998_v63, %v3301_v18 }
 0x512   : > { %v3479_v46 = vsel %vm1525_vm15, %v10161_v50, 0.0 }
 0x513   : > { %v3412_v17 = vmul.f32 1.442695, %v3365_v0  ;;  %v10168_v41 = vpop.eup %6867  ;;  %v10195_v0 = vadd.f32 %v3236_v9, %v3123_v54 }
 0x514   : > { %v3482_v40 = vsel %vm1525_vm15, %v10168_v41, 0.0 }
 0x515   : > { %6869 = vpow2.f32 %v3412_v17 }
 0x516   : > { %v6561_v10 = vpop.permute.xlu0 %6560 }
 0x517   : > { %v6562_v21 = vunpack.i.l.bf16 %v6561_v10 }
 0x518   : > { %v10159_v13 = vpop.xlane.xlu1 %3450  ;;  %3489 = vadd.xlane.f32.xlu0 %v3488_v8  ;;  %3477 = vadd.xlane.f32.xlu1 %v3476_v47 }
 0x519   : > { %6871 = vrcp.f32 %v10159_v13  ;;  %v10190_v47 = vsel %vm1525_vm15, %v12226_v33, %v6562_v21  ;;  %vm3562_vm9 = vweird.f32 %v10159_v13  ;;  %v3566_v54 = vand.u32 2147483647, %v10159_v13 }
 0x51a   : > { %6873 = vrcp.f32 %v10172_v61  ;;  %12622 = vst [vmem:[#allocation29_spill] sm:$0xff] %v10190_v47  ;;  %4991 = vmatmul.f32.vlgmr.msrb.gmra.mxu1 %v10190_v47 }
 0x51b   : > { %v10177_v11 = vpop.eup %6869  ;;  %vm3567_vm3 = vcmp.eq.f32.partialorder %v3566_v54, 8.507059e+37 }
 0x51c   : > { %v3491_v32 = vsel %vm1525_vm15, %v10177_v11, 0.0 }
 0x51f   : > { %v6872_v31 = vpop.eup %6871 }
 0x520   : > { %v10166_v22 = vpop.xlane.xlu1 %3456  ;;  %3480 = vadd.xlane.f32.xlu1 %v3479_v46  ;;  %v6874_v42 = vpop.eup %6873  ;;  %v3558_v56 = vmul.f32 %v6872_v31, %v10159_v13  ;;  %vm3563_vm10 = vweird.f32 %v6872_v31 }
 0x521   : > { %vm3548_vm8 = vweird.f32 %v6874_v42  ;;  %vm3564_vm1 = vmor %vm3562_vm9, %vm3563_vm10  ;;  %vm3592_vm10 = vweird.f32 %v10166_v22 }
 0x522   : > { %v3559_v8 = vsub.f32 1.0, %v3558_v56  ;;  %v12623_v56 = vld [vmem:[#allocation18_spill] sm:$0xff]  ;;  %vm3549_vm2 = vmor %vm3547_vm11, %vm3548_vm8 }
 0x524   : > { %v3560_v17 = vmul.f32 %v6872_v31, %v3559_v8 }
 0x526   : > { %v3561_v33 = vadd.f32 %v6872_v31, %v3560_v17 }
 0x528   : > { %v3307_v25 = vpop.xlane.xlu1 %3306  ;;  %3483 = vadd.xlane.f32.xlu1 %v3482_v40  ;;  %v6563_v40 = vunpack.i.h.bf16 %v6561_v10 }
 0x529   : > { %v3367_v63 = vsub.f32 %v10038_v62, %v3307_v25  ;;  %v3543_v62 = vmul.f32 %v6874_v42, %v10172_v61 }
 0x52a   : > { %v10203_v21 = vsel %vm1525_vm15, %v12623_v56, %v6563_v40  ;;  %v3551_v40 = vand.u32 2147483647, %v10172_v61 }
 0x52b   : > { %v3416_v24 = vmul.f32 1.442695, %v3367_v63  ;;  %v3544_v46 = vsub.f32 1.0, %v3543_v62  ;;  %12624 = vst [vmem:[#allocation40_spill] sm:$0xff] %v10203_v21  ;;  %v3568_v62 = vand.u32 2147483648, %v10159_v13  ;;  %4994 = vmatmul.f32.gmra.mxu1 %v10203_v21 }
 0x52c   : > { %vm3552_vm12 = vcmp.eq.f32.partialorder %v3551_v40, 8.507059e+37 }
 0x52d   : > { %6875 = vpow2.f32 %v3416_v24  ;;  %v3545_v63 = vmul.f32 %v6874_v42, %v3544_v46  ;;  %v3332_v24 = vsel %vm1525_vm15, %v10195_v0, -inf  ;;  %v3553_v46 = vand.u32 2147483648, %v10172_v61 }
 0x52e   : > { %6877 = vrcp.f32 %v10166_v22 }
 0x52f   : > { %v3546_v9 = vadd.f32 %v6874_v42, %v3545_v63 }
 0x530   : > { %3492 = vadd.xlane.f32.xlu1 %v3491_v32  ;;  %v3126_v32 = vpop.f32.mrf.mxu3 }
 0x531   : > { %v3550_v21 = vsel %vm3549_vm2, %v6874_v42, %v3546_v9  ;;  %v3596_v42 = vand.u32 2147483647, %v10166_v22 }
 0x533   : > { %v10183_v15 = vpop.eup %6875  ;;  %vm3597_vm9 = vcmp.eq.f32.partialorder %v3596_v42, 8.507059e+37 }
 0x534   : > { %v3497_v18 = vsel %vm1525_vm15, %v10183_v15, 0.0  ;;  %v10193_v20 = vpop.eup %6877 }
 0x535   : > { %3498 = vadd.xlane.f32.xlu2 %v3497_v18  ;;  %v3588_v25 = vmul.f32 %v10193_v20, %v10166_v22  ;;  %v3239_v18 = vpop.f32.mrf.mxu0  ;;  %vm3593_vm6 = vweird.f32 %v10193_v20 }
 0x536   : > { %v10209_v8 = vadd.f32 %v3239_v18, %v3126_v32  ;;  %v3554_v32 = vor.u32 1.1754944e-38, %v3553_v46  ;;  %vm3594_vm8 = vmor %vm3592_vm10, %vm3593_vm6 }
 0x537   : > { %v3589_v10 = vsub.f32 1.0, %v3588_v25  ;;  %v3569_v25 = vor.u32 1.1754944e-38, %v3568_v62 }
 0x538   : > { %v3335_v13 = vsel %vm1525_vm15, %v10209_v8, -inf  ;;  %v3555_v47 = vsel %vm3552_vm12, %v3554_v32, %v3550_v21 }
 0x539   : > { %v3590_v63 = vmul.f32 %v10193_v20, %v3589_v10  ;;  %v3556_v9 = vmul.f32 %v9989_v52, %v3555_v47 }
 0x53b   : > { %v3591_v23 = vadd.f32 %v10193_v20, %v3590_v63  ;;  %v4054_v63 = vrot.slane %v3556_v9, 7 }
 0x53d   : > { %3333 = vmax.xlane.f32.xlu2 %v3332_v24  ;;  %v3565_v24 = vsel %vm3564_vm1, %v6872_v31, %v3561_v33  ;;  %v3598_v33 = vand.u32 2147483648, %v10166_v22  ;;  %v3595_v21 = vsel %vm3594_vm8, %v10193_v20, %v3591_v23  ;;  %v3310_v23 = vpop.xlane.xlu1 %3309 }
 0x53e   : > { %v3570_v18 = vsel %vm3567_vm3, %v3569_v25, %v3565_v24  ;;  %vm12625_vm3 = vcmask 1040384   ;;  %v3368_v9 = vsub.f32 %v10044_v12, %v3310_v23 }
 0x53f   : > { %v3571_v31 = vmul.f32 %v10008_v37, %v3570_v18  ;;  %v3599_v40 = vor.u32 1.1754944e-38, %v3598_v33  ;;  %vm12626_vm6 = vmmov %vm12625_vm3 }
 0x540   : > { %vm12628_vm10 = vmmov %vm12625_vm3  ;;  %v3418_v12 = vmul.f32 1.442695, %v3368_v9 }
 0x541   : > { %v3454_v17 = vpop.xlane.xlu0 %3453  ;;  %v4055_v46 = vrot.slane %v3571_v31, 7  ;;  %vm12629_vm8 = vmmov %vm12625_vm3 }
 0x542   : > { %6879 = vrcp.f32 %v3454_v17  ;;  %v3583_v24 = vand.u32 2147483648, %v3454_v17  ;;  %v3581_v25 = vand.u32 2147483647, %v3454_v17  ;;  %vm3577_vm11 = vweird.f32 %v3454_v17 }
 0x543   : > { %v10229_v18 = vsel %vm12625_vm3, %v4054_v63, %v4055_v46  ;;  %v10235_v31 = vsel %vm12626_vm6, %v4055_v46, 0.0 }
 0x544   : > { %v3584_v22 = vor.u32 1.1754944e-38, %v3583_v24  ;;  %vm3582_vm12 = vcmp.eq.f32.partialorder %v3581_v25, 8.507059e+37  ;;  %12627 = vst [vmem:[#allocation92_spill] sm:$0xff] %v10235_v31 }
 0x545   : > { %3336 = vmax.xlane.f32.xlu2 %v3335_v13  ;;  %v3600_v13 = vsel %vm3597_vm9, %v3599_v40, %v3595_v21  ;;  %v4213_v21 = vrot.slane %v10229_v18, 1  ;;  %vm12630_vm9 = vcmask 1046528  }
 0x546   : > { %v10232_v52 = vmul.f32 %v10029_v30, %v3600_v13  ;;  %v10270_v13 = vpop.xlane.xlu2 %3462 }
 0x547   : > { %v3628_v6 = vand.u32 2147483648, %v10270_v13 }
 0x548   : > { %v6880_v61 = vpop.eup %6879 }
 0x549   : > { %v3573_v62 = vmul.f32 %v6880_v61, %v3454_v17  ;;  %v10224_v10 = vpop.xlane.xlu0 %3459  ;;  %vm3578_vm1 = vweird.f32 %v6880_v61  ;;  %v10239_v17 = vsel %vm12628_vm10, 0.0, %v4054_v63 }
 0x54a   : > { %vm3579_vm2 = vmor %vm3577_vm11, %vm3578_vm1  ;;  %vm3622_vm11 = vweird.f32 %v10270_v13  ;;  %vm3607_vm6 = vweird.f32 %v10224_v10 }
 0x54b   : > { %v3574_v54 = vsub.f32 1.0, %v3573_v62  ;;  %vm12632_vm1 = vmmov %vm12630_vm9 }
 0x54d   : > { %v3575_v37 = vmul.f32 %v6880_v61, %v3574_v54  ;;  %v12093_v54 = vrot.slane %v10232_v52, 7 }
 0x54f   : > { %v3576_v32 = vadd.f32 %v6880_v61, %v3575_v37 }
 0x550   : > { %v3129_v23 = vpop.f32.mrf.mxu3 }
 0x551   : > { %v3580_v47 = vsel %vm3579_vm2, %v6880_v61, %v3576_v32  ;;  %v3304_v20 = vpop.xlane.xlu0 %3303  ;;  %v4215_v61 = vrot.slane %v10235_v31, 1 }
 0x552   : > { %v3585_v33 = vsel %vm3582_vm12, %v3584_v22, %v3580_v47  ;;  %v3366_v42 = vsub.f32 %v10088_v28, %v3304_v20  ;;  %v4212_v28 = vrot.slane %v10239_v17, 1  ;;  %v3242_v20 = vpop.f32.mrf.mxu0 }
 0x553   : > { %v10242_v62 = vmul.f32 %v10070_v1, %v3585_v33  ;;  %v10261_v24 = vsel %vm12632_vm1, %v4213_v21, %v4215_v61  ;;  %v10278_v33 = vadd.f32 %v3242_v20, %v3129_v23 }
 0x554   : > { %v3414_v30 = vmul.f32 1.442695, %v3366_v42  ;;  %v10258_v40 = vsel %vm12630_vm9, %v4212_v28, %v4213_v21  ;;  %12633 = vst [vmem:[#allocation118_spill] sm:$0xff] %v10261_v24 }
 0x555   : > { %v12094_v46 = vrot.slane %v10242_v62, 7  ;;  %12631 = vst [vmem:[#allocation117_spill] sm:$0xff] %v10258_v40  ;;  %v6564_v37 = vpack.i.bf16 %v10261_v24, %v10258_v40  ;;  %v3338_v61 = vsel %vm1525_vm15, %v10278_v33, -inf }
 0x556   : > { %6881 = vpow2.f32 %v3414_v30 }
 0x557   : > { %v10255_v1 = vsel %vm12629_vm8, %v12094_v46, %v12093_v54  ;;  %6883 = vpow2.f32 %v3418_v12 }
 0x558   : > { %6885 = vrcp.f32 %v10270_v13 }
 0x559   : > { %v3316_v32 = vpop.xlane.xlu0 %3315  ;;  %6887 = vrcp.f32 %v10224_v10 }
 0x55a   : > { %v3370_v46 = vsub.f32 %v10092_v45, %v3316_v32 }
 0x55c   : > { %v10265_v25 = vpop.eup %6881 }
 0x55d   : > { %6565 = vrot.lane.b32.xlu2 %v6564_v37, %s7138_s15  ;;  %v3494_v63 = vsel %vm1525_vm15, %v10265_v25, 0.0  ;;  %v10272_v22 = vpop.eup %6883  ;;  %v3132_v37 = vpop.f32.mrf.mxu3 }
 0x55e   : > { %3495 = vadd.xlane.f32.xlu0 %v3494_v63  ;;  %v3500_v47 = vsel %vm1525_vm15, %v10272_v22, 0.0  ;;  %v6886_v42 = vpop.eup %6885  ;;  %v3245_v63 = vpop.f32.mrf.mxu0 }
 0x55f   : > { %v6888_v9 = vpop.eup %6887  ;;  %v3618_v28 = vmul.f32 %v6886_v42, %v10270_v13  ;;  %v10290_v23 = vadd.f32 %v3245_v63, %v3132_v37  ;;  %v3422_v37 = vmul.f32 1.442695, %v3370_v46  ;;  %vm3623_vm2 = vweird.f32 %v6886_v42 }
 0x560   : > { %v3603_v12 = vmul.f32 %v6888_v9, %v10224_v10  ;;  %vm3608_vm3 = vweird.f32 %v6888_v9  ;;  %vm10313_vm12 = vmor %vm3622_vm11, %vm3623_vm2 }
 0x561   : > { %v10280_v30 = vpop.xlane.xlu0 %3318  ;;  %12634 = vst [vmem:[#allocation94_spill] sm:$0xff] %v10290_v23  ;;  %vm3609_vm10 = vmor %vm3607_vm6, %vm3608_vm3 }
 0x562   : > { %v3604_v20 = vsub.f32 1.0, %v3603_v12 }
 0x564   : > { %v3605_v31 = vmul.f32 %v6888_v9, %v3604_v20 }
 0x566   : > { %3501 = vadd.xlane.f32.xlu0 %v3500_v47  ;;  %v3619_v47 = vsub.f32 1.0, %v3618_v28  ;;  %v3606_v3 = vadd.f32 %v6888_v9, %v3605_v31 }
 0x568   : > { %v3620_v53 = vmul.f32 %v6886_v42, %v3619_v47  ;;  %v3613_v47 = vand.u32 2147483648, %v10224_v10 }
 0x569   : > { %v10297_v40 = vpop.xlane.xlu0 %3321 }
 0x56a   : > { %v3621_v12 = vadd.f32 %v6886_v42, %v3620_v53  ;;  %v3611_v53 = vand.u32 2147483647, %v10224_v10  ;;  %v3614_v51 = vor.u32 1.1754944e-38, %v3613_v47 }
 0x56b   : > { %v10282_v21 = vpop.xlane.xlu1 %3468 }
 0x56c   : > { %vm3612_vm9 = vcmp.eq.f32.partialorder %v3611_v53, 8.507059e+37  ;;  %vm3652_vm1 = vweird.f32 %v10282_v21 }
 0x56e   : > { %3339 = vmax.xlane.f32.xlu0 %v3338_v61  ;;  %v3341_v61 = vsel %vm1525_vm15, %v10290_v23, -inf }
 0x570   : > { %v10288_v54 = vpop.xlane.xlu2 %3465 }
 0x571   : > { %6889 = vrcp.f32 %v10288_v54  ;;  %v10325_v35 = vpop.xlane.xlu0 %3324  ;;  %vm3637_vm3 = vweird.f32 %v10288_v54 }
 0x572   : > { %6891 = vrcp.f32 %v10282_v21 }
 0x573   : > { %v10294_v24 = vpop.xlane.xlu1 %3327  ;;  %6893 = vpow2.f32 %v3422_v37  ;;  %v3625_v37 = vsel %vm10313_vm12, %v6886_v42, %v3621_v12 }
 0x576   : > { %3342 = vmax.xlane.f32.xlu0 %v3341_v61 }
 0x577   : > { %v10301_v63 = vpop.eup %6889 }
 0x578   : > { %v3313_v28 = vpop.xlane.xlu2 %3312  ;;  %v10305_v32 = vpop.eup %6891  ;;  %v3633_v46 = vmul.f32 %v10301_v63, %v10288_v54  ;;  %vm3638_vm11 = vweird.f32 %v10301_v63 }
 0x579   : > { %v3369_v45 = vsub.f32 %v10126_v44, %v3313_v28  ;;  %v3626_v44 = vand.u32 2147483647, %v10270_v13  ;;  %v3648_v31 = vmul.f32 %v10305_v32, %v10282_v21  ;;  %v3610_v28 = vsel %vm3609_vm10, %v6888_v9, %v3606_v3  ;;  %v10329_v10 = vpop.eup %6893  ;;  %vm10366_vm6 = vmor %vm3637_vm3, %vm3638_vm11 }
 0x57a   : > { %v3634_v23 = vsub.f32 1.0, %v3633_v46  ;;  %12637 = vst [vmem:[#allocation113_spill] sm:$0xff] %v10329_v10  ;;  %v3615_v59 = vsel %vm3612_vm9, %v3614_v51, %v3610_v28  ;;  %v3506_v51 = vsel %vm1525_vm15, %v10329_v10, 0.0  ;;  %v3656_v46 = vand.u32 2147483647, %v10282_v21 }
 0x57b   : > { %v3420_v20 = vmul.f32 1.442695, %v3369_v45  ;;  %v10311_v61 = vpop.xlane.xlu1 %3474  ;;  %v3629_v45 = vor.u32 1.1754944e-38, %v3628_v6  ;;  %vm3627_vm8 = vcmp.eq.f32.partialorder %v3626_v44, 8.507059e+37  ;;  %v3649_v60 = vsub.f32 1.0, %v3648_v31 }
 0x57c   : > { %6895 = vrcp.f32 %v10311_v61  ;;  %v3635_v3 = vmul.f32 %v10301_v63, %v3634_v23  ;;  %v10342_v12 = vmul.f32 %v10081_v34, %v3615_v59  ;;  %v3643_v44 = vand.u32 2147483648, %v10288_v54 }
 0x57d   : > { %6897 = vpow2.f32 %v3420_v20  ;;  %v3630_v49 = vsel %vm3627_vm8, %v3629_v45, %v3625_v37  ;;  %v3650_v47 = vmul.f32 %v10305_v32, %v3649_v60  ;;  %v3686_v60 = vand.u32 2147483647, %v10311_v61 }
 0x57e   : > { %v10339_v9 = vmul.f32 %v10042_v57, %v3630_v49  ;;  %v3688_v49 = vand.u32 2147483648, %v10311_v61  ;;  %v3636_v34 = vadd.f32 %v10301_v63, %v3635_v3  ;;  %v3658_v37 = vand.u32 2147483648, %v10282_v21 }
 0x57f   : > { %v3641_v28 = vand.u32 2147483647, %v10288_v54  ;;  %vm3653_vm12 = vweird.f32 %v10305_v32  ;;  %vm3682_vm10 = vweird.f32 %v10311_v61  ;;  %vm3687_vm9 = vcmp.eq.f32.partialorder %v3686_v60, 8.507059e+37 }
 0x580   : > { %v10327_v13 = vpop.xlane.xlu2 %3471  ;;  %v3640_v54 = vsel %vm10366_vm6, %v10301_v63, %v3636_v34  ;;  %vm10380_vm11 = vmor %vm3652_vm1, %vm3653_vm12  ;;  %vm3657_vm12 = vcmp.eq.f32.partialorder %v3656_v46, 8.507059e+37 }
 0x581   : > { %6899 = vrcp.f32 %v10327_v13  ;;  %v3673_v19 = vand.u32 2147483648, %v10327_v13  ;;  %vm3642_vm3 = vcmp.eq.f32.partialorder %v3641_v28, 8.507059e+37  ;;  %vm3667_vm1 = vweird.f32 %v10327_v13 }
 0x582   : > { %v6896_v20 = vpop.eup %6895  ;;  %v12642_v28 = vrot.slane %v10242_v62, 7 }
 0x583   : > { %v10332_v7 = vpop.eup %6897  ;;  %v3678_v6 = vmul.f32 %v6896_v20, %v10311_v61  ;;  %v10336_v42 = vpop.xlane.xlu1 %3330  ;;  %vm3683_vm2 = vweird.f32 %v6896_v20 }
 0x584   : > { %v3503_v59 = vsel %vm1525_vm15, %v10332_v7, 0.0  ;;  %v10356_v31 = vpop.xlane.xlu0 %3486  ;;  %vm3684_vm8 = vmor %vm3682_vm10, %vm3683_vm2 }
 0x585   : > { %v3679_v23 = vsub.f32 1.0, %v3678_v6  ;;  %3504 = vadd.xlane.f32.xlu1 %v3503_v59  ;;  %v3651_v6 = vadd.f32 %v10305_v32, %v3650_v47  ;;  %v3689_v59 = vor.u32 1.1754944e-38, %v3688_v49  ;;  %6901 = vrcp.f32 %v10356_v31 }
 0x586   : > { %3507 = vadd.xlane.f32.xlu2 %v3506_v51 }
 0x587   : > { %v6900_v57 = vpop.eup %6899  ;;  %v3680_v53 = vmul.f32 %v6896_v20, %v3679_v23  ;;  %v3644_v23 = vor.u32 1.1754944e-38, %v3643_v44  ;;  %v3655_v63 = vsel %vm10380_vm11, %v10305_v32, %v3651_v6 }
 0x588   : > { %v3663_v45 = vmul.f32 %v6900_v57, %v10327_v13  ;;  %vm3668_vm2 = vweird.f32 %v6900_v57 }
 0x589   : > { %v3681_v51 = vadd.f32 %v6896_v20, %v3680_v53  ;;  %v3671_v53 = vand.u32 2147483647, %v10327_v13  ;;  %v3645_v34 = vsel %vm3642_vm3, %v3644_v23, %v3640_v54  ;;  %vm3669_vm6 = vmor %vm3667_vm1, %vm3668_vm2  ;;  %v12647_v54 = vrot.slane %v10232_v52, 7 }
 0x58a   : > { %v3664_v10 = vsub.f32 1.0, %v3663_v45  ;;  %v4060_v45 = vrot.slane %v10342_v12, 7  ;;  %v3646_v32 = vmul.f32 %v10113_v14, %v3645_v34 }
 0x58b   : > { %v3685_v47 = vsel %vm3684_vm8, %v6896_v20, %v3681_v51  ;;  %v10376_v4 = vpop.xlane.xlu1 %3477  ;;  %v3659_v20 = vor.u32 1.1754944e-38, %v3658_v37  ;;  %v10391_v3 = vpop.eup %6901  ;;  %v4061_v51 = vrot.slane %v10339_v9, 7  ;;  %vm3672_vm10 = vcmp.eq.f32.partialorder %v3671_v53, 8.507059e+37 }
 0x58c   : > { %v3690_v44 = vsel %vm3687_vm9, %v3689_v59, %v3685_v47  ;;  %v3665_v49 = vmul.f32 %v6900_v57, %v3664_v10  ;;  %v3674_v10 = vor.u32 1.1754944e-38, %v3673_v19  ;;  %vm12643_vm8 = vcmask 1040384  }
 0x58d   : > { %v3691_v21 = vmul.f32 %v10128_v29, %v3690_v44  ;;  %v3660_v12 = vsel %vm3657_vm12, %v3659_v20, %v3655_v63  ;;  %v10398_v29 = vsel %vm12643_vm8, 0.0, %v12642_v28  ;;  %vm12644_vm9 = vmmov %vm12643_vm8  ;;  %v3738_v9 = vmul.f32 %v10391_v3, %v10356_v31 }
 0x58e   : > { %v3666_v60 = vadd.f32 %v6900_v57, %v3665_v49  ;;  %v10401_v13 = vsel %vm12644_vm9, 0.0, %v4060_v45  ;;  %v3661_v6 = vmul.f32 %v10106_v27, %v3660_v12  ;;  %vm12645_vm11 = vmmov %vm12643_vm8  ;;  %v4217_v61 = vrot.slane %v10398_v29, 1 }
 0x58f   : > { %v4067_v46 = vrot.slane %v3691_v21, 7  ;;  %v10410_v14 = vsel %vm12645_vm11, %v4060_v45, %v4061_v51  ;;  %vm12646_vm2 = vmmov %vm12643_vm8  ;;  %v4222_v27 = vrot.slane %v10401_v13, 1  ;;  %v4218_v44 = vrot.slane %v10255_v1, 1 }
 0x590   : > { %v3670_v59 = vsel %vm3669_vm6, %v6900_v57, %v3666_v60  ;;  %v10413_v23 = vsel %vm12646_vm2, %v4061_v51, 0.0  ;;  %vm12648_vm3 = vmmov %vm12646_vm2  ;;  %v4223_v52 = vrot.slane %v10410_v14, 1  ;;  %v4064_v63 = vrot.slane %v3661_v6, 7 }
 0x591   : > { %v3675_v37 = vsel %vm3672_vm10, %v3674_v10, %v3670_v59  ;;  %v10418_v47 = vsel %vm12648_vm3, %v12647_v54, 0.0  ;;  %vm12649_vm1 = vmmov %vm12646_vm2  ;;  %v3739_v20 = vsub.f32 1.0, %v3738_v9  ;;  %v4225_v10 = vrot.slane %v10413_v23, 1 }
 0x592   : > { %v3676_v19 = vmul.f32 %v10137_v26, %v3675_v37  ;;  %v4063_v26 = vrot.slane %v3646_v32, 7  ;;  %vm12650_vm12 = vmmov %vm12649_vm1  ;;  %v4220_v21 = vrot.slane %v10418_v47, 1  ;;  %vm12652_vm10 = vcmask 1046528  }
 0x593   : > { %v10407_v57 = vpop.xlane.xlu1 %3480  ;;  %vm12651_vm6 = vmmov %vm12649_vm1  ;;  %v10439_v12 = vsel %vm12652_vm10, %v4217_v61, %v4218_v44 }
 0x594   : > { %v4066_v62 = vrot.slane %v3676_v19, 7  ;;  %v10430_v45 = vsel %vm12651_vm6, %v4067_v46, 0.0  ;;  %12653 = vst [vmem:[#allocation91_spill] sm:$0xff] %v10439_v12  ;;  %vm12654_vm8 = vmmov %vm12652_vm10  ;;  %v3740_v19 = vmul.f32 %v10391_v3, %v3739_v20  ;;  %v4169_v54 = vsel %vm12651_vm6, %v4064_v63, 0.0 }
 0x595   : > { %v4235_v51 = vrot.slane %v10430_v45, 1  ;;  %v10442_v59 = vsel %vm12654_vm8, %v4218_v44, %v4220_v21  ;;  %vm12656_vm9 = vmmov %vm12649_vm1  ;;  %vm3743_vm10 = vweird.f32 %v10391_v3  ;;  %v4230_v21 = vrot.slane %v4169_v54, 1 }
 0x596   : > { %v10424_v49 = vsel %vm12649_vm1, 0.0, %v4066_v62  ;;  %v10427_v53 = vsel %vm12650_vm12, %v4066_v62, %v4067_v46  ;;  %12655 = vst [vmem:[#allocation99_spill] sm:$0xff] %v10442_v59  ;;  %v10445_v32 = vsel %vm12656_vm9, %v4063_v26, %v4064_v63  ;;  %vm12657_vm11 = vmmov %vm12649_vm1  ;;  %v3741_v63 = vadd.f32 %v10391_v3, %v3740_v19 }
 0x597   : > { %v4232_v34 = vrot.slane %v10424_v49, 1  ;;  %v4233_v60 = vrot.slane %v10427_v53, 1  ;;  %v10448_v37 = vsel %vm12657_vm11, 0.0, %v4063_v26  ;;  %vm12658_vm2 = vmmov %vm12654_vm8  ;;  %v6569_v26 = vpack.i.bf16 %v10442_v59, %v10439_v12 }
 0x598   : > { %v10451_v28 = vsel %vm12658_vm2, %v4222_v27, %v4223_v52  ;;  %vm12660_vm3 = vmmov %vm12658_vm2  ;;  %v12107_v27 = vrot.slane %v10445_v32, 2  ;;  %v4227_v61 = vrot.slane %v10448_v37, 1  ;;  %v4228_v44 = vrot.slane %v10445_v32, 1 }
 0x599   : > { %12659 = vst [vmem:[#allocation136_spill] sm:$0xff] %v10451_v28  ;;  %v10454_v46 = vsel %vm12660_vm3, %v4223_v52, %v4225_v10  ;;  %vm12662_vm1 = vmmov %vm12658_vm2  ;;  %vm12666_vm8 = vcmask 1045504   ;;  %vm3742_vm9 = vweird.f32 %v10356_v31  ;;  %v3373_v59 = vsub.f32 %v10110_v2, %v10325_v35 }
 0x59a   : > { %12661 = vst [vmem:[#allocation82_spill] sm:$0xff] %v10454_v46  ;;  %v10458_v9 = vsel %vm12662_vm1, %v4232_v34, %v4233_v60  ;;  %vm12664_vm12 = vmmov %vm12662_vm1  ;;  %v6574_v20 = vpack.i.bf16 %v10454_v46, %v10451_v28  ;;  %v4305_v34 = vrot.slane %v4169_v54, 2 }
 0x59b   : > { %v3484_v6 = vpop.xlane.xlu1 %3483  ;;  %12663 = vst [vmem:[#allocation81_spill] sm:$0xff] %v10458_v9  ;;  %v10461_v62 = vsel %vm12664_vm12, %v4233_v60, %v4235_v51  ;;  %v3748_v60 = vand.u32 2147483648, %v10356_v31  ;;  %v3746_v51 = vand.u32 2147483647, %v10356_v31  ;;  %vm12667_vm11 = vmmov %vm12662_vm1 }
 0x59c   : > { %12665 = vst [vmem:[#allocation102_spill] sm:$0xff] %v10461_v62  ;;  %6903 = vrcp.f32 %v3484_v6  ;;  %v6584_v52 = vpack.i.bf16 %v10461_v62, %v10458_v9  ;;  %v10482_v10 = vsel %vm12666_vm8, %v12107_v27, %v4305_v34  ;;  %v10487_v19 = vsel %vm12667_vm11, %v4227_v61, %v4228_v44  ;;  %vm12669_vm2 = vmmov %vm12662_vm1 }
 0x59d   : > { %12668 = vst [vmem:[#allocation101_spill] sm:$0xff] %v10487_v19  ;;  %v10490_v54 = vsel %vm12669_vm2, %v4228_v44, %v4230_v21  ;;  %vm3744_vm3 = vmor %vm3742_vm9, %vm3743_vm10  ;;  %v3749_v62 = vor.u32 1.1754944e-38, %v3748_v60  ;;  %vm3747_vm1 = vcmp.eq.f32.partialorder %v3746_v51, 8.507059e+37  ;;  %v3733_v46 = vand.u32 2147483648, %v3484_v6  ;;  %v10501_v60 = vpop.xlane.xlu0 %3489 }
 0x59e   : > { %6570 = vrot.lane.b32.xlu2 %v6569_v26, %s7138_s15  ;;  %6585 = vrot.lane.b32.xlu0 %v6584_v52, %s7138_s15  ;;  %12670 = vst [vmem:[#allocation103_spill] sm:$0xff] %v10490_v54  ;;  %v3745_v52 = vsel %vm3744_vm3, %v10391_v3, %v3741_v63  ;;  %v6579_v34 = vpack.i.bf16 %v10490_v54, %v10487_v19  ;;  %v3731_v61 = vand.u32 2147483647, %v3484_v6  ;;  %vm3727_vm6 = vweird.f32 %v3484_v6 }
 0x59f   : > { %6575 = vrot.lane.b32.xlu1 %v6574_v20, %s7138_s15  ;;  %v3750_v9 = vsel %vm3747_vm1, %v3749_v62, %v3745_v52  ;;  %v3734_v51 = vor.u32 1.1754944e-38, %v3733_v46  ;;  %vm12671_vm9 = vcmask 1040384   ;;  %vm12673_vm2 = vcmask 1045504  }
 0x5a0   : > { %v3751_v3 = vmul.f32 %v10143_v16, %v3750_v9  ;;  %vm3732_vm8 = vcmp.eq.f32.partialorder %v3731_v61, 8.507059e+37  ;;  %vm12672_vm11 = vmmov %vm12671_vm9 }
 0x5a2   : > { %v6904_v26 = vpop.eup %6903 }
 0x5a3   : > { %v3723_v20 = vmul.f32 %v6904_v26, %v3484_v6  ;;  %vm3728_vm12 = vweird.f32 %v6904_v26  ;;  %v10496_v44 = vpop.xlane.xlu1 %3492 }
 0x5a4   : > { %vm3729_vm10 = vmor %vm3727_vm6, %vm3728_vm12  ;;  %6905 = vrcp.f32 %v10496_v44  ;;  %v3778_v2 = vand.u32 2147483648, %v10496_v44  ;;  %vm3772_vm12 = vweird.f32 %v10496_v44 }
 0x5a5   : > { %v3724_v27 = vsub.f32 1.0, %v3723_v20  ;;  %6907 = vrcp.f32 %v10501_v60 }
 0x5a6   : > { %6580 = vrot.lane.b32.xlu2 %v6579_v34, %s7138_s15  ;;  %6909 = vrcp.f32 %v10407_v57 }
 0x5a7   : > { %v3725_v31 = vmul.f32 %v6904_v26, %v3724_v27  ;;  %v4073_v27 = vrot.slane %v3751_v3, 7  ;;  %6911 = vrcp.f32 %v10376_v4 }
 0x5a8   : > { %v10498_v21 = vpop.xlane.xlu2 %3498 }
 0x5a9   : > { %v3726_v63 = vadd.f32 %v6904_v26, %v3725_v31  ;;  %v10520_v9 = vsel %vm12672_vm11, %v4073_v27, 0.0 }
 0x5aa   : > { %v10512_v6 = vpop.eup %6905  ;;  %v4320_v61 = vrot.slane %v10520_v9, 2 }
 0x5ab   : > { %v3730_v20 = vsel %vm3729_vm10, %v6904_v26, %v3726_v63  ;;  %v3768_v31 = vmul.f32 %v10512_v6, %v10496_v44  ;;  %v3371_v63 = vsub.f32 %v10096_v58, %v10280_v30  ;;  %vm3773_vm3 = vweird.f32 %v10512_v6 }
 0x5ac   : > { %v3735_v62 = vsel %vm3732_vm8, %v3734_v51, %v3730_v20  ;;  %vm10564_vm6 = vmor %vm3772_vm12, %vm3773_vm3  ;;  %vm3757_vm10 = vweird.f32 %v10501_v60 }
 0x5ad   : > { %v10506_v52 = vmul.f32 %v10168_v41, %v3735_v62  ;;  %v10523_v41 = vpop.eup %6907  ;;  %v3372_v62 = vsub.f32 %v10101_v55, %v10297_v40  ;;  %v3424_v58 = vmul.f32 1.442695, %v3371_v63 }
 0x5ae   : > { %v10529_v3 = vpop.eup %6909  ;;  %v3753_v51 = vmul.f32 %v10523_v41, %v10501_v60  ;;  %vm3758_vm1 = vweird.f32 %v10523_v41 }
 0x5af   : > { %v12110_v34 = vrot.slane %v10506_v52, 7  ;;  %v3708_v19 = vmul.f32 %v10529_v3, %v10407_v57  ;;  %v3426_v28 = vmul.f32 1.442695, %v3372_v62  ;;  %6913 = vpow2.f32 %v3424_v58  ;;  %vm10579_vm8 = vmor %vm3757_vm10, %vm3758_vm1 }
 0x5b0   : > { %v10510_v16 = vpop.xlane.xlu2 %3333  ;;  %v3754_v30 = vsub.f32 1.0, %v3753_v51  ;;  %vm3713_vm11 = vweird.f32 %v10529_v3 }
 0x5b1   : > { %v10517_v46 = vsel %vm12671_vm9, %v12110_v34, %v4073_v27  ;;  %v10542_v27 = vpop.eup %6911  ;;  %v3769_v34 = vsub.f32 1.0, %v3768_v31  ;;  %v3709_v55 = vsub.f32 1.0, %v3708_v19  ;;  %6915 = vpow2.f32 %v3426_v28 }
 0x5b2   : > { %v12115_v26 = vrot.slane %v10517_v46, 2  ;;  %v3755_v40 = vmul.f32 %v10523_v41, %v3754_v30  ;;  %v3428_v31 = vmul.f32 1.442695, %v3373_v59  ;;  %v3776_v59 = vand.u32 2147483647, %v10496_v44 }
 0x5b3   : > { %v3710_v35 = vmul.f32 %v10529_v3, %v3709_v55  ;;  %v3761_v30 = vand.u32 2147483647, %v10501_v60  ;;  %vm3712_vm9 = vweird.f32 %v10407_v57 }
 0x5b4   : > { %v10538_v20 = vsel %vm12673_vm2, %v12115_v26, %v4320_v61  ;;  %v3693_v61 = vmul.f32 %v10542_v27, %v10376_v4  ;;  %v3770_v26 = vmul.f32 %v10512_v6, %v3769_v34  ;;  %v3756_v19 = vadd.f32 %v10523_v41, %v3755_v40  ;;  %vm10594_vm12 = vmor %vm3712_vm9, %vm3713_vm11 }
 0x5b5   : > { %12674 = vst [vmem:[#allocation140_spill] sm:$0xff] %v10538_v20  ;;  %v3763_v20 = vand.u32 2147483648, %v10501_v60  ;;  %6917 = vpow2.f32 %v3428_v31  ;;  %v10570_v58 = vpop.eup %6913  ;;  %v3711_v40 = vadd.f32 %v10529_v3, %v3710_v35  ;;  %v3779_v31 = vor.u32 1.1754944e-38, %v3778_v2 }
 0x5b6   : > { %v3694_v12 = vsub.f32 1.0, %v3693_v61  ;;  %v3771_v63 = vadd.f32 %v10512_v6, %v3770_v26  ;;  %v3760_v60 = vsel %vm10579_vm8, %v10523_v41, %v3756_v19  ;;  %vm3698_vm2 = vweird.f32 %v10542_v27 }
 0x5b7   : > { %v3764_v61 = vor.u32 1.1754944e-38, %v3763_v20  ;;  %vm3777_vm3 = vcmp.eq.f32.partialorder %v3776_v59, 8.507059e+37  ;;  %vm3762_vm1 = vcmp.eq.f32.partialorder %v3761_v30, 8.507059e+37  ;;  %v3703_v34 = vand.u32 2147483648, %v10376_v4 }
 0x5b8   : > { %v10544_v54 = vpop.xlane.xlu2 %3336  ;;  %v3695_v28 = vmul.f32 %v10542_v27, %v3694_v12  ;;  %v3775_v44 = vsel %vm10564_vm6, %v10512_v6, %v3771_v63  ;;  %v10577_v12 = vpop.eup %6915  ;;  %v3718_v6 = vand.u32 2147483648, %v10407_v57  ;;  %v3716_v63 = vand.u32 2147483647, %v10407_v57 }
 0x5b9   : > { %v3512_v41 = vsel %vm1525_vm15, %v10577_v12, 0.0  ;;  %v3509_v19 = vsel %vm1525_vm15, %v10570_v58, 0.0  ;;  %vm3697_vm6 = vweird.f32 %v10376_v4  ;;  %v3701_v57 = vand.u32 2147483647, %v10376_v4 }
 0x5ba   : > { %v3696_v20 = vadd.f32 %v10542_v27, %v3695_v28  ;;  %v3765_v28 = vsel %vm3762_vm1, %v3764_v61, %v3760_v60  ;;  %vm3699_vm10 = vmor %vm3697_vm6, %vm3698_vm2  ;;  %vm3717_vm8 = vcmp.eq.f32.partialorder %v3716_v63, 8.507059e+37  ;;  %v3704_v55 = vor.u32 1.1754944e-38, %v3703_v34 }
 0x5bb   : > { %v10602_v59 = vpop.eup %6917  ;;  %v3766_v4 = vmul.f32 %v10150_v39, %v3765_v28  ;;  %vm3702_vm9 = vcmp.eq.f32.partialorder %v3701_v57, 8.507059e+37  ;;  %vm12681_vm11 = vcmask 1040384  }
 0x5bc   : > { %v3515_v60 = vsel %vm1525_vm15, %v10602_v59, 0.0  ;;  %vm12682_vm2 = vmmov %vm12681_vm11 }
 0x5bd   : > { %vm12684_vm1 = vmmov %vm12682_vm2 }
 0x5be   : > { %vm12686_vm6 = vmmov %vm12684_vm1 }
 0x5c0   : > { %v6566_v51 = vpop.permute.xlu2 %6565 }
 0x5c1   : > { %v6567_v62 = vunpack.i.l.bf16 %v6566_v51  ;;  %v6568_v35 = vunpack.i.h.bf16 %v6566_v51  ;;  %v3715_v51 = vsel %vm10594_vm12, %v10529_v3, %v3711_v40  ;;  %vm12685_vm12 = vmmov %vm12684_vm1 }
 0x5c3   : > { %v4734_v26 = vsel %vm1525_vm15, %v10239_v17, %v6567_v62  ;;  %v3780_v62 = vsel %vm3777_vm3, %v3779_v31, %v3775_v44  ;;  %v3700_v44 = vsel %vm3699_vm10, %v10542_v27, %v3696_v20  ;;  %v4735_v61 = vsel %vm1525_vm15, %v10229_v18, %v6568_v35  ;;  %vm12683_vm3 = vmmov %vm12682_vm2 }
 0x5c4   : > { %4997 = vmatmul.f32.gmra.mxu1 %v4734_v26  ;;  %v3719_v26 = vor.u32 1.1754944e-38, %v3718_v6  ;;  %v3781_v30 = vmul.f32 %v10177_v11, %v3780_v62  ;;  %v3705_v3 = vsel %vm3702_vm9, %v3704_v55, %v3700_v44  ;;  %v4075_v6 = vrot.slane %v3766_v4, 7  ;;  %vm12692_vm9 = vmmov %vm12684_vm1 }
 0x5c5   : > { %v3706_v27 = vmul.f32 %v10152_v38, %v3705_v3  ;;  %vm12687_vm10 = vcmask 1046528  }
 0x5c6   : > { %v3720_v31 = vsel %vm3717_vm8, %v3719_v26, %v3715_v51  ;;  %v4076_v40 = vrot.slane %v3781_v30, 7  ;;  %v10627_v62 = vsel %vm12683_vm3, 0.0, %v4075_v6  ;;  %vm12689_vm8 = vmmov %vm12687_vm10  ;;  %v12691_v30 = vrot.slane %v10506_v52, 7 }
 0x5c7   : > { %v3721_v11 = vmul.f32 %v10161_v50, %v3720_v31  ;;  %v4069_v35 = vrot.slane %v3706_v27, 7  ;;  %v4247_v50 = vrot.slane %v10627_v62, 1  ;;  %v4243_v52 = vrot.slane %v10517_v46, 1 }
 0x5c8   : > { %3513 = vadd.xlane.f32.xlu0 %v3512_v41  ;;  %v10621_v20 = vsel %vm12681_vm11, %v4075_v6, %v4076_v40  ;;  %v10624_v39 = vsel %vm12682_vm2, %v4076_v40, 0.0  ;;  %v10652_v44 = vsel %vm12692_vm9, 0.0, %v12691_v30  ;;  %vm12693_vm11 = vmmov %vm12689_vm8  ;;  %v4245_v40 = vrot.slane %v10520_v9, 1 }
 0x5c9   : > { %3510 = vadd.xlane.f32.xlu1 %v3509_v19  ;;  %v4070_v63 = vrot.slane %v3721_v11, 7  ;;  %v4248_v34 = vrot.slane %v10621_v20, 1  ;;  %v4250_v2 = vrot.slane %v10624_v39, 1  ;;  %v10639_v19 = vsel %vm12686_vm6, 0.0, %v4069_v35  ;;  %vm12694_vm2 = vmmov %vm12689_vm8 }
 0x5ca   : > { %v4237_v4 = vrot.slane %v10639_v19, 1  ;;  %v4242_v3 = vrot.slane %v10652_v44, 1  ;;  %vm12696_vm3 = vmmov %vm12694_vm2  ;;  %v3375_v9 = vsub.f32 %v10139_v48, %v10336_v42  ;;  %v3376_v42 = vsub.f32 %v10195_v0, %v10510_v16 }
 0x5cb   : > { %v10633_v41 = vsel %vm12684_vm1, %v4069_v35, %v4070_v63  ;;  %v10636_v38 = vsel %vm12685_vm12, %v4070_v63, 0.0  ;;  %v10642_v28 = vsel %vm12687_vm10, %v4247_v50, %v4248_v34  ;;  %v10645_v57 = vsel %vm12689_vm8, %v4248_v34, %v4250_v2  ;;  %vm12698_vm1 = vmmov %vm12694_vm2 }
 0x5cc   : > { %5000 = vmatmul.f32.gmra.mxu1 %v4735_v61  ;;  %12688 = vst [vmem:[#allocation147_spill] sm:$0xff] %v10642_v28  ;;  %v4238_v51 = vrot.slane %v10633_v41, 1  ;;  %v4240_v26 = vrot.slane %v10636_v38, 1  ;;  %v6599_v61 = vpack.i.bf16 %v10645_v57, %v10642_v28  ;;  %v10670_v11 = vsel %vm12696_vm3, %v4242_v3, %v4243_v52 }
 0x5cd   : > { %12690 = vst [vmem:[#allocation120_spill] sm:$0xff] %v10645_v57  ;;  %v10673_v6 = vsel %vm12698_vm1, %v4243_v52, %v4245_v40  ;;  %vm3802_vm8 = vweird.f32 %v10498_v21 }
 0x5ce   : > { %v10659_v55 = vsel %vm12693_vm11, %v4237_v4, %v4238_v51  ;;  %v10662_v31 = vsel %vm12694_vm2, %v4238_v51, %v4240_v26  ;;  %12697 = vst [vmem:[#allocation105_spill] sm:$0xff] %v10670_v11  ;;  %v6594_v27 = vpack.i.bf16 %v10673_v6, %v10670_v11  ;;  %v3374_v51 = vsub.f32 %v10115_v36, %v10294_v24 }
 0x5cf   : > { %3516 = vadd.xlane.f32.xlu2 %v3515_v60  ;;  %12695 = vst [vmem:[#allocation98_spill] sm:$0xff] %v10662_v31  ;;  %v6589_v60 = vpack.i.bf16 %v10662_v31, %v10659_v55  ;;  %v3432_v26 = vmul.f32 1.442695, %v3375_v9 }
 0x5d0   : > { %12699 = vst [vmem:[#allocation146_spill] sm:$0xff] %v10673_v6  ;;  %v3430_v3 = vmul.f32 1.442695, %v3374_v51 }
 0x5d1   : > { %v10678_v63 = vpop.xlane.xlu0 %3495 }
 0x5d2   : > { %6919 = vrcp.f32 %v10678_v63  ;;  %vm3787_vm10 = vweird.f32 %v10678_v63 }
 0x5d3   : > { %6921 = vrcp.f32 %v10498_v21 }
 0x5d8   : > { %v10687_v34 = vpop.eup %6919 }
 0x5d9   : > { %v10681_v35 = vpop.xlane.xlu0 %3501  ;;  %v10691_v50 = vpop.eup %6921  ;;  %v3783_v4 = vmul.f32 %v10687_v34, %v10678_v63  ;;  %vm3788_vm12 = vweird.f32 %v10687_v34 }
 0x5da   : > { %v3798_v48 = vmul.f32 %v10691_v50, %v10498_v21  ;;  %vm3803_vm6 = vweird.f32 %v10691_v50  ;;  %vm10737_vm9 = vmor %vm3787_vm10, %vm3788_vm12 }
 0x5db   : > { %v3784_v24 = vsub.f32 1.0, %v3783_v4  ;;  %vm10754_vm11 = vmor %vm3802_vm8, %vm3803_vm6  ;;  %vm3817_vm8 = vweird.f32 %v10681_v35 }
 0x5dc   : > { %6600 = vrot.lane.b32.xlu0 %v6599_v61, %s7138_s15  ;;  %v3799_v40 = vsub.f32 1.0, %v3798_v48 }
 0x5dd   : > { %v3785_v0 = vmul.f32 %v10687_v34, %v3784_v24  ;;  %v3791_v24 = vand.u32 2147483647, %v10678_v63 }
 0x5de   : > { %v3800_v51 = vmul.f32 %v10691_v50, %v3799_v40 }
 0x5df   : > { %vm3792_vm2 = vcmp.eq.f32.partialorder %v3791_v24, 8.507059e+37 }
 0x5e1   : > { %v3340_v61 = vpop.xlane.xlu0 %3339 }
 0x5e2   : > { %6590 = vrot.lane.b32.xlu1 %v6589_v60, %s7138_s15  ;;  %v3378_v36 = vsub.f32 %v10278_v33, %v3340_v61  ;;  %v3434_v60 = vmul.f32 1.442695, %v3376_v42  ;;  %v3786_v42 = vadd.f32 %v10687_v34, %v3785_v0 }
 0x5e4   : > { %v3438_v9 = vmul.f32 1.442695, %v3378_v36  ;;  %v3801_v36 = vadd.f32 %v10691_v50, %v3800_v51 }
 0x5e7   : > { %6595 = vrot.lane.b32.xlu2 %v6594_v27, %s7138_s15 }
 0x5f8   : > { %v10695_v30 = vpop.xlane.xlu1 %3504 }
 0x5f9   : > { %v10689_v2 = vpop.xlane.xlu2 %3507  ;;  %6923 = vrcp.f32 %v10695_v30  ;;  %vm3832_vm6 = vweird.f32 %v10695_v30 }
 0x5fa   : > { %6925 = vrcp.f32 %v10681_v35 }
 0x5fb   : > { %6927 = vpow2.f32 %v3432_v26  ;;  %v3377_v26 = vsub.f32 %v10209_v8, %v10544_v54  ;;  %v3793_v8 = vand.u32 2147483648, %v10678_v63  ;;  %v3790_v63 = vsel %vm10737_vm9, %v10687_v34, %v3786_v42 }
 0x5fc   : > { %6929 = vpow2.f32 %v3430_v3 }
 0x5fd   : > { %6931 = vpow2.f32 %v3434_v60  ;;  %v3436_v54 = vmul.f32 1.442695, %v3377_v26 }
 0x5fe   : > { %6933 = vpow2.f32 %v3438_v9  ;;  %v3808_v9 = vand.u32 2147483648, %v10498_v21 }
 0x5ff   : > { %v10706_v52 = vpop.eup %6923  ;;  %6935 = vpow2.f32 %v3436_v54 }
 0x600   : > { %v10708_v28 = vpop.eup %6925  ;;  %v3828_v16 = vmul.f32 %v10706_v52, %v10695_v30  ;;  %v3809_v42 = vor.u32 1.1754944e-38, %v3808_v9  ;;  %vm3833_vm1 = vweird.f32 %v10706_v52  ;;  %6937 = vrcp.f32 %v10689_v2 }
 0x601   : > { %v6571_v27 = vpop.permute.xlu2 %6570  ;;  %v10710_v6 = vpop.eup %6927  ;;  %v3813_v61 = vmul.f32 %v10708_v28, %v10681_v35  ;;  %vm3818_vm12 = vweird.f32 %v10708_v28  ;;  %vm10775_vm10 = vmor %vm3832_vm6, %vm3833_vm1  ;;  %vm12709_vm6 = vcmask 1046528  }
 0x602   : > { %v6572_v57 = vunpack.i.l.bf16 %v6571_v27  ;;  %v3521_v4 = vsel %vm1525_vm15, %v10710_v6, 0.0  ;;  %v10724_v48 = vpop.eup %6929  ;;  %v6573_v3 = vunpack.i.h.bf16 %v6571_v27  ;;  %vm3819_vm9 = vmor %vm3817_vm8, %vm3818_vm12 }
 0x603   : > { %v3814_v40 = vsub.f32 1.0, %v3813_v61  ;;  %v10733_v60 = vpop.eup %6931  ;;  %v3518_v0 = vsel %vm1525_vm15, %v10724_v48, 0.0 }
 0x604   : > { %v4736_v33 = vsel %vm1525_vm15, %v10398_v29, %v6572_v57  ;;  %v3829_v57 = vsub.f32 1.0, %v3828_v16  ;;  %v10743_v16 = vpop.eup %6933  ;;  %v4737_v26 = vsel %vm1525_vm15, %v10255_v1, %v6573_v3  ;;  %v3524_v27 = vsel %vm1525_vm15, %v10733_v60, 0.0 }
 0x605   : > { %5003 = vmatmul.f32.gmra.mxu1 %v4736_v33  ;;  %5330 = vmatmul.f32.vlgmr.msra.gmra.mxu0 %v4736_v33  ;;  %v3806_v33 = vand.u32 2147483647, %v10498_v21  ;;  %v3805_v21 = vsel %vm10754_vm11, %v10691_v50, %v3801_v36  ;;  %v3815_v34 = vmul.f32 %v10708_v28, %v3814_v40  ;;  %v3530_v3 = vsel %vm1525_vm15, %v10743_v16, 0.0 }
 0x606   : > { %3522 = vadd.xlane.f32.xlu0 %v3521_v4  ;;  %v3830_v51 = vmul.f32 %v10706_v52, %v3829_v57  ;;  %v3794_v4 = vor.u32 1.1754944e-38, %v3793_v8  ;;  %v3838_v36 = vand.u32 2147483648, %v10695_v30  ;;  %v3836_v40 = vand.u32 2147483647, %v10695_v30 }
 0x607   : > { %vm3807_vm3 = vcmp.eq.f32.partialorder %v3806_v33, 8.507059e+37  ;;  %v3816_v24 = vadd.f32 %v10708_v28, %v3815_v34 }
 0x608   : > { %v3795_v57 = vsel %vm3792_vm2, %v3794_v4, %v3790_v63  ;;  %v3831_v8 = vadd.f32 %v10706_v52, %v3830_v51  ;;  %v3810_v50 = vsel %vm3807_vm3, %v3809_v42, %v3805_v21  ;;  %v10779_v51 = vpop.eup %6935  ;;  %v3839_v61 = vor.u32 1.1754944e-38, %v3838_v36 }
 0x609   : > { %v3796_v54 = vmul.f32 %v10265_v25, %v3795_v57  ;;  %v3821_v25 = vand.u32 2147483647, %v10681_v35  ;;  %v3820_v34 = vsel %vm3819_vm9, %v10708_v28, %v3816_v24  ;;  %vm3837_vm11 = vcmp.eq.f32.partialorder %v3836_v40, 8.507059e+37 }
 0x60a   : > { %v3835_v30 = vsel %vm10775_vm10, %v10706_v52, %v3831_v8  ;;  %vm12706_vm3 = vcmask 1040384   ;;  %vm12711_vm10 = vmmov %vm12709_vm6 }
 0x60b   : > { %v4078_v21 = vrot.slane %v3796_v54, 7  ;;  %v3840_v42 = vsel %vm3837_vm11, %v3839_v61, %v3835_v30  ;;  %vm3822_vm2 = vcmp.eq.f32.partialorder %v3821_v25, 8.507059e+37  ;;  %vm12707_vm1 = vmmov %vm12706_vm3  ;;  %v6624_v25 = vpack.i.bf16 %v9944_v43, %v9938_v5  ;;  %v10834_v43 = vpop.xlane.xlu0 %3342 }
 0x60c   : > { %3519 = vadd.xlane.f32.xlu1 %v3518_v0  ;;  %v3823_v0 = vand.u32 2147483648, %v10681_v35  ;;  %v3527_v35 = vsel %vm1525_vm15, %v10779_v51, 0.0  ;;  %v3841_v8 = vmul.f32 %v10332_v7, %v3840_v42  ;;  %vm12708_vm12 = vmmov %vm12707_vm1 }
 0x60d   : > { %5006 = vmatmul.f32.gmra.mxu1 %v4737_v26  ;;  %5333 = vmatmul.f32.gmra.mxu0 %v4737_v26  ;;  %v3811_v26 = vmul.f32 %v10183_v15, %v3810_v50  ;;  %vm12713_vm8 = vmmov %vm12707_vm1 }
 0x60e   : > { %3531 = vadd.xlane.f32.xlu0 %v3530_v3  ;;  %v3824_v15 = vor.u32 1.1754944e-38, %v3823_v0  ;;  %v6581_v0 = vpop.permute.xlu2 %6580  ;;  %vm12714_vm9 = vmmov %vm12707_vm1 }
 0x60f   : > { %v4079_v57 = vrot.slane %v3811_v26, 7  ;;  %vm12715_vm11 = vmmov %vm12707_vm1 }
 0x610   : > { %3525 = vadd.xlane.f32.xlu2 %v3524_v27  ;;  %v3825_v52 = vsel %vm3822_vm2, %v3824_v15, %v3820_v34  ;;  %v10795_v27 = vsel %vm12706_vm3, 0.0, %v4078_v21  ;;  %vm12716_vm2 = vmmov %vm12709_vm6 }
 0x611   : > { %v6576_v9 = vpop.permute.xlu1 %6575  ;;  %v10799_v28 = vsel %vm12707_vm1, %v4078_v21, %v4079_v57  ;;  %v3826_v50 = vmul.f32 %v10272_v22, %v3825_v52  ;;  %v10803_v36 = vsel %vm12708_vm12, %v4079_v57, 0.0  ;;  %v4252_v24 = vrot.slane %v10795_v27, 1  ;;  %vm12718_vm3 = vmmov %vm12716_vm2 }
 0x612   : > { %v6577_v63 = vunpack.i.l.bf16 %v6576_v9  ;;  %v6578_v3 = vunpack.i.h.bf16 %v6576_v9  ;;  %v4253_v40 = vrot.slane %v10799_v28, 1  ;;  %v4082_v9 = vrot.slane %v3841_v8, 7  ;;  %v6938_v8 = vpop.eup %6937 }
 0x613   : > { %v4255_v7 = vrot.slane %v10803_v36, 1  ;;  %v4081_v33 = vrot.slane %v3826_v50, 7  ;;  %vm3848_vm1 = vweird.f32 %v6938_v8  ;;  %vm3847_vm12 = vweird.f32 %v10689_v2 }
 0x614   : > { %v4738_v4 = vsel %vm1525_vm15, %v10401_v13, %v6577_v63  ;;  %v4739_v54 = vsel %vm1525_vm15, %v10410_v14, %v6578_v3  ;;  %v6582_v63 = vunpack.i.l.bf16 %v6581_v0  ;;  %v10811_v22 = vsel %vm12709_vm6, %v4252_v24, %v4253_v40  ;;  %v12720_v24 = vld [vmem:[#allocation110_spill] sm:$0xff]  ;;  %vm3849_vm6 = vmor %vm3847_vm12, %vm3848_vm1 }
 0x615   : > { %5009 = vmatmul.f32.gmra.mxu1 %v4738_v4  ;;  %5336 = vmatmul.f32.gmra.mxu0 %v4738_v4  ;;  %12710 = vst [vmem:[#allocation100_spill] sm:$0xff] %v10811_v22  ;;  %v10814_v26 = vsel %vm12711_vm10, %v4253_v40, %v4255_v7  ;;  %v10819_v30 = vsel %vm12713_vm8, %v4081_v33, %v4082_v9  ;;  %v10822_v61 = vsel %vm12714_vm9, %v4082_v9, 0.0  ;;  %v10825_v4 = vsel %vm12715_vm11, 0.0, %v4081_v33  ;;  %v12721_v40 = vld [vmem:[#allocation69_spill] sm:$0xff] }
 0x616   : > { %12712 = vst [vmem:[#allocation132_spill] sm:$0xff] %v10814_v26  ;;  %v6609_v21 = vpack.i.bf16 %v10814_v26, %v10811_v22  ;;  %v4740_v34 = vsel %vm1525_vm15, %v10448_v37, %v6582_v63  ;;  %v4258_v15 = vrot.slane %v10819_v30, 1  ;;  %v4260_v5 = vrot.slane %v10822_v61, 1 }
 0x617   : > { %v4257_v42 = vrot.slane %v10825_v4, 1  ;;  %v6604_v9 = vpack.i.bf16 %v12721_v40, %v12720_v24 }
 0x618   : > { %3528 = vadd.xlane.f32.xlu2 %v3527_v35  ;;  %v6583_v35 = vunpack.i.h.bf16 %v6581_v0  ;;  %v10843_v52 = vsel %vm12718_vm3, %v4258_v15, %v4260_v5  ;;  %v3843_v0 = vmul.f32 %v6938_v8, %v10689_v2 }
 0x619   : > { %v10840_v57 = vsel %vm12716_vm2, %v4257_v42, %v4258_v15  ;;  %12719 = vst [vmem:[#allocation125_spill] sm:$0xff] %v10843_v52  ;;  %v3853_v15 = vand.u32 2147483648, %v10689_v2 }
 0x61a   : > { %12717 = vst [vmem:[#allocation116_spill] sm:$0xff] %v10840_v57  ;;  %v6614_v3 = vpack.i.bf16 %v10843_v52, %v10840_v57  ;;  %v4741_v50 = vsel %vm1525_vm15, %v10445_v32, %v6583_v35  ;;  %v3844_v33 = vsub.f32 1.0, %v3843_v0 }
 0x61c   : > { %v3845_v63 = vmul.f32 %v6938_v8, %v3844_v33  ;;  %v12723_v33 = vld [vmem:[#allocation113_spill] sm:$0xff] }
 0x61d   : > { %5012 = vmatmul.f32.gmra.mxu1 %v4739_v54  ;;  %5339 = vmatmul.f32.gmra.mxu0 %v4739_v54  ;;  %v6586_v54 = vpop.permute.xlu0 %6585 }
 0x61e   : > { %v6587_v7 = vunpack.i.l.bf16 %v6586_v54 }
 0x622   : > { %6625 = vrot.lane.b32.xlu0 %v6624_v25, %s7139_s23  ;;  %v12722_v25 = vld [vmem:[#allocation22_spill] sm:$0xff] }
 0x625   : > { %6610 = vrot.lane.b32.xlu1 %v6609_v21, %s7138_s15  ;;  %5015 = vmatmul.f32.gmra.mxu1 %v4740_v34  ;;  %v6588_v21 = vunpack.i.h.bf16 %v6586_v54  ;;  %v3854_v54 = vor.u32 1.1754944e-38, %v3853_v15 }
 0x626   : > { %5342 = vmatmul.f32.gmra.mxu0 %v4740_v34  ;;  %v3846_v34 = vadd.f32 %v6938_v8, %v3845_v63 }
 0x627   : > { %v4743_v35 = vsel %vm1525_vm15, %v10427_v53, %v6588_v21 }
 0x62a   : > { %2299 = vrot.lane.b32.xlu0 %v12623_v56, %s7140_s14  ;;  %v4742_v56 = vsel %vm1525_vm15, %v10424_v49, %v6587_v7 }
 0x62d   : > { %6615 = vrot.lane.b32.xlu1 %v6614_v3, %s7138_s15  ;;  %5018 = vmatmul.f32.gmra.mxu1 %v4741_v50  ;;  %v3851_v3 = vand.u32 2147483647, %v10689_v2 }
 0x62e   : > { %5345 = vmatmul.f32.gmra.mxu0 %v4741_v50  ;;  %v3850_v50 = vsel %vm3849_vm6, %v6938_v8, %v3846_v34 }
 0x62f   : > { %vm3852_vm10 = vcmp.eq.f32.partialorder %v3851_v3, 8.507059e+37 }
 0x630   : > { %6605 = vrot.lane.b32.xlu2 %v6604_v9, %s7137_s3  ;;  %v3855_v40 = vsel %vm3852_vm10, %v3854_v54, %v3850_v50  ;;  %s12920_s3 = sld [smem:[#allocation169_spill]] }
 0x635   : > { %5021 = vmatmul.f32.gmra.mxu1 %v4742_v56 }
 0x636   : > { %5348 = vmatmul.f32.gmra.mxu0 %v4742_v56  ;;  %v3856_v56 = vmul.f32 %v12723_v33, %v3855_v40  ;;  %s7072_s17 = scalar_lea.hbm %s12920_s3, 128 }
 0x638   : > { %2392 = vrot.lane.b32.xlu2 %v12722_v25, %s7141_s19  ;;  %v4084_v34 = vrot.slane %v3856_v56, 7 }
 0x63b   : > { %v3514_v5 = vpop.xlane.xlu0 %3513 }
 0x63c   : > { %v3511_v42 = vpop.xlane.xlu1 %3510  ;;  %6939 = vrcp.f32 %v3514_v5  ;;  %v3881_v21 = vand.u32 2147483647, %v3514_v5  ;;  %v3883_v2 = vand.u32 2147483648, %v3514_v5  ;;  %vm3877_vm11 = vweird.f32 %v3514_v5 }
 0x63d   : > { %5024 = vmatmul.f32.gmra.mxu1 %v4743_v35  ;;  %6941 = vrcp.f32 %v3511_v42  ;;  %v3866_v57 = vand.u32 2147483647, %v3511_v42  ;;  %v3868_v8 = vand.u32 2147483648, %v3511_v42  ;;  %vm3862_vm3 = vweird.f32 %v3511_v42 }
 0x63e   : > { %5351 = vmatmul.f32.gmra.mxu0 %v4743_v35  ;;  %vm3882_vm2 = vcmp.eq.f32.partialorder %v3881_v21, 8.507059e+37  ;;  %v3884_v50 = vor.u32 1.1754944e-38, %v3883_v2 }
 0x63f   : > { %vm3867_vm12 = vcmp.eq.f32.partialorder %v3866_v57, 8.507059e+37  ;;  %v3869_v33 = vor.u32 1.1754944e-38, %v3868_v8 }
 0x642   : > { %v3517_v24 = vpop.xlane.xlu2 %3516  ;;  %v6940_v9 = vpop.eup %6939 }
 0x643   : > { %6943 = vrcp.f32 %v3517_v24  ;;  %v6942_v0 = vpop.eup %6941  ;;  %v3873_v7 = vmul.f32 %v6940_v9, %v3514_v5  ;;  %vm3878_vm8 = vweird.f32 %v6940_v9 }
 0x644   : > { %v3858_v63 = vmul.f32 %v6942_v0, %v3511_v42  ;;  %vm3863_vm9 = vweird.f32 %v6942_v0  ;;  %vm3879_vm1 = vmor %vm3877_vm11, %vm3878_vm8  ;;  %vm3892_vm8 = vweird.f32 %v3517_v24  ;;  %vm12724_vm11 = vcmask 1040384  }
 0x645   : > { %v3874_v25 = vsub.f32 1.0, %v3873_v7  ;;  %vm3864_vm6 = vmor %vm3862_vm3, %vm3863_vm9  ;;  %v10869_v21 = vsel %vm12724_vm11, 0.0, %v4084_v34 }
 0x646   : > { %v3859_v52 = vsub.f32 1.0, %v3858_v63  ;;  %v3896_v63 = vand.u32 2147483647, %v3517_v24 }
 0x647   : > { %v3875_v22 = vmul.f32 %v6940_v9, %v3874_v25  ;;  %v3898_v25 = vand.u32 2147483648, %v3517_v24 }
 0x648   : > { %v3860_v15 = vmul.f32 %v6942_v0, %v3859_v52  ;;  %vm3897_vm9 = vcmp.eq.f32.partialorder %v3896_v63, 8.507059e+37 }
 0x649   : > { %v6944_v26 = vpop.eup %6943  ;;  %v3876_v3 = vadd.f32 %v6940_v9, %v3875_v22  ;;  %v3899_v57 = vor.u32 1.1754944e-38, %v3898_v25 }
 0x64a   : > { %v3888_v35 = vmul.f32 %v6944_v26, %v3517_v24  ;;  %v3861_v54 = vadd.f32 %v6942_v0, %v3860_v15  ;;  %vm3893_vm10 = vweird.f32 %v6944_v26  ;;  %v4262_v24 = vrot.slane %v10869_v21, 1 }
 0x64b   : > { %v3880_v7 = vsel %vm3879_vm1, %v6940_v9, %v3876_v3  ;;  %vm3894_vm7 = vmor %vm3892_vm8, %vm3893_vm10  ;;  %vm12728_vm1 = vcmask 1046528  }
 0x64c   : > { %v3889_v40 = vsub.f32 1.0, %v3888_v35  ;;  %v3885_v11 = vsel %vm3882_vm2, %v3884_v50, %v3880_v7  ;;  %v3865_v31 = vsel %vm3864_vm6, %v6942_v0, %v3861_v54  ;;  %vm12725_vm2 = vmmov %vm12724_vm11  ;;  %v12732_v54 = vld [vmem:[#allocation38_spill] sm:$0xff]  ;;  %v12733_v7 = vld [vmem:[#allocation68_spill] sm:$0xff] }
 0x64d   : > { %v3886_v52 = vmul.f32 %v10577_v12, %v3885_v11  ;;  %v3870_v22 = vsel %vm3867_vm12, %v3869_v33, %v3865_v31  ;;  %vm12726_vm3 = vmmov %vm12725_vm2 }
 0x64e   : > { %v3890_v56 = vmul.f32 %v6944_v26, %v3889_v40  ;;  %v3871_v5 = vmul.f32 %v10570_v58, %v3870_v22  ;;  %vm12730_vm12 = vmmov %vm12728_vm1 }
 0x64f   : > { %v4087_v9 = vrot.slane %v3886_v52, 7  ;;  %vm12734_vm6 = vmmov %vm12725_vm2 }
 0x650   : > { %v3891_v42 = vadd.f32 %v6944_v26, %v3890_v56  ;;  %v4085_v2 = vrot.slane %v3871_v5, 7  ;;  %vm12735_vm10 = vmmov %vm12728_vm1 }
 0x651   : > { %vm12738_vm8 = vmmov %vm12725_vm2 }
 0x652   : > { %v3895_v8 = vsel %vm3894_vm7, %v6944_v26, %v3891_v42  ;;  %v10873_v35 = vsel %vm12725_vm2, %v4084_v34, %v4085_v2  ;;  %v10876_v12 = vsel %vm12726_vm3, %v4085_v2, 0.0  ;;  %vm12727_vm7 = vmmov %vm12725_vm2 }
 0x653   : > { %v3900_v15 = vsel %vm3897_vm9, %v3899_v57, %v3895_v8  ;;  %v4263_v31 = vrot.slane %v10873_v35, 1  ;;  %v4265_v11 = vrot.slane %v10876_v12, 1  ;;  %v10882_v26 = vsel %vm12727_vm7, 0.0, %v4087_v9  ;;  %v6596_v57 = vpop.permute.xlu2 %6595  ;;  %vm12739_vm11 = vmmov %vm12728_vm1 }
 0x654   : > { %v3901_v0 = vmul.f32 %v10602_v59, %v3900_v15  ;;  %v6591_v58 = vpop.permute.xlu1 %6590  ;;  %v4267_v56 = vrot.slane %v10882_v26, 1  ;;  %v6597_v8 = vunpack.i.l.bf16 %v6596_v57 }
 0x655   : > { %v6592_v50 = vunpack.i.l.bf16 %v6591_v58  ;;  %v10885_v59 = vsel %vm12728_vm1, %v4263_v31, %v4265_v11  ;;  %v10888_v34 = vsel %vm12730_vm12, %v4262_v24, %v4263_v31  ;;  %v6593_v5 = vunpack.i.h.bf16 %v6591_v58  ;;  %v6601_v24 = vpop.permute.xlu0 %6600 }
 0x656   : > { %v4088_v3 = vrot.slane %v3901_v0, 7  ;;  %12729 = vst [vmem:[#allocation109_spill] sm:$0xff] %v10885_v59  ;;  %v6629_v40 = vpack.i.bf16 %v10885_v59, %v12732_v54  ;;  %v6619_v33 = vpack.i.bf16 %v10888_v34, %v12733_v7  ;;  %v4746_v0 = vsel %vm1525_vm15, %v10652_v44, %v6597_v8 }
 0x657   : > { %12731 = vst [vmem:[#allocation108_spill] sm:$0xff] %v10888_v34  ;;  %v4744_v63 = vsel %vm1525_vm15, %v10639_v19, %v6592_v50  ;;  %v4745_v42 = vsel %vm1525_vm15, %v10633_v41, %v6593_v5  ;;  %v6598_v31 = vunpack.i.h.bf16 %v6596_v57  ;;  %v6602_v54 = vunpack.i.l.bf16 %v6601_v24 }
 0x658   : > { %v10897_v25 = vsel %vm12734_vm6, %v4087_v9, %v4088_v3  ;;  %5027 = vmatmul.f32.gmra.mxu1 %v4744_v63  ;;  %5354 = vmatmul.f32.gmra.mxu0 %v4744_v63  ;;  %v12737_v9 = vld [vmem:[#allocation44_spill] sm:$0xff]  ;;  %v10913_v2 = vsel %vm12738_vm8, %v4088_v3, 0.0  ;;  %v12741_v3 = vld [vmem:[#allocation94_spill] sm:$0xff]  ;;  %v6603_v63 = vunpack.i.h.bf16 %v6601_v24 }
 0x659   : > { %v4268_v52 = vrot.slane %v10897_v25, 1  ;;  %6630 = vrot.lane.b32.xlu2 %v6629_v40, %s7138_s15  ;;  %6620 = vrot.lane.b32.xlu1 %v6619_v33, %s7138_s15  ;;  %v4270_v15 = vrot.slane %v10913_v2, 1  ;;  %v4747_v11 = vsel %vm1525_vm15, %v10517_v46, %v6598_v31  ;;  %v3379_v50 = vsub.f32 %v12741_v3, %v10834_v43 }
 0x65a   : > { %v4748_v7 = vsel %vm1525_vm15, %v10627_v62, %v6602_v54  ;;  %v4749_v5 = vsel %vm1525_vm15, %v10621_v20, %v6603_v63 }
 0x65b   : > { %v10904_v22 = vsel %vm12735_vm10, %v4267_v56, %v4268_v52  ;;  %v10919_v58 = vsel %vm12739_vm11, %v4268_v52, %v4270_v15  ;;  %v3440_v40 = vmul.f32 1.442695, %v3379_v50 }
 0x65c   : > { %12736 = vst [vmem:[#allocation129_spill] sm:$0xff] %v10904_v22  ;;  %4486 = vrot.lane.b32.xlu0 %v10904_v22, %s7138_s15 }
 0x65d   : > { %12740 = vst [vmem:[#allocation128_spill] sm:$0xff] %v10919_v58  ;;  %6945 = vpow2.f32 %v3440_v40 }
 0x660   : > { %5030 = vmatmul.f32.gmra.mxu1 %v4745_v42  ;;  %5357 = vmatmul.f32.gmra.mxu0 %v4745_v42 }
 0x661   : > { %2394 = vrot.lane.b32.xlu2 %v12737_v9, %s7141_s19 }
 0x663   : > { %v10929_v56 = vpop.eup %6945 }
 0x664   : > { %v3533_v57 = vsel %vm1525_vm15, %v10929_v56, 0.0 }
 0x668   : > { %5033 = vmatmul.f32.gmra.mxu1 %v4746_v0  ;;  %5360 = vmatmul.f32.gmra.mxu0 %v4746_v0 }
 0x669   : > { %4488 = vrot.lane.b32.xlu2 %v10919_v58, %s7138_s15 }
 0x670   : > { %5036 = vmatmul.f32.gmra.mxu1 %v4747_v11  ;;  %5363 = vmatmul.f32.gmra.mxu0 %v4747_v11 }
 0x678   : > { %5039 = vmatmul.f32.gmra.mxu1 %v4748_v7  ;;  %5366 = vmatmul.f32.gmra.mxu0 %v4748_v7 }
 0x679   : > { %v3523_v33 = vpop.xlane.xlu0 %3522 }
 0x67a   : > { %6947 = vrcp.f32 %v3523_v33  ;;  %v3928_v15 = vand.u32 2147483648, %v3523_v33  ;;  %v3926_v11 = vand.u32 2147483647, %v3523_v33  ;;  %vm3922_vm2 = vweird.f32 %v3523_v33 }
 0x67c   : > { %v3929_v50 = vor.u32 1.1754944e-38, %v3928_v15  ;;  %vm3927_vm7 = vcmp.eq.f32.partialorder %v3926_v11, 8.507059e+37 }
 0x67f   : > { %v3520_v52 = vpop.xlane.xlu1 %3519 }
 0x680   : > { %6949 = vrcp.f32 %v3520_v52  ;;  %5042 = vmatmul.f32.gmra.mxu1 %v4749_v5  ;;  %5369 = vmatmul.f32.gmra.mxu0 %v4749_v5  ;;  %v6948_v43 = vpop.eup %6947  ;;  %v3911_v63 = vand.u32 2147483647, %v3520_v52  ;;  %v3913_v5 = vand.u32 2147483648, %v3520_v52  ;;  %vm3907_vm12 = vweird.f32 %v3520_v52 }
 0x681   : > { %v3918_v42 = vmul.f32 %v6948_v43, %v3523_v33  ;;  %vm3923_vm9 = vweird.f32 %v6948_v43 }
 0x682   : > { %vm3924_vm3 = vmor %vm3922_vm2, %vm3923_vm9  ;;  %vm3912_vm10 = vcmp.eq.f32.partialorder %v3911_v63, 8.507059e+37  ;;  %v3914_v33 = vor.u32 1.1754944e-38, %v3913_v5 }
 0x683   : > { %v3526_v9 = vpop.xlane.xlu2 %3525  ;;  %3534 = vadd.xlane.f32.xlu1 %v3533_v57  ;;  %v3919_v8 = vsub.f32 1.0, %v3918_v42 }
 0x684   : > { %6951 = vrcp.f32 %v3526_v9  ;;  %v3943_v15 = vand.u32 2147483648, %v3526_v9  ;;  %v3941_v11 = vand.u32 2147483647, %v3526_v9  ;;  %vm3937_vm11 = vweird.f32 %v3526_v9 }
 0x685   : > { %v3920_v31 = vmul.f32 %v6948_v43, %v3919_v8 }
 0x686   : > { %v6950_v0 = vpop.eup %6949  ;;  %vm3942_vm2 = vcmp.eq.f32.partialorder %v3941_v11, 8.507059e+37 }
 0x687   : > { %v3903_v24 = vmul.f32 %v6950_v0, %v3520_v52  ;;  %v3921_v3 = vadd.f32 %v6948_v43, %v3920_v31  ;;  %vm3908_vm1 = vweird.f32 %v6950_v0  ;;  %v3944_v52 = vor.u32 1.1754944e-38, %v3943_v15 }
 0x688   : > { %vm3909_vm6 = vmor %vm3907_vm12, %vm3908_vm1 }
 0x689   : > { %v3904_v54 = vsub.f32 1.0, %v3903_v24  ;;  %v3925_v7 = vsel %vm3924_vm3, %v6948_v43, %v3921_v3  ;;  %vm12742_vm3 = vcmask 1040384  }
 0x68a   : > { %v6952_v40 = vpop.eup %6951  ;;  %v3930_v57 = vsel %vm3927_vm7, %v3929_v50, %v3925_v7  ;;  %vm12743_vm7 = vmmov %vm12742_vm3 }
 0x68b   : > { %v3529_v58 = vpop.xlane.xlu2 %3528  ;;  %v3905_v42 = vmul.f32 %v6950_v0, %v3904_v54  ;;  %v3933_v22 = vmul.f32 %v6952_v40, %v3526_v9  ;;  %v3931_v31 = vmul.f32 %v10710_v6, %v3930_v57  ;;  %vm3938_vm8 = vweird.f32 %v6952_v40  ;;  %vm12744_vm12 = vmmov %vm12742_vm3 }
 0x68c   : > { %6953 = vrcp.f32 %v3529_v58  ;;  %vm3939_vm9 = vmor %vm3937_vm11, %vm3938_vm8  ;;  %v3956_v57 = vand.u32 2147483647, %v3529_v58  ;;  %vm12745_vm11 = vcmask 1046528  }
 0x68d   : > { %v3906_v8 = vadd.f32 %v6950_v0, %v3905_v42  ;;  %v3934_v59 = vsub.f32 1.0, %v3933_v22  ;;  %v4091_v34 = vrot.slane %v3931_v31, 7 }
 0x68f   : > { %v3910_v24 = vsel %vm3909_vm6, %v6950_v0, %v3906_v8  ;;  %v3935_v43 = vmul.f32 %v6952_v40, %v3934_v59  ;;  %v3958_v0 = vand.u32 2147483648, %v3529_v58  ;;  %vm3952_vm6 = vweird.f32 %v3529_v58 }
 0x690   : > { %v3915_v3 = vsel %vm3912_vm10, %v3914_v33, %v3910_v24  ;;  %v12134_v24 = vrot.slane %v10255_v1, 2  ;;  %vm3957_vm10 = vcmp.eq.f32.partialorder %v3956_v57, 8.507059e+37 }
 0x691   : > { %v3916_v50 = vmul.f32 %v10724_v48, %v3915_v3  ;;  %v3936_v54 = vadd.f32 %v6952_v40, %v3935_v43  ;;  %v4178_v48 = vsel %vm12743_vm7, %v4091_v34, 0.0 }
 0x692   : > { %v6954_v7 = vpop.eup %6953  ;;  %v4275_v11 = vrot.slane %v4178_v48, 1 }
 0x693   : > { %v4090_v22 = vrot.slane %v3916_v50, 7  ;;  %v3940_v42 = vsel %vm3939_vm9, %v6952_v40, %v3936_v54  ;;  %v3948_v6 = vmul.f32 %v6954_v7, %v3529_v58  ;;  %vm3953_vm1 = vweird.f32 %v6954_v7  ;;  %vm12747_vm9 = vmmov %vm12745_vm11 }
 0x694   : > { %v3945_v63 = vsel %vm3942_vm2, %v3944_v52, %v3940_v42  ;;  %vm3954_vm8 = vmor %vm3952_vm6, %vm3953_vm1  ;;  %v4350_v50 = vrot.slane %v4178_v48, 2  ;;  %vm12749_vm2 = vcmask 1045504  }
 0x695   : > { %v3949_v5 = vsub.f32 1.0, %v3948_v6  ;;  %v3946_v59 = vmul.f32 %v10733_v60, %v3945_v63  ;;  %v10939_v8 = vsel %vm12742_vm3, %v4090_v22, %v4091_v34  ;;  %v10943_v33 = vsel %vm12744_vm12, 0.0, %v4090_v22  ;;  %vm12751_vm3 = vmmov %vm12749_vm2 }
 0x696   : > { %v4272_v15 = vrot.slane %v10943_v33, 1  ;;  %v4273_v60 = vrot.slane %v10939_v8, 1  ;;  %v3959_v34 = vor.u32 1.1754944e-38, %v3958_v0  ;;  %v12132_v42 = vrot.slane %v10939_v8, 2  ;;  %vm12752_vm1 = vmmov %vm12743_vm7 }
 0x697   : > { %v3950_v9 = vmul.f32 %v6954_v7, %v3949_v5  ;;  %v6611_v31 = vpop.permute.xlu1 %6610  ;;  %v4093_v3 = vrot.slane %v3946_v59, 7  ;;  %v4295_v63 = vrot.slane %v10418_v47, 2  ;;  %vm12753_vm12 = vmmov %vm12752_vm1 }
 0x698   : > { %v6612_v40 = vunpack.i.l.bf16 %v6611_v31  ;;  %v10951_v58 = vsel %vm12745_vm11, %v4272_v15, %v4273_v60  ;;  %v10954_v22 = vsel %vm12747_vm9, %v4273_v60, %v4275_v11  ;;  %v10966_v5 = vsel %vm12749_vm2, %v12132_v42, %v4350_v50  ;;  %vm12754_vm6 = vmmov %vm12747_vm9 }
 0x699   : > { %v3951_v43 = vadd.f32 %v6954_v7, %v3950_v9  ;;  %12746 = vst [vmem:[#allocation130_spill] sm:$0xff] %v10951_v58  ;;  %4490 = vrot.lane.b32.xlu0 %v10951_v58, %s7138_s15  ;;  %v6613_v57 = vunpack.i.h.bf16 %v6611_v31  ;;  %v10971_v59 = vsel %vm12751_vm3, %v12134_v24, %v4295_v63  ;;  %v10974_v48 = vsel %vm12743_vm7, 0.0, %v4093_v3  ;;  %vm12760_vm11 = vmmov %vm12749_vm2 }
 0x69a   : > { %v4750_v54 = vsel %vm1525_vm15, %v10795_v27, %v6612_v40  ;;  %12748 = vst [vmem:[#allocation148_spill] sm:$0xff] %v10954_v22  ;;  %v6654_v47 = vpack.i.bf16 %v10971_v59, %v10255_v1  ;;  %v4277_v40 = vrot.slane %v10974_v48, 1  ;;  %v4302_v11 = vrot.slane %v10448_v37, 2  ;;  %vm12762_vm9 = vmmov %vm12749_vm2 }
 0x69b   : > { %v3955_v52 = vsel %vm3954_vm8, %v6954_v7, %v3951_v43  ;;  %5045 = vmatmul.f32.gmra.mxu1 %v4750_v54  ;;  %5372 = vmatmul.f32.gmra.mxu0 %v4750_v54  ;;  %12750 = vst [vmem:[#allocation126_spill] sm:$0xff] %v10966_v5  ;;  %v4751_v31 = vsel %vm1525_vm15, %v10799_v28, %v6613_v57  ;;  %v12758_v54 = vrot.slane %v10445_v32, 2  ;;  %vm12759_vm8 = vmmov %vm12749_vm2  ;;  %v4310_v57 = vrot.slane %v10430_v45, 2 }
 0x69c   : > { %v3960_v6 = vsel %vm3957_vm10, %v3959_v34, %v3955_v52  ;;  %4492 = vrot.lane.b32.xlu1 %v10954_v22, %s7138_s15  ;;  %vm12756_vm10 = vmmov %vm12754_vm6  ;;  %v12761_v45 = vrot.slane %v10517_v46, 2 }
 0x69d   : > { %v3961_v7 = vmul.f32 %v10779_v51, %v3960_v6  ;;  %v11004_v52 = vsel %vm12759_vm8, %v4302_v11, %v12758_v54  ;;  %v12764_v54 = vld [vmem:[#allocation85_spill] sm:$0xff] }
 0x69e   : > { %v6669_v6 = vpack.i.bf16 %v11004_v52, %v10448_v37 }
 0x69f   : > { %v4094_v0 = vrot.slane %v3961_v7, 7  ;;  %v6616_v60 = vpop.permute.xlu1 %6615  ;;  %v12133_v7 = vrot.slane %v10427_v53, 2 }
 0x6a0   : > { %v6617_v50 = vunpack.i.l.bf16 %v6616_v60 }
 0x6a1   : > { %v10979_v51 = vsel %vm12752_vm1, %v4093_v3, %v4094_v0  ;;  %v10982_v9 = vsel %vm12753_vm12, %v4094_v0, 0.0  ;;  %v6618_v0 = vunpack.i.h.bf16 %v6616_v60 }
 0x6a2   : > { %v4278_v15 = vrot.slane %v10979_v51, 1  ;;  %v4280_v43 = vrot.slane %v10982_v9, 1  ;;  %v4752_v63 = vsel %vm1525_vm15, %v10825_v4, %v6617_v50  ;;  %v11032_v50 = vpop.xlane.xlu0 %3531 }
 0x6a3   : > { %5048 = vmatmul.f32.gmra.mxu1 %v4751_v31  ;;  %5375 = vmatmul.f32.gmra.mxu0 %v4751_v31  ;;  %v4753_v31 = vsel %vm1525_vm15, %v10819_v30, %v6618_v0  ;;  %6955 = vrcp.f32 %v11032_v50 }
 0x6a4   : > { %6655 = vrot.lane.b32.xlu1 %v6654_v47, %s7138_s15  ;;  %v10992_v3 = vsel %vm12754_vm6, %v4277_v40, %v4278_v15  ;;  %v10995_v34 = vsel %vm12756_vm10, %v4278_v15, %v4280_v43  ;;  %v11016_v47 = vsel %vm12760_vm11, %v12133_v7, %v4310_v57  ;;  %v4317_v40 = vrot.slane %v10652_v44, 2  ;;  %v6606_v43 = vpop.permute.xlu2 %6605 }
 0x6a5   : > { %12755 = vst [vmem:[#allocation143_spill] sm:$0xff] %v10992_v3  ;;  %4494 = vrot.lane.b32.xlu2 %v10992_v3, %s7138_s15  ;;  %4496 = vrot.lane.b32.xlu0 %v10995_v34, %s7138_s15  ;;  %v6684_v37 = vpack.i.bf16 %v11016_v47, %v10427_v53  ;;  %v6607_v0 = vunpack.i.l.bf16 %v6606_v43  ;;  %v6608_v58 = vunpack.i.h.bf16 %v6606_v43  ;;  %vm12777_vm6 = vcmask 1040384  }
 0x6a6   : > { %12757 = vst [vmem:[#allocation145_spill] sm:$0xff] %v10995_v34  ;;  %v11027_v15 = vsel %vm12762_vm9, %v4317_v40, %v12761_v45  ;;  %v12767_v34 = vld [vmem:[#allocation64_spill] sm:$0xff]  ;;  %vm12778_vm10 = vmmov %vm12777_vm6  ;;  %vm12781_vm11 = vcmask 1046528  }
 0x6a7   : > { %12763 = vst [vmem:[#allocation137_spill] sm:$0xff] %v11027_v15  ;;  %v6699_v60 = vpack.i.bf16 %v11027_v15, %v10652_v44  ;;  %vm12779_vm8 = vmmov %vm12777_vm6 }
 0x6ab   : > { %5051 = vmatmul.f32.gmra.mxu1 %v4752_v63  ;;  %5378 = vmatmul.f32.gmra.mxu0 %v4752_v63  ;;  %v12765_v63 = vld [vmem:[#allocation95_spill] sm:$0xff] }
 0x6ac   : > { %6670 = vrot.lane.b32.xlu1 %v6669_v6, %s7138_s15  ;;  %v2393_v11 = vpop.permute.xlu2 %2392  ;;  %v6228_v6 = vunpack.i.h.bf16 %v12764_v54  ;;  %v6233_v57 = vunpack.i.h.bf16 %v12765_v63 }
 0x6b3   : > { %5054 = vmatmul.f32.gmra.mxu1 %v4753_v31  ;;  %5381 = vmatmul.f32.gmra.mxu0 %v4753_v31  ;;  %v12766_v31 = vld [vmem:[#allocation158_spill] sm:$0xff] }
 0x6b4   : > { %6685 = vrot.lane.b32.xlu1 %v6684_v37, %s7138_s15  ;;  %v6626_v37 = vpop.permute.xlu0 %6625  ;;  %v2458_v42 = vsel %vm1499_vm13, %v12766_v31, %v6228_v6  ;;  %v6631_v40 = vpop.permute.xlu2 %6630 }
 0x6b5   : > { %v2490_v7 = vsel %vm523_vm0, %v2458_v42, %v6233_v57  ;;  %v6627_v22 = vunpack.i.l.bf16 %v6626_v37  ;;  %v6632_v63 = vunpack.i.l.bf16 %v6631_v40  ;;  %v12769_v57 = vld [vmem:[#allocation65_spill] sm:$0xff] }
 0x6b6   : > { %v2522_v54 = vsel %vm1516_vm14, %v2490_v7, %v6607_v0  ;;  %v6633_v0 = vunpack.i.h.bf16 %v6631_v40 }
 0x6bc   : > { %6700 = vrot.lane.b32.xlu1 %v6699_v60, %s7138_s15  ;;  %v12768_v60 = vld [vmem:[#allocation159_spill] sm:$0xff] }
 0x6bd   : > { %v2459_v3 = vsel %vm1499_vm13, %v12768_v60, %v12767_v34  ;;  %vm12772_vm13 = vcmask 916480   ;;  %v2300_v60 = vpop.permute.xlu0 %2299 }
 0x6be   : > { %v2491_v31 = vsel %vm523_vm0, %v2459_v3, %v12769_v57  ;;  %vm12773_vm0 = vmmov %vm12772_vm13 }
 0x6bf   : > { %v2523_v43 = vsel %vm1516_vm14, %v2491_v31, %v6608_v58 }
 0x6cb   : > { %v6621_v45 = vpop.permute.xlu1 %6620 }
 0x6cc   : > { %v6623_v24 = vunpack.i.h.bf16 %v6621_v45  ;;  %v6622_v44 = vunpack.i.l.bf16 %v6621_v45  ;;  %v12770_v45 = vld [vmem:[#allocation149_spill] sm:$0xff] }
 0x6cd   : > { %v12771_v15 = vunpack.i.l.bf16 %v12770_v45 }
 0x6ce   : > { %v2554_v5 = vsel %vm1525_vm15, %v2522_v54, %v6622_v44  ;;  %v4754_v6 = vsel %vm1525_vm15, %v10869_v21, %v6623_v24  ;;  %v2555_v44 = vsel %vm1525_vm15, %v2523_v43, %v6632_v63  ;;  %v6628_v24 = vunpack.i.h.bf16 %v6626_v37 }
 0x6cf   : > { %5057 = vmatmul.f32.gmra.mxu1 %v4754_v6  ;;  %5384 = vmatmul.f32.gmra.mxu0 %v4754_v6  ;;  %v2586_v42 = vsel %vm1534_vm4, %v2554_v5, %v6627_v22  ;;  %v2395_v22 = vpop.permute.xlu2 %2394  ;;  %v4755_v5 = vsel %vm1525_vm15, %v10873_v35, %v6633_v0  ;;  %v3973_v0 = vand.u32 2147483648, %v11032_v50 }
 0x6d0   : > { %v2618_v34 = vsel %vm1543_vm5, %v2586_v42, %v12771_v15  ;;  %v2587_v54 = vsel %vm1534_vm4, %v2555_v44, %v6628_v24  ;;  %v4487_v15 = vpop.permute.xlu0 %4486  ;;  %v6956_v42 = vpop.eup %6955  ;;  %vm3967_vm4 = vweird.f32 %v11032_v50  ;;  %v3971_v44 = vand.u32 2147483647, %v11032_v50 }
 0x6d1   : > { %v2650_v7 = vsel %vm12772_vm13, %v2618_v34, %v2393_v11  ;;  %v2619_v3 = vsel %vm1543_vm5, %v2587_v54, %v2300_v60  ;;  %v11060_v11 = vpop.f32.mrf.mxu1  ;;  %v4756_v37 = vsel %vm1525_vm15, %v10882_v26, %v4487_v15  ;;  %v3963_v57 = vmul.f32 %v6956_v42, %v11032_v50  ;;  %vm12782_vm13 = vmmov %vm12781_vm11 }
 0x6d2   : > { %3134 = vmatmul.f32.gmra.mxu3 %v2650_v7  ;;  %v2651_v58 = vsel %vm12773_vm0, %v2619_v3, %v2395_v22  ;;  %vm3968_vm14 = vweird.f32 %v6956_v42  ;;  %v3974_v22 = vor.u32 1.1754944e-38, %v3973_v0  ;;  %vm3972_vm2 = vcmp.eq.f32.partialorder %v3971_v44, 8.507059e+37  ;;  %v11081_v44 = vpop.f32.mrf.mxu0  ;;  %vm12785_vm0 = vmmov %vm12762_vm9 }
 0x6d3   : > { %v3964_v31 = vsub.f32 1.0, %v3963_v57  ;;  %vm3969_vm5 = vmor %vm3967_vm4, %vm3968_vm14 }
 0x6d4   : > { %vm12786_vm14 = vmmov %vm12785_vm0 }
 0x6d5   : > { %v3965_v34 = vmul.f32 %v6956_v42, %v3964_v31  ;;  %vm12788_vm4 = vmmov %vm12785_vm0 }
 0x6d7   : > { %5060 = vmatmul.f32.gmra.mxu1 %v4755_v5  ;;  %5387 = vmatmul.f32.gmra.mxu0 %v4755_v5  ;;  %v4489_v40 = vpop.permute.xlu2 %4488  ;;  %v3966_v7 = vadd.f32 %v6956_v42, %v3965_v34 }
 0x6d8   : > { %v4757_v63 = vsel %vm1525_vm15, %v10897_v25, %v4489_v40 }
 0x6d9   : > { %v11067_v6 = vpop.f32.mrf.mxu1  ;;  %v3970_v60 = vsel %vm3969_vm5, %v6956_v42, %v3966_v7  ;;  %vm12789_vm5 = vmmov %vm12785_vm0 }
 0x6da   : > { %3137 = vmatmul.f32.gmra.mxu3 %v2651_v58  ;;  %v3975_v3 = vsel %vm3972_vm2, %v3974_v22, %v3970_v60  ;;  %v4288_v22 = vrot.slane %v10229_v18, 2  ;;  %vm12792_vm2 = vmmov %vm12785_vm0 }
 0x6df   : > { %5063 = vmatmul.f32.gmra.mxu1 %v4756_v37  ;;  %5390 = vmatmul.f32.gmra.mxu0 %v4756_v37  ;;  %v3976_v37 = vmul.f32 %v10743_v16, %v3975_v3 }
 0x6e1   : > { %v11070_v45 = vpop.f32.mrf.mxu1  ;;  %v4096_v34 = vrot.slane %v3976_v37, 7 }
 0x6e2   : > { %12774 = vst [vmem:[#allocation135_spill] sm:$0xff] %v11070_v45 }
 0x6e3   : > { %v11084_v60 = vsel %vm12777_vm6, 0.0, %v4096_v34  ;;  %vm12799_vm6 = vmmov %vm12785_vm0 }
 0x6e7   : > { %5066 = vmatmul.f32.gmra.mxu1 %v4757_v63  ;;  %5393 = vmatmul.f32.gmra.mxu0 %v4757_v63 }
 0x6e9   : > { %v11075_v24 = vpop.f32.mrf.mxu1 }
 0x6ea   : > { %12775 = vst [vmem:[#allocation43_spill] sm:$0xff] %v11075_v24 }
 0x6f1   : > { %v11078_v57 = vpop.f32.mrf.mxu1 }
 0x6f2   : > { %12776 = vst [vmem:[#allocation61_spill] sm:$0xff] %v11078_v57 }
 0x6f6   : > { %v3535_v43 = vpop.xlane.xlu1 %3534 }
 0x6f7   : > { %6957 = vrcp.f32 %v3535_v43  ;;  %v3988_v15 = vand.u32 2147483648, %v3535_v43  ;;  %v3986_v63 = vand.u32 2147483647, %v3535_v43  ;;  %vm3982_vm7 = vweird.f32 %v3535_v43 }
 0x6f9   : > { %v3989_v50 = vor.u32 1.1754944e-38, %v3988_v15  ;;  %vm3987_vm12 = vcmp.eq.f32.partialorder %v3986_v63, 8.507059e+37  ;;  %v11093_v3 = vpop.f32.mrf.mxu1  ;;  %v4282_v15 = vrot.slane %v11084_v60, 1 }
 0x6fa   : > { %12780 = vst [vmem:[#allocation46_spill] sm:$0xff] %v11093_v3 }
 0x6fd   : > { %v6958_v54 = vpop.eup %6957 }
 0x6fe   : > { %v3978_v5 = vmul.f32 %v6958_v54, %v3535_v43  ;;  %vm3983_vm3 = vweird.f32 %v6958_v54 }
 0x6ff   : > { %vm3984_vm1 = vmor %vm3982_vm7, %vm3983_vm3 }
 0x700   : > { %v3979_v58 = vsub.f32 1.0, %v3978_v5  ;;  %vm12794_vm3 = vmmov %vm12785_vm0 }
 0x701   : > { %vm12795_vm7 = vmmov %vm12785_vm0 }
 0x702   : > { %v3980_v40 = vmul.f32 %v6958_v54, %v3979_v58  ;;  %v4287_v58 = vrot.slane %v10239_v17, 2 }
 0x704   : > { %v3981_v31 = vadd.f32 %v6958_v54, %v3980_v40 }
 0x706   : > { %v3985_v42 = vsel %vm3984_vm1, %v6958_v54, %v3981_v31  ;;  %v11105_v31 = vsel %vm12762_vm9, %v4287_v58, %v4288_v22  ;;  %v12784_v58 = vrot.slane %v10255_v1, 2  ;;  %v4298_v1 = vrot.slane %v10410_v14, 2  ;;  %vm12796_vm1 = vmmov %vm12785_vm0 }
 0x707   : > { %v3990_v7 = vsel %vm3987_vm12, %v3989_v50, %v3985_v42  ;;  %vm12798_vm12 = vmmov %vm12785_vm0 }
 0x708   : > { %v3991_v0 = vmul.f32 %v10929_v56, %v3990_v7  ;;  %v4292_v7 = vrot.slane %v10398_v29, 2  ;;  %vm12803_vm9 = vmmov %vm12785_vm0 }
 0x70a   : > { %v4097_v16 = vrot.slane %v3991_v0, 7  ;;  %v12783_v0 = vld [vmem:[#allocation92_spill] sm:$0xff] }
 0x70b   : > { %v4491_v37 = vpop.permute.xlu0 %4490 }
 0x70c   : > { %v11088_v5 = vsel %vm12778_vm10, %v4096_v34, %v4097_v16  ;;  %v11091_v43 = vsel %vm12779_vm8, %v4097_v16, 0.0  ;;  %v4758_v40 = vsel %vm1525_vm15, %v10943_v33, %v4491_v37  ;;  %v4290_v16 = vrot.slane %v12783_v0, 2  ;;  %v4495_v0 = vpop.permute.xlu2 %4494  ;;  %vm12800_vm10 = vmmov %vm12785_vm0 }
 0x70d   : > { %v4283_v54 = vrot.slane %v11088_v5, 1  ;;  %v4285_v56 = vrot.slane %v11091_v43, 1  ;;  %5069 = vmatmul.f32.gmra.mxu1 %v4758_v40  ;;  %5396 = vmatmul.f32.gmra.mxu0 %v4758_v40  ;;  %vm12801_vm8 = vmmov %vm12785_vm0 }
 0x70e   : > { %v11126_v37 = vsel %vm12786_vm14, %v4288_v22, %v4290_v16  ;;  %v4300_v22 = vrot.slane %v10413_v23, 2  ;;  %vm12809_vm14 = vmmov %vm12785_vm0 }
 0x70f   : > { %v11102_v63 = vsel %vm12781_vm11, %v4283_v54, %v4285_v56  ;;  %v11108_v50 = vsel %vm12782_vm13, %v4282_v15, %v4283_v54  ;;  %v11118_v56 = vpop.f32.mrf.mxu0  ;;  %v4493_v54 = vpop.permute.xlu1 %4492  ;;  %v11123_v15 = vsel %vm12785_vm0, %v4292_v7, %v12784_v58  ;;  %v4297_v7 = vrot.slane %v10401_v13, 2  ;;  %vm12802_vm11 = vmmov %vm12785_vm0 }
 0x710   : > { %v6639_v34 = vpack.i.bf16 %v11102_v63, %v11105_v31  ;;  %v6634_v42 = vpack.i.bf16 %v10239_v17, %v11108_v50  ;;  %v11128_v17 = vpop.f32.mrf.mxu1  ;;  %v4759_v40 = vsel %vm1525_vm15, %v10939_v8, %v4493_v54  ;;  %v11142_v16 = vsel %vm12788_vm4, %v4298_v1, %v4300_v22  ;;  %vm12806_vm13 = vmmov %vm12785_vm0 }
 0x711   : > { %12787 = vst [vmem:[#allocation106_spill] sm:$0xff] %v11128_v17  ;;  %v11145_v54 = vsel %vm12789_vm5, %v4297_v7, %v4298_v1  ;;  %v6664_v58 = vpack.i.bf16 %v11142_v16, %v10410_v14  ;;  %v12791_v1 = vrot.slane %v10427_v53, 2  ;;  %v4315_v53 = vrot.slane %v10636_v38, 2  ;;  %vm12813_vm4 = vmmov %vm12785_vm0 }
 0x712   : > { %6640 = vrot.lane.b32.xlu0 %v6639_v34, %s7138_s15  ;;  %6635 = vrot.lane.b32.xlu2 %v6634_v42, %s7138_s15  ;;  %v6649_v34 = vpack.i.bf16 %v11123_v15, %v10398_v29  ;;  %v6644_v42 = vpack.i.bf16 %v11126_v37, %v10229_v18  ;;  %v4760_v18 = vsel %vm1525_vm15, %v10974_v48, %v4495_v0  ;;  %vm12815_vm5 = vmmov %vm12785_vm0 }
 0x713   : > { %v6659_v23 = vpack.i.bf16 %v11145_v54, %v10401_v13  ;;  %v6674_v0 = vpack.i.bf16 %v10482_v10, %v10445_v32 }
 0x715   : > { %5072 = vmatmul.f32.gmra.mxu1 %v4759_v40  ;;  %5399 = vmatmul.f32.gmra.mxu0 %v4759_v40 }
 0x717   : > { %v11147_v29 = vpop.f32.mrf.mxu0 }
 0x718   : > { %v11155_v40 = vpop.f32.mrf.mxu1 }
 0x719   : > { %12790 = vst [vmem:[#allocation39_spill] sm:$0xff] %v11155_v40 }
 0x71a   : > { %6650 = vrot.lane.b32.xlu0 %v6649_v34, %s7138_s15  ;;  %6645 = vrot.lane.b32.xlu2 %v6644_v42, %s7138_s15  ;;  %v4307_v34 = vrot.slane %v10424_v49, 2  ;;  %v4497_v42 = vpop.permute.xlu0 %4496 }
 0x71b   : > { %v4761_v14 = vsel %vm1525_vm15, %v10979_v51, %v4497_v42  ;;  %v4323_v42 = vrot.slane %v10621_v20, 2 }
 0x71c   : > { %v11163_v7 = vsel %vm12792_vm2, %v4307_v34, %v12791_v1  ;;  %v4322_v1 = vrot.slane %v10627_v62, 2  ;;  %vm12817_vm2 = vmmov %vm12785_vm0 }
 0x71d   : > { %5075 = vmatmul.f32.gmra.mxu1 %v4760_v18  ;;  %5402 = vmatmul.f32.gmra.mxu0 %v4760_v18  ;;  %v6679_v13 = vpack.i.bf16 %v11163_v7, %v10424_v49  ;;  %v4313_v18 = vrot.slane %v10633_v41, 2 }
 0x71f   : > { %v11167_v22 = vpop.f32.mrf.mxu0  ;;  %v11181_v34 = vsel %vm12794_vm3, %v4313_v18, %v4315_v53  ;;  %vm12839_vm3 = vmmov %vm12785_vm0 }
 0x720   : > { %12793 = vst [vmem:[#allocation70_spill] sm:$0xff] %v11167_v22  ;;  %v6694_v32 = vpack.i.bf16 %v11181_v34, %v10633_v41  ;;  %v12797_v41 = vld [vmem:[#allocation140_spill] sm:$0xff] }
 0x722   : > { %6665 = vrot.lane.b32.xlu0 %v6664_v58, %s7138_s15  ;;  %6660 = vrot.lane.b32.xlu2 %v6659_v23, %s7138_s15  ;;  %v11177_v58 = vpop.f32.mrf.mxu1  ;;  %v4312_v23 = vrot.slane %v10639_v19, 2 }
 0x724   : > { %v11184_v49 = vsel %vm12795_vm7, %v4312_v23, %v4313_v18  ;;  %v6704_v18 = vpack.i.bf16 %v12797_v41, %v10517_v46  ;;  %vm12842_vm7 = vmmov %vm12785_vm0 }
 0x725   : > { %5078 = vmatmul.f32.gmra.mxu1 %v4761_v14  ;;  %5405 = vmatmul.f32.gmra.mxu0 %v4761_v14  ;;  %v6689_v38 = vpack.i.bf16 %v11184_v49, %v10639_v19  ;;  %v4325_v19 = vrot.slane %v10624_v39, 2 }
 0x727   : > { %v11207_v53 = vsel %vm12798_vm12, %v4323_v42, %v4325_v19  ;;  %v4333_v19 = vrot.slane %v10819_v30, 2  ;;  %v11275_v3 = vpop.f32.mrf.mxu0 }
 0x728   : > { %12805 = vst [vmem:[#allocation83_spill] sm:$0xff] %v11275_v3 }
 0x72a   : > { %6680 = vrot.lane.b32.xlu0 %v6679_v13, %s7138_s15  ;;  %6675 = vrot.lane.b32.xlu2 %v6674_v0, %s7138_s15  ;;  %v11194_v14 = vpop.f32.mrf.mxu1  ;;  %v11197_v13 = vsel %vm12796_vm1, %v4322_v1, %v4323_v42  ;;  %v4330_v42 = vrot.slane %v10803_v36, 2 }
 0x72b   : > { %v6709_v0 = vpack.i.bf16 %v11197_v13, %v10627_v62  ;;  %v4328_v62 = vrot.slane %v10799_v28, 2 }
 0x732   : > { %6695 = vrot.lane.b32.xlu0 %v6694_v32, %s7138_s15  ;;  %6690 = vrot.lane.b32.xlu2 %v6689_v38, %s7138_s15  ;;  %v11209_v23 = vpop.f32.mrf.mxu1  ;;  %v6714_v32 = vpack.i.bf16 %v11207_v53, %v10621_v20  ;;  %v4327_v38 = vrot.slane %v10795_v27, 2  ;;  %v11226_v20 = vsel %vm12800_vm10, %v4328_v62, %v4330_v42 }
 0x734   : > { %v11217_v46 = vsel %vm12799_vm6, %v4327_v38, %v4328_v62 }
 0x735   : > { %v6719_v39 = vpack.i.bf16 %v11217_v46, %v10795_v27  ;;  %v4332_v27 = vrot.slane %v10825_v4, 2 }
 0x737   : > { %v11236_v38 = vsel %vm12801_vm8, %v4332_v27, %v4333_v19 }
 0x73a   : > { %6710 = vrot.lane.b32.xlu0 %v6709_v0, %s7138_s15  ;;  %6705 = vrot.lane.b32.xlu2 %v6704_v18, %s7138_s15  ;;  %v11221_v1 = vpop.f32.mrf.mxu1  ;;  %v6724_v0 = vpack.i.bf16 %v11226_v20, %v10799_v28  ;;  %v6729_v28 = vpack.i.bf16 %v11236_v38, %v10825_v4 }
 0x742   : > { %6715 = vrot.lane.b32.xlu0 %v6714_v32, %s7138_s15  ;;  %v11230_v18 = vpop.f32.mrf.mxu1 }
 0x74a   : > { %6720 = vrot.lane.b32.xlu0 %v6719_v39, %s7138_s15  ;;  %v4335_v39 = vrot.slane %v10822_v61, 2  ;;  %v11247_v42 = vpop.f32.mrf.mxu1 }
 0x74c   : > { %v11250_v27 = vsel %vm12802_vm11, %v4333_v19, %v4335_v39 }
 0x752   : > { %6725 = vrot.lane.b32.xlu0 %v6724_v0, %s7138_s15  ;;  %v11260_v61 = vpop.f32.mrf.mxu1 }
 0x755   : > { %v3135_v32 = vpop.f32.mrf.mxu3 }
 0x756   : > { %v11239_v36 = vadd.f32 %v11081_v44, %v3135_v32  ;;  %v6734_v32 = vpack.i.bf16 %v11250_v27, %v10819_v30 }
 0x758   : > { %v3344_v62 = vsel %vm1525_vm15, %v11239_v36, -inf }
 0x759   : > { %3345 = vmax.xlane.f32.xlu1 %v3344_v62  ;;  %v4338_v62 = vrot.slane %v10873_v35, 2 }
 0x75a   : > { %6730 = vrot.lane.b32.xlu0 %v6729_v28, %s7138_s15  ;;  %v4337_v28 = vrot.slane %v10869_v21, 2 }
 0x75d   : > { %v3138_v0 = vpop.f32.mrf.mxu3 }
 0x75e   : > { %v11253_v44 = vadd.f32 %v11118_v56, %v3138_v0  ;;  %v11265_v56 = vsel %vm12803_vm9, %v4337_v28, %v4338_v62  ;;  %v11267_v0 = vpop.f32.mrf.mxu1  ;;  %v4340_v28 = vrot.slane %v10876_v12, 2  ;;  %v4342_v12 = vrot.slane %v10882_v26, 2 }
 0x75f   : > { %v6739_v17 = vpack.i.bf16 %v11265_v56, %v10869_v21 }
 0x760   : > { %v3347_v4 = vsel %vm1525_vm15, %v11253_v44, -inf  ;;  %v11280_v24 = vsel %vm12806_vm13, %v4338_v62, %v4340_v28 }
 0x761   : > { %v6744_v21 = vpack.i.bf16 %v11280_v24, %v10873_v35 }
 0x762   : > { %6735 = vrot.lane.b32.xlu0 %v6734_v32, %s7138_s15  ;;  %v12804_v32 = vld [vmem:[#allocation23_spill] sm:$0xff] }
 0x763   : > { %3348 = vmax.xlane.f32.xlu2 %v3347_v4 }
 0x76c   : > { %v6636_v19 = vpop.permute.xlu2 %6635 }
 0x76d   : > { %v6638_v39 = vunpack.i.h.bf16 %v6636_v19  ;;  %v6637_v40 = vunpack.i.l.bf16 %v6636_v19 }
 0x76f   : > { %v4762_v30 = vsel %vm1525_vm15, %v11084_v60, %v6637_v40  ;;  %v4764_v4 = vsel %vm1525_vm15, %v12804_v32, %v6638_v39  ;;  %v12807_v40 = vld [vmem:[#allocation88_spill] sm:$0xff] }
 0x770   : > { %5081 = vmatmul.f32.gmra.mxu1 %v4762_v30  ;;  %5104 = vmatmul.f32.vlgmr.msra.gmra.mxu2 %v4764_v4  ;;  %v11284_v4 = vpop.f32.mrf.mxu1 }
 0x771   : > { %5408 = vmatmul.f32.gmra.mxu0 %v4762_v30  ;;  %v4343_v30 = vrot.slane %v10897_v25, 2 }
 0x772   : > { %6740 = vrot.lane.b32.xlu1 %v6739_v17, %s7138_s15 }
 0x773   : > { %v11292_v17 = vsel %vm12785_vm0, %v4342_v12, %v4343_v30  ;;  %v12810_v12 = vld [vmem:[#allocation117_spill] sm:$0xff]  ;;  %vm12873_vm0 = vcmask 1040384  }
 0x774   : > { %v6646_v19 = vpop.permute.xlu2 %6645  ;;  %v6749_v62 = vpack.i.bf16 %v11292_v17, %v10882_v26  ;;  %v11307_v26 = vpop.f32.mrf.mxu0 }
 0x775   : > { %v6647_v57 = vunpack.i.l.bf16 %v6646_v19  ;;  %12811 = vst [vmem:[#allocation152_spill] sm:$0xff] %v11307_v26 }
 0x777   : > { %v4765_v39 = vsel %vm1525_vm15, %v12807_v40, %v6647_v57  ;;  %v4345_v57 = vrot.slane %v10913_v2, 2 }
 0x778   : > { %5107 = vmatmul.f32.gmra.mxu2 %v4765_v39  ;;  %v11297_v28 = vpop.f32.mrf.mxu1 }
 0x779   : > { %12808 = vst [vmem:[#allocation48_spill] sm:$0xff] %v11297_v28  ;;  %v11301_v45 = vsel %vm12809_vm14, %v4343_v30, %v4345_v57  ;;  %v6648_v30 = vunpack.i.h.bf16 %v6646_v19  ;;  %v12812_v28 = vrot.slane %v10939_v8, 2  ;;  %vm12874_vm14 = vmmov %vm12873_vm0 }
 0x77a   : > { %v6754_v2 = vpack.i.bf16 %v11301_v45, %v10897_v25 }
 0x77b   : > { %6745 = vrot.lane.b32.xlu2 %v6744_v21, %s7138_s15 }
 0x783   : > { %6750 = vrot.lane.b32.xlu2 %v6749_v62, %s7138_s15  ;;  %v4347_v62 = vrot.slane %v10943_v33, 2 }
 0x784   : > { %v6641_v39 = vpop.permute.xlu0 %6640 }
 0x785   : > { %v6643_v35 = vunpack.i.h.bf16 %v6641_v39  ;;  %v6642_v3 = vunpack.i.l.bf16 %v6641_v39  ;;  %v11312_v39 = vpop.f32.mrf.mxu1 }
 0x787   : > { %v4763_v21 = vsel %vm1525_vm15, %v11088_v5, %v6643_v35  ;;  %v4796_v22 = vsel %vm1525_vm15, %v12810_v12, %v6642_v3  ;;  %v11318_v3 = vsel %vm12813_vm4, %v4347_v62, %v12812_v28  ;;  %v6656_v12 = vpop.permute.xlu1 %6655  ;;  %vm12875_vm4 = vmmov %vm12873_vm0 }
 0x788   : > { %5084 = vmatmul.f32.gmra.mxu1 %v4763_v21  ;;  %5217 = vmatmul.f32.vlgmr.msra.gmra.mxu3 %v4796_v22  ;;  %v6759_v19 = vpack.i.bf16 %v11318_v3, %v10943_v33  ;;  %v6657_v26 = vunpack.i.l.bf16 %v6656_v12  ;;  %v6661_v33 = vpop.permute.xlu2 %6660 }
 0x789   : > { %5411 = vmatmul.f32.gmra.mxu0 %v4763_v21  ;;  %v12814_v21 = vld [vmem:[#allocation118_spill] sm:$0xff] }
 0x78a   : > { %v4797_v25 = vsel %vm1525_vm15, %v12814_v21, %v6648_v30 }
 0x78b   : > { %6755 = vrot.lane.b32.xlu2 %v6754_v2, %s7138_s15  ;;  %v4353_v2 = vrot.slane %v10979_v51, 2 }
 0x78c   : > { %v6651_v57 = vpop.permute.xlu0 %6650 }
 0x78d   : > { %v6652_v35 = vunpack.i.l.bf16 %v6651_v57  ;;  %v6653_v28 = vunpack.i.h.bf16 %v6651_v57  ;;  %v11331_v62 = vpop.f32.mrf.mxu1 }
 0x78f   : > { %v4766_v22 = vsel %vm1525_vm15, %v11105_v31, %v6652_v35  ;;  %v4352_v31 = vrot.slane %v10974_v48, 2  ;;  %v4767_v35 = vsel %vm1525_vm15, %v11126_v37, %v6657_v26 }
 0x790   : > { %5110 = vmatmul.f32.gmra.mxu2 %v4766_v22  ;;  %5220 = vmatmul.f32.gmra.mxu3 %v4797_v25  ;;  %v12816_v22 = vld [vmem:[#allocation91_spill] sm:$0xff]  ;;  %v4355_v25 = vrot.slane %v10982_v9, 2  ;;  %v6663_v9 = vunpack.i.h.bf16 %v6661_v33 }
 0x791   : > { %5896 = vmatmul.msk.f32.vlgmr.msra.gmra.mxu1 %vm1525_vm15, %v11123_v15  ;;  %v11334_v30 = vsel %vm12815_vm5, %v4352_v31, %v4353_v2  ;;  %v4798_v21 = vsel %vm1525_vm15, %v12816_v22, %v6653_v28  ;;  %v6662_v31 = vunpack.i.l.bf16 %v6661_v33  ;;  %vm12876_vm5 = vcmask 1046528  }
 0x792   : > { %v6769_v57 = vpack.i.bf16 %v11334_v30, %v10974_v48  ;;  %v11347_v37 = vsel %vm12817_vm2, %v4353_v2, %v4355_v25  ;;  %v6671_v25 = vpop.permute.xlu1 %6670 }
 0x793   : > { %6760 = vrot.lane.b32.xlu2 %v6759_v19, %s7138_s15  ;;  %v6658_v19 = vunpack.i.h.bf16 %v6656_v12  ;;  %v4768_v28 = vsel %vm1525_vm15, %v11123_v15, %v6662_v31  ;;  %v6774_v48 = vpack.i.bf16 %v11347_v37, %v10979_v51  ;;  %v12820_v15 = vld [vmem:[#allocation136_spill] sm:$0xff]  ;;  %v6672_v31 = vunpack.i.l.bf16 %v6671_v25 }
 0x795   : > { %v11349_v26 = vpop.f32.mrf.mxu1  ;;  %v4770_v33 = vsel %vm1525_vm15, %v11145_v54, %v6672_v31 }
 0x796   : > { %12818 = vst [vmem:[#allocation41_spill] sm:$0xff] %v11349_v26 }
 0x798   : > { %5113 = vmatmul.f32.gmra.mxu2 %v4767_v35  ;;  %5223 = vmatmul.f32.gmra.mxu3 %v4798_v21  ;;  %v12819_v35 = vld [vmem:[#allocation99_spill] sm:$0xff]  ;;  %v6666_v21 = vpop.permute.xlu0 %6665 }
 0x799   : > { %5897 = vmatmul.msk.f32.gmra.mxu1 %vm1525_vm15, %v10971_v59  ;;  %v4799_v22 = vsel %vm1525_vm15, %v12819_v35, %v6658_v19  ;;  %v6667_v12 = vunpack.i.l.bf16 %v6666_v21  ;;  %v6668_v51 = vunpack.i.h.bf16 %v6666_v21  ;;  %v12824_v21 = vld [vmem:[#allocation101_spill] sm:$0xff] }
 0x79b   : > { %6770 = vrot.lane.b32.xlu2 %v6769_v57, %s7138_s15  ;;  %v4769_v2 = vsel %vm1525_vm15, %v10971_v59, %v6667_v12  ;;  %v4800_v57 = vsel %vm1525_vm15, %v12820_v15, %v6663_v9  ;;  %v6676_v59 = vpop.permute.xlu2 %6675  ;;  %v6686_v15 = vpop.permute.xlu1 %6685 }
 0x79c   : > { %v6677_v9 = vunpack.i.l.bf16 %v6676_v59  ;;  %v6678_v31 = vunpack.i.h.bf16 %v6676_v59 }
 0x79d   : > { %v11364_v19 = vpop.f32.mrf.mxu1 }
 0x79e   : > { %12821 = vst [vmem:[#allocation50_spill] sm:$0xff] %v11364_v19  ;;  %v4771_v12 = vsel %vm1525_vm15, %v11142_v16, %v6677_v9 }
 0x7a0   : > { %5116 = vmatmul.f32.gmra.mxu2 %v4768_v28  ;;  %5226 = vmatmul.f32.gmra.mxu3 %v4799_v22  ;;  %v12822_v28 = vld [vmem:[#allocation82_spill] sm:$0xff] }
 0x7a1   : > { %5898 = vmatmul.msk.f32.gmra.mxu1 %vm1525_vm15, %v11145_v54  ;;  %v4801_v35 = vsel %vm1525_vm15, %v12822_v28, %v6668_v51  ;;  %v6681_v54 = vpop.permute.xlu0 %6680  ;;  %v6687_v28 = vunpack.i.l.bf16 %v6686_v15 }
 0x7a2   : > { %v6682_v51 = vunpack.i.l.bf16 %v6681_v54 }
 0x7a3   : > { %6775 = vrot.lane.b32.xlu2 %v6774_v48, %s7138_s15  ;;  %v6673_v48 = vunpack.i.h.bf16 %v6671_v25  ;;  %v6691_v9 = vpop.permute.xlu2 %6690  ;;  %v4773_v59 = vsel %vm1525_vm15, %v10482_v10, %v6687_v28  ;;  %v12830_v28 = vld [vmem:[#allocation102_spill] sm:$0xff] }
 0x7a4   : > { %v4772_v25 = vsel %vm1525_vm15, %v11004_v52, %v6682_v51 }
 0x7a5   : > { %v11372_v22 = vpop.f32.mrf.mxu1 }
 0x7a6   : > { %12823 = vst [vmem:[#allocation37_spill] sm:$0xff] %v11372_v22 }
 0x7a8   : > { %5119 = vmatmul.f32.gmra.mxu2 %v4769_v2  ;;  %5229 = vmatmul.f32.gmra.mxu3 %v4800_v57  ;;  %v4802_v2 = vsel %vm1525_vm15, %v12824_v21, %v6673_v48  ;;  %v6701_v48 = vpop.permute.xlu1 %6700  ;;  %v12828_v21 = vld [vmem:[#allocation81_spill] sm:$0xff] }
 0x7a9   : > { %5899 = vmatmul.msk.f32.gmra.mxu1 %vm1525_vm15, %v11142_v16 }
 0x7ad   : > { %v11382_v57 = vpop.f32.mrf.mxu1 }
 0x7ae   : > { %12825 = vst [vmem:[#allocation151_spill] sm:$0xff] %v11382_v57 }
 0x7b0   : > { %5122 = vmatmul.f32.gmra.mxu2 %v4770_v33  ;;  %5232 = vmatmul.f32.gmra.mxu3 %v4801_v35  ;;  %v12826_v33 = vld [vmem:[#allocation103_spill] sm:$0xff]  ;;  %v6683_v35 = vunpack.i.h.bf16 %v6681_v54 }
 0x7b1   : > { %5900 = vmatmul.msk.f32.gmra.mxu1 %vm1525_vm15, %v11004_v52  ;;  %v4803_v16 = vsel %vm1525_vm15, %v12826_v33, %v6678_v31  ;;  %v6692_v31 = vunpack.i.l.bf16 %v6691_v9 }
 0x7b2   : > { %v4804_v52 = vsel %vm1525_vm15, %v12828_v21, %v6683_v35 }
 0x7b8   : > { %5125 = vmatmul.f32.gmra.mxu2 %v4771_v12  ;;  %5235 = vmatmul.f32.gmra.mxu3 %v4802_v2  ;;  %v11390_v12 = vpop.f32.mrf.mxu1  ;;  %v6688_v2 = vunpack.i.h.bf16 %v6686_v15  ;;  %v6693_v15 = vunpack.i.h.bf16 %v6691_v9 }
 0x7b9   : > { %5901 = vmatmul.msk.f32.gmra.mxu1 %vm1525_vm15, %v10482_v10  ;;  %12827 = vst [vmem:[#allocation155_spill] sm:$0xff] %v11390_v12  ;;  %v4774_v10 = vsel %vm1525_vm15, %v11163_v7, %v6692_v31 }
 0x7ba   : > { %v4805_v35 = vsel %vm1525_vm15, %v12830_v28, %v6688_v2  ;;  %v4806_v2 = vsel %vm1525_vm15, %v10659_v55, %v6693_v15  ;;  %v12832_v28 = vld [vmem:[#allocation98_spill] sm:$0xff] }
 0x7c0   : > { %5128 = vmatmul.f32.gmra.mxu2 %v4772_v25  ;;  %5238 = vmatmul.f32.gmra.mxu3 %v4803_v16  ;;  %v6706_v25 = vpop.permute.xlu2 %6705  ;;  %v11399_v33 = vpop.f32.mrf.mxu1 }
 0x7c1   : > { %5902 = vmatmul.msk.f32.gmra.mxu1 %vm1525_vm15, %v11163_v7  ;;  %12829 = vst [vmem:[#allocation52_spill] sm:$0xff] %v11399_v33 }
 0x7c8   : > { %5131 = vmatmul.f32.gmra.mxu2 %v4773_v59  ;;  %5241 = vmatmul.f32.gmra.mxu3 %v4804_v52  ;;  %v6696_v59 = vpop.permute.xlu0 %6695 }
 0x7c9   : > { %5903 = vmatmul.msk.f32.gmra.mxu1 %vm1525_vm15, %v11016_v47  ;;  %v6697_v21 = vunpack.i.l.bf16 %v6696_v59 }
 0x7cb   : > { %v4775_v7 = vsel %vm1525_vm15, %v11016_v47, %v6697_v21  ;;  %v12834_v21 = vld [vmem:[#allocation137_spill] sm:$0xff] }
 0x7cc   : > { %v3346_v51 = vpop.xlane.xlu1 %3345 }
 0x7cd   : > { %v3380_v54 = vsub.f32 %v11239_v36, %v3346_v51  ;;  %v11409_v51 = vpop.f32.mrf.mxu1 }
 0x7ce   : > { %12831 = vst [vmem:[#allocation139_spill] sm:$0xff] %v11409_v51 }
 0x7cf   : > { %v3442_v16 = vmul.f32 1.442695, %v3380_v54 }
 0x7d0   : > { %5134 = vmatmul.f32.gmra.mxu2 %v4774_v10  ;;  %5244 = vmatmul.f32.gmra.mxu3 %v4805_v35  ;;  %v6698_v10 = vunpack.i.h.bf16 %v6696_v59 }
 0x7d1   : > { %6959 = vpow2.f32 %v3442_v16  ;;  %5904 = vmatmul.msk.f32.gmra.mxu1 %vm1525_vm15, %v11184_v49  ;;  %v6702_v16 = vunpack.i.l.bf16 %v6701_v48 }
 0x7d2   : > { %v4807_v55 = vsel %vm1525_vm15, %v12832_v28, %v6698_v10  ;;  %v4358_v28 = vrot.slane %v11088_v5, 2 }
 0x7d3   : > { %v4776_v47 = vsel %vm1525_vm15, %v11184_v49, %v6702_v16 }
 0x7d5   : > { %v11426_v15 = vpop.f32.mrf.mxu1 }
 0x7d6   : > { %v3349_v36 = vpop.xlane.xlu2 %3348  ;;  %12833 = vst [vmem:[#allocation36_spill] sm:$0xff] %v11426_v15 }
 0x7d7   : > { %v11407_v52 = vpop.eup %6959  ;;  %v3381_v54 = vsub.f32 %v11253_v44, %v3349_v36  ;;  %v6711_v44 = vpop.permute.xlu0 %6710  ;;  %v6703_v36 = vunpack.i.h.bf16 %v6701_v48  ;;  %v12837_v48 = vld [vmem:[#allocation126_spill] sm:$0xff] }
 0x7d8   : > { %5137 = vmatmul.f32.gmra.mxu2 %v4775_v7  ;;  %5247 = vmatmul.f32.gmra.mxu3 %v4806_v2  ;;  %v3536_v31 = vsel %vm1525_vm15, %v11407_v52, 0.0  ;;  %v12835_v7 = vld [vmem:[#allocation105_spill] sm:$0xff]  ;;  %v6712_v10 = vunpack.i.l.bf16 %v6711_v44 }
 0x7d9   : > { %v3444_v9 = vmul.f32 1.442695, %v3381_v54  ;;  %5905 = vmatmul.msk.f32.gmra.mxu1 %vm1525_vm15, %v11181_v34  ;;  %3537 = vadd.xlane.f32.xlu0 %v3536_v31  ;;  %v6707_v54 = vunpack.i.l.bf16 %v6706_v25  ;;  %v4808_v2 = vsel %vm1525_vm15, %v12835_v7, %v6703_v36 }
 0x7db   : > { %6961 = vpow2.f32 %v3444_v9  ;;  %v4777_v49 = vsel %vm1525_vm15, %v11181_v34, %v6707_v54  ;;  %v6708_v9 = vunpack.i.h.bf16 %v6706_v25  ;;  %v4357_v34 = vrot.slane %v11084_v60, 2 }
 0x7dc   : > { %v6713_v54 = vunpack.i.h.bf16 %v6711_v44 }
 0x7dd   : > { %v11438_v16 = vpop.f32.mrf.mxu1  ;;  %v11450_v25 = vsel %vm12839_vm3, %v4357_v34, %v4358_v28  ;;  %vm12877_vm3 = vmmov %vm12876_vm5 }
 0x7de   : > { %12836 = vst [vmem:[#allocation55_spill] sm:$0xff] %v11438_v16  ;;  %v6779_v7 = vpack.i.bf16 %v11450_v25, %v11084_v60 }
 0x7df   : > { %v6716_v31 = vpop.permute.xlu0 %6715 }
 0x7e0   : > { %5140 = vmatmul.f32.gmra.mxu2 %v4776_v47  ;;  %5250 = vmatmul.f32.gmra.mxu3 %v4807_v55  ;;  %v6764_v47 = vpack.i.bf16 %v12837_v48, %v10939_v8  ;;  %v4778_v55 = vsel %vm1525_vm15, %v12834_v21, %v6712_v10  ;;  %v12841_v10 = vld [vmem:[#allocation147_spill] sm:$0xff] }
 0x7e1   : > { %v11424_v35 = vpop.eup %6961  ;;  %5906 = vmatmul.msk.f32.gmra.mxu1 %vm1525_vm15, %v12834_v21 }
 0x7e2   : > { %v3539_v59 = vsel %vm1525_vm15, %v11424_v35, 0.0 }
 0x7e3   : > { %3540 = vadd.xlane.f32.xlu1 %v3539_v59  ;;  %v12838_v59 = vld [vmem:[#allocation146_spill] sm:$0xff] }
 0x7e4   : > { %v4809_v36 = vsel %vm1525_vm15, %v12838_v59, %v6708_v9 }
 0x7e5   : > { %v11457_v21 = vpop.f32.mrf.mxu1 }
 0x7e6   : > { %12840 = vst [vmem:[#allocation53_spill] sm:$0xff] %v11457_v21 }
 0x7e7   : > { %v6721_v8 = vpop.permute.xlu0 %6720 }
 0x7e8   : > { %5143 = vmatmul.f32.gmra.mxu2 %v4777_v49  ;;  %5253 = vmatmul.f32.gmra.mxu3 %v4808_v2  ;;  %v6717_v49 = vunpack.i.l.bf16 %v6716_v31  ;;  %v4360_v2 = vrot.slane %v11091_v43, 2  ;;  %v6718_v43 = vunpack.i.h.bf16 %v6716_v31  ;;  %v6722_v44 = vunpack.i.l.bf16 %v6721_v8 }
 0x7e9   : > { %5907 = vmatmul.msk.f32.gmra.mxu1 %vm1525_vm15, %v12797_v41 }
 0x7ea   : > { %v4779_v9 = vsel %vm1525_vm15, %v12797_v41, %v6717_v49  ;;  %v11465_v34 = vsel %vm12842_vm7, %v4358_v28, %v4360_v2  ;;  %v4780_v59 = vsel %vm1525_vm15, %v11197_v13, %v6722_v44  ;;  %v12844_v28 = vld [vmem:[#allocation120_spill] sm:$0xff]  ;;  %vm12879_vm7 = vmmov %vm12817_vm2 }
 0x7eb   : > { %v6784_v60 = vpack.i.bf16 %v11465_v34, %v11088_v5  ;;  %v6723_v5 = vunpack.i.h.bf16 %v6721_v8 }
 0x7ed   : > { %6765 = vrot.lane.b32.xlu0 %v6764_v47, %s7138_s15  ;;  %v4810_v47 = vsel %vm1525_vm15, %v12841_v10, %v6713_v54  ;;  %v11472_v41 = vpop.f32.mrf.mxu1 }
 0x7ee   : > { %12843 = vst [vmem:[#allocation87_spill] sm:$0xff] %v11472_v41 }
 0x7f0   : > { %5146 = vmatmul.f32.gmra.mxu2 %v4778_v55  ;;  %5256 = vmatmul.f32.gmra.mxu3 %v4809_v36  ;;  %v6726_v55 = vpop.permute.xlu0 %6725  ;;  %v4811_v36 = vsel %vm1525_vm15, %v12844_v28, %v6718_v43 }
 0x7f1   : > { %5908 = vmatmul.msk.f32.gmra.mxu1 %vm1525_vm15, %v11197_v13  ;;  %v6727_v31 = vunpack.i.l.bf16 %v6726_v55  ;;  %v6728_v10 = vunpack.i.h.bf16 %v6726_v55 }
 0x7f3   : > { %v11478_v54 = vpop.f32.mrf.mxu2  ;;  %v4781_v2 = vsel %vm1525_vm15, %v11207_v53, %v6727_v31 }
 0x7f5   : > { %6780 = vrot.lane.b32.xlu0 %v6779_v7, %s7138_s15 }
 0x7f8   : > { %5149 = vmatmul.f32.gmra.mxu2 %v4779_v9  ;;  %5259 = vmatmul.f32.gmra.mxu3 %v4810_v47  ;;  %v6731_v7 = vpop.permute.xlu0 %6730  ;;  %v12846_v9 = vld [vmem:[#allocation100_spill] sm:$0xff] }
 0x7f9   : > { %5909 = vmatmul.msk.f32.gmra.mxu1 %vm1525_vm15, %v11207_v53  ;;  %v4812_v13 = vsel %vm1525_vm15, %v12846_v9, %v6723_v5  ;;  %v6732_v47 = vunpack.i.l.bf16 %v6731_v7  ;;  %v12847_v53 = vld [vmem:[#allocation132_spill] sm:$0xff]  ;;  %v6733_v55 = vunpack.i.h.bf16 %v6731_v7  ;;  %v6746_v7 = vpop.permute.xlu2 %6745 }
 0x7fa   : > { %v12848_v9 = vld [vmem:[#allocation116_spill] sm:$0xff] }
 0x7fb   : > { %v4782_v44 = vsel %vm1525_vm15, %v11217_v46, %v6732_v47  ;;  %v6741_v47 = vpop.permute.xlu1 %6740 }
 0x7fc   : > { %6785 = vrot.lane.b32.xlu1 %v6784_v60, %s7138_s15  ;;  %v11490_v60 = vpop.f32.mrf.mxu2 }
 0x800   : > { %5152 = vmatmul.f32.gmra.mxu2 %v4780_v59  ;;  %5262 = vmatmul.f32.gmra.mxu3 %v4811_v36  ;;  %v4813_v59 = vsel %vm1525_vm15, %v12847_v53, %v6728_v10  ;;  %v6736_v28 = vpop.permute.xlu0 %6735  ;;  %v11512_v10 = vpop.f32.mrf.mxu0  ;;  %v6742_v53 = vunpack.i.l.bf16 %v6741_v47 }
 0x801   : > { %5910 = vmatmul.msk.f32.gmra.mxu1 %vm1525_vm15, %v11217_v46  ;;  %v6737_v36 = vunpack.i.l.bf16 %v6736_v28  ;;  %12849 = vst [vmem:[#allocation57_spill] sm:$0xff] %v11512_v10  ;;  %v6751_v16 = vpop.permute.xlu2 %6750 }
 0x803   : > { %v4783_v46 = vsel %vm1525_vm15, %v11226_v20, %v6737_v36 }
 0x805   : > { %v11482_v49 = vpop.f32.mrf.mxu1 }
 0x806   : > { %12845 = vst [vmem:[#allocation35_spill] sm:$0xff] %v11482_v49 }
 0x808   : > { %5155 = vmatmul.f32.gmra.mxu2 %v4781_v2  ;;  %5265 = vmatmul.f32.gmra.mxu3 %v4812_v13  ;;  %v4814_v13 = vsel %vm1525_vm15, %v12848_v9, %v6733_v55  ;;  %v12850_v55 = vld [vmem:[#allocation125_spill] sm:$0xff]  ;;  %v6743_v9 = vunpack.i.h.bf16 %v6741_v47  ;;  %v6752_v47 = vunpack.i.l.bf16 %v6751_v16 }
 0x809   : > { %5911 = vmatmul.msk.f32.gmra.mxu1 %vm1525_vm15, %v11226_v20  ;;  %v4784_v20 = vsel %vm1525_vm15, %v11236_v38, %v6742_v53  ;;  %v6756_v33 = vpop.permute.xlu2 %6755 }
 0x80b   : > { %v11492_v8 = vpop.f32.mrf.mxu3 }
 0x80e   : > { %v11494_v43 = vpop.f32.mrf.mxu1 }
 0x810   : > { %5158 = vmatmul.f32.gmra.mxu2 %v4782_v44  ;;  %5268 = vmatmul.f32.gmra.mxu3 %v4813_v59  ;;  %v6738_v44 = vunpack.i.h.bf16 %v6736_v28  ;;  %v6747_v28 = vunpack.i.l.bf16 %v6746_v7 }
 0x811   : > { %5912 = vmatmul.msk.f32.gmra.mxu1 %vm1525_vm15, %v11236_v38 }
 0x812   : > { %v4815_v36 = vsel %vm1525_vm15, %v12850_v55, %v6738_v44  ;;  %v4785_v38 = vsel %vm1525_vm15, %v11250_v27, %v6747_v28  ;;  %v12852_v44 = vld [vmem:[#allocation108_spill] sm:$0xff]  ;;  %v12856_v28 = vld [vmem:[#allocation109_spill] sm:$0xff] }
 0x813   : > { %v11502_v5 = vpop.f32.mrf.mxu2  ;;  %v11504_v31 = vpop.f32.mrf.mxu3  ;;  %v4816_v53 = vsel %vm1525_vm15, %v12852_v44, %v6743_v9 }
 0x816   : > { %v11506_v2 = vpop.f32.mrf.mxu1 }
 0x818   : > { %5161 = vmatmul.f32.gmra.mxu2 %v4783_v46  ;;  %5271 = vmatmul.f32.gmra.mxu3 %v4814_v13  ;;  %v11528_v46 = vpop.f32.mrf.mxu0 }
 0x819   : > { %5913 = vmatmul.msk.f32.gmra.mxu1 %vm1525_vm15, %v11250_v27  ;;  %12851 = vst [vmem:[#allocation33_spill] sm:$0xff] %v11528_v46  ;;  %v4786_v27 = vsel %vm1525_vm15, %v11265_v56, %v6752_v47 }
 0x81b   : > { %v11516_v59 = vpop.f32.mrf.mxu2  ;;  %v11518_v49 = vpop.f32.mrf.mxu3 }
 0x81e   : > { %v11520_v41 = vpop.f32.mrf.mxu1 }
 0x820   : > { %5164 = vmatmul.f32.gmra.mxu2 %v4784_v20  ;;  %5274 = vmatmul.f32.gmra.mxu3 %v4815_v36  ;;  %v6748_v20 = vunpack.i.h.bf16 %v6746_v7  ;;  %v11546_v51 = vpop.f32.mrf.mxu0  ;;  %v6753_v7 = vunpack.i.h.bf16 %v6751_v16  ;;  %v6758_v16 = vunpack.i.h.bf16 %v6756_v33 }
 0x821   : > { %5914 = vmatmul.msk.f32.gmra.mxu1 %vm1525_vm15, %v11265_v56  ;;  %12854 = vst [vmem:[#allocation24_spill] sm:$0xff] %v11546_v51  ;;  %v12860_v56 = vld [vmem:[#allocation129_spill] sm:$0xff] }
 0x822   : > { %v4817_v9 = vsel %vm1525_vm15, %v12856_v28, %v6748_v20  ;;  %v4818_v47 = vsel %vm1525_vm15, %v12860_v56, %v6753_v7  ;;  %v12865_v7 = vld [vmem:[#allocation128_spill] sm:$0xff] }
 0x823   : > { %v11530_v13 = vpop.f32.mrf.mxu2  ;;  %v11532_v21 = vpop.f32.mrf.mxu3 }
 0x826   : > { %v11534_v15 = vpop.f32.mrf.mxu1 }
 0x828   : > { %5167 = vmatmul.f32.gmra.mxu2 %v4785_v38  ;;  %5277 = vmatmul.f32.gmra.mxu3 %v4816_v53  ;;  %v6757_v38 = vunpack.i.l.bf16 %v6756_v33  ;;  %v11566_v20 = vpop.f32.mrf.mxu0 }
 0x829   : > { %5915 = vmatmul.msk.f32.gmra.mxu1 %vm1525_vm15, %v11280_v24  ;;  %12861 = vst [vmem:[#allocation28_spill] sm:$0xff] %v11566_v20 }
 0x82a   : > { %v4787_v22 = vsel %vm1525_vm15, %v11280_v24, %v6757_v38  ;;  %v4819_v38 = vsel %vm1525_vm15, %v12865_v7, %v6758_v16 }
 0x82b   : > { %v11542_v55 = vpop.f32.mrf.mxu2  ;;  %v11544_v36 = vpop.f32.mrf.mxu3 }
 0x82c   : > { %12853 = vst [vmem:[#allocation26_spill] sm:$0xff] %v11542_v55 }
 0x82e   : > { %v11548_v12 = vpop.f32.mrf.mxu1 }
 0x82f   : > { %12855 = vst [vmem:[#allocation21_spill] sm:$0xff] %v11548_v12 }
 0x830   : > { %5170 = vmatmul.f32.gmra.mxu2 %v4786_v27  ;;  %5280 = vmatmul.f32.gmra.mxu3 %v4817_v9  ;;  %v6761_v27 = vpop.permute.xlu2 %6760  ;;  %v5355_v56 = vpop.f32.mrf.mxu0 }
 0x831   : > { %5916 = vmatmul.msk.f32.gmra.mxu1 %vm1525_vm15, %v11292_v17  ;;  %v6762_v28 = vunpack.i.l.bf16 %v6761_v27 }
 0x833   : > { %v11556_v44 = vpop.f32.mrf.mxu2  ;;  %v11558_v53 = vpop.f32.mrf.mxu3  ;;  %v4788_v24 = vsel %vm1525_vm15, %v11292_v17, %v6762_v28 }
 0x834   : > { %12857 = vst [vmem:[#allocation161_spill] sm:$0xff] %v11556_v44 }
 0x835   : > { %12858 = vst [vmem:[#allocation157_spill] sm:$0xff] %v11558_v53 }
 0x836   : > { %v11560_v57 = vpop.f32.mrf.mxu1 }
 0x837   : > { %12859 = vst [vmem:[#allocation45_spill] sm:$0xff] %v11560_v57 }
 0x838   : > { %5173 = vmatmul.f32.gmra.mxu2 %v4787_v22  ;;  %5283 = vmatmul.f32.gmra.mxu3 %v4818_v47  ;;  %v6763_v22 = vunpack.i.h.bf16 %v6761_v27  ;;  %v5358_v17 = vpop.f32.mrf.mxu0  ;;  %v6771_v12 = vpop.permute.xlu2 %6770 }
 0x839   : > { %5917 = vmatmul.msk.f32.gmra.mxu1 %vm1525_vm15, %v11301_v45 }
 0x83b   : > { %v11570_v9 = vpop.f32.mrf.mxu2  ;;  %v11572_v51 = vpop.f32.mrf.mxu3 }
 0x83c   : > { %12862 = vst [vmem:[#allocation47_spill] sm:$0xff] %v11570_v9  ;;  %v12868_v9 = vld [vmem:[#allocation130_spill] sm:$0xff] }
 0x83d   : > { %12863 = vst [vmem:[#allocation49_spill] sm:$0xff] %v11572_v51 }
 0x83e   : > { %v11574_v19 = vpop.f32.mrf.mxu1 }
 0x83f   : > { %12864 = vst [vmem:[#allocation58_spill] sm:$0xff] %v11574_v19  ;;  %v4820_v19 = vsel %vm1525_vm15, %v12868_v9, %v6763_v22 }
 0x840   : > { %5176 = vmatmul.f32.gmra.mxu2 %v4788_v24  ;;  %5286 = vmatmul.f32.gmra.mxu3 %v4819_v38  ;;  %v5361_v57 = vpop.f32.mrf.mxu0 }
 0x841   : > { %5918 = vmatmul.msk.f32.gmra.mxu1 %vm1525_vm15, %v11318_v3 }
 0x843   : > { %v5129_v33 = vpop.f32.mrf.mxu2  ;;  %v11582_v47 = vpop.f32.mrf.mxu3 }
 0x844   : > { %12866 = vst [vmem:[#allocation51_spill] sm:$0xff] %v11582_v47  ;;  %v5130_v16 = vadd.f32 %v5129_v33, %v11177_v58 }
 0x846   : > { %v11584_v20 = vpop.f32.mrf.mxu1 }
 0x847   : > { %12867 = vst [vmem:[#allocation54_spill] sm:$0xff] %v11584_v20 }
 0x848   : > { %5289 = vmatmul.f32.gmra.mxu3 %v4820_v19 }
 0x849   : > { %5919 = vmatmul.msk.f32.gmra.mxu1 %vm1525_vm15, %v12837_v48 }
 0x84b   : > { %v5132_v28 = vpop.f32.mrf.mxu2  ;;  %v5242_v24 = vpop.f32.mrf.mxu3 }
 0x84c   : > { %v5243_v7 = vadd.f32 %v5242_v24, %v5130_v16  ;;  %v3538_v38 = vpop.xlane.xlu0 %3537  ;;  %v5133_v19 = vadd.f32 %v5132_v28, %v11194_v14 }
 0x84d   : > { %6963 = vrcp.f32 %v3538_v38  ;;  %vm3997_vm12 = vweird.f32 %v3538_v38  ;;  %v4001_v28 = vand.u32 2147483647, %v3538_v38 }
 0x84e   : > { %v5356_v27 = vadd.f32 %v5355_v56, %v5243_v7  ;;  %v5468_v51 = vpop.f32.mrf.mxu1  ;;  %v4003_v7 = vand.u32 2147483648, %v3538_v38 }
 0x84f   : > { %vm4002_vm10 = vcmp.eq.f32.partialorder %v4001_v28, 8.507059e+37 }
 0x850   : > { %v11591_v47 = vadd.f32 %v5468_v51, %v5356_v27 }
 0x851   : > { %5920 = vmatmul.msk.f32.gmra.mxu1 %vm1525_vm15, %v11334_v30 }
 0x852   : > { %12869 = vst [vmem:[#allocation154_spill] sm:$0xff] %v11591_v47  ;;  %v4004_v47 = vor.u32 1.1754944e-38, %v4003_v7 }
 0x853   : > { %v6964_v9 = vpop.eup %6963  ;;  %v5135_v22 = vpop.f32.mrf.mxu2 }
 0x854   : > { %v5245_v20 = vpop.f32.mrf.mxu3  ;;  %v3993_v44 = vmul.f32 %v6964_v9, %v3538_v38  ;;  %vm3998_vm1 = vweird.f32 %v6964_v9  ;;  %v5136_v27 = vadd.f32 %v5135_v22, %v11209_v23 }
 0x855   : > { %v5246_v58 = vadd.f32 %v5245_v20, %v5133_v19  ;;  %vm3999_vm6 = vmor %vm3997_vm12, %vm3998_vm1 }
 0x856   : > { %v3994_v33 = vsub.f32 1.0, %v3993_v44  ;;  %v5471_v16 = vpop.f32.mrf.mxu1  ;;  %v3541_v24 = vpop.xlane.xlu1 %3540 }
 0x857   : > { %v5359_v46 = vadd.f32 %v5358_v17, %v5246_v58  ;;  %6965 = vrcp.f32 %v3541_v24  ;;  %v4016_v23 = vand.u32 2147483647, %v3541_v24  ;;  %v4018_v22 = vand.u32 2147483648, %v3541_v24 }
 0x858   : > { %v3995_v56 = vmul.f32 %v6964_v9, %v3994_v33  ;;  %v5364_v33 = vpop.f32.mrf.mxu0  ;;  %vm4012_vm11 = vweird.f32 %v3541_v24 }
 0x859   : > { %v11596_v51 = vadd.f32 %v5471_v16, %v5359_v46  ;;  %5921 = vmatmul.msk.f32.gmra.mxu1 %vm1525_vm15, %v11347_v37  ;;  %vm4017_vm13 = vcmp.eq.f32.partialorder %v4016_v23, 8.507059e+37 }
 0x85a   : > { %v3996_v14 = vadd.f32 %v6964_v9, %v3995_v56 }
 0x85b   : > { %12870 = vst [vmem:[#allocation153_spill] sm:$0xff] %v11596_v51  ;;  %v5138_v20 = vpop.f32.mrf.mxu2 }
 0x85c   : > { %v5248_v44 = vpop.f32.mrf.mxu3  ;;  %v4000_v17 = vsel %vm3999_vm6, %v6964_v9, %v3996_v14  ;;  %v5139_v10 = vadd.f32 %v5138_v20, %v11221_v1  ;;  %v4019_v20 = vor.u32 1.1754944e-38, %v4018_v22  ;;  %v12872_v22 = vld [vmem:[#allocation143_spill] sm:$0xff] }
 0x85d   : > { %v5249_v19 = vadd.f32 %v5248_v44, %v5136_v27  ;;  %v6966_v58 = vpop.eup %6965  ;;  %v4005_v26 = vsel %vm4002_vm10, %v4004_v47, %v4000_v17 }
 0x85e   : > { %v4008_v46 = vmul.f32 %v6966_v58, %v3541_v24  ;;  %v5474_v51 = vpop.f32.mrf.mxu1  ;;  %v4006_v7 = vmul.f32 %v11407_v52, %v4005_v26  ;;  %vm4013_vm8 = vweird.f32 %v6966_v58  ;;  %v6776_v24 = vpop.permute.xlu2 %6775 }
 0x85f   : > { %v5362_v16 = vadd.f32 %v5361_v57, %v5249_v19  ;;  %v6766_v53 = vpop.permute.xlu0 %6765  ;;  %v12871_v57 = vld [vmem:[#allocation148_spill] sm:$0xff]  ;;  %vm4014_vm9 = vmor %vm4012_vm11, %vm4013_vm8 }
 0x860   : > { %v4009_v56 = vsub.f32 1.0, %v4008_v46  ;;  %v6768_v38 = vunpack.i.h.bf16 %v6766_v53  ;;  %v6767_v9 = vunpack.i.l.bf16 %v6766_v53  ;;  %v6773_v53 = vunpack.i.h.bf16 %v6771_v12 }
 0x861   : > { %v11601_v55 = vadd.f32 %v5474_v51, %v5362_v16  ;;  %5922 = vmatmul.msk.f32.gmra.mxu1 %vm1525_vm15, %v11450_v25  ;;  %v4099_v17 = vrot.slane %v4006_v7, 7  ;;  %v6772_v46 = vunpack.i.l.bf16 %v6771_v12 }
 0x862   : > { %v4010_v14 = vmul.f32 %v6966_v58, %v4009_v56  ;;  %v4821_v47 = vsel %vm1525_vm15, %v12871_v57, %v6768_v38  ;;  %v4789_v51 = vsel %vm1525_vm15, %v11301_v45, %v6767_v9  ;;  %v5367_v56 = vpop.f32.mrf.mxu0 }
 0x863   : > { %v5141_v28 = vpop.f32.mrf.mxu2  ;;  %5292 = vmatmul.f32.gmra.mxu3 %v4821_v47  ;;  %5179 = vmatmul.f32.gmra.mxu2 %v4789_v51  ;;  %v4790_v23 = vsel %vm1525_vm15, %v11318_v3, %v6772_v46 }
 0x864   : > { %v5251_v27 = vpop.f32.mrf.mxu3  ;;  %v4011_v44 = vadd.f32 %v6966_v58, %v4010_v14  ;;  %v5142_v9 = vadd.f32 %v5141_v28, %v11230_v18 }
 0x865   : > { %v5252_v1 = vadd.f32 %v5251_v27, %v5139_v10  ;;  %v6778_v27 = vunpack.i.h.bf16 %v6776_v24 }
 0x866   : > { %v4015_v26 = vsel %vm4014_vm9, %v6966_v58, %v4011_v44  ;;  %v5477_v19 = vpop.f32.mrf.mxu1  ;;  %v4822_v58 = vsel %vm1525_vm15, %v12872_v22, %v6773_v53  ;;  %v6777_v53 = vunpack.i.l.bf16 %v6776_v24  ;;  %v12878_v24 = vld [vmem:[#allocation145_spill] sm:$0xff] }
 0x867   : > { %v5365_v52 = vadd.f32 %v5364_v33, %v5252_v1  ;;  %v4020_v16 = vsel %vm4017_vm13, %v4019_v20, %v4015_v26  ;;  %v11620_v33 = vsel %vm12873_vm0, 0.0, %v4099_v17 }
 0x868   : > { %v4021_v38 = vmul.f32 %v11424_v35, %v4020_v16  ;;  %v4433_v28 = vrot.slane %v11620_v33, 2  ;;  %v4396_v3 = vrot.slane %v11620_v33, 1 }
 0x869   : > { %v11612_v45 = vadd.f32 %v5477_v19, %v5365_v52  ;;  %5923 = vmatmul.msk.f32.gmra.mxu1 %vm1525_vm15, %v11465_v34 }
 0x86a   : > { %v4100_v10 = vrot.slane %v4021_v38, 7  ;;  %v5370_v16 = vpop.f32.mrf.mxu0 }
 0x86b   : > { %v5144_v12 = vpop.f32.mrf.mxu2  ;;  %5295 = vmatmul.f32.gmra.mxu3 %v4822_v58  ;;  %5182 = vmatmul.f32.gmra.mxu2 %v4790_v23  ;;  %v4791_v58 = vsel %vm1525_vm15, %v12837_v48, %v6777_v53 }
 0x86c   : > { %v5254_v35 = vpop.f32.mrf.mxu3  ;;  %v11625_v14 = vsel %vm12874_vm14, %v4099_v17, %v4100_v10  ;;  %v4181_v57 = vsel %vm12875_vm4, %v4100_v10, 0.0  ;;  %v5145_v38 = vadd.f32 %v5144_v12, %v11247_v42  ;;  %v4823_v10 = vsel %vm1525_vm15, %v12878_v24, %v6778_v27 }
 0x86d   : > { %v5255_v7 = vadd.f32 %v5254_v35, %v5142_v9  ;;  %v4397_v18 = vrot.slane %v11625_v14, 1  ;;  %v4399_v47 = vrot.slane %v4181_v57, 1  ;;  %v4434_v51 = vrot.slane %v11625_v14, 2 }
 0x86e   : > { %v5480_v1 = vpop.f32.mrf.mxu1  ;;  %v4436_v9 = vrot.slane %v4181_v57, 2 }
 0x86f   : > { %v5368_v44 = vadd.f32 %v5367_v56, %v5255_v7  ;;  %v11633_v20 = vsel %vm12876_vm5, %v4397_v18, %v4399_v47  ;;  %v4435_v17 = vsel %vm12817_vm2, %v4433_v28, %v4434_v51  ;;  %v11640_v19 = vsel %vm12877_vm3, %v4396_v3, %v4397_v18  ;;  %v6781_v56 = vpop.permute.xlu0 %6780 }
 0x870   : > { %v6794_v52 = vpack.i.bf16 %v11633_v20, %v4435_v17  ;;  %v6789_v46 = vpack.i.bf16 %v11620_v33, %v11640_v19  ;;  %v6783_v7 = vunpack.i.h.bf16 %v6781_v56  ;;  %v4437_v42 = vsel %vm12879_vm7, %v4434_v51, %v4436_v9 }
 0x871   : > { %v11636_v26 = vadd.f32 %v5480_v1, %v5368_v44  ;;  %5924 = vmatmul.msk.f32.gmra.mxu1 %vm1525_vm15, %v4435_v17  ;;  %v6782_v12 = vunpack.i.l.bf16 %v6781_v56  ;;  %v6799_v57 = vpack.i.bf16 %v4437_v42, %v11625_v14  ;;  %v6786_v44 = vpop.permute.xlu1 %6785 }
 0x872   : > { %6795 = vrot.lane.b32.xlu0 %v6794_v52, %s7138_s15  ;;  %6790 = vrot.lane.b32.xlu2 %v6789_v46, %s7138_s15  ;;  %v5373_v27 = vpop.f32.mrf.mxu0  ;;  %v4824_v1 = vsel %vm1525_vm15, %v11108_v50, %v6783_v7  ;;  %v6788_v52 = vunpack.i.h.bf16 %v6786_v44  ;;  %v6787_v56 = vunpack.i.l.bf16 %v6786_v44 }
 0x873   : > { %v5147_v22 = vpop.f32.mrf.mxu2  ;;  %5298 = vmatmul.f32.gmra.mxu3 %v4823_v10  ;;  %5185 = vmatmul.f32.gmra.mxu2 %v4791_v58  ;;  %v4792_v51 = vsel %vm1525_vm15, %v11334_v30, %v6782_v12 }
 0x874   : > { %v5257_v23 = vpop.f32.mrf.mxu3  ;;  %v5148_v48 = vadd.f32 %v5147_v22, %v11260_v61  ;;  %v4825_v61 = vsel %vm1525_vm15, %v11102_v63, %v6788_v52  ;;  %v4793_v30 = vsel %vm1525_vm15, %v11347_v37, %v6787_v56 }
 0x875   : > { %v5258_v35 = vadd.f32 %v5257_v23, %v5145_v38 }
 0x876   : > { %v5483_v47 = vpop.f32.mrf.mxu1 }
 0x877   : > { %v5371_v18 = vadd.f32 %v5370_v16, %v5258_v35  ;;  %v5106_v35 = vadd.f32 %v11478_v54, %v11060_v11 }
 0x879   : > { %v11653_v28 = vadd.f32 %v5483_v47, %v5371_v18  ;;  %5925 = vmatmul.msk.f32.gmra.mxu1 %vm1525_vm15, %v4437_v42  ;;  %v5219_v63 = vadd.f32 %v11492_v8, %v5106_v35  ;;  %v5109_v42 = vadd.f32 %v11490_v60, %v11067_v6  ;;  %v12886_v35 = vld [vmem:[#allocation61_spill] sm:$0xff] }
 0x87a   : > { %6800 = vrot.lane.b32.xlu2 %v6799_v57, %s7138_s15  ;;  %v5376_v22 = vpop.f32.mrf.mxu0  ;;  %s5632_s15 = scalar_lea.hbm %s12920_s3, %s5935_s27 }
 0x87b   : > { %v5150_v3 = vpop.f32.mrf.mxu2  ;;  %5301 = vmatmul.f32.gmra.mxu3 %v4824_v1  ;;  %5188 = vmatmul.f32.gmra.mxu2 %v4792_v51  ;;  %v5332_v37 = vadd.f32 %v11147_v29, %v5219_v63  ;;  %v5222_v11 = vadd.f32 %v11504_v31, %v5109_v42  ;;  %v12882_v31 = vld [vmem:[#allocation48_spill] sm:$0xff]  ;;  %s5635_s30 = sshll.u32 %s5632_s15, 4  ;;  %s5636_s30 = int_to_ptr.hbm [resolvable:$true] %s5635_s30 }
 0x87c   : > { %v5260_v53 = vpop.f32.mrf.mxu3  ;;  %v5151_v50 = vadd.f32 %v5150_v3, %v11267_v0  ;;  %s7066_s23 = sshra.s32 %s5636_s30, 4  ;;  %s7067_s23 = int_to_ptr.hbm [resolvable:$true] %s7066_s23 }
 0x87d   : > { %v5261_v17 = vadd.f32 %v5260_v53, %v5148_v48  ;;  %v5445_v12 = vadd.f32 %v11494_v43, %v5332_v37  ;;  %v12881_v48 = vld [vmem:[#allocation135_spill] sm:$0xff]  ;;  %s7068_s13 = scalar_lea.hbm %s7067_s23, 64  ;;  %p7073_p7 = scmp.lt.s32.totalorder %s7067_s23, %s12920_s3 }
 0x87e   : > { %v5486_v16 = vpop.f32.mrf.mxu1  ;;  %v5112_v29 = vadd.f32 %v11502_v5, %v12881_v48  ;;  %v12892_v48 = vld [vmem:[#allocation41_spill] sm:$0xff]  ;;  %p7069_p4 = scmp.ne.s32.totalorder %s7067_s23, %s7068_s13  ;;  %p7074_p5 = scmp.lt.s32.totalorder %s7072_s17, %s7068_s13 }
 0x87f   : > { %v5374_v46 = vadd.f32 %v5373_v27, %v5261_v17  ;;  %v12883_v17 = vld [vmem:[#allocation83_spill] sm:$0xff] }
 0x880   : > { %v5225_v6 = vadd.f32 %v11518_v49, %v5112_v29  ;;  %p7070_p6 = pnand %p7069_p4, %p7245_p11  ;;  %p7075_p8 = por %p7074_p5, %p7073_p7 }
 0x881   : > { %v11663_v38 = vadd.f32 %v5486_v16, %v5374_v46  ;;  %5926 = vmatmul.msk.f32.gmra.mxu1 %vm1525_vm15, %v12804_v32  ;;  %v12884_v16 = vld [vmem:[#allocation43_spill] sm:$0xff] }
 0x882   : > { %v5379_v47 = vpop.f32.mrf.mxu0  ;;  %v5115_v56 = vadd.f32 %v11516_v59, %v12884_v16  ;;  %v5118_v59 = vadd.f32 %v11530_v13, %v12886_v35  ;;  %p7071_p0 = pneg %p7070_p6 }
 0x883   : > { %v5153_v24 = vpop.f32.mrf.mxu2  ;;  %5304 = vmatmul.f32.gmra.mxu3 %v4825_v61  ;;  %5191 = vmatmul.f32.gmra.mxu2 %v4793_v30 }
 0x884   : > { %v5263_v10 = vpop.f32.mrf.mxu3  ;;  %v5154_v57 = vadd.f32 %v5153_v24, %v11284_v4  ;;  %v5338_v4 = vadd.f32 %v12883_v17, %v5225_v6  ;;  %p7076_p9 = pnand %p7075_p8, %p7071_p0 }
 0x885   : > { %v5264_v9 = vadd.f32 %v5263_v10, %v5151_v50 }
 0x886   : > { %v5489_v23 = vpop.f32.mrf.mxu1  ;;  %v5451_v61 = vadd.f32 %v11520_v41, %v5338_v4  ;;  %v5231_v41 = vadd.f32 %v11544_v36, %v5118_v59  ;;  %v12896_v4 = vld [vmem:[#allocation45_spill] sm:$0xff]  ;;  %v12902_v59 = vld [vmem:[#allocation58_spill] sm:$0xff] }
 0x887   : > { %v5377_v58 = vadd.f32 %v5376_v22, %v5264_v9  ;;  %v12885_v9 = vld [vmem:[#allocation152_spill] sm:$0xff] }
 0x889   : > { %v11674_v32 = vadd.f32 %v5489_v23, %v5377_v58  ;;  %5927 = vmatmul.msk.f32.gmra.mxu1 %vm1525_vm15, %v12807_v40  ;;  %v12880_v40 = vld [vmem:[#allocation70_spill] sm:$0xff] }
 0x88a   : > { %v5335_v27 = vadd.f32 %v12880_v40, %v5222_v11  ;;  %v5382_v3 = vpop.f32.mrf.mxu0  ;;  %v12890_v40 = vld [vmem:[#allocation21_spill] sm:$0xff] }
 0x88b   : > { %v5156_v7 = vpop.f32.mrf.mxu2 }
 0x88c   : > { %v5266_v0 = vpop.f32.mrf.mxu3  ;;  %v5448_v51 = vadd.f32 %v11506_v2, %v5335_v27  ;;  %v5157_v53 = vadd.f32 %v5156_v7, %v12882_v31  ;;  %v5228_v2 = vadd.f32 %v11532_v21, %v5115_v56  ;;  %v12891_v27 = vld [vmem:[#allocation157_spill] sm:$0xff]  ;;  %v12894_v31 = vld [vmem:[#allocation106_spill] sm:$0xff] }
 0x88d   : > { %v5267_v8 = vadd.f32 %v5266_v0, %v5154_v57  ;;  %v12889_v57 = vld [vmem:[#allocation26_spill] sm:$0xff] }
 0x88e   : > { %v5492_v18 = vpop.f32.mrf.mxu1  ;;  %v5341_v22 = vadd.f32 %v12885_v9, %v5228_v2  ;;  %v12900_v9 = vld [vmem:[#allocation39_spill] sm:$0xff] }
 0x88f   : > { %v5380_v60 = vadd.f32 %v5379_v47, %v5267_v8  ;;  %v12887_v47 = vld [vmem:[#allocation57_spill] sm:$0xff] }
 0x890   : > { %v5454_v63 = vadd.f32 %v11534_v15, %v5341_v22  ;;  %v5344_v42 = vadd.f32 %v12887_v47, %v5231_v41  ;;  %v12901_v22 = vld [vmem:[#allocation47_spill] sm:$0xff] }
 0x891   : > { %v5493_v52 = vadd.f32 %v5492_v18, %v5380_v60  ;;  %v12903_v41 = vld [vmem:[#allocation51_spill] sm:$0xff] }
 0x892   : > { %v5385_v50 = vpop.f32.mrf.mxu0  ;;  %v5457_v15 = vadd.f32 %v12890_v40, %v5344_v42 }
 0x893   : > { %v5159_v44 = vpop.f32.mrf.mxu2 }
 0x894   : > { %v5269_v54 = vpop.f32.mrf.mxu3  ;;  %5540 = vxpose.xlu0.b32.start [1/16] (narrow) %v5445_v12, 32  ;;  %v5160_v10 = vadd.f32 %v5159_v44, %v11312_v39 }
 0x895   : > { %v5270_v46 = vadd.f32 %v5269_v54, %v5157_v53  ;;  %v12888_v54 = vld [vmem:[#allocation46_spill] sm:$0xff]  ;;  %v12895_v53 = vld [vmem:[#allocation161_spill] sm:$0xff] }
 0x896   : > { %v5495_v1 = vpop.f32.mrf.mxu1  ;;  %v5121_v13 = vadd.f32 %v12889_v57, %v12888_v54  ;;  %v5124_v17 = vadd.f32 %v12895_v53, %v12894_v31  ;;  %v12906_v54 = vld [vmem:[#allocation54_spill] sm:$0xff] }
 0x897   : > { %v5383_v24 = vadd.f32 %v5382_v3, %v5270_v46  ;;  %v12897_v46 = vld [vmem:[#allocation49_spill] sm:$0xff]  ;;  %v12908_v31 = vld [vmem:[#allocation154_spill] sm:$0xff] }
 0x898   : > { %v5234_v36 = vadd.f32 %v12891_v27, %v5121_v13  ;;  %v5237_v16 = vadd.f32 %v12897_v46, %v5124_v17 }
 0x899   : > { %v5496_v58 = vadd.f32 %v5495_v1, %v5383_v24 }
 0x89a   : > { %v5388_v0 = vpop.f32.mrf.mxu0 }
 0x89b   : > { %v5162_v5 = vpop.f32.mrf.mxu2 }
 0x89c   : > { %v5272_v43 = vpop.f32.mrf.mxu3  ;;  %5541 = vxpose.xlu0.b32.cont [2/16] (narrow) %v5448_v51, 32  ;;  %v5163_v18 = vadd.f32 %v5162_v5, %v11331_v62  ;;  %v12893_v62 = vld [vmem:[#allocation33_spill] sm:$0xff] }
 0x89d   : > { %v5273_v23 = vadd.f32 %v5272_v43, %v5160_v10  ;;  %v5347_v3 = vadd.f32 %v12893_v62, %v5234_v36  ;;  %v12907_v36 = vld [vmem:[#allocation151_spill] sm:$0xff] }
 0x89e   : > { %v5498_v49 = vpop.f32.mrf.mxu1 }
 0x89f   : > { %v5386_v21 = vadd.f32 %v5385_v50, %v5273_v23  ;;  %v12898_v50 = vld [vmem:[#allocation50_spill] sm:$0xff] }
 0x8a0   : > { %5572 = vxpose.xlu2.b32.start [1/16] (narrow) %v5493_v52, 32  ;;  %v5460_v52 = vadd.f32 %v12896_v4, %v5347_v3  ;;  %v12909_v4 = vld [vmem:[#allocation155_spill] sm:$0xff] }
 0x8a1   : > { %v5499_v12 = vadd.f32 %v5498_v49, %v5386_v21 }
 0x8a2   : > { %v5391_v44 = vpop.f32.mrf.mxu0 }
 0x8a3   : > { %v5165_v7 = vpop.f32.mrf.mxu2 }
 0x8a4   : > { %v5275_v30 = vpop.f32.mrf.mxu3  ;;  %5542 = vxpose.xlu0.b32.cont [3/16] (narrow) %v5451_v61, 32  ;;  %v5166_v29 = vadd.f32 %v5165_v7, %v12892_v48  ;;  %v12899_v61 = vld [vmem:[#allocation24_spill] sm:$0xff] }
 0x8a5   : > { %v5276_v11 = vadd.f32 %v5275_v30, %v5163_v18  ;;  %v5350_v2 = vadd.f32 %v12899_v61, %v5237_v16  ;;  %v12904_v7 = vld [vmem:[#allocation28_spill] sm:$0xff]  ;;  %v12905_v18 = vld [vmem:[#allocation37_spill] sm:$0xff] }
 0x8a6   : > { %v5501_v37 = vpop.f32.mrf.mxu1 }
 0x8a7   : > { %v5389_v8 = vadd.f32 %v5388_v0, %v5276_v11 }
 0x8a8   : > { %5573 = vxpose.xlu2.b32.cont [2/16] (narrow) %v5496_v58, 32  ;;  %v5127_v58 = vadd.f32 %v12901_v22, %v12900_v9 }
 0x8a9   : > { %v5502_v6 = vadd.f32 %v5501_v37, %v5389_v8 }
 0x8aa   : > { %v5394_v49 = vpop.f32.mrf.mxu0  ;;  %v5240_v0 = vadd.f32 %v12903_v41, %v5127_v58  ;;  %v12911_v58 = vld [vmem:[#allocation52_spill] sm:$0xff] }
 0x8ab   : > { %v5168_v1 = vpop.f32.mrf.mxu2 }
 0x8ac   : > { %5543 = vxpose.xlu0.b32.cont [4/16] (narrow) %v5454_v63, 32  ;;  %v5278_v39 = vpop.f32.mrf.mxu3  ;;  %v5169_v5 = vadd.f32 %v5168_v1, %v12898_v50  ;;  %v5463_v63 = vadd.f32 %v12902_v59, %v5350_v2  ;;  %v5353_v37 = vadd.f32 %v12904_v7, %v5240_v0 }
 0x8ad   : > { %v5279_v60 = vadd.f32 %v5278_v39, %v5166_v29 }
 0x8ae   : > { %v5504_v51 = vpop.f32.mrf.mxu1  ;;  %v5466_v57 = vadd.f32 %v12906_v54, %v5353_v37  ;;  %v12912_v37 = vld [vmem:[#allocation139_spill] sm:$0xff]  ;;  %v12914_v54 = vld [vmem:[#allocation36_spill] sm:$0xff] }
 0x8af   : > { %v5392_v56 = vadd.f32 %v5391_v44, %v5279_v60 }
 0x8b0   : > { %5574 = vxpose.xlu2.b32.cont [3/16] (narrow) %v5499_v12, 32 }
 0x8b1   : > { %v5505_v24 = vadd.f32 %v5504_v51, %v5392_v56 }
 0x8b2   : > { %v5397_v47 = vpop.f32.mrf.mxu0 }
 0x8b3   : > { %v5171_v30 = vpop.f32.mrf.mxu2 }
 0x8b4   : > { %5544 = vxpose.xlu0.b32.cont [5/16] (narrow) %v5457_v15, 32  ;;  %v5281_v43 = vpop.f32.mrf.mxu3  ;;  %v5172_v39 = vadd.f32 %v5171_v30, %v12905_v18 }
 0x8b5   : > { %v5282_v10 = vadd.f32 %v5281_v43, %v5169_v5  ;;  %v12910_v5 = vld [vmem:[#allocation153_spill] sm:$0xff] }
 0x8b6   : > { %v5507_v23 = vpop.f32.mrf.mxu1 }
 0x8b7   : > { %v5395_v21 = vadd.f32 %v5394_v49, %v5282_v10 }
 0x8b8   : > { %5575 = vxpose.xlu2.b32.cont [4/16] (narrow) %v5502_v6, 32 }
 0x8b9   : > { %v5508_v42 = vadd.f32 %v5507_v23, %v5395_v21 }
 0x8ba   : > { %v5400_v51 = vpop.f32.mrf.mxu0 }
 0x8bb   : > { %v5174_v11 = vpop.f32.mrf.mxu2 }
 0x8bc   : > { %5545 = vxpose.xlu0.b32.cont [6/16] (narrow) %v5460_v52, 32  ;;  %v5284_v35 = vpop.f32.mrf.mxu3  ;;  %v5175_v8 = vadd.f32 %v5174_v11, %v12907_v36 }
 0x8bd   : > { %v5285_v12 = vadd.f32 %v5284_v35, %v5172_v39 }
 0x8be   : > { %v5510_v13 = vpop.f32.mrf.mxu1 }
 0x8bf   : > { %v5398_v15 = vadd.f32 %v5397_v47, %v5285_v12 }
 0x8c0   : > { %5576 = vxpose.xlu2.b32.cont [5/16] (narrow) %v5505_v24, 32 }
 0x8c1   : > { %v5511_v29 = vadd.f32 %v5510_v13, %v5398_v15 }
 0x8c3   : > { %v5177_v6 = vpop.f32.mrf.mxu2 }
 0x8c4   : > { %5546 = vxpose.xlu0.b32.cont [7/16] (narrow) %v5463_v63, 32  ;;  %v5287_v40 = vpop.f32.mrf.mxu3  ;;  %v5178_v52 = vadd.f32 %v5177_v6, %v12909_v4 }
 0x8c5   : > { %v5288_v1 = vadd.f32 %v5287_v40, %v5175_v8  ;;  %v12915_v40 = vld [vmem:[#allocation40_spill] sm:$0xff] }
 0x8c6   : > { %v5513_v43 = vpop.f32.mrf.mxu1 }
 0x8c7   : > { %v5401_v60 = vadd.f32 %v5400_v51, %v5288_v1 }
 0x8c8   : > { %5577 = vxpose.xlu2.b32.cont [6/16] (narrow) %v5508_v42, 32 }
 0x8c9   : > { %v5514_v16 = vadd.f32 %v5513_v43, %v5401_v60  ;;  %v6969_v60 = vld [vmem:[%s7303_s9] sm:$0xff] }
 0x8cc   : > { %5547 = vxpose.xlu0.b32.cont [8/16] (narrow) %v5466_v57, 32  ;;  %v6791_v27 = vpop.permute.xlu2 %6790  ;;  %v5290_v53 = vpop.f32.mrf.mxu3 }
 0x8cd   : > { %v6793_v44 = vunpack.i.h.bf16 %v6791_v27  ;;  %v6792_v48 = vunpack.i.l.bf16 %v6791_v27  ;;  %v5291_v56 = vadd.f32 %v5290_v53, %v5178_v52 }
 0x8ce   : > { %v5516_v61 = vpop.f32.mrf.mxu1 }
 0x8cf   : > { %v4794_v62 = vsel %vm1525_vm15, %v11450_v25, %v6793_v44  ;;  %v4828_v3 = vsel %vm1525_vm15, %v11620_v33, %v6792_v48  ;;  %v5403_v33 = vpop.f32.mrf.mxu0  ;;  %v12916_v44 = vld [vmem:[#allocation55_spill] sm:$0xff] }
 0x8d0   : > { %5194 = vmatmul.f32.gmra.mxu2 %v4794_v62  ;;  %5414 = vmatmul.f32.gmra.mxu0 %v4828_v3  ;;  %v5404_v50 = vadd.f32 %v5403_v33, %v5291_v56 }
 0x8d1   : > { %5578 = vxpose.xlu2.b32.cont [7/16] (narrow) %v5511_v29, 32 }
 0x8d2   : > { %v5517_v2 = vadd.f32 %v5516_v61, %v5404_v50 }
 0x8d4   : > { %5548 = vxpose.xlu0.b32.cont [9/16] (narrow) %v12908_v31, 32  ;;  %v6801_v17 = vpop.permute.xlu2 %6800 }
 0x8d5   : > { %v6802_v46 = vunpack.i.l.bf16 %v6801_v17  ;;  %v6803_v41 = vunpack.i.h.bf16 %v6801_v17 }
 0x8d6   : > { %v5519_v35 = vpop.f32.mrf.mxu1 }
 0x8d7   : > { %v4795_v25 = vsel %vm1525_vm15, %v11465_v34, %v6802_v46  ;;  %v5406_v63 = vpop.f32.mrf.mxu0 }
 0x8d8   : > { %5197 = vmatmul.f32.gmra.mxu2 %v4795_v25  ;;  %v12918_v25 = vld [vmem:[#allocation87_spill] sm:$0xff] }
 0x8d9   : > { %5579 = vxpose.xlu2.b32.cont [8/16] (narrow) %v5514_v16, 32 }
 0x8dc   : > { %5549 = vxpose.xlu0.b32.cont [10/16] (narrow) %v12910_v5, 32 }
 0x8de   : > { %v5522_v42 = vpop.f32.mrf.mxu1 }
 0x8df   : > { %v5409_v47 = vpop.f32.mrf.mxu0 }
 0x8e1   : > { %5580 = vxpose.xlu2.b32.cont [9/16] (narrow) %v5517_v2, 32 }
 0x8e4   : > { %v6796_v49 = vpop.permute.xlu0 %6795  ;;  %5550 = vxpose.xlu0.b32.cont [11/16] (narrow) %v11601_v55, 32 }
 0x8e5   : > { %v6798_v24 = vunpack.i.h.bf16 %v6796_v49  ;;  %v6797_v30 = vunpack.i.l.bf16 %v6796_v49 }
 0x8e6   : > { %v5293_v10 = vpop.f32.mrf.mxu3  ;;  %v5180_v9 = vpop.f32.mrf.mxu2 }
 0x8e7   : > { %v4826_v22 = vsel %vm1525_vm15, %v11640_v19, %v6797_v30  ;;  %v4829_v34 = vsel %vm1525_vm15, %v11625_v14, %v6798_v24  ;;  %v5181_v23 = vadd.f32 %v5180_v9, %v12911_v58  ;;  %v4827_v19 = vsel %vm1525_vm15, %v11633_v20, %v6803_v41  ;;  %v12913_v14 = vld [vmem:[#allocation29_spill] sm:$0xff]  ;;  %v5412_v15 = vpop.f32.mrf.mxu0  ;;  %v5525_v36 = vpop.f32.mrf.mxu1  ;;  %v6970_v41 = vld [vmem:[%s7303_s9 + $0x10] sm:$0xff] }
 0x8e8   : > { %5307 = vmatmul.f32.gmra.mxu3 %v4826_v22  ;;  %5417 = vmatmul.f32.gmra.mxu0 %v4829_v34 }
 0x8e9   : > { %v5294_v59 = vadd.f32 %v5293_v10, %v5181_v23  ;;  %v12919_v10 = vld [vmem:[#allocation35_spill] sm:$0xff] }
 0x8eb   : > { %v5407_v0 = vadd.f32 %v5406_v63, %v5294_v59 }
 0x8ec   : > { %5551 = vxpose.xlu0.b32.cont [12/16] (narrow) %v11612_v45, 32 }
 0x8ed   : > { %v5520_v55 = vadd.f32 %v5519_v35, %v5407_v0 }
 0x8ee   : > { %v5183_v21 = vpop.f32.mrf.mxu2  ;;  %v5296_v7 = vpop.f32.mrf.mxu3 }
 0x8ef   : > { %v5184_v18 = vadd.f32 %v5183_v21, %v12912_v37  ;;  %5581 = vxpose.xlu2.b32.cont [10/16] (narrow) %v5520_v55, 32  ;;  %v5528_v51 = vpop.f32.mrf.mxu1  ;;  %v6971_v21 = vld [vmem:[%s7303_s9 + $0x20] sm:$0xff]  ;;  %v6972_v37 = vld [vmem:[%s7303_s9 + $0x30] sm:$0xff] }
 0x8f0   : > { %5310 = vmatmul.f32.gmra.mxu3 %v4827_v19  ;;  %5420 = vmatmul.f32.gmra.mxu0 %v12913_v14 }
 0x8f1   : > { %v5297_v39 = vadd.f32 %v5296_v7, %v5184_v18 }
 0x8f3   : > { %v5410_v12 = vadd.f32 %v5409_v47, %v5297_v39  ;;  %v6973_v39 = vld [vmem:[%s7303_s9 + $0x8] sm:$0xff] }
 0x8f4   : > { %5552 = vxpose.xlu0.b32.cont [13/16] (narrow) %v11636_v26, 32 }
 0x8f5   : > { %v5523_v11 = vadd.f32 %v5522_v42, %v5410_v12  ;;  %v6974_v12 = vld [vmem:[%s7303_s9 + $0x18] sm:$0xff] }
 0x8f6   : > { %v5186_v45 = vpop.f32.mrf.mxu2  ;;  %v5299_v13 = vpop.f32.mrf.mxu3 }
 0x8f7   : > { %v5187_v57 = vadd.f32 %v5186_v45, %v12914_v54  ;;  %5582 = vxpose.xlu2.b32.cont [11/16] (narrow) %v5523_v11, 32  ;;  %v5531_v17 = vpop.f32.mrf.mxu1  ;;  %v6975_v54 = vld [vmem:[%s7303_s9 + $0x28] sm:$0xff] }
 0x8f8   : > { %5423 = vmatmul.f32.gmra.mxu0 %v12915_v40  ;;  %v6976_v40 = vld [vmem:[%s7303_s9 + $0x38] sm:$0xff] }
 0x8f9   : > { %v5300_v20 = vadd.f32 %v5299_v13, %v5187_v57 }
 0x8fb   : > { %v5413_v27 = vadd.f32 %v5412_v15, %v5300_v20 }
 0x8fc   : > { %5553 = vxpose.xlu0.b32.cont [14/16] (narrow) %v11653_v28, 32 }
 0x8fd   : > { %v5526_v8 = vadd.f32 %v5525_v36, %v5413_v27 }
 0x8fe   : > { %v5189_v26 = vpop.f32.mrf.mxu2  ;;  %v5302_v29 = vpop.f32.mrf.mxu3 }
 0x8ff   : > { %5583 = vxpose.xlu2.b32.cont [12/16] (narrow) %v5526_v8, 32  ;;  %v5190_v48 = vadd.f32 %v5189_v26, %v12916_v44  ;;  %v5534_v61 = vpop.f32.mrf.mxu1 }
 0x901   : > { %v5303_v1 = vadd.f32 %v5302_v29, %v5190_v48 }
 0x904   : > { %5554 = vxpose.xlu0.b32.cont [15/16] (narrow) %v11663_v38, 32  ;;  %v12917_v38 = vld [vmem:[#allocation53_spill] sm:$0xff] }
 0x906   : > { %v5192_v31 = vpop.f32.mrf.mxu2  ;;  %v5305_v53 = vpop.f32.mrf.mxu3 }
 0x907   : > { %v5537_v23 = vpop.f32.mrf.mxu1 }
 0x90c   : > { %5555 = vxpose.xlu0.b32.end [16/16] (narrow) %v11674_v32, 32  ;;  %v5193_v32 = vadd.f32 %v5192_v31, %v12917_v38 }
 0x90e   : > { %v5306_v4 = vadd.f32 %v5305_v53, %v5193_v32 }
 0x938   : > { %v5556_v28 = vpop.trf.xlu0 }
 0x939   : > { %v5604_v43 = vadd.f32 %v6969_v60, %v5556_v28 }
 0x93b   : > { %5612 = vst [vmem:[%s11754_s29] sm:$0xff] %v5604_v43 }
 0x940   : > { %v5557_v63 = vpop.trf.xlu0 }
 0x941   : > { %v5606_v0 = vadd.f32 %v6970_v41, %v5557_v63 }
 0x943   : > { %5614 = vst [vmem:[%s11754_s29 + $0x10] sm:$0xff] %v5606_v0 }
 0x948   : > { %v5558_v55 = vpop.trf.xlu0 }
 0x949   : > { %v5608_v7 = vadd.f32 %v6971_v21, %v5558_v55 }
 0x94b   : > { %5616 = vst [vmem:[%s11754_s29 + $0x20] sm:$0xff] %v5608_v7 }
 0x94d   : > { %v5415_v62 = vpop.f32.mrf.mxu0 }
 0x94e   : > { %v5416_v3 = vadd.f32 %v5415_v62, %v5303_v1 }
 0x950   : > { %v5529_v6 = vadd.f32 %v5528_v51, %v5416_v3  ;;  %v5559_v19 = vpop.trf.xlu0 }
 0x951   : > { %v5610_v18 = vadd.f32 %v6972_v37, %v5559_v19 }
 0x952   : > { %5584 = vxpose.xlu2.b32.cont [13/16] (narrow) %v5529_v6, 32 }
 0x953   : > { %v5195_v52 = vpop.f32.mrf.mxu2  ;;  %5618 = vst [vmem:[%s11754_s29 + $0x30] sm:$0xff] %v5610_v18 }
 0x954   : > { %v5196_v33 = vadd.f32 %v5195_v52, %v12918_v25 }
 0x95b   : > { %v5198_v49 = vpop.f32.mrf.mxu2 }
 0x95c   : > { %v5199_v9 = vadd.f32 %v5198_v49, %v12919_v10 }
 0x965   : > { %v5418_v46 = vpop.f32.mrf.mxu0 }
 0x966   : > { %v5419_v16 = vadd.f32 %v5418_v46, %v5306_v4 }
 0x968   : > { %v5532_v56 = vadd.f32 %v5531_v17, %v5419_v16 }
 0x96a   : > { %5585 = vxpose.xlu2.b32.cont [14/16] (narrow) %v5532_v56, 32 }
 0x96b   : > { %v5308_v50 = vpop.f32.mrf.mxu3 }
 0x96c   : > { %v5309_v5 = vadd.f32 %v5308_v50, %v5196_v33 }
 0x96d   : > { %v5421_v2 = vpop.f32.mrf.mxu0 }
 0x96e   : > { %v5422_v24 = vadd.f32 %v5421_v2, %v5309_v5 }
 0x970   : > { %v5535_v30 = vadd.f32 %v5534_v61, %v5422_v24 }
 0x972   : > { %5586 = vxpose.xlu2.b32.cont [15/16] (narrow) %v5535_v30, 32 }
 0x973   : > { %v5311_v22 = vpop.f32.mrf.mxu3 }
 0x974   : > { %v5312_v34 = vadd.f32 %v5311_v22, %v5199_v9 }
 0x975   : > { %v5424_v58 = vpop.f32.mrf.mxu0 }
 0x976   : > { %v5425_v35 = vadd.f32 %v5424_v58, %v5312_v34 }
 0x978   : > { %v5538_v59 = vadd.f32 %v5537_v23, %v5425_v35 }
 0x97a   : > { %5587 = vxpose.xlu2.b32.end [16/16] (narrow) %v5538_v59, 32 }
 0x99b   : > { %v5588_v14 = vpop.trf.xlu2 }
 0x99c   : > { %v5605_v47 = vadd.f32 %v6973_v39, %v5588_v14 }
 0x99e   : > { %5613 = vst [vmem:[%s11754_s29 + $0x8] sm:$0xff] %v5605_v47 }
 0x9a3   : > { %v5589_v42 = vpop.trf.xlu2 }
 0x9a4   : > { %v5607_v11 = vadd.f32 %v6974_v12, %v5589_v42 }
 0x9a6   : > { %5615 = vst [vmem:[%s11754_s29 + $0x18] sm:$0xff] %v5607_v11 }
 0x9ab   : > { %v5590_v45 = vpop.trf.xlu2 }
 0x9ac   : > { %v5609_v57 = vadd.f32 %v6975_v54, %v5590_v45 }
 0x9ae   : > { %5617 = vst [vmem:[%s11754_s29 + $0x28] sm:$0xff] %v5609_v57 }
 0x9b3   : > { %v5591_v13 = vpop.trf.xlu2 }
 0x9b4   : > { %v5611_v20 = vadd.f32 %v6976_v40, %v5591_v13 }
 0x9b6   : > { %5619 = vst [vmem:[%s11754_s29 + $0x38] sm:$0xff] %v5611_v20 }
 0x9b7   : > { %7079 = shalt.err (!%p7076_p9)
}
 0x9b8   : > { %s7142_s25 = smov 256  }
 0x9b9   : > { %5954 = dma.vmem_to_hbm [thread:$0]  (%p7245_p11), %s5634_s28, 1024, %s5636_s30, %s5621_s20, %s7142_s25, %s7142_s25, %s7135_s26  }
 0x9ba PF: > { %s12921_s9 = sld [smem:[#allocation14_spill]]  ;;  %p12923_p10 = scmp.ge.s32.totalorder %s7126_s12, 2 }
 0x9bc   : > { %p5968_p1 = pnand %p12923_p10, %p7249_p12 }
 0x9be   : > { %p5969_p2 = pneg %p5968_p1 }
 0x9c0   : > { %s5650_s29 = sand.u32 1, %s12921_s9  }
 0x9c1   : > { %s5651_s27 = scalar_lea.sflag [#allocation4], %s5650_s29 }
 0x9c2   : > { %7109 = dma.done.wait (%p5969_p2), %s5651_s27, 1024  }
 0x9c3   : > { %7111 = vsyncadd (%p5969_p2), %s5651_s27, 4294966272  ;;  %s12924_s12 = sld [smem:[#allocation15_spill]]  ;;  %s12926_s30 = smov %s7118_s10 }
 0x9c4   : > { %s12925_s24 = sld [smem:[#allocation16_spill]]  ;;  %s12927_s10 = smov %s7122_s11 }
 0x9c9   : > { %p24_p3 = scmp.ge.s32.totalorder %s12924_s12, 4  }
 0x9ca   : > { %s12928_s11 = smov %s12925_s24 }
 0x9cb   :  { %26 = sbr.rel (!%p24_p3) target bundleno = 11 (0xb), region = 113 }
 0x9d0   :  { %5657 = vsyncpa [#allocation3], 1 }
 0x9d1   :  { %5659 = vsyncpa [#allocation3 + $0x1], 1 }
 0x9d2   :  { %5660 = vsyncpa [#allocation8], 1 }
 0x9d3   :  { %5661 = vsyncpa [#allocation4], 1 }
 0x9d4   :  { %5663 = vsyncpa [#allocation4 + $0x1], 1 }
 0x9d5   :  { %5664 = vsyncpa [#allocation5], 1 }
 0x9d6   :  { %5666 = vsyncpa [#allocation5 + $0x1], 1 }

</bundles_post_ra>
